<compile_context>
chip_gen: v7x
topology: tpu7x:2x2x1
jax: 0.10.0
libtpu: 0.0.40
codegen_flags: <defaults>
</compile_context>

<pallas_src>
import jax
import jax.numpy as jnp
from jax.experimental import pallas as pl
from jax.experimental.pallas import tpu as pltpu

# ---------------- small synthetic config (shapes implied by the module) -----
B = 2            # batch of image slices
C = 3            # pixel channels
IMG = 16         # image height/width
P = 4            # patch size
G = IMG // P     # patch grid side   -> 4
L = G * G        # vision seq len    -> 16
K = C * P * P    # flattened patch   -> 48

D = 32           # vision hidden size
NH = 4           # vision attention heads
HD = D // NH     # head dim -> 8
MLP = 64         # vision MLP intermediate
NUM_LAYERS = 2   # encoder layers

DE = 64          # resampler embed dim (LLM hidden)
RH = 4           # resampler heads
RHD = DE // RH   # -> 16
NQ = 8           # number of learned queries

VIT_EPS = 1e-6   # SigLIP layernorm eps
RS_EPS = 1e-5    # torch.nn.LayerNorm default eps (resampler)


# ---------------- shared in-kernel helpers ----------------------------------
def _layer_norm(x, g, b, eps):
  mu = jnp.mean(x, axis=-1, keepdims=True)
  var = jnp.mean((x - mu) ** 2, axis=-1, keepdims=True)
  return (x - mu) * jax.lax.rsqrt(var + eps) * g + b


def _softmax_lastdim(s):
  m = jnp.max(s, axis=-1, keepdims=True)
  e = jnp.exp(s - m)
  return e * pl.reciprocal(jnp.sum(e, axis=-1, keepdims=True), approx=True)


def _mha(q, k, v, num_heads, head_dim):
  """Head-batched scaled-dot attention on already-projected 2-D q/k/v.

  One batched contraction per stage (heads = leading batch dim); no per-head
  loop, no per-head transpose, no lane-axis concatenate.
  """
  lq, lk = q.shape[0], k.shape[0]
  scale = head_dim ** -0.5
  qh = jnp.swapaxes((q * scale).reshape(lq, num_heads, head_dim), 0, 1)
  kh = jnp.swapaxes(k.reshape(lk, num_heads, head_dim), 0, 1)
  vh = jnp.swapaxes(v.reshape(lk, num_heads, head_dim), 0, 1)
  s = jnp.einsum('hqd,hkd->hqk', qh, kh, preferred_element_type=jnp.float32)
  p = _softmax_lastdim(s)
  ctx = jnp.einsum('hqk,hkd->hqd', p, vh, preferred_element_type=jnp.float32)
  return jnp.swapaxes(ctx, 0, 1).reshape(lq, num_heads * head_dim)


# ---------------- the single fused kernel ------------------------------------
def fused_vit_kernel(
    patches_ref, pw_ref, pbias_ref,
    # stacked encoder weights, leading axis = layer
    ln1g_ref, ln1b_ref, wq_ref, bq_ref, wk_ref, bk_ref, wv_ref, bv_ref,
    wo_ref, bo_ref, ln2g_ref, ln2b_ref, w1_ref, b1_ref, w2_ref, b2_ref,
    # post_layernorm + resampler
    postg_ref, postb_ref,
    rpos_ref, wkv_ref, lnkvg_ref, lnkvb_ref, query_ref, lnqg_ref, lnqb_ref,
    rwq_ref, rbq_ref, rwk_ref, rbk_ref, rwv_ref, rbv_ref, rwo_ref, rbo_ref,
    lnpg_ref, lnpb_ref, proj_ref,
    o_ref):
  # ---- 1. patch embedding (conv2d-as-matmul) + fused bias/pos embedding ----
  x = patches_ref[...].reshape(B * L, K)
  h = jnp.dot(x, pw_ref[...], preferred_element_type=jnp.float32)     # (B*L, D)
  h = (h.reshape(B, L, D) + pbias_ref[...]).reshape(B * L, D)

  # ---- 2. SigLIP encoder layers (pre-LN MHA + tanh-GELU MLP) ----
  for l in range(NUM_LAYERS):            # NUM_LAYERS is tiny -> fully unrolled
    hn = _layer_norm(h, ln1g_ref[l], ln1b_ref[l], VIT_EPS)
    q = jnp.dot(hn, wq_ref[l], preferred_element_type=jnp.float32) + bq_ref[l]
    k = jnp.dot(hn, wk_ref[l], preferred_element_type=jnp.float32) + bk_ref[l]
    v = jnp.dot(hn, wv_ref[l], preferred_element_type=jnp.float32) + bv_ref[l]
    ctx = jnp.concatenate(
        [_mha(q[b * L:(b + 1) * L], k[b * L:(b + 1) * L],
              v[b * L:(b + 1) * L], NH, HD) for b in range(B)],
        axis=0)                                                        # (B*L, D)
    h = h + (jnp.dot(ctx, wo_ref[l], preferred_element_type=jnp.float32)
             + bo_ref[l])
    hn = _layer_norm(h, ln2g_ref[l], ln2b_ref[l], VIT_EPS)
    m = jnp.dot(hn, w1_ref[l], preferred_element_type=jnp.float32) + b1_ref[l]
    m = jax.nn.gelu(m, approximate=True)          # gelu_pytorch_tanh
    h = h + (jnp.dot(m, w2_ref[l], preferred_element_type=jnp.float32)
             + b2_ref[l])

  # ---- 3. vpm.post_layernorm + resampler (cross-attn with learned queries) --
  xh = _layer_norm(h, postg_ref[...], postb_ref[...], VIT_EPS)
  kv = jnp.dot(xh, wkv_ref[...], preferred_element_type=jnp.float32)  # kv_proj
  kv = _layer_norm(kv, lnkvg_ref[...], lnkvb_ref[...], RS_EPS)        # ln_kv
  key_in = (kv.reshape(B, L, DE) + rpos_ref[...]).reshape(B * L, DE)  # keys+pos
  q_in = _layer_norm(query_ref[...], lnqg_ref[...], lnqb_ref[...], RS_EPS)
  # nn.MultiheadAttention in-projections (queries are batch-independent)
  qp = jnp.dot(q_in, rwq_ref[...], preferred_element_type=jnp.float32) + rbq_ref[...]
  kp = jnp.dot(key_in, rwk_ref[...], preferred_element_type=jnp.float32) + rbk_ref[...]
  vp = jnp.dot(kv, rwv_ref[...], preferred_element_type=jnp.float32) + rbv_ref[...]
  ctx = jnp.concatenate(
      [_mha(qp, kp[b * L:(b + 1) * L], vp[b * L:(b + 1) * L], RH, RHD)
       for b in range(B)],
      axis=0)                                                         # (B*NQ, DE)
  out = jnp.dot(ctx, rwo_ref[...], preferred_element_type=jnp.float32) + rbo_ref[...]
  out = _layer_norm(out, lnpg_ref[...], lnpb_ref[...], RS_EPS)        # ln_post
  out = jnp.dot(out, proj_ref[...], preferred_element_type=jnp.float32)
  o_ref[...] = out.reshape(B, NQ, DE)


# ---------------- pallas_call wrapper ----------------------------------------
def _full_spec(a):
  nd = a.ndim
  return pl.BlockSpec(a.shape, lambda i, _nd=nd: (0,) * _nd)


_PARAM_ORDER = [
    "e_ln1_g", "e_ln1_b", "e_wq", "e_bq", "e_wk", "e_bk", "e_wv", "e_bv",
    "e_wo", "e_bo", "e_ln2_g", "e_ln2_b", "e_w1", "e_b1", "e_w2", "e_b2",
    "post_g", "post_b",
    "r_pos_embed", "r_wkv", "r_lnkv_g", "r_lnkv_b", "r_query", "r_lnq_g",
    "r_lnq_b", "r_wq", "r_bq", "r_wk", "r_bk", "r_wv", "r_bv", "r_wo", "r_bo",
    "r_lnp_g", "r_lnp_b", "r_proj",
]


def im2col(pixel_values):
  # NCHW -> (B, L, C*P*P) with (c, ph, pw) flattening order (matches conv2d).
  b_, c_, h_, w_ = pixel_values.shape
  x = pixel_values.reshape(b_, c_, h_ // P, P, w_ // P, P)
  x = jnp.transpose(x, (0, 2, 4, 1, 3, 5))
  return x.reshape(b_, (h_ // P) * (w_ // P), c_ * P * P)


@jax.jit
def vision_transformer_forward(pixel_values, params):
  patches = im2col(pixel_values.astype(jnp.float32))
  # position_ids is a tiled arange (fixed square image path), so the gathered
  # position embedding is identical for every batch row: fold it into the
  # patch bias once, outside the kernel, and drop the per-token pos stream.
  pbias = params["patch_b"] + params["pos_table"][params["position_ids"][0]]  # (L, D)
  inputs = [patches, params["patch_w"], pbias] + [params[n] for n in _PARAM_ORDER]
  return pl.pallas_call(
      fused_vit_kernel,
      out_shape=jax.ShapeDtypeStruct((B, NQ, DE), jnp.float32),
      grid=(1,),  # everything fits in VMEM; one step, no HBM round trips
      in_specs=[_full_spec(a) for a in inputs],
      out_specs=pl.BlockSpec((B, NQ, DE), lambda i: (0, 0, 0)),
      compiler_params=pltpu.CompilerParams(dimension_semantics=("arbitrary",)),
  )(*inputs)


# ---------------- deterministic parameter construction -----------------------
def _sincos_1d(dim, pos):
  omega = jnp.arange(dim // 2, dtype=jnp.float32) / (dim / 2.0)
  omega = 1.0 / (10000.0 ** omega)
  out = pos[:, None].astype(jnp.float32) * omega[None, :]
  return jnp.concatenate([jnp.sin(out), jnp.cos(out)], axis=1)


def _sincos_2d(dim, gh, gw):
  gy, gx = jnp.meshgrid(jnp.arange(gh), jnp.arange(gw), indexing="ij")
  emb_h = _sincos_1d(dim // 2, gy.reshape(-1))
  emb_w = _sincos_1d(dim // 2, gx.reshape(-1))
  return jnp.concatenate([emb_h, emb_w], axis=1)                # (gh*gw, dim)


def init_params(key):
  keys = list(jax.random.split(key, 64))
  it = iter(keys)

  def rnd(shape, scale=0.02):
    return (scale * jax.random.normal(next(it), shape)).astype(jnp.float32)

  ones = lambda s: jnp.ones(s, jnp.float32)
  zeros = lambda s: jnp.zeros(s, jnp.float32)

  p = {
      # vpm.embeddings
      "patch_w": rnd((K, D)),
      "patch_b": rnd((1, D)),
      "pos_table": rnd((L, D)),
      "position_ids": jnp.tile(jnp.arange(L, dtype=jnp.int32)[None], (B, 1)),
      # vpm.encoder — per-layer weights stacked on a leading layer axis
      "e_ln1_g": ones((NUM_LAYERS, 1, D)), "e_ln1_b": zeros((NUM_LAYERS, 1, D)),
      "e_wq": rnd((NUM_LAYERS, D, D)), "e_bq": rnd((NUM_LAYERS, 1, D)),
      "e_wk": rnd((NUM_LAYERS, D, D)), "e_bk": rnd((NUM_LAYERS, 1, D)),
      "e_wv": rnd((NUM_LAYERS, D, D)), "e_bv": rnd((NUM_LAYERS, 1, D)),
      "e_wo": rnd((NUM_LAYERS, D, D)), "e_bo": rnd((NUM_LAYERS, 1, D)),
      "e_ln2_g": ones((NUM_LAYERS, 1, D)), "e_ln2_b": zeros((NUM_LAYERS, 1, D)),
      "e_w1": rnd((NUM_LAYERS, D, MLP)), "e_b1": rnd((NUM_LAYERS, 1, MLP)),
      "e_w2": rnd((NUM_LAYERS, MLP, D)), "e_b2": rnd((NUM_LAYERS, 1, D)),
      # vpm.post_layernorm
      "post_g": ones((1, D)), "post_b": zeros((1, D)),
      # resampler
      "r_query": rnd((NQ, DE)),
      "r_wkv": rnd((D, DE)),
      "r_lnkv_g": ones((1, DE)), "r_lnkv_b": zeros((1, DE)),
      "r_lnq_g": ones((1, DE)), "r_lnq_b": zeros((1, DE)),
      "r_wq": rnd((DE, DE)), "r_bq": rnd((1, DE)),
      "r_wk": rnd((DE, DE)), "r_bk": rnd((1, DE)),
      "r_wv": rnd((DE, DE)), "r_bv": rnd((1, DE)),
      "r_wo": rnd((DE, DE)), "r_bo": rnd((1, DE)),
      "r_lnp_g": ones((1, DE)), "r_lnp_b": zeros((1, DE)),
      "r_proj": rnd((DE, DE), scale=DE ** -0.5),
      "r_pos_embed": _sincos_2d(DE, G, G),                      # (L, DE)
  }
  return p
  # TODO(synk): MiniCPM-V's variable tgt_sizes / key_padding_mask path is not
  # modeled; fixed square images are assumed so no padding mask is needed and
  # the position-id gather is an identity fold into the patch bias.


# ---------------- main --------------------------------------------------------
if __name__ == "__main__":
  key = jax.random.PRNGKey(0)
  k_img, k_par = jax.random.split(key)
  pixel_values = jax.random.normal(k_img, (B, C, IMG, IMG), jnp.float32)  # NCHW
  params = init_params(k_par)

  out = vision_transformer_forward(pixel_values, params)
  out = jax.block_until_ready(out)
  assert out.shape == (B, NQ, DE) and out.dtype == jnp.float32
  assert bool(jnp.all(jnp.isfinite(out)))
  print("KERNEL_OK")
</pallas_src>

<mosaic_0001>
module attributes {stable_mosaic.version = 11 : i64} {
  func.func @fused_vit_kernel(%arg0: i32, %arg1: memref<2x16x48xf32, #tpu.memory_space<vmem>>, %arg2: memref<48x32xf32, #tpu.memory_space<vmem>>, %arg3: memref<16x32xf32, #tpu.memory_space<vmem>>, %arg4: memref<2x1x32xf32, #tpu.memory_space<vmem>>, %arg5: memref<2x1x32xf32, #tpu.memory_space<vmem>>, %arg6: memref<2x32x32xf32, #tpu.memory_space<vmem>>, %arg7: memref<2x1x32xf32, #tpu.memory_space<vmem>>, %arg8: memref<2x32x32xf32, #tpu.memory_space<vmem>>, %arg9: memref<2x1x32xf32, #tpu.memory_space<vmem>>, %arg10: memref<2x32x32xf32, #tpu.memory_space<vmem>>, %arg11: memref<2x1x32xf32, #tpu.memory_space<vmem>>, %arg12: memref<2x32x32xf32, #tpu.memory_space<vmem>>, %arg13: memref<2x1x32xf32, #tpu.memory_space<vmem>>, %arg14: memref<2x1x32xf32, #tpu.memory_space<vmem>>, %arg15: memref<2x1x32xf32, #tpu.memory_space<vmem>>, %arg16: memref<2x32x64xf32, #tpu.memory_space<vmem>>, %arg17: memref<2x1x64xf32, #tpu.memory_space<vmem>>, %arg18: memref<2x64x32xf32, #tpu.memory_space<vmem>>, %arg19: memref<2x1x32xf32, #tpu.memory_space<vmem>>, %arg20: memref<1x32xf32, #tpu.memory_space<vmem>>, %arg21: memref<1x32xf32, #tpu.memory_space<vmem>>, %arg22: memref<16x64xf32, #tpu.memory_space<vmem>>, %arg23: memref<32x64xf32, #tpu.memory_space<vmem>>, %arg24: memref<1x64xf32, #tpu.memory_space<vmem>>, %arg25: memref<1x64xf32, #tpu.memory_space<vmem>>, %arg26: memref<8x64xf32, #tpu.memory_space<vmem>>, %arg27: memref<1x64xf32, #tpu.memory_space<vmem>>, %arg28: memref<1x64xf32, #tpu.memory_space<vmem>>, %arg29: memref<64x64xf32, #tpu.memory_space<vmem>>, %arg30: memref<1x64xf32, #tpu.memory_space<vmem>>, %arg31: memref<64x64xf32, #tpu.memory_space<vmem>>, %arg32: memref<1x64xf32, #tpu.memory_space<vmem>>, %arg33: memref<64x64xf32, #tpu.memory_space<vmem>>, %arg34: memref<1x64xf32, #tpu.memory_space<vmem>>, %arg35: memref<64x64xf32, #tpu.memory_space<vmem>>, %arg36: memref<1x64xf32, #tpu.memory_space<vmem>>, %arg37: memref<1x64xf32, #tpu.memory_space<vmem>>, %arg38: memref<1x64xf32, #tpu.memory_space<vmem>>, %arg39: memref<64x64xf32, #tpu.memory_space<vmem>>, %arg40: memref<2x8x64xf32, #tpu.memory_space<vmem>>) attributes {dimension_semantics = [#tpu.dimension_semantics<arbitrary>], iteration_bounds = array<i64: 1>, scalar_prefetch = 0 : i64, scratch_operands = 0 : i64, tpu.core_type = #tpu.core_type<tc>, window_params = [{pipeline_mode = #tpu.pipeline_mode<synchronous>, transform_indices = @transform_0, window_bounds = array<i64: 2, 16, 48>}, {pipeline_mode = #tpu.pipeline_mode<synchronous>, transform_indices = @transform_1, window_bounds = array<i64: 48, 32>}, {pipeline_mode = #tpu.pipeline_mode<synchronous>, transform_indices = @transform_2, window_bounds = array<i64: 16, 32>}, {pipeline_mode = #tpu.pipeline_mode<synchronous>, transform_indices = @transform_3, window_bounds = array<i64: 2, 1, 32>}, {pipeline_mode = #tpu.pipeline_mode<synchronous>, transform_indices = @transform_4, window_bounds = array<i64: 2, 1, 32>}, {pipeline_mode = #tpu.pipeline_mode<synchronous>, transform_indices = @transform_5, window_bounds = array<i64: 2, 32, 32>}, {pipeline_mode = #tpu.pipeline_mode<synchronous>, transform_indices = @transform_6, window_bounds = array<i64: 2, 1, 32>}, {pipeline_mode = #tpu.pipeline_mode<synchronous>, transform_indices = @transform_7, window_bounds = array<i64: 2, 32, 32>}, {pipeline_mode = #tpu.pipeline_mode<synchronous>, transform_indices = @transform_8, window_bounds = array<i64: 2, 1, 32>}, {pipeline_mode = #tpu.pipeline_mode<synchronous>, transform_indices = @transform_9, window_bounds = array<i64: 2, 32, 32>}, {pipeline_mode = #tpu.pipeline_mode<synchronous>, transform_indices = @transform_10, window_bounds = array<i64: 2, 1, 32>}, {pipeline_mode = #tpu.pipeline_mode<synchronous>, transform_indices = @transform_11, window_bounds = array<i64: 2, 32, 32>}, {pipeline_mode = #tpu.pipeline_mode<synchronous>, transform_indices = @transform_12, window_bounds = array<i64: 2, 1, 32>}, {pipeline_mode = #tpu.pipeline_mode<synchronous>, transform_indices = @transform_13, window_bounds = array<i64: 2, 1, 32>}, {pipeline_mode = #tpu.pipeline_mode<synchronous>, transform_indices = @transform_14, window_bounds = array<i64: 2, 1, 32>}, {pipeline_mode = #tpu.pipeline_mode<synchronous>, transform_indices = @transform_15, window_bounds = array<i64: 2, 32, 64>}, {pipeline_mode = #tpu.pipeline_mode<synchronous>, transform_indices = @transform_16, window_bounds = array<i64: 2, 1, 64>}, {pipeline_mode = #tpu.pipeline_mode<synchronous>, transform_indices = @transform_17, window_bounds = array<i64: 2, 64, 32>}, {pipeline_mode = #tpu.pipeline_mode<synchronous>, transform_indices = @transform_18, window_bounds = array<i64: 2, 1, 32>}, {pipeline_mode = #tpu.pipeline_mode<synchronous>, transform_indices = @transform_19, window_bounds = array<i64: 1, 32>}, {pipeline_mode = #tpu.pipeline_mode<synchronous>, transform_indices = @transform_20, window_bounds = array<i64: 1, 32>}, {pipeline_mode = #tpu.pipeline_mode<synchronous>, transform_indices = @transform_21, window_bounds = array<i64: 16, 64>}, {pipeline_mode = #tpu.pipeline_mode<synchronous>, transform_indices = @transform_22, window_bounds = array<i64: 32, 64>}, {pipeline_mode = #tpu.pipeline_mode<synchronous>, transform_indices = @transform_23, window_bounds = array<i64: 1, 64>}, {pipeline_mode = #tpu.pipeline_mode<synchronous>, transform_indices = @transform_24, window_bounds = array<i64: 1, 64>}, {pipeline_mode = #tpu.pipeline_mode<synchronous>, transform_indices = @transform_25, window_bounds = array<i64: 8, 64>}, {pipeline_mode = #tpu.pipeline_mode<synchronous>, transform_indices = @transform_26, window_bounds = array<i64: 1, 64>}, {pipeline_mode = #tpu.pipeline_mode<synchronous>, transform_indices = @transform_27, window_bounds = array<i64: 1, 64>}, {pipeline_mode = #tpu.pipeline_mode<synchronous>, transform_indices = @transform_28, window_bounds = array<i64: 64, 64>}, {pipeline_mode = #tpu.pipeline_mode<synchronous>, transform_indices = @transform_29, window_bounds = array<i64: 1, 64>}, {pipeline_mode = #tpu.pipeline_mode<synchronous>, transform_indices = @transform_30, window_bounds = array<i64: 64, 64>}, {pipeline_mode = #tpu.pipeline_mode<synchronous>, transform_indices = @transform_31, window_bounds = array<i64: 1, 64>}, {pipeline_mode = #tpu.pipeline_mode<synchronous>, transform_indices = @transform_32, window_bounds = array<i64: 64, 64>}, {pipeline_mode = #tpu.pipeline_mode<synchronous>, transform_indices = @transform_33, window_bounds = array<i64: 1, 64>}, {pipeline_mode = #tpu.pipeline_mode<synchronous>, transform_indices = @transform_34, window_bounds = array<i64: 64, 64>}, {pipeline_mode = #tpu.pipeline_mode<synchronous>, transform_indices = @transform_35, window_bounds = array<i64: 1, 64>}, {pipeline_mode = #tpu.pipeline_mode<synchronous>, transform_indices = @transform_36, window_bounds = array<i64: 1, 64>}, {pipeline_mode = #tpu.pipeline_mode<synchronous>, transform_indices = @transform_37, window_bounds = array<i64: 1, 64>}, {pipeline_mode = #tpu.pipeline_mode<synchronous>, transform_indices = @transform_38, window_bounds = array<i64: 64, 64>}, {pipeline_mode = #tpu.pipeline_mode<synchronous>, transform_indices = @transform_39, window_bounds = array<i64: 2, 8, 64>}]} {
    %c0 = arith.constant 0 : index
    %c0_0 = arith.constant 0 : index
    %c0_1 = arith.constant 0 : index
    %0 = vector.load %arg1[%c0, %c0_0, %c0_1] : memref<2x16x48xf32, #tpu.memory_space<vmem>>, vector<2x16x48xf32>
    %1 = vector.shape_cast %0 : vector<2x16x48xf32> to vector<32x48xf32>
    %c0_2 = arith.constant 0 : index
    %c0_3 = arith.constant 0 : index
    %2 = vector.load %arg2[%c0_2, %c0_3] : memref<48x32xf32, #tpu.memory_space<vmem>>, vector<48x32xf32>
    %cst = arith.constant dense<0.000000e+00> : vector<32x32xf32>
    %3 = tpu.matmul %1, %2, %cst {dimension_numbers = #tpu.dot_dimension_numbers<[1], [0], [0], [1], [0, 0, 1, 1], [], []>} : vector<32x48xf32>, vector<48x32xf32>, vector<32x32xf32> -> vector<32x32xf32>
    %4 = vector.shape_cast %3 : vector<32x32xf32> to vector<2x16x32xf32>
    %c0_4 = arith.constant 0 : index
    %c0_5 = arith.constant 0 : index
    %5 = vector.load %arg3[%c0_4, %c0_5] : memref<16x32xf32, #tpu.memory_space<vmem>>, vector<16x32xf32>
    %6 = vector.shape_cast %5 : vector<16x32xf32> to vector<1x16x32xf32>
    %7 = vector.broadcast %6 : vector<1x16x32xf32> to vector<2x16x32xf32>
    %8 = arith.addf %4, %7 : vector<2x16x32xf32>
    %9 = vector.shape_cast %8 : vector<2x16x32xf32> to vector<32x32xf32>
    %c0_6 = arith.constant 0 : index
    %c0_7 = arith.constant 0 : index
    %c0_8 = arith.constant 0 : index
    %10 = vector.load %arg4[%c0_6, %c0_7, %c0_8] : memref<2x1x32xf32, #tpu.memory_space<vmem>>, vector<1x1x32xf32>
    %11 = vector.shape_cast %10 : vector<1x1x32xf32> to vector<1x32xf32>
    %c0_9 = arith.constant 0 : index
    %c0_10 = arith.constant 0 : index
    %c0_11 = arith.constant 0 : index
    %12 = vector.load %arg5[%c0_9, %c0_10, %c0_11] : memref<2x1x32xf32, #tpu.memory_space<vmem>>, vector<1x1x32xf32>
    %13 = vector.shape_cast %12 : vector<1x1x32xf32> to vector<1x32xf32>
    %cst_12 = arith.constant dense<0.000000e+00> : vector<32xf32>
    %14 = vector.multi_reduction <add>, %9, %cst_12 [1] : vector<32x32xf32> to vector<32xf32>
    %15 = vector.shape_cast %14 : vector<32xf32> to vector<32x1xf32>
    %cst_13 = arith.constant 3.200000e+01 : f32
    %16 = vector.broadcast %cst_13 : f32 to vector<32x1xf32>
    %17 = arith.divf %15, %16 : vector<32x1xf32>
    %18 = vector.broadcast %17 : vector<32x1xf32> to vector<32x32xf32>
    %19 = arith.subf %9, %18 : vector<32x32xf32>
    %20 = arith.mulf %19, %19 : vector<32x32xf32>
    %cst_14 = arith.constant dense<0.000000e+00> : vector<32xf32>
    %21 = vector.multi_reduction <add>, %20, %cst_14 [1] : vector<32x32xf32> to vector<32xf32>
    %22 = vector.shape_cast %21 : vector<32xf32> to vector<32x1xf32>
    %cst_15 = arith.constant 3.200000e+01 : f32
    %23 = vector.broadcast %cst_15 : f32 to vector<32x1xf32>
    %24 = arith.divf %22, %23 : vector<32x1xf32>
    %25 = vector.broadcast %17 : vector<32x1xf32> to vector<32x32xf32>
    %26 = arith.subf %9, %25 : vector<32x32xf32>
    %cst_16 = arith.constant 9.99999997E-7 : f32
    %27 = vector.broadcast %cst_16 : f32 to vector<32x1xf32>
    %28 = arith.addf %24, %27 : vector<32x1xf32>
    %29 = math.rsqrt %28 : vector<32x1xf32>
    %30 = vector.broadcast %29 : vector<32x1xf32> to vector<32x32xf32>
    %31 = arith.mulf %26, %30 : vector<32x32xf32>
    %32 = vector.broadcast %11 : vector<1x32xf32> to vector<32x32xf32>
    %33 = arith.mulf %31, %32 : vector<32x32xf32>
    %34 = vector.broadcast %13 : vector<1x32xf32> to vector<32x32xf32>
    %35 = arith.addf %33, %34 : vector<32x32xf32>
    %c0_17 = arith.constant 0 : index
    %c0_18 = arith.constant 0 : index
    %c0_19 = arith.constant 0 : index
    %36 = vector.load %arg6[%c0_17, %c0_18, %c0_19] : memref<2x32x32xf32, #tpu.memory_space<vmem>>, vector<1x32x32xf32>
    %37 = vector.shape_cast %36 : vector<1x32x32xf32> to vector<32x32xf32>
    %cst_20 = arith.constant dense<0.000000e+00> : vector<32x32xf32>
    %38 = tpu.matmul %35, %37, %cst_20 {dimension_numbers = #tpu.dot_dimension_numbers<[1], [0], [0], [1], [0, 0, 1, 1], [], []>} : vector<32x32xf32>, vector<32x32xf32>, vector<32x32xf32> -> vector<32x32xf32>
    %c0_21 = arith.constant 0 : index
    %c0_22 = arith.constant 0 : index
    %c0_23 = arith.constant 0 : index
    %39 = vector.load %arg7[%c0_21, %c0_22, %c0_23] : memref<2x1x32xf32, #tpu.memory_space<vmem>>, vector<1x1x32xf32>
    %40 = vector.shape_cast %39 : vector<1x1x32xf32> to vector<1x32xf32>
    %41 = vector.broadcast %40 : vector<1x32xf32> to vector<32x32xf32>
    %42 = arith.addf %38, %41 : vector<32x32xf32>
    %c0_24 = arith.constant 0 : index
    %c0_25 = arith.constant 0 : index
    %c0_26 = arith.constant 0 : index
    %43 = vector.load %arg8[%c0_24, %c0_25, %c0_26] : memref<2x32x32xf32, #tpu.memory_space<vmem>>, vector<1x32x32xf32>
    %44 = vector.shape_cast %43 : vector<1x32x32xf32> to vector<32x32xf32>
    %cst_27 = arith.constant dense<0.000000e+00> : vector<32x32xf32>
    %45 = tpu.matmul %35, %44, %cst_27 {dimension_numbers = #tpu.dot_dimension_numbers<[1], [0], [0], [1], [0, 0, 1, 1], [], []>} : vector<32x32xf32>, vector<32x32xf32>, vector<32x32xf32> -> vector<32x32xf32>
    %c0_28 = arith.constant 0 : index
    %c0_29 = arith.constant 0 : index
    %c0_30 = arith.constant 0 : index
    %46 = vector.load %arg9[%c0_28, %c0_29, %c0_30] : memref<2x1x32xf32, #tpu.memory_space<vmem>>, vector<1x1x32xf32>
    %47 = vector.shape_cast %46 : vector<1x1x32xf32> to vector<1x32xf32>
    %48 = vector.broadcast %47 : vector<1x32xf32> to vector<32x32xf32>
    %49 = arith.addf %45, %48 : vector<32x32xf32>
    %c0_31 = arith.constant 0 : index
    %c0_32 = arith.constant 0 : index
    %c0_33 = arith.constant 0 : index
    %50 = vector.load %arg10[%c0_31, %c0_32, %c0_33] : memref<2x32x32xf32, #tpu.memory_space<vmem>>, vector<1x32x32xf32>
    %51 = vector.shape_cast %50 : vector<1x32x32xf32> to vector<32x32xf32>
    %cst_34 = arith.constant dense<0.000000e+00> : vector<32x32xf32>
    %52 = tpu.matmul %35, %51, %cst_34 {dimension_numbers = #tpu.dot_dimension_numbers<[1], [0], [0], [1], [0, 0, 1, 1], [], []>} : vector<32x32xf32>, vector<32x32xf32>, vector<32x32xf32> -> vector<32x32xf32>
    %c0_35 = arith.constant 0 : index
    %c0_36 = arith.constant 0 : index
    %c0_37 = arith.constant 0 : index
    %53 = vector.load %arg11[%c0_35, %c0_36, %c0_37] : memref<2x1x32xf32, #tpu.memory_space<vmem>>, vector<1x1x32xf32>
    %54 = vector.shape_cast %53 : vector<1x1x32xf32> to vector<1x32xf32>
    %55 = vector.broadcast %54 : vector<1x32xf32> to vector<32x32xf32>
    %56 = arith.addf %52, %55 : vector<32x32xf32>
    %57 = vector.extract_strided_slice %42 {offsets = [0, 0], sizes = [16, 32], strides = [1, 1]} : vector<32x32xf32> to vector<16x32xf32>
    %58 = vector.extract_strided_slice %49 {offsets = [0, 0], sizes = [16, 32], strides = [1, 1]} : vector<32x32xf32> to vector<16x32xf32>
    %59 = vector.extract_strided_slice %56 {offsets = [0, 0], sizes = [16, 32], strides = [1, 1]} : vector<32x32xf32> to vector<16x32xf32>
    %cst_38 = arith.constant 0.353553385 : f32
    %60 = vector.broadcast %cst_38 : f32 to vector<16x32xf32>
    %61 = arith.mulf %57, %60 : vector<16x32xf32>
    %62 = vector.shape_cast %61 : vector<16x32xf32> to vector<16x4x8xf32>
    %63 = tpu.transpose %62, [1, 0, 2] : vector<16x4x8xf32> -> vector<4x16x8xf32>
    %64 = vector.shape_cast %58 : vector<16x32xf32> to vector<16x4x8xf32>
    %65 = tpu.transpose %64, [1, 0, 2] : vector<16x4x8xf32> -> vector<4x16x8xf32>
    %66 = vector.shape_cast %59 : vector<16x32xf32> to vector<16x4x8xf32>
    %67 = tpu.transpose %66, [1, 0, 2] : vector<16x4x8xf32> -> vector<4x16x8xf32>
    "tpu.trace_start"() <{level = 10 : i32, message = "hqd,hkd->hqk"}> : () -> ()
    %cst_39 = arith.constant dense<0.000000e+00> : vector<4x16x16xf32>
    %68 = tpu.matmul %63, %65, %cst_39 {dimension_numbers = #tpu.dot_dimension_numbers<[2], [2], [1], [1], [0, 0, 0, 1, 1, 1], [0], [0]>} : vector<4x16x8xf32>, vector<4x16x8xf32>, vector<4x16x16xf32> -> vector<4x16x16xf32>
    "tpu.trace_stop"() : () -> ()
    %cst_40 = arith.constant dense<0xFF800000> : vector<4x16xf32>
    %69 = vector.multi_reduction <maximumf>, %68, %cst_40 [2] : vector<4x16x16xf32> to vector<4x16xf32>
    %70 = vector.shape_cast %69 : vector<4x16xf32> to vector<4x16x1xf32>
    %71 = vector.broadcast %70 : vector<4x16x1xf32> to vector<4x16x16xf32>
    %72 = arith.subf %68, %71 : vector<4x16x16xf32>
    %73 = math.exp %72 : vector<4x16x16xf32>
    %cst_41 = arith.constant dense<0.000000e+00> : vector<4x16xf32>
    %74 = vector.multi_reduction <add>, %73, %cst_41 [2] : vector<4x16x16xf32> to vector<4x16xf32>
    %75 = vector.shape_cast %74 : vector<4x16xf32> to vector<4x16x1xf32>
    %76 = tpu.reciprocal %75 {approx = true} : vector<4x16x1xf32> -> vector<4x16x1xf32>
    %77 = vector.broadcast %76 : vector<4x16x1xf32> to vector<4x16x16xf32>
    %78 = arith.mulf %73, %77 : vector<4x16x16xf32>
    "tpu.trace_start"() <{level = 10 : i32, message = "hqk,hkd->hqd"}> : () -> ()
    %cst_42 = arith.constant dense<0.000000e+00> : vector<4x16x8xf32>
    %79 = tpu.matmul %78, %67, %cst_42 {dimension_numbers = #tpu.dot_dimension_numbers<[2], [1], [1], [2], [0, 0, 0, 1, 1, 2], [0], [0]>} : vector<4x16x16xf32>, vector<4x16x8xf32>, vector<4x16x8xf32> -> vector<4x16x8xf32>
    "tpu.trace_stop"() : () -> ()
    %80 = tpu.transpose %79, [1, 0, 2] : vector<4x16x8xf32> -> vector<16x4x8xf32>
    %81 = vector.shape_cast %80 : vector<16x4x8xf32> to vector<16x32xf32>
    %82 = vector.extract_strided_slice %42 {offsets = [16, 0], sizes = [16, 32], strides = [1, 1]} : vector<32x32xf32> to vector<16x32xf32>
    %83 = vector.extract_strided_slice %49 {offsets = [16, 0], sizes = [16, 32], strides = [1, 1]} : vector<32x32xf32> to vector<16x32xf32>
    %84 = vector.extract_strided_slice %56 {offsets = [16, 0], sizes = [16, 32], strides = [1, 1]} : vector<32x32xf32> to vector<16x32xf32>
    %cst_43 = arith.constant 0.353553385 : f32
    %85 = vector.broadcast %cst_43 : f32 to vector<16x32xf32>
    %86 = arith.mulf %82, %85 : vector<16x32xf32>
    %87 = vector.shape_cast %86 : vector<16x32xf32> to vector<16x4x8xf32>
    %88 = tpu.transpose %87, [1, 0, 2] : vector<16x4x8xf32> -> vector<4x16x8xf32>
    %89 = vector.shape_cast %83 : vector<16x32xf32> to vector<16x4x8xf32>
    %90 = tpu.transpose %89, [1, 0, 2] : vector<16x4x8xf32> -> vector<4x16x8xf32>
    %91 = vector.shape_cast %84 : vector<16x32xf32> to vector<16x4x8xf32>
    %92 = tpu.transpose %91, [1, 0, 2] : vector<16x4x8xf32> -> vector<4x16x8xf32>
    "tpu.trace_start"() <{level = 10 : i32, message = "hqd,hkd->hqk"}> : () -> ()
    %cst_44 = arith.constant dense<0.000000e+00> : vector<4x16x16xf32>
    %93 = tpu.matmul %88, %90, %cst_44 {dimension_numbers = #tpu.dot_dimension_numbers<[2], [2], [1], [1], [0, 0, 0, 1, 1, 1], [0], [0]>} : vector<4x16x8xf32>, vector<4x16x8xf32>, vector<4x16x16xf32> -> vector<4x16x16xf32>
    "tpu.trace_stop"() : () -> ()
    %cst_45 = arith.constant dense<0xFF800000> : vector<4x16xf32>
    %94 = vector.multi_reduction <maximumf>, %93, %cst_45 [2] : vector<4x16x16xf32> to vector<4x16xf32>
    %95 = vector.shape_cast %94 : vector<4x16xf32> to vector<4x16x1xf32>
    %96 = vector.broadcast %95 : vector<4x16x1xf32> to vector<4x16x16xf32>
    %97 = arith.subf %93, %96 : vector<4x16x16xf32>
    %98 = math.exp %97 : vector<4x16x16xf32>
    %cst_46 = arith.constant dense<0.000000e+00> : vector<4x16xf32>
    %99 = vector.multi_reduction <add>, %98, %cst_46 [2] : vector<4x16x16xf32> to vector<4x16xf32>
    %100 = vector.shape_cast %99 : vector<4x16xf32> to vector<4x16x1xf32>
    %101 = tpu.reciprocal %100 {approx = true} : vector<4x16x1xf32> -> vector<4x16x1xf32>
    %102 = vector.broadcast %101 : vector<4x16x1xf32> to vector<4x16x16xf32>
    %103 = arith.mulf %98, %102 : vector<4x16x16xf32>
    "tpu.trace_start"() <{level = 10 : i32, message = "hqk,hkd->hqd"}> : () -> ()
    %cst_47 = arith.constant dense<0.000000e+00> : vector<4x16x8xf32>
    %104 = tpu.matmul %103, %92, %cst_47 {dimension_numbers = #tpu.dot_dimension_numbers<[2], [1], [1], [2], [0, 0, 0, 1, 1, 2], [0], [0]>} : vector<4x16x16xf32>, vector<4x16x8xf32>, vector<4x16x8xf32> -> vector<4x16x8xf32>
    "tpu.trace_stop"() : () -> ()
    %105 = tpu.transpose %104, [1, 0, 2] : vector<4x16x8xf32> -> vector<16x4x8xf32>
    %106 = vector.shape_cast %105 : vector<16x4x8xf32> to vector<16x32xf32>
    %107 = tpu.concatenate %81, %106 in 0 : vector<16x32xf32>, vector<16x32xf32> -> vector<32x32xf32>
    %c0_48 = arith.constant 0 : index
    %c0_49 = arith.constant 0 : index
    %c0_50 = arith.constant 0 : index
    %108 = vector.load %arg12[%c0_48, %c0_49, %c0_50] : memref<2x32x32xf32, #tpu.memory_space<vmem>>, vector<1x32x32xf32>
    %109 = vector.shape_cast %108 : vector<1x32x32xf32> to vector<32x32xf32>
    %cst_51 = arith.constant dense<0.000000e+00> : vector<32x32xf32>
    %110 = tpu.matmul %107, %109, %cst_51 {dimension_numbers = #tpu.dot_dimension_numbers<[1], [0], [0], [1], [0, 0, 1, 1], [], []>} : vector<32x32xf32>, vector<32x32xf32>, vector<32x32xf32> -> vector<32x32xf32>
    %c0_52 = arith.constant 0 : index
    %c0_53 = arith.constant 0 : index
    %c0_54 = arith.constant 0 : index
    %111 = vector.load %arg13[%c0_52, %c0_53, %c0_54] : memref<2x1x32xf32, #tpu.memory_space<vmem>>, vector<1x1x32xf32>
    %112 = vector.shape_cast %111 : vector<1x1x32xf32> to vector<1x32xf32>
    %113 = vector.broadcast %112 : vector<1x32xf32> to vector<32x32xf32>
    %114 = arith.addf %110, %113 : vector<32x32xf32>
    %115 = arith.addf %9, %114 : vector<32x32xf32>
    %c0_55 = arith.constant 0 : index
    %c0_56 = arith.constant 0 : index
    %c0_57 = arith.constant 0 : index
    %116 = vector.load %arg14[%c0_55, %c0_56, %c0_57] : memref<2x1x32xf32, #tpu.memory_space<vmem>>, vector<1x1x32xf32>
    %117 = vector.shape_cast %116 : vector<1x1x32xf32> to vector<1x32xf32>
    %c0_58 = arith.constant 0 : index
    %c0_59 = arith.constant 0 : index
    %c0_60 = arith.constant 0 : index
    %118 = vector.load %arg15[%c0_58, %c0_59, %c0_60] : memref<2x1x32xf32, #tpu.memory_space<vmem>>, vector<1x1x32xf32>
    %119 = vector.shape_cast %118 : vector<1x1x32xf32> to vector<1x32xf32>
    %cst_61 = arith.constant dense<0.000000e+00> : vector<32xf32>
    %120 = vector.multi_reduction <add>, %115, %cst_61 [1] : vector<32x32xf32> to vector<32xf32>
    %121 = vector.shape_cast %120 : vector<32xf32> to vector<32x1xf32>
    %cst_62 = arith.constant 3.200000e+01 : f32
    %122 = vector.broadcast %cst_62 : f32 to vector<32x1xf32>
    %123 = arith.divf %121, %122 : vector<32x1xf32>
    %124 = vector.broadcast %123 : vector<32x1xf32> to vector<32x32xf32>
    %125 = arith.subf %115, %124 : vector<32x32xf32>
    %126 = arith.mulf %125, %125 : vector<32x32xf32>
    %cst_63 = arith.constant dense<0.000000e+00> : vector<32xf32>
    %127 = vector.multi_reduction <add>, %126, %cst_63 [1] : vector<32x32xf32> to vector<32xf32>
    %128 = vector.shape_cast %127 : vector<32xf32> to vector<32x1xf32>
    %cst_64 = arith.constant 3.200000e+01 : f32
    %129 = vector.broadcast %cst_64 : f32 to vector<32x1xf32>
    %130 = arith.divf %128, %129 : vector<32x1xf32>
    %131 = vector.broadcast %123 : vector<32x1xf32> to vector<32x32xf32>
    %132 = arith.subf %115, %131 : vector<32x32xf32>
    %cst_65 = arith.constant 9.99999997E-7 : f32
    %133 = vector.broadcast %cst_65 : f32 to vector<32x1xf32>
    %134 = arith.addf %130, %133 : vector<32x1xf32>
    %135 = math.rsqrt %134 : vector<32x1xf32>
    %136 = vector.broadcast %135 : vector<32x1xf32> to vector<32x32xf32>
    %137 = arith.mulf %132, %136 : vector<32x32xf32>
    %138 = vector.broadcast %117 : vector<1x32xf32> to vector<32x32xf32>
    %139 = arith.mulf %137, %138 : vector<32x32xf32>
    %140 = vector.broadcast %119 : vector<1x32xf32> to vector<32x32xf32>
    %141 = arith.addf %139, %140 : vector<32x32xf32>
    %c0_66 = arith.constant 0 : index
    %c0_67 = arith.constant 0 : index
    %c0_68 = arith.constant 0 : index
    %142 = vector.load %arg16[%c0_66, %c0_67, %c0_68] : memref<2x32x64xf32, #tpu.memory_space<vmem>>, vector<1x32x64xf32>
    %143 = vector.shape_cast %142 : vector<1x32x64xf32> to vector<32x64xf32>
    %cst_69 = arith.constant dense<0.000000e+00> : vector<32x64xf32>
    %144 = tpu.matmul %141, %143, %cst_69 {dimension_numbers = #tpu.dot_dimension_numbers<[1], [0], [0], [1], [0, 0, 1, 1], [], []>} : vector<32x32xf32>, vector<32x64xf32>, vector<32x64xf32> -> vector<32x64xf32>
    %c0_70 = arith.constant 0 : index
    %c0_71 = arith.constant 0 : index
    %c0_72 = arith.constant 0 : index
    %145 = vector.load %arg17[%c0_70, %c0_71, %c0_72] : memref<2x1x64xf32, #tpu.memory_space<vmem>>, vector<1x1x64xf32>
    %146 = vector.shape_cast %145 : vector<1x1x64xf32> to vector<1x64xf32>
    %147 = vector.broadcast %146 : vector<1x64xf32> to vector<32x64xf32>
    %148 = arith.addf %144, %147 : vector<32x64xf32>
    %149 = arith.mulf %148, %148 : vector<32x64xf32>
    %150 = arith.mulf %148, %149 : vector<32x64xf32>
    %cst_73 = arith.constant 4.471500e-02 : f32
    %151 = vector.broadcast %cst_73 : f32 to vector<32x64xf32>
    %152 = arith.mulf %151, %150 : vector<32x64xf32>
    %153 = arith.addf %148, %152 : vector<32x64xf32>
    %cst_74 = arith.constant 0.797884583 : f32
    %154 = vector.broadcast %cst_74 : f32 to vector<32x64xf32>
    %155 = arith.mulf %154, %153 : vector<32x64xf32>
    %156 = math.tanh %155 : vector<32x64xf32>
    %cst_75 = arith.constant 1.000000e+00 : f32
    %157 = vector.broadcast %cst_75 : f32 to vector<32x64xf32>
    %158 = arith.addf %157, %156 : vector<32x64xf32>
    %cst_76 = arith.constant 5.000000e-01 : f32
    %159 = vector.broadcast %cst_76 : f32 to vector<32x64xf32>
    %160 = arith.mulf %159, %158 : vector<32x64xf32>
    %161 = arith.mulf %148, %160 : vector<32x64xf32>
    %c0_77 = arith.constant 0 : index
    %c0_78 = arith.constant 0 : index
    %c0_79 = arith.constant 0 : index
    %162 = vector.load %arg18[%c0_77, %c0_78, %c0_79] : memref<2x64x32xf32, #tpu.memory_space<vmem>>, vector<1x64x32xf32>
    %163 = vector.shape_cast %162 : vector<1x64x32xf32> to vector<64x32xf32>
    %cst_80 = arith.constant dense<0.000000e+00> : vector<32x32xf32>
    %164 = tpu.matmul %161, %163, %cst_80 {dimension_numbers = #tpu.dot_dimension_numbers<[1], [0], [0], [1], [0, 0, 1, 1], [], []>} : vector<32x64xf32>, vector<64x32xf32>, vector<32x32xf32> -> vector<32x32xf32>
    %c0_81 = arith.constant 0 : index
    %c0_82 = arith.constant 0 : index
    %c0_83 = arith.constant 0 : index
    %165 = vector.load %arg19[%c0_81, %c0_82, %c0_83] : memref<2x1x32xf32, #tpu.memory_space<vmem>>, vector<1x1x32xf32>
    %166 = vector.shape_cast %165 : vector<1x1x32xf32> to vector<1x32xf32>
    %167 = vector.broadcast %166 : vector<1x32xf32> to vector<32x32xf32>
    %168 = arith.addf %164, %167 : vector<32x32xf32>
    %169 = arith.addf %115, %168 : vector<32x32xf32>
    %c1 = arith.constant 1 : index
    %c0_84 = arith.constant 0 : index
    %c0_85 = arith.constant 0 : index
    %170 = vector.load %arg4[%c1, %c0_84, %c0_85] : memref<2x1x32xf32, #tpu.memory_space<vmem>>, vector<1x1x32xf32>
    %171 = vector.shape_cast %170 : vector<1x1x32xf32> to vector<1x32xf32>
    %c1_86 = arith.constant 1 : index
    %c0_87 = arith.constant 0 : index
    %c0_88 = arith.constant 0 : index
    %172 = vector.load %arg5[%c1_86, %c0_87, %c0_88] : memref<2x1x32xf32, #tpu.memory_space<vmem>>, vector<1x1x32xf32>
    %173 = vector.shape_cast %172 : vector<1x1x32xf32> to vector<1x32xf32>
    %cst_89 = arith.constant dense<0.000000e+00> : vector<32xf32>
    %174 = vector.multi_reduction <add>, %169, %cst_89 [1] : vector<32x32xf32> to vector<32xf32>
    %175 = vector.shape_cast %174 : vector<32xf32> to vector<32x1xf32>
    %cst_90 = arith.constant 3.200000e+01 : f32
    %176 = vector.broadcast %cst_90 : f32 to vector<32x1xf32>
    %177 = arith.divf %175, %176 : vector<32x1xf32>
    %178 = vector.broadcast %177 : vector<32x1xf32> to vector<32x32xf32>
    %179 = arith.subf %169, %178 : vector<32x32xf32>
    %180 = arith.mulf %179, %179 : vector<32x32xf32>
    %cst_91 = arith.constant dense<0.000000e+00> : vector<32xf32>
    %181 = vector.multi_reduction <add>, %180, %cst_91 [1] : vector<32x32xf32> to vector<32xf32>
    %182 = vector.shape_cast %181 : vector<32xf32> to vector<32x1xf32>
    %cst_92 = arith.constant 3.200000e+01 : f32
    %183 = vector.broadcast %cst_92 : f32 to vector<32x1xf32>
    %184 = arith.divf %182, %183 : vector<32x1xf32>
    %185 = vector.broadcast %177 : vector<32x1xf32> to vector<32x32xf32>
    %186 = arith.subf %169, %185 : vector<32x32xf32>
    %cst_93 = arith.constant 9.99999997E-7 : f32
    %187 = vector.broadcast %cst_93 : f32 to vector<32x1xf32>
    %188 = arith.addf %184, %187 : vector<32x1xf32>
    %189 = math.rsqrt %188 : vector<32x1xf32>
    %190 = vector.broadcast %189 : vector<32x1xf32> to vector<32x32xf32>
    %191 = arith.mulf %186, %190 : vector<32x32xf32>
    %192 = vector.broadcast %171 : vector<1x32xf32> to vector<32x32xf32>
    %193 = arith.mulf %191, %192 : vector<32x32xf32>
    %194 = vector.broadcast %173 : vector<1x32xf32> to vector<32x32xf32>
    %195 = arith.addf %193, %194 : vector<32x32xf32>
    %c1_94 = arith.constant 1 : index
    %c0_95 = arith.constant 0 : index
    %c0_96 = arith.constant 0 : index
    %196 = vector.load %arg6[%c1_94, %c0_95, %c0_96] : memref<2x32x32xf32, #tpu.memory_space<vmem>>, vector<1x32x32xf32>
    %197 = vector.shape_cast %196 : vector<1x32x32xf32> to vector<32x32xf32>
    %cst_97 = arith.constant dense<0.000000e+00> : vector<32x32xf32>
    %198 = tpu.matmul %195, %197, %cst_97 {dimension_numbers = #tpu.dot_dimension_numbers<[1], [0], [0], [1], [0, 0, 1, 1], [], []>} : vector<32x32xf32>, vector<32x32xf32>, vector<32x32xf32> -> vector<32x32xf32>
    %c1_98 = arith.constant 1 : index
    %c0_99 = arith.constant 0 : index
    %c0_100 = arith.constant 0 : index
    %199 = vector.load %arg7[%c1_98, %c0_99, %c0_100] : memref<2x1x32xf32, #tpu.memory_space<vmem>>, vector<1x1x32xf32>
    %200 = vector.shape_cast %199 : vector<1x1x32xf32> to vector<1x32xf32>
    %201 = vector.broadcast %200 : vector<1x32xf32> to vector<32x32xf32>
    %202 = arith.addf %198, %201 : vector<32x32xf32>
    %c1_101 = arith.constant 1 : index
    %c0_102 = arith.constant 0 : index
    %c0_103 = arith.constant 0 : index
    %203 = vector.load %arg8[%c1_101, %c0_102, %c0_103] : memref<2x32x32xf32, #tpu.memory_space<vmem>>, vector<1x32x32xf32>
    %204 = vector.shape_cast %203 : vector<1x32x32xf32> to vector<32x32xf32>
    %cst_104 = arith.constant dense<0.000000e+00> : vector<32x32xf32>
    %205 = tpu.matmul %195, %204, %cst_104 {dimension_numbers = #tpu.dot_dimension_numbers<[1], [0], [0], [1], [0, 0, 1, 1], [], []>} : vector<32x32xf32>, vector<32x32xf32>, vector<32x32xf32> -> vector<32x32xf32>
    %c1_105 = arith.constant 1 : index
    %c0_106 = arith.constant 0 : index
    %c0_107 = arith.constant 0 : index
    %206 = vector.load %arg9[%c1_105, %c0_106, %c0_107] : memref<2x1x32xf32, #tpu.memory_space<vmem>>, vector<1x1x32xf32>
    %207 = vector.shape_cast %206 : vector<1x1x32xf32> to vector<1x32xf32>
    %208 = vector.broadcast %207 : vector<1x32xf32> to vector<32x32xf32>
    %209 = arith.addf %205, %208 : vector<32x32xf32>
    %c1_108 = arith.constant 1 : index
    %c0_109 = arith.constant 0 : index
    %c0_110 = arith.constant 0 : index
    %210 = vector.load %arg10[%c1_108, %c0_109, %c0_110] : memref<2x32x32xf32, #tpu.memory_space<vmem>>, vector<1x32x32xf32>
    %211 = vector.shape_cast %210 : vector<1x32x32xf32> to vector<32x32xf32>
    %cst_111 = arith.constant dense<0.000000e+00> : vector<32x32xf32>
    %212 = tpu.matmul %195, %211, %cst_111 {dimension_numbers = #tpu.dot_dimension_numbers<[1], [0], [0], [1], [0, 0, 1, 1], [], []>} : vector<32x32xf32>, vector<32x32xf32>, vector<32x32xf32> -> vector<32x32xf32>
    %c1_112 = arith.constant 1 : index
    %c0_113 = arith.constant 0 : index
    %c0_114 = arith.constant 0 : index
    %213 = vector.load %arg11[%c1_112, %c0_113, %c0_114] : memref<2x1x32xf32, #tpu.memory_space<vmem>>, vector<1x1x32xf32>
    %214 = vector.shape_cast %213 : vector<1x1x32xf32> to vector<1x32xf32>
    %215 = vector.broadcast %214 : vector<1x32xf32> to vector<32x32xf32>
    %216 = arith.addf %212, %215 : vector<32x32xf32>
    %217 = vector.extract_strided_slice %202 {offsets = [0, 0], sizes = [16, 32], strides = [1, 1]} : vector<32x32xf32> to vector<16x32xf32>
    %218 = vector.extract_strided_slice %209 {offsets = [0, 0], sizes = [16, 32], strides = [1, 1]} : vector<32x32xf32> to vector<16x32xf32>
    %219 = vector.extract_strided_slice %216 {offsets = [0, 0], sizes = [16, 32], strides = [1, 1]} : vector<32x32xf32> to vector<16x32xf32>
    %cst_115 = arith.constant 0.353553385 : f32
    %220 = vector.broadcast %cst_115 : f32 to vector<16x32xf32>
    %221 = arith.mulf %217, %220 : vector<16x32xf32>
    %222 = vector.shape_cast %221 : vector<16x32xf32> to vector<16x4x8xf32>
    %223 = tpu.transpose %222, [1, 0, 2] : vector<16x4x8xf32> -> vector<4x16x8xf32>
    %224 = vector.shape_cast %218 : vector<16x32xf32> to vector<16x4x8xf32>
    %225 = tpu.transpose %224, [1, 0, 2] : vector<16x4x8xf32> -> vector<4x16x8xf32>
    %226 = vector.shape_cast %219 : vector<16x32xf32> to vector<16x4x8xf32>
    %227 = tpu.transpose %226, [1, 0, 2] : vector<16x4x8xf32> -> vector<4x16x8xf32>
    "tpu.trace_start"() <{level = 10 : i32, message = "hqd,hkd->hqk"}> : () -> ()
    %cst_116 = arith.constant dense<0.000000e+00> : vector<4x16x16xf32>
    %228 = tpu.matmul %223, %225, %cst_116 {dimension_numbers = #tpu.dot_dimension_numbers<[2], [2], [1], [1], [0, 0, 0, 1, 1, 1], [0], [0]>} : vector<4x16x8xf32>, vector<4x16x8xf32>, vector<4x16x16xf32> -> vector<4x16x16xf32>
    "tpu.trace_stop"() : () -> ()
    %cst_117 = arith.constant dense<0xFF800000> : vector<4x16xf32>
    %229 = vector.multi_reduction <maximumf>, %228, %cst_117 [2] : vector<4x16x16xf32> to vector<4x16xf32>
    %230 = vector.shape_cast %229 : vector<4x16xf32> to vector<4x16x1xf32>
    %231 = vector.broadcast %230 : vector<4x16x1xf32> to vector<4x16x16xf32>
    %232 = arith.subf %228, %231 : vector<4x16x16xf32>
    %233 = math.exp %232 : vector<4x16x16xf32>
    %cst_118 = arith.constant dense<0.000000e+00> : vector<4x16xf32>
    %234 = vector.multi_reduction <add>, %233, %cst_118 [2] : vector<4x16x16xf32> to vector<4x16xf32>
    %235 = vector.shape_cast %234 : vector<4x16xf32> to vector<4x16x1xf32>
    %236 = tpu.reciprocal %235 {approx = true} : vector<4x16x1xf32> -> vector<4x16x1xf32>
    %237 = vector.broadcast %236 : vector<4x16x1xf32> to vector<4x16x16xf32>
    %238 = arith.mulf %233, %237 : vector<4x16x16xf32>
    "tpu.trace_start"() <{level = 10 : i32, message = "hqk,hkd->hqd"}> : () -> ()
    %cst_119 = arith.constant dense<0.000000e+00> : vector<4x16x8xf32>
    %239 = tpu.matmul %238, %227, %cst_119 {dimension_numbers = #tpu.dot_dimension_numbers<[2], [1], [1], [2], [0, 0, 0, 1, 1, 2], [0], [0]>} : vector<4x16x16xf32>, vector<4x16x8xf32>, vector<4x16x8xf32> -> vector<4x16x8xf32>
    "tpu.trace_stop"() : () -> ()
    %240 = tpu.transpose %239, [1, 0, 2] : vector<4x16x8xf32> -> vector<16x4x8xf32>
    %241 = vector.shape_cast %240 : vector<16x4x8xf32> to vector<16x32xf32>
    %242 = vector.extract_strided_slice %202 {offsets = [16, 0], sizes = [16, 32], strides = [1, 1]} : vector<32x32xf32> to vector<16x32xf32>
    %243 = vector.extract_strided_slice %209 {offsets = [16, 0], sizes = [16, 32], strides = [1, 1]} : vector<32x32xf32> to vector<16x32xf32>
    %244 = vector.extract_strided_slice %216 {offsets = [16, 0], sizes = [16, 32], strides = [1, 1]} : vector<32x32xf32> to vector<16x32xf32>
    %cst_120 = arith.constant 0.353553385 : f32
    %245 = vector.broadcast %cst_120 : f32 to vector<16x32xf32>
    %246 = arith.mulf %242, %245 : vector<16x32xf32>
    %247 = vector.shape_cast %246 : vector<16x32xf32> to vector<16x4x8xf32>
    %248 = tpu.transpose %247, [1, 0, 2] : vector<16x4x8xf32> -> vector<4x16x8xf32>
    %249 = vector.shape_cast %243 : vector<16x32xf32> to vector<16x4x8xf32>
    %250 = tpu.transpose %249, [1, 0, 2] : vector<16x4x8xf32> -> vector<4x16x8xf32>
    %251 = vector.shape_cast %244 : vector<16x32xf32> to vector<16x4x8xf32>
    %252 = tpu.transpose %251, [1, 0, 2] : vector<16x4x8xf32> -> vector<4x16x8xf32>
    "tpu.trace_start"() <{level = 10 : i32, message = "hqd,hkd->hqk"}> : () -> ()
    %cst_121 = arith.constant dense<0.000000e+00> : vector<4x16x16xf32>
    %253 = tpu.matmul %248, %250, %cst_121 {dimension_numbers = #tpu.dot_dimension_numbers<[2], [2], [1], [1], [0, 0, 0, 1, 1, 1], [0], [0]>} : vector<4x16x8xf32>, vector<4x16x8xf32>, vector<4x16x16xf32> -> vector<4x16x16xf32>
    "tpu.trace_stop"() : () -> ()
    %cst_122 = arith.constant dense<0xFF800000> : vector<4x16xf32>
    %254 = vector.multi_reduction <maximumf>, %253, %cst_122 [2] : vector<4x16x16xf32> to vector<4x16xf32>
    %255 = vector.shape_cast %254 : vector<4x16xf32> to vector<4x16x1xf32>
    %256 = vector.broadcast %255 : vector<4x16x1xf32> to vector<4x16x16xf32>
    %257 = arith.subf %253, %256 : vector<4x16x16xf32>
    %258 = math.exp %257 : vector<4x16x16xf32>
    %cst_123 = arith.constant dense<0.000000e+00> : vector<4x16xf32>
    %259 = vector.multi_reduction <add>, %258, %cst_123 [2] : vector<4x16x16xf32> to vector<4x16xf32>
    %260 = vector.shape_cast %259 : vector<4x16xf32> to vector<4x16x1xf32>
    %261 = tpu.reciprocal %260 {approx = true} : vector<4x16x1xf32> -> vector<4x16x1xf32>
    %262 = vector.broadcast %261 : vector<4x16x1xf32> to vector<4x16x16xf32>
    %263 = arith.mulf %258, %262 : vector<4x16x16xf32>
    "tpu.trace_start"() <{level = 10 : i32, message = "hqk,hkd->hqd"}> : () -> ()
    %cst_124 = arith.constant dense<0.000000e+00> : vector<4x16x8xf32>
    %264 = tpu.matmul %263, %252, %cst_124 {dimension_numbers = #tpu.dot_dimension_numbers<[2], [1], [1], [2], [0, 0, 0, 1, 1, 2], [0], [0]>} : vector<4x16x16xf32>, vector<4x16x8xf32>, vector<4x16x8xf32> -> vector<4x16x8xf32>
    "tpu.trace_stop"() : () -> ()
    %265 = tpu.transpose %264, [1, 0, 2] : vector<4x16x8xf32> -> vector<16x4x8xf32>
    %266 = vector.shape_cast %265 : vector<16x4x8xf32> to vector<16x32xf32>
    %267 = tpu.concatenate %241, %266 in 0 : vector<16x32xf32>, vector<16x32xf32> -> vector<32x32xf32>
    %c1_125 = arith.constant 1 : index
    %c0_126 = arith.constant 0 : index
    %c0_127 = arith.constant 0 : index
    %268 = vector.load %arg12[%c1_125, %c0_126, %c0_127] : memref<2x32x32xf32, #tpu.memory_space<vmem>>, vector<1x32x32xf32>
    %269 = vector.shape_cast %268 : vector<1x32x32xf32> to vector<32x32xf32>
    %cst_128 = arith.constant dense<0.000000e+00> : vector<32x32xf32>
    %270 = tpu.matmul %267, %269, %cst_128 {dimension_numbers = #tpu.dot_dimension_numbers<[1], [0], [0], [1], [0, 0, 1, 1], [], []>} : vector<32x32xf32>, vector<32x32xf32>, vector<32x32xf32> -> vector<32x32xf32>
    %c1_129 = arith.constant 1 : index
    %c0_130 = arith.constant 0 : index
    %c0_131 = arith.constant 0 : index
    %271 = vector.load %arg13[%c1_129, %c0_130, %c0_131] : memref<2x1x32xf32, #tpu.memory_space<vmem>>, vector<1x1x32xf32>
    %272 = vector.shape_cast %271 : vector<1x1x32xf32> to vector<1x32xf32>
    %273 = vector.broadcast %272 : vector<1x32xf32> to vector<32x32xf32>
    %274 = arith.addf %270, %273 : vector<32x32xf32>
    %275 = arith.addf %169, %274 : vector<32x32xf32>
    %c1_132 = arith.constant 1 : index
    %c0_133 = arith.constant 0 : index
    %c0_134 = arith.constant 0 : index
    %276 = vector.load %arg14[%c1_132, %c0_133, %c0_134] : memref<2x1x32xf32, #tpu.memory_space<vmem>>, vector<1x1x32xf32>
    %277 = vector.shape_cast %276 : vector<1x1x32xf32> to vector<1x32xf32>
    %c1_135 = arith.constant 1 : index
    %c0_136 = arith.constant 0 : index
    %c0_137 = arith.constant 0 : index
    %278 = vector.load %arg15[%c1_135, %c0_136, %c0_137] : memref<2x1x32xf32, #tpu.memory_space<vmem>>, vector<1x1x32xf32>
    %279 = vector.shape_cast %278 : vector<1x1x32xf32> to vector<1x32xf32>
    %cst_138 = arith.constant dense<0.000000e+00> : vector<32xf32>
    %280 = vector.multi_reduction <add>, %275, %cst_138 [1] : vector<32x32xf32> to vector<32xf32>
    %281 = vector.shape_cast %280 : vector<32xf32> to vector<32x1xf32>
    %cst_139 = arith.constant 3.200000e+01 : f32
    %282 = vector.broadcast %cst_139 : f32 to vector<32x1xf32>
    %283 = arith.divf %281, %282 : vector<32x1xf32>
    %284 = vector.broadcast %283 : vector<32x1xf32> to vector<32x32xf32>
    %285 = arith.subf %275, %284 : vector<32x32xf32>
    %286 = arith.mulf %285, %285 : vector<32x32xf32>
    %cst_140 = arith.constant dense<0.000000e+00> : vector<32xf32>
    %287 = vector.multi_reduction <add>, %286, %cst_140 [1] : vector<32x32xf32> to vector<32xf32>
    %288 = vector.shape_cast %287 : vector<32xf32> to vector<32x1xf32>
    %cst_141 = arith.constant 3.200000e+01 : f32
    %289 = vector.broadcast %cst_141 : f32 to vector<32x1xf32>
    %290 = arith.divf %288, %289 : vector<32x1xf32>
    %291 = vector.broadcast %283 : vector<32x1xf32> to vector<32x32xf32>
    %292 = arith.subf %275, %291 : vector<32x32xf32>
    %cst_142 = arith.constant 9.99999997E-7 : f32
    %293 = vector.broadcast %cst_142 : f32 to vector<32x1xf32>
    %294 = arith.addf %290, %293 : vector<32x1xf32>
    %295 = math.rsqrt %294 : vector<32x1xf32>
    %296 = vector.broadcast %295 : vector<32x1xf32> to vector<32x32xf32>
    %297 = arith.mulf %292, %296 : vector<32x32xf32>
    %298 = vector.broadcast %277 : vector<1x32xf32> to vector<32x32xf32>
    %299 = arith.mulf %297, %298 : vector<32x32xf32>
    %300 = vector.broadcast %279 : vector<1x32xf32> to vector<32x32xf32>
    %301 = arith.addf %299, %300 : vector<32x32xf32>
    %c1_143 = arith.constant 1 : index
    %c0_144 = arith.constant 0 : index
    %c0_145 = arith.constant 0 : index
    %302 = vector.load %arg16[%c1_143, %c0_144, %c0_145] : memref<2x32x64xf32, #tpu.memory_space<vmem>>, vector<1x32x64xf32>
    %303 = vector.shape_cast %302 : vector<1x32x64xf32> to vector<32x64xf32>
    %cst_146 = arith.constant dense<0.000000e+00> : vector<32x64xf32>
    %304 = tpu.matmul %301, %303, %cst_146 {dimension_numbers = #tpu.dot_dimension_numbers<[1], [0], [0], [1], [0, 0, 1, 1], [], []>} : vector<32x32xf32>, vector<32x64xf32>, vector<32x64xf32> -> vector<32x64xf32>
    %c1_147 = arith.constant 1 : index
    %c0_148 = arith.constant 0 : index
    %c0_149 = arith.constant 0 : index
    %305 = vector.load %arg17[%c1_147, %c0_148, %c0_149] : memref<2x1x64xf32, #tpu.memory_space<vmem>>, vector<1x1x64xf32>
    %306 = vector.shape_cast %305 : vector<1x1x64xf32> to vector<1x64xf32>
    %307 = vector.broadcast %306 : vector<1x64xf32> to vector<32x64xf32>
    %308 = arith.addf %304, %307 : vector<32x64xf32>
    %309 = arith.mulf %308, %308 : vector<32x64xf32>
    %310 = arith.mulf %308, %309 : vector<32x64xf32>
    %cst_150 = arith.constant 4.471500e-02 : f32
    %311 = vector.broadcast %cst_150 : f32 to vector<32x64xf32>
    %312 = arith.mulf %311, %310 : vector<32x64xf32>
    %313 = arith.addf %308, %312 : vector<32x64xf32>
    %cst_151 = arith.constant 0.797884583 : f32
    %314 = vector.broadcast %cst_151 : f32 to vector<32x64xf32>
    %315 = arith.mulf %314, %313 : vector<32x64xf32>
    %316 = math.tanh %315 : vector<32x64xf32>
    %cst_152 = arith.constant 1.000000e+00 : f32
    %317 = vector.broadcast %cst_152 : f32 to vector<32x64xf32>
    %318 = arith.addf %317, %316 : vector<32x64xf32>
    %cst_153 = arith.constant 5.000000e-01 : f32
    %319 = vector.broadcast %cst_153 : f32 to vector<32x64xf32>
    %320 = arith.mulf %319, %318 : vector<32x64xf32>
    %321 = arith.mulf %308, %320 : vector<32x64xf32>
    %c1_154 = arith.constant 1 : index
    %c0_155 = arith.constant 0 : index
    %c0_156 = arith.constant 0 : index
    %322 = vector.load %arg18[%c1_154, %c0_155, %c0_156] : memref<2x64x32xf32, #tpu.memory_space<vmem>>, vector<1x64x32xf32>
    %323 = vector.shape_cast %322 : vector<1x64x32xf32> to vector<64x32xf32>
    %cst_157 = arith.constant dense<0.000000e+00> : vector<32x32xf32>
    %324 = tpu.matmul %321, %323, %cst_157 {dimension_numbers = #tpu.dot_dimension_numbers<[1], [0], [0], [1], [0, 0, 1, 1], [], []>} : vector<32x64xf32>, vector<64x32xf32>, vector<32x32xf32> -> vector<32x32xf32>
    %c1_158 = arith.constant 1 : index
    %c0_159 = arith.constant 0 : index
    %c0_160 = arith.constant 0 : index
    %325 = vector.load %arg19[%c1_158, %c0_159, %c0_160] : memref<2x1x32xf32, #tpu.memory_space<vmem>>, vector<1x1x32xf32>
    %326 = vector.shape_cast %325 : vector<1x1x32xf32> to vector<1x32xf32>
    %327 = vector.broadcast %326 : vector<1x32xf32> to vector<32x32xf32>
    %328 = arith.addf %324, %327 : vector<32x32xf32>
    %329 = arith.addf %275, %328 : vector<32x32xf32>
    %c0_161 = arith.constant 0 : index
    %c0_162 = arith.constant 0 : index
    %330 = vector.load %arg20[%c0_161, %c0_162] : memref<1x32xf32, #tpu.memory_space<vmem>>, vector<1x32xf32>
    %c0_163 = arith.constant 0 : index
    %c0_164 = arith.constant 0 : index
    %331 = vector.load %arg21[%c0_163, %c0_164] : memref<1x32xf32, #tpu.memory_space<vmem>>, vector<1x32xf32>
    %cst_165 = arith.constant dense<0.000000e+00> : vector<32xf32>
    %332 = vector.multi_reduction <add>, %329, %cst_165 [1] : vector<32x32xf32> to vector<32xf32>
    %333 = vector.shape_cast %332 : vector<32xf32> to vector<32x1xf32>
    %cst_166 = arith.constant 3.200000e+01 : f32
    %334 = vector.broadcast %cst_166 : f32 to vector<32x1xf32>
    %335 = arith.divf %333, %334 : vector<32x1xf32>
    %336 = vector.broadcast %335 : vector<32x1xf32> to vector<32x32xf32>
    %337 = arith.subf %329, %336 : vector<32x32xf32>
    %338 = arith.mulf %337, %337 : vector<32x32xf32>
    %cst_167 = arith.constant dense<0.000000e+00> : vector<32xf32>
    %339 = vector.multi_reduction <add>, %338, %cst_167 [1] : vector<32x32xf32> to vector<32xf32>
    %340 = vector.shape_cast %339 : vector<32xf32> to vector<32x1xf32>
    %cst_168 = arith.constant 3.200000e+01 : f32
    %341 = vector.broadcast %cst_168 : f32 to vector<32x1xf32>
    %342 = arith.divf %340, %341 : vector<32x1xf32>
    %343 = vector.broadcast %335 : vector<32x1xf32> to vector<32x32xf32>
    %344 = arith.subf %329, %343 : vector<32x32xf32>
    %cst_169 = arith.constant 9.99999997E-7 : f32
    %345 = vector.broadcast %cst_169 : f32 to vector<32x1xf32>
    %346 = arith.addf %342, %345 : vector<32x1xf32>
    %347 = math.rsqrt %346 : vector<32x1xf32>
    %348 = vector.broadcast %347 : vector<32x1xf32> to vector<32x32xf32>
    %349 = arith.mulf %344, %348 : vector<32x32xf32>
    %350 = vector.broadcast %330 : vector<1x32xf32> to vector<32x32xf32>
    %351 = arith.mulf %349, %350 : vector<32x32xf32>
    %352 = vector.broadcast %331 : vector<1x32xf32> to vector<32x32xf32>
    %353 = arith.addf %351, %352 : vector<32x32xf32>
    %c0_170 = arith.constant 0 : index
    %c0_171 = arith.constant 0 : index
    %354 = vector.load %arg23[%c0_170, %c0_171] : memref<32x64xf32, #tpu.memory_space<vmem>>, vector<32x64xf32>
    %cst_172 = arith.constant dense<0.000000e+00> : vector<32x64xf32>
    %355 = tpu.matmul %353, %354, %cst_172 {dimension_numbers = #tpu.dot_dimension_numbers<[1], [0], [0], [1], [0, 0, 1, 1], [], []>} : vector<32x32xf32>, vector<32x64xf32>, vector<32x64xf32> -> vector<32x64xf32>
    %c0_173 = arith.constant 0 : index
    %c0_174 = arith.constant 0 : index
    %356 = vector.load %arg24[%c0_173, %c0_174] : memref<1x64xf32, #tpu.memory_space<vmem>>, vector<1x64xf32>
    %c0_175 = arith.constant 0 : index
    %c0_176 = arith.constant 0 : index
    %357 = vector.load %arg25[%c0_175, %c0_176] : memref<1x64xf32, #tpu.memory_space<vmem>>, vector<1x64xf32>
    %cst_177 = arith.constant dense<0.000000e+00> : vector<32xf32>
    %358 = vector.multi_reduction <add>, %355, %cst_177 [1] : vector<32x64xf32> to vector<32xf32>
    %359 = vector.shape_cast %358 : vector<32xf32> to vector<32x1xf32>
    %cst_178 = arith.constant 6.400000e+01 : f32
    %360 = vector.broadcast %cst_178 : f32 to vector<32x1xf32>
    %361 = arith.divf %359, %360 : vector<32x1xf32>
    %362 = vector.broadcast %361 : vector<32x1xf32> to vector<32x64xf32>
    %363 = arith.subf %355, %362 : vector<32x64xf32>
    %364 = arith.mulf %363, %363 : vector<32x64xf32>
    %cst_179 = arith.constant dense<0.000000e+00> : vector<32xf32>
    %365 = vector.multi_reduction <add>, %364, %cst_179 [1] : vector<32x64xf32> to vector<32xf32>
    %366 = vector.shape_cast %365 : vector<32xf32> to vector<32x1xf32>
    %cst_180 = arith.constant 6.400000e+01 : f32
    %367 = vector.broadcast %cst_180 : f32 to vector<32x1xf32>
    %368 = arith.divf %366, %367 : vector<32x1xf32>
    %369 = vector.broadcast %361 : vector<32x1xf32> to vector<32x64xf32>
    %370 = arith.subf %355, %369 : vector<32x64xf32>
    %cst_181 = arith.constant 9.99999974E-6 : f32
    %371 = vector.broadcast %cst_181 : f32 to vector<32x1xf32>
    %372 = arith.addf %368, %371 : vector<32x1xf32>
    %373 = math.rsqrt %372 : vector<32x1xf32>
    %374 = vector.broadcast %373 : vector<32x1xf32> to vector<32x64xf32>
    %375 = arith.mulf %370, %374 : vector<32x64xf32>
    %376 = vector.broadcast %356 : vector<1x64xf32> to vector<32x64xf32>
    %377 = arith.mulf %375, %376 : vector<32x64xf32>
    %378 = vector.broadcast %357 : vector<1x64xf32> to vector<32x64xf32>
    %379 = arith.addf %377, %378 : vector<32x64xf32>
    %380 = vector.shape_cast %379 : vector<32x64xf32> to vector<2x16x64xf32>
    %c0_182 = arith.constant 0 : index
    %c0_183 = arith.constant 0 : index
    %381 = vector.load %arg22[%c0_182, %c0_183] : memref<16x64xf32, #tpu.memory_space<vmem>>, vector<16x64xf32>
    %382 = vector.shape_cast %381 : vector<16x64xf32> to vector<1x16x64xf32>
    %383 = vector.broadcast %382 : vector<1x16x64xf32> to vector<2x16x64xf32>
    %384 = arith.addf %380, %383 : vector<2x16x64xf32>
    %385 = vector.shape_cast %384 : vector<2x16x64xf32> to vector<32x64xf32>
    %c0_184 = arith.constant 0 : index
    %c0_185 = arith.constant 0 : index
    %386 = vector.load %arg26[%c0_184, %c0_185] : memref<8x64xf32, #tpu.memory_space<vmem>>, vector<8x64xf32>
    %c0_186 = arith.constant 0 : index
    %c0_187 = arith.constant 0 : index
    %387 = vector.load %arg27[%c0_186, %c0_187] : memref<1x64xf32, #tpu.memory_space<vmem>>, vector<1x64xf32>
    %c0_188 = arith.constant 0 : index
    %c0_189 = arith.constant 0 : index
    %388 = vector.load %arg28[%c0_188, %c0_189] : memref<1x64xf32, #tpu.memory_space<vmem>>, vector<1x64xf32>
    %cst_190 = arith.constant dense<0.000000e+00> : vector<8xf32>
    %389 = vector.multi_reduction <add>, %386, %cst_190 [1] : vector<8x64xf32> to vector<8xf32>
    %390 = vector.shape_cast %389 : vector<8xf32> to vector<8x1xf32>
    %cst_191 = arith.constant 6.400000e+01 : f32
    %391 = vector.broadcast %cst_191 : f32 to vector<8x1xf32>
    %392 = arith.divf %390, %391 : vector<8x1xf32>
    %393 = vector.broadcast %392 : vector<8x1xf32> to vector<8x64xf32>
    %394 = arith.subf %386, %393 : vector<8x64xf32>
    %395 = arith.mulf %394, %394 : vector<8x64xf32>
    %cst_192 = arith.constant dense<0.000000e+00> : vector<8xf32>
    %396 = vector.multi_reduction <add>, %395, %cst_192 [1] : vector<8x64xf32> to vector<8xf32>
    %397 = vector.shape_cast %396 : vector<8xf32> to vector<8x1xf32>
    %cst_193 = arith.constant 6.400000e+01 : f32
    %398 = vector.broadcast %cst_193 : f32 to vector<8x1xf32>
    %399 = arith.divf %397, %398 : vector<8x1xf32>
    %400 = vector.broadcast %392 : vector<8x1xf32> to vector<8x64xf32>
    %401 = arith.subf %386, %400 : vector<8x64xf32>
    %cst_194 = arith.constant 9.99999974E-6 : f32
    %402 = vector.broadcast %cst_194 : f32 to vector<8x1xf32>
    %403 = arith.addf %399, %402 : vector<8x1xf32>
    %404 = math.rsqrt %403 : vector<8x1xf32>
    %405 = vector.broadcast %404 : vector<8x1xf32> to vector<8x64xf32>
    %406 = arith.mulf %401, %405 : vector<8x64xf32>
    %407 = vector.broadcast %387 : vector<1x64xf32> to vector<8x64xf32>
    %408 = arith.mulf %406, %407 : vector<8x64xf32>
    %409 = vector.broadcast %388 : vector<1x64xf32> to vector<8x64xf32>
    %410 = arith.addf %408, %409 : vector<8x64xf32>
    %c0_195 = arith.constant 0 : index
    %c0_196 = arith.constant 0 : index
    %411 = vector.load %arg29[%c0_195, %c0_196] : memref<64x64xf32, #tpu.memory_space<vmem>>, vector<64x64xf32>
    %cst_197 = arith.constant dense<0.000000e+00> : vector<8x64xf32>
    %412 = tpu.matmul %410, %411, %cst_197 {dimension_numbers = #tpu.dot_dimension_numbers<[1], [0], [0], [1], [0, 0, 1, 1], [], []>} : vector<8x64xf32>, vector<64x64xf32>, vector<8x64xf32> -> vector<8x64xf32>
    %c0_198 = arith.constant 0 : index
    %c0_199 = arith.constant 0 : index
    %413 = vector.load %arg30[%c0_198, %c0_199] : memref<1x64xf32, #tpu.memory_space<vmem>>, vector<1x64xf32>
    %414 = vector.broadcast %413 : vector<1x64xf32> to vector<8x64xf32>
    %415 = arith.addf %412, %414 : vector<8x64xf32>
    %c0_200 = arith.constant 0 : index
    %c0_201 = arith.constant 0 : index
    %416 = vector.load %arg31[%c0_200, %c0_201] : memref<64x64xf32, #tpu.memory_space<vmem>>, vector<64x64xf32>
    %cst_202 = arith.constant dense<0.000000e+00> : vector<32x64xf32>
    %417 = tpu.matmul %385, %416, %cst_202 {dimension_numbers = #tpu.dot_dimension_numbers<[1], [0], [0], [1], [0, 0, 1, 1], [], []>} : vector<32x64xf32>, vector<64x64xf32>, vector<32x64xf32> -> vector<32x64xf32>
    %c0_203 = arith.constant 0 : index
    %c0_204 = arith.constant 0 : index
    %418 = vector.load %arg32[%c0_203, %c0_204] : memref<1x64xf32, #tpu.memory_space<vmem>>, vector<1x64xf32>
    %419 = vector.broadcast %418 : vector<1x64xf32> to vector<32x64xf32>
    %420 = arith.addf %417, %419 : vector<32x64xf32>
    %c0_205 = arith.constant 0 : index
    %c0_206 = arith.constant 0 : index
    %421 = vector.load %arg33[%c0_205, %c0_206] : memref<64x64xf32, #tpu.memory_space<vmem>>, vector<64x64xf32>
    %cst_207 = arith.constant dense<0.000000e+00> : vector<32x64xf32>
    %422 = tpu.matmul %379, %421, %cst_207 {dimension_numbers = #tpu.dot_dimension_numbers<[1], [0], [0], [1], [0, 0, 1, 1], [], []>} : vector<32x64xf32>, vector<64x64xf32>, vector<32x64xf32> -> vector<32x64xf32>
    %c0_208 = arith.constant 0 : index
    %c0_209 = arith.constant 0 : index
    %423 = vector.load %arg34[%c0_208, %c0_209] : memref<1x64xf32, #tpu.memory_space<vmem>>, vector<1x64xf32>
    %424 = vector.broadcast %423 : vector<1x64xf32> to vector<32x64xf32>
    %425 = arith.addf %422, %424 : vector<32x64xf32>
    %426 = vector.extract_strided_slice %420 {offsets = [0, 0], sizes = [16, 64], strides = [1, 1]} : vector<32x64xf32> to vector<16x64xf32>
    %427 = vector.extract_strided_slice %425 {offsets = [0, 0], sizes = [16, 64], strides = [1, 1]} : vector<32x64xf32> to vector<16x64xf32>
    %cst_210 = arith.constant 2.500000e-01 : f32
    %428 = vector.broadcast %cst_210 : f32 to vector<8x64xf32>
    %429 = arith.mulf %415, %428 : vector<8x64xf32>
    %430 = vector.shape_cast %429 : vector<8x64xf32> to vector<8x4x16xf32>
    %431 = tpu.transpose %430, [1, 0, 2] : vector<8x4x16xf32> -> vector<4x8x16xf32>
    %432 = vector.shape_cast %426 : vector<16x64xf32> to vector<16x4x16xf32>
    %433 = tpu.transpose %432, [1, 0, 2] : vector<16x4x16xf32> -> vector<4x16x16xf32>
    %434 = vector.shape_cast %427 : vector<16x64xf32> to vector<16x4x16xf32>
    %435 = tpu.transpose %434, [1, 0, 2] : vector<16x4x16xf32> -> vector<4x16x16xf32>
    "tpu.trace_start"() <{level = 10 : i32, message = "hqd,hkd->hqk"}> : () -> ()
    %cst_211 = arith.constant dense<0.000000e+00> : vector<4x8x16xf32>
    %436 = tpu.matmul %431, %433, %cst_211 {dimension_numbers = #tpu.dot_dimension_numbers<[2], [2], [1], [1], [0, 0, 0, 1, 1, 1], [0], [0]>} : vector<4x8x16xf32>, vector<4x16x16xf32>, vector<4x8x16xf32> -> vector<4x8x16xf32>
    "tpu.trace_stop"() : () -> ()
    %cst_212 = arith.constant dense<0xFF800000> : vector<4x8xf32>
    %437 = vector.multi_reduction <maximumf>, %436, %cst_212 [2] : vector<4x8x16xf32> to vector<4x8xf32>
    %438 = vector.shape_cast %437 : vector<4x8xf32> to vector<4x8x1xf32>
    %439 = vector.broadcast %438 : vector<4x8x1xf32> to vector<4x8x16xf32>
    %440 = arith.subf %436, %439 : vector<4x8x16xf32>
    %441 = math.exp %440 : vector<4x8x16xf32>
    %cst_213 = arith.constant dense<0.000000e+00> : vector<4x8xf32>
    %442 = vector.multi_reduction <add>, %441, %cst_213 [2] : vector<4x8x16xf32> to vector<4x8xf32>
    %443 = vector.shape_cast %442 : vector<4x8xf32> to vector<4x8x1xf32>
    %444 = tpu.reciprocal %443 {approx = true} : vector<4x8x1xf32> -> vector<4x8x1xf32>
    %445 = vector.broadcast %444 : vector<4x8x1xf32> to vector<4x8x16xf32>
    %446 = arith.mulf %441, %445 : vector<4x8x16xf32>
    "tpu.trace_start"() <{level = 10 : i32, message = "hqk,hkd->hqd"}> : () -> ()
    %cst_214 = arith.constant dense<0.000000e+00> : vector<4x8x16xf32>
    %447 = tpu.matmul %446, %435, %cst_214 {dimension_numbers = #tpu.dot_dimension_numbers<[2], [1], [1], [2], [0, 0, 0, 1, 1, 2], [0], [0]>} : vector<4x8x16xf32>, vector<4x16x16xf32>, vector<4x8x16xf32> -> vector<4x8x16xf32>
    "tpu.trace_stop"() : () -> ()
    %448 = tpu.transpose %447, [1, 0, 2] : vector<4x8x16xf32> -> vector<8x4x16xf32>
    %449 = vector.shape_cast %448 : vector<8x4x16xf32> to vector<8x64xf32>
    %450 = vector.extract_strided_slice %420 {offsets = [16, 0], sizes = [16, 64], strides = [1, 1]} : vector<32x64xf32> to vector<16x64xf32>
    %451 = vector.extract_strided_slice %425 {offsets = [16, 0], sizes = [16, 64], strides = [1, 1]} : vector<32x64xf32> to vector<16x64xf32>
    %cst_215 = arith.constant 2.500000e-01 : f32
    %452 = vector.broadcast %cst_215 : f32 to vector<8x64xf32>
    %453 = arith.mulf %415, %452 : vector<8x64xf32>
    %454 = vector.shape_cast %453 : vector<8x64xf32> to vector<8x4x16xf32>
    %455 = tpu.transpose %454, [1, 0, 2] : vector<8x4x16xf32> -> vector<4x8x16xf32>
    %456 = vector.shape_cast %450 : vector<16x64xf32> to vector<16x4x16xf32>
    %457 = tpu.transpose %456, [1, 0, 2] : vector<16x4x16xf32> -> vector<4x16x16xf32>
    %458 = vector.shape_cast %451 : vector<16x64xf32> to vector<16x4x16xf32>
    %459 = tpu.transpose %458, [1, 0, 2] : vector<16x4x16xf32> -> vector<4x16x16xf32>
    "tpu.trace_start"() <{level = 10 : i32, message = "hqd,hkd->hqk"}> : () -> ()
    %cst_216 = arith.constant dense<0.000000e+00> : vector<4x8x16xf32>
    %460 = tpu.matmul %455, %457, %cst_216 {dimension_numbers = #tpu.dot_dimension_numbers<[2], [2], [1], [1], [0, 0, 0, 1, 1, 1], [0], [0]>} : vector<4x8x16xf32>, vector<4x16x16xf32>, vector<4x8x16xf32> -> vector<4x8x16xf32>
    "tpu.trace_stop"() : () -> ()
    %cst_217 = arith.constant dense<0xFF800000> : vector<4x8xf32>
    %461 = vector.multi_reduction <maximumf>, %460, %cst_217 [2] : vector<4x8x16xf32> to vector<4x8xf32>
    %462 = vector.shape_cast %461 : vector<4x8xf32> to vector<4x8x1xf32>
    %463 = vector.broadcast %462 : vector<4x8x1xf32> to vector<4x8x16xf32>
    %464 = arith.subf %460, %463 : vector<4x8x16xf32>
    %465 = math.exp %464 : vector<4x8x16xf32>
    %cst_218 = arith.constant dense<0.000000e+00> : vector<4x8xf32>
    %466 = vector.multi_reduction <add>, %465, %cst_218 [2] : vector<4x8x16xf32> to vector<4x8xf32>
    %467 = vector.shape_cast %466 : vector<4x8xf32> to vector<4x8x1xf32>
    %468 = tpu.reciprocal %467 {approx = true} : vector<4x8x1xf32> -> vector<4x8x1xf32>
    %469 = vector.broadcast %468 : vector<4x8x1xf32> to vector<4x8x16xf32>
    %470 = arith.mulf %465, %469 : vector<4x8x16xf32>
    "tpu.trace_start"() <{level = 10 : i32, message = "hqk,hkd->hqd"}> : () -> ()
    %cst_219 = arith.constant dense<0.000000e+00> : vector<4x8x16xf32>
    %471 = tpu.matmul %470, %459, %cst_219 {dimension_numbers = #tpu.dot_dimension_numbers<[2], [1], [1], [2], [0, 0, 0, 1, 1, 2], [0], [0]>} : vector<4x8x16xf32>, vector<4x16x16xf32>, vector<4x8x16xf32> -> vector<4x8x16xf32>
    "tpu.trace_stop"() : () -> ()
    %472 = tpu.transpose %471, [1, 0, 2] : vector<4x8x16xf32> -> vector<8x4x16xf32>
    %473 = vector.shape_cast %472 : vector<8x4x16xf32> to vector<8x64xf32>
    %474 = tpu.concatenate %449, %473 in 0 : vector<8x64xf32>, vector<8x64xf32> -> vector<16x64xf32>
    %c0_220 = arith.constant 0 : index
    %c0_221 = arith.constant 0 : index
    %475 = vector.load %arg35[%c0_220, %c0_221] : memref<64x64xf32, #tpu.memory_space<vmem>>, vector<64x64xf32>
    %cst_222 = arith.constant dense<0.000000e+00> : vector<16x64xf32>
    %476 = tpu.matmul %474, %475, %cst_222 {dimension_numbers = #tpu.dot_dimension_numbers<[1], [0], [0], [1], [0, 0, 1, 1], [], []>} : vector<16x64xf32>, vector<64x64xf32>, vector<16x64xf32> -> vector<16x64xf32>
    %c0_223 = arith.constant 0 : index
    %c0_224 = arith.constant 0 : index
    %477 = vector.load %arg36[%c0_223, %c0_224] : memref<1x64xf32, #tpu.memory_space<vmem>>, vector<1x64xf32>
    %478 = vector.broadcast %477 : vector<1x64xf32> to vector<16x64xf32>
    %479 = arith.addf %476, %478 : vector<16x64xf32>
    %c0_225 = arith.constant 0 : index
    %c0_226 = arith.constant 0 : index
    %480 = vector.load %arg37[%c0_225, %c0_226] : memref<1x64xf32, #tpu.memory_space<vmem>>, vector<1x64xf32>
    %c0_227 = arith.constant 0 : index
    %c0_228 = arith.constant 0 : index
    %481 = vector.load %arg38[%c0_227, %c0_228] : memref<1x64xf32, #tpu.memory_space<vmem>>, vector<1x64xf32>
    %cst_229 = arith.constant dense<0.000000e+00> : vector<16xf32>
    %482 = vector.multi_reduction <add>, %479, %cst_229 [1] : vector<16x64xf32> to vector<16xf32>
    %483 = vector.shape_cast %482 : vector<16xf32> to vector<16x1xf32>
    %cst_230 = arith.constant 6.400000e+01 : f32
    %484 = vector.broadcast %cst_230 : f32 to vector<16x1xf32>
    %485 = arith.divf %483, %484 : vector<16x1xf32>
    %486 = vector.broadcast %485 : vector<16x1xf32> to vector<16x64xf32>
    %487 = arith.subf %479, %486 : vector<16x64xf32>
    %488 = arith.mulf %487, %487 : vector<16x64xf32>
    %cst_231 = arith.constant dense<0.000000e+00> : vector<16xf32>
    %489 = vector.multi_reduction <add>, %488, %cst_231 [1] : vector<16x64xf32> to vector<16xf32>
    %490 = vector.shape_cast %489 : vector<16xf32> to vector<16x1xf32>
    %cst_232 = arith.constant 6.400000e+01 : f32
    %491 = vector.broadcast %cst_232 : f32 to vector<16x1xf32>
    %492 = arith.divf %490, %491 : vector<16x1xf32>
    %493 = vector.broadcast %485 : vector<16x1xf32> to vector<16x64xf32>
    %494 = arith.subf %479, %493 : vector<16x64xf32>
    %cst_233 = arith.constant 9.99999974E-6 : f32
    %495 = vector.broadcast %cst_233 : f32 to vector<16x1xf32>
    %496 = arith.addf %492, %495 : vector<16x1xf32>
    %497 = math.rsqrt %496 : vector<16x1xf32>
    %498 = vector.broadcast %497 : vector<16x1xf32> to vector<16x64xf32>
    %499 = arith.mulf %494, %498 : vector<16x64xf32>
    %500 = vector.broadcast %480 : vector<1x64xf32> to vector<16x64xf32>
    %501 = arith.mulf %499, %500 : vector<16x64xf32>
    %502 = vector.broadcast %481 : vector<1x64xf32> to vector<16x64xf32>
    %503 = arith.addf %501, %502 : vector<16x64xf32>
    %c0_234 = arith.constant 0 : index
    %c0_235 = arith.constant 0 : index
    %504 = vector.load %arg39[%c0_234, %c0_235] : memref<64x64xf32, #tpu.memory_space<vmem>>, vector<64x64xf32>
    %cst_236 = arith.constant dense<0.000000e+00> : vector<16x64xf32>
    %505 = tpu.matmul %503, %504, %cst_236 {dimension_numbers = #tpu.dot_dimension_numbers<[1], [0], [0], [1], [0, 0, 1, 1], [], []>} : vector<16x64xf32>, vector<64x64xf32>, vector<16x64xf32> -> vector<16x64xf32>
    %506 = vector.shape_cast %505 : vector<16x64xf32> to vector<2x8x64xf32>
    %c0_237 = arith.constant 0 : index
    %c0_238 = arith.constant 0 : index
    %c0_239 = arith.constant 0 : index
    %507 = vector.load %arg40[%c0_237, %c0_238, %c0_239] : memref<2x8x64xf32, #tpu.memory_space<vmem>>, vector<2x8x64xf32>
    tpu.vector_store %arg40[%c0_237, %c0_238, %c0_239], %506 {strides = array<i32>} : memref<2x8x64xf32, #tpu.memory_space<vmem>>, vector<2x8x64xf32>,
    return
  }
  func.func @transform_0(%arg0: i32) -> (i32, i32, i32) {
    %c0_i32 = arith.constant 0 : i32
    %c0_i32_0 = arith.constant 0 : i32
    %c0_i32_1 = arith.constant 0 : i32
    %c0_i32_2 = arith.constant 0 : i32
    return %c0_i32, %c0_i32_0, %c0_i32_1 : i32, i32, i32
  }
  func.func @transform_1(%arg0: i32) -> (i32, i32) {
    %c0_i32 = arith.constant 0 : i32
    %c0_i32_0 = arith.constant 0 : i32
    %c0_i32_1 = arith.constant 0 : i32
    return %c0_i32, %c0_i32_0 : i32, i32
  }
  func.func @transform_2(%arg0: i32) -> (i32, i32) {
    %c0_i32 = arith.constant 0 : i32
    %c0_i32_0 = arith.constant 0 : i32
    %c0_i32_1 = arith.constant 0 : i32
    return %c0_i32, %c0_i32_0 : i32, i32
  }
  func.func @transform_3(%arg0: i32) -> (i32, i32, i32) {
    %c0_i32 = arith.constant 0 : i32
    %c0_i32_0 = arith.constant 0 : i32
    %c0_i32_1 = arith.constant 0 : i32
    %c0_i32_2 = arith.constant 0 : i32
    return %c0_i32, %c0_i32_0, %c0_i32_1 : i32, i32, i32
  }
  func.func @transform_4(%arg0: i32) -> (i32, i32, i32) {
    %c0_i32 = arith.constant 0 : i32
    %c0_i32_0 = arith.constant 0 : i32
    %c0_i32_1 = arith.constant 0 : i32
    %c0_i32_2 = arith.constant 0 : i32
    return %c0_i32, %c0_i32_0, %c0_i32_1 : i32, i32, i32
  }
  func.func @transform_5(%arg0: i32) -> (i32, i32, i32) {
    %c0_i32 = arith.constant 0 : i32
    %c0_i32_0 = arith.constant 0 : i32
    %c0_i32_1 = arith.constant 0 : i32
    %c0_i32_2 = arith.constant 0 : i32
    return %c0_i32, %c0_i32_0, %c0_i32_1 : i32, i32, i32
  }
  func.func @transform_6(%arg0: i32) -> (i32, i32, i32) {
    %c0_i32 = arith.constant 0 : i32
    %c0_i32_0 = arith.constant 0 : i32
    %c0_i32_1 = arith.constant 0 : i32
    %c0_i32_2 = arith.constant 0 : i32
    return %c0_i32, %c0_i32_0, %c0_i32_1 : i32, i32, i32
  }
  func.func @transform_7(%arg0: i32) -> (i32, i32, i32) {
    %c0_i32 = arith.constant 0 : i32
    %c0_i32_0 = arith.constant 0 : i32
    %c0_i32_1 = arith.constant 0 : i32
    %c0_i32_2 = arith.constant 0 : i32
    return %c0_i32, %c0_i32_0, %c0_i32_1 : i32, i32, i32
  }
  func.func @transform_8(%arg0: i32) -> (i32, i32, i32) {
    %c0_i32 = arith.constant 0 : i32
    %c0_i32_0 = arith.constant 0 : i32
    %c0_i32_1 = arith.constant 0 : i32
    %c0_i32_2 = arith.constant 0 : i32
    return %c0_i32, %c0_i32_0, %c0_i32_1 : i32, i32, i32
  }
  func.func @transform_9(%arg0: i32) -> (i32, i32, i32) {
    %c0_i32 = arith.constant 0 : i32
    %c0_i32_0 = arith.constant 0 : i32
    %c0_i32_1 = arith.constant 0 : i32
    %c0_i32_2 = arith.constant 0 : i32
    return %c0_i32, %c0_i32_0, %c0_i32_1 : i32, i32, i32
  }
  func.func @transform_10(%arg0: i32) -> (i32, i32, i32) {
    %c0_i32 = arith.constant 0 : i32
    %c0_i32_0 = arith.constant 0 : i32
    %c0_i32_1 = arith.constant 0 : i32
    %c0_i32_2 = arith.constant 0 : i32
    return %c0_i32, %c0_i32_0, %c0_i32_1 : i32, i32, i32
  }
  func.func @transform_11(%arg0: i32) -> (i32, i32, i32) {
    %c0_i32 = arith.constant 0 : i32
    %c0_i32_0 = arith.constant 0 : i32
    %c0_i32_1 = arith.constant 0 : i32
    %c0_i32_2 = arith.constant 0 : i32
    return %c0_i32, %c0_i32_0, %c0_i32_1 : i32, i32, i32
  }
  func.func @transform_12(%arg0: i32) -> (i32, i32, i32) {
    %c0_i32 = arith.constant 0 : i32
    %c0_i32_0 = arith.constant 0 : i32
    %c0_i32_1 = arith.constant 0 : i32
    %c0_i32_2 = arith.constant 0 : i32
    return %c0_i32, %c0_i32_0, %c0_i32_1 : i32, i32, i32
  }
  func.func @transform_13(%arg0: i32) -> (i32, i32, i32) {
    %c0_i32 = arith.constant 0 : i32
    %c0_i32_0 = arith.constant 0 : i32
    %c0_i32_1 = arith.constant 0 : i32
    %c0_i32_2 = arith.constant 0 : i32
    return %c0_i32, %c0_i32_0, %c0_i32_1 : i32, i32, i32
  }
  func.func @transform_14(%arg0: i32) -> (i32, i32, i32) {
    %c0_i32 = arith.constant 0 : i32
    %c0_i32_0 = arith.constant 0 : i32
    %c0_i32_1 = arith.constant 0 : i32
    %c0_i32_2 = arith.constant 0 : i32
    return %c0_i32, %c0_i32_0, %c0_i32_1 : i32, i32, i32
  }
  func.func @transform_15(%arg0: i32) -> (i32, i32, i32) {
    %c0_i32 = arith.constant 0 : i32
    %c0_i32_0 = arith.constant 0 : i32
    %c0_i32_1 = arith.constant 0 : i32
    %c0_i32_2 = arith.constant 0 : i32
    return %c0_i32, %c0_i32_0, %c0_i32_1 : i32, i32, i32
  }
  func.func @transform_16(%arg0: i32) -> (i32, i32, i32) {
    %c0_i32 = arith.constant 0 : i32
    %c0_i32_0 = arith.constant 0 : i32
    %c0_i32_1 = arith.constant 0 : i32
    %c0_i32_2 = arith.constant 0 : i32
    return %c0_i32, %c0_i32_0, %c0_i32_1 : i32, i32, i32
  }
  func.func @transform_17(%arg0: i32) -> (i32, i32, i32) {
    %c0_i32 = arith.constant 0 : i32
    %c0_i32_0 = arith.constant 0 : i32
    %c0_i32_1 = arith.constant 0 : i32
    %c0_i32_2 = arith.constant 0 : i32
    return %c0_i32, %c0_i32_0, %c0_i32_1 : i32, i32, i32
  }
  func.func @transform_18(%arg0: i32) -> (i32, i32, i32) {
    %c0_i32 = arith.constant 0 : i32
    %c0_i32_0 = arith.constant 0 : i32
    %c0_i32_1 = arith.constant 0 : i32
    %c0_i32_2 = arith.constant 0 : i32
    return %c0_i32, %c0_i32_0, %c0_i32_1 : i32, i32, i32
  }
  func.func @transform_19(%arg0: i32) -> (i32, i32) {
    %c0_i32 = arith.constant 0 : i32
    %c0_i32_0 = arith.constant 0 : i32
    %c0_i32_1 = arith.constant 0 : i32
    return %c0_i32, %c0_i32_0 : i32, i32
  }
  func.func @transform_20(%arg0: i32) -> (i32, i32) {
    %c0_i32 = arith.constant 0 : i32
    %c0_i32_0 = arith.constant 0 : i32
    %c0_i32_1 = arith.constant 0 : i32
    return %c0_i32, %c0_i32_0 : i32, i32
  }
  func.func @transform_21(%arg0: i32) -> (i32, i32) {
    %c0_i32 = arith.constant 0 : i32
    %c0_i32_0 = arith.constant 0 : i32
    %c0_i32_1 = arith.constant 0 : i32
    return %c0_i32, %c0_i32_0 : i32, i32
  }
  func.func @transform_22(%arg0: i32) -> (i32, i32) {
    %c0_i32 = arith.constant 0 : i32
    %c0_i32_0 = arith.constant 0 : i32
    %c0_i32_1 = arith.constant 0 : i32
    return %c0_i32, %c0_i32_0 : i32, i32
  }
  func.func @transform_23(%arg0: i32) -> (i32, i32) {
    %c0_i32 = arith.constant 0 : i32
    %c0_i32_0 = arith.constant 0 : i32
    %c0_i32_1 = arith.constant 0 : i32
    return %c0_i32, %c0_i32_0 : i32, i32
  }
  func.func @transform_24(%arg0: i32) -> (i32, i32) {
    %c0_i32 = arith.constant 0 : i32
    %c0_i32_0 = arith.constant 0 : i32
    %c0_i32_1 = arith.constant 0 : i32
    return %c0_i32, %c0_i32_0 : i32, i32
  }
  func.func @transform_25(%arg0: i32) -> (i32, i32) {
    %c0_i32 = arith.constant 0 : i32
    %c0_i32_0 = arith.constant 0 : i32
    %c0_i32_1 = arith.constant 0 : i32
    return %c0_i32, %c0_i32_0 : i32, i32
  }
  func.func @transform_26(%arg0: i32) -> (i32, i32) {
    %c0_i32 = arith.constant 0 : i32
    %c0_i32_0 = arith.constant 0 : i32
    %c0_i32_1 = arith.constant 0 : i32
    return %c0_i32, %c0_i32_0 : i32, i32
  }
  func.func @transform_27(%arg0: i32) -> (i32, i32) {
    %c0_i32 = arith.constant 0 : i32
    %c0_i32_0 = arith.constant 0 : i32
    %c0_i32_1 = arith.constant 0 : i32
    return %c0_i32, %c0_i32_0 : i32, i32
  }
  func.func @transform_28(%arg0: i32) -> (i32, i32) {
    %c0_i32 = arith.constant 0 : i32
    %c0_i32_0 = arith.constant 0 : i32
    %c0_i32_1 = arith.constant 0 : i32
    return %c0_i32, %c0_i32_0 : i32, i32
  }
  func.func @transform_29(%arg0: i32) -> (i32, i32) {
    %c0_i32 = arith.constant 0 : i32
    %c0_i32_0 = arith.constant 0 : i32
    %c0_i32_1 = arith.constant 0 : i32
    return %c0_i32, %c0_i32_0 : i32, i32
  }
  func.func @transform_30(%arg0: i32) -> (i32, i32) {
    %c0_i32 = arith.constant 0 : i32
    %c0_i32_0 = arith.constant 0 : i32
    %c0_i32_1 = arith.constant 0 : i32
    return %c0_i32, %c0_i32_0 : i32, i32
  }
  func.func @transform_31(%arg0: i32) -> (i32, i32) {
    %c0_i32 = arith.constant 0 : i32
    %c0_i32_0 = arith.constant 0 : i32
    %c0_i32_1 = arith.constant 0 : i32
    return %c0_i32, %c0_i32_0 : i32, i32
  }
  func.func @transform_32(%arg0: i32) -> (i32, i32) {
    %c0_i32 = arith.constant 0 : i32
    %c0_i32_0 = arith.constant 0 : i32
    %c0_i32_1 = arith.constant 0 : i32
    return %c0_i32, %c0_i32_0 : i32, i32
  }
  func.func @transform_33(%arg0: i32) -> (i32, i32) {
    %c0_i32 = arith.constant 0 : i32
    %c0_i32_0 = arith.constant 0 : i32
    %c0_i32_1 = arith.constant 0 : i32
    return %c0_i32, %c0_i32_0 : i32, i32
  }
  func.func @transform_34(%arg0: i32) -> (i32, i32) {
    %c0_i32 = arith.constant 0 : i32
    %c0_i32_0 = arith.constant 0 : i32
    %c0_i32_1 = arith.constant 0 : i32
    return %c0_i32, %c0_i32_0 : i32, i32
  }
  func.func @transform_35(%arg0: i32) -> (i32, i32) {
    %c0_i32 = arith.constant 0 : i32
    %c0_i32_0 = arith.constant 0 : i32
    %c0_i32_1 = arith.constant 0 : i32
    return %c0_i32, %c0_i32_0 : i32, i32
  }
  func.func @transform_36(%arg0: i32) -> (i32, i32) {
    %c0_i32 = arith.constant 0 : i32
    %c0_i32_0 = arith.constant 0 : i32
    %c0_i32_1 = arith.constant 0 : i32
    return %c0_i32, %c0_i32_0 : i32, i32
  }
  func.func @transform_37(%arg0: i32) -> (i32, i32) {
    %c0_i32 = arith.constant 0 : i32
    %c0_i32_0 = arith.constant 0 : i32
    %c0_i32_1 = arith.constant 0 : i32
    return %c0_i32, %c0_i32_0 : i32, i32
  }
  func.func @transform_38(%arg0: i32) -> (i32, i32) {
    %c0_i32 = arith.constant 0 : i32
    %c0_i32_0 = arith.constant 0 : i32
    %c0_i32_1 = arith.constant 0 : i32
    return %c0_i32, %c0_i32_0 : i32, i32
  }
  func.func @transform_39(%arg0: i32) -> (i32, i32, i32) {
    %c0_i32 = arith.constant 0 : i32
    %c0_i32_0 = arith.constant 0 : i32
    %c0_i32_1 = arith.constant 0 : i32
    %c0_i32_2 = arith.constant 0 : i32
    return %c0_i32, %c0_i32_0, %c0_i32_1 : i32, i32, i32
  }
}

</mosaic_0001>

<bundles_post_ra>
// kernel: vision_transformer_forward.1
= control target key start
LH: loop header
LB: loop body
LE: loop exit
PB: predicated region body
PF: predicated region fallthrough
CT: control target
= control target key end

     0   :  { %s15584_s6 = smov 1   ;;  %s15585_s10 = smov 2   ;;  %s18481_s0 = inlined_call_operand.smem [shape: u32[40], index: -1, kind: input, shape index: {}] }
   0x1   :  { %s15648_s5 = sld [smem:[%s18481_s0]]   ;;  %s15586_s14 = smov 3  }
   0x2   :  { %s15653_s9 = sld [smem:[%s18481_s0 + %s15584_s6]]   ;;  %s15587_s18 = smov 4  }
   0x3   :  { %s15658_s13 = sld [smem:[%s18481_s0 + %s15585_s10]]   ;;  %s15588_s22 = smov 5  }
   0x4   :  { %s15663_s17 = sld [smem:[%s18481_s0 + %s15586_s14]]   ;;  %s15589_s26 = smov 6  }
   0x5   :  { %s15668_s21 = sld [smem:[%s18481_s0 + %s15587_s18]]   ;;  %s15590_s30 = smov 7  }
   0x6   :  { %s15673_s25 = sld [smem:[%s18481_s0 + %s15588_s22]]   ;;  %s15591_s4 = smov 8  }
   0x7   :  { %s15678_s29 = sld [smem:[%s18481_s0 + %s15589_s26]]   ;;  %s15592_s10 = smov 9  }
   0x8   :  { %s15683_s3 = sld [smem:[%s18481_s0 + %s15590_s30]]   ;;  %s15593_s15 = smov 10  }
   0x9   :  { %s15688_s8 = sld [smem:[%s18481_s0 + %s15591_s4]]   ;;  %s15594_s20 = smov 11  }
   0xa   :  { %s15693_s14 = sld [smem:[%s18481_s0 + %s15592_s10]]   ;;  %s15595_s26 = smov 12  }
   0xb   :  { %s15698_s19 = sld [smem:[%s18481_s0 + %s15593_s15]]   ;;  %s15596_s1 = smov 13  }
   0xc   :  { %s15703_s24 = sld [smem:[%s18481_s0 + %s15594_s20]]   ;;  %s15597_s7 = smov 14  }
   0xd   :  { %s15708_s30 = sld [smem:[%s18481_s0 + %s15595_s26]]   ;;  %s15598_s15 = smov 15  }
   0xe   :  { %s15713_s6 = sld [smem:[%s18481_s0 + %s15596_s1]]   ;;  %s15599_s22 = smov 16  }
   0xf   :  { %s15718_s12 = sld [smem:[%s18481_s0 + %s15597_s7]]   ;;  %s15600_s28 = smov 17  }
  0x10   :  { %s15723_s20 = sld [smem:[%s18481_s0 + %s15598_s15]]   ;;  %s15601_s7 = smov 18  }
  0x11   :  { %s15728_s27 = sld [smem:[%s18481_s0 + %s15599_s22]]   ;;  %s15602_s15 = smov 19  }
  0x12   :  { %s15733_s4 = sld [smem:[%s18481_s0 + %s15600_s28]]   ;;  %s15603_s22 = smov 20  }
  0x13   :  { %s15604_s28 = smov 21  }
  0x14   :  { %18493 = sst [smem:[#allocation5_spill]] %s15713_s6 }
  0x15   :  { %18494 = sst [smem:[#allocation6_spill]] %s15718_s12 }
  0x16   :  { %s15738_s12 = sld [smem:[%s18481_s0 + %s15601_s7]]   ;;  %s15605_s7 = smov 22  }
  0x17   :  { %18495 = sst [smem:[#allocation7_spill]] %s15728_s27 }
  0x18   :  { %18496 = sst [smem:[#allocation8_spill]] %s15733_s4 }
  0x19   :  { %s15743_s6 = sld [smem:[%s18481_s0 + %s15602_s15]]   ;;  %s15606_s15 = smov 23  }
  0x1a   :  { %s15748_s27 = sld [smem:[%s18481_s0 + %s15603_s22]]   ;;  %s15607_s22 = smov 24  }
  0x1b   :  { %s15753_s4 = sld [smem:[%s18481_s0 + %s15604_s28]]   ;;  %s15608_s28 = smov 25  }
  0x1c   :  { %18497 = sst [smem:[#allocation9_spill]] %s15738_s12 }
  0x1d   :  { %s15758_s12 = sld [smem:[%s18481_s0 + %s15605_s7]]   ;;  %s15609_s7 = smov 26  }
  0x1f   :  { %18498 = sst [smem:[#allocation10_spill]] %s15743_s6 }
  0x20   :  { %18499 = sst [smem:[#allocation11_spill]] %s15748_s27 }
  0x21   :  { %18500 = sst [smem:[#allocation12_spill]] %s15753_s4 }
  0x22   :  { %s15763_s6 = sld [smem:[%s18481_s0 + %s15606_s15]]   ;;  %s15610_s15 = smov 27  }
  0x23   :  { %18501 = sst [smem:[#allocation13_spill]] %s15758_s12 }
  0x24   :  { %s15768_s27 = sld [smem:[%s18481_s0 + %s15607_s22]]   ;;  %s15611_s22 = smov 28  }
  0x25   :  { %s15773_s4 = sld [smem:[%s18481_s0 + %s15608_s28]]   ;;  %s15612_s28 = smov 29  }
  0x26   :  { %s15778_s12 = sld [smem:[%s18481_s0 + %s15609_s7]]   ;;  %s15613_s7 = smov 30  }
  0x28   :  { %18502 = sst [smem:[#allocation14_spill]] %s15763_s6 }
  0x29   :  { %s15783_s6 = sld [smem:[%s18481_s0 + %s15610_s15]]   ;;  %s15614_s15 = smov 31  }
  0x2a   :  { %18503 = sst [smem:[#allocation15_spill]] %s15768_s27 }
  0x2b   :  { %18504 = sst [smem:[#allocation16_spill]] %s15773_s4 }
  0x2c   :  { %18505 = sst [smem:[#allocation17_spill]] %s15778_s12 }
  0x2d   :  { %s15788_s27 = sld [smem:[%s18481_s0 + %s15611_s22]]   ;;  %s15615_s22 = smov 32  }
  0x2e   :  { %s15793_s4 = sld [smem:[%s18481_s0 + %s15612_s28]]   ;;  %s15616_s28 = smov 33  }
  0x2f   :  { %18506 = sst [smem:[#allocation18_spill]] %s15783_s6 }
  0x30   :  { %s15798_s12 = sld [smem:[%s18481_s0 + %s15613_s7]]   ;;  %s15617_s7 = smov 34  }
  0x31   :  { %s15803_s6 = sld [smem:[%s18481_s0 + %s15614_s15]]   ;;  %s15618_s15 = smov 35  }
  0x33   :  { %18507 = sst [smem:[#allocation19_spill]] %s15788_s27 }
  0x34   :  { %18508 = sst [smem:[#allocation20_spill]] %s15793_s4 }
  0x35   :  { %s15808_s27 = sld [smem:[%s18481_s0 + %s15615_s22]]   ;;  %s15619_s22 = smov 36  }
  0x36   :  { %18509 = sst [smem:[#allocation21_spill]] %s15798_s12 }
  0x37   :  { %18510 = sst [smem:[#allocation22_spill]] %s15803_s6 }
  0x38   :  { %s15813_s4 = sld [smem:[%s18481_s0 + %s15616_s28]]   ;;  %s15620_s28 = smov 37  }
  0x39   :  { %s15818_s12 = sld [smem:[%s18481_s0 + %s15617_s7]]   ;;  %s15621_s7 = smov 38  }
  0x3a   :  { %s15823_s6 = sld [smem:[%s18481_s0 + %s15618_s15]]   ;;  %s15622_s15 = smov 39  }
  0x3b   :  { %18511 = sst [smem:[#allocation23_spill]] %s15808_s27 }
  0x3c   :  { %s15828_s27 = sld [smem:[%s18481_s0 + %s15619_s22]]  }
  0x3e   :  { %18512 = sst [smem:[#allocation24_spill]] %s15813_s4 }
  0x3f   :  { %18513 = sst [smem:[#allocation25_spill]] %s15818_s12 }
  0x40   :  { %18514 = sst [smem:[#allocation26_spill]] %s15823_s6 }
  0x41   :  { %s15833_s4 = sld [smem:[%s18481_s0 + %s15620_s28]]  }
  0x42   :  { %s15838_s12 = sld [smem:[%s18481_s0 + %s15621_s7]]  }
  0x43   :  { %s15843_s6 = sld [smem:[%s18481_s0 + %s15622_s15]]  }
  0x44   :  { %v167_v0 = vld [vmem:[%s15653_s9] sm:$0xff]  ;;  %v168_v1 = vld [vmem:[%s15653_s9 + $0x8] sm:$0xff]  ;;  %v169_v2 = vld [vmem:[%s15653_s9 + $0x10] sm:$0xff]  ;;  %vm173_vm0 = vcmask 392192  }
  0x45   :  { %v14849_v3 = vpack.c.bf16 %v168_v1, %v167_v0  ;;  %v170_v4 = vld [vmem:[%s15653_s9 + $0x18] sm:$0xff]  ;;  %v171_v6 = vld [vmem:[%s15653_s9 + $0x20] sm:$0xff]  ;;  %v172_v7 = vld [vmem:[%s15653_s9 + $0x28] sm:$0xff] }
  0x46   :  { %v14853_v5 = vpack.c.bf16 %v170_v4, %v169_v2  ;;  %v163_v8 = vld [vmem:[%s15648_s5] sm:$0xff] }
  0x47   :  { %14850 = vmatprep.subr.bf16.mxu0 %v14849_v3  ;;  %14208 = vmatprep.mubr.msk.f32.mxu0 %vm173_vm0, %v163_v8 }
  0x48   :  { %84 = vsyncpa [#allocation3], 0  ;;  %14852 = vmatpush3.bf16.msra.mxu0 %v14849_v3  ;;  %v14857_v9 = vpack.c.bf16 %v172_v7, %v171_v6  ;;  %v164_v10 = vld [vmem:[%s15648_s5 + $0x8] sm:$0xff]  ;;  %v165_v11 = vld [vmem:[%s15648_s5 + $0x10] sm:$0xff]  ;;  %vm279_vm1 = vcmask 261120   ;;  %s15623_s0 = smov 120  }
  0x49   :  { %14854 = vmatprep.subr.bf16.mxu0 %v14853_v5  ;;  %v166_v12 = vld [vmem:[%s15648_s5 + $0x18] sm:$0xff]  ;;  %v271_v13 = vld [vmem:[%s15658_s13] sm:$0xff]  ;;  %v272_v15 = vld [vmem:[%s15658_s13 + $0x8] sm:$0xff]  ;;  %s15624_s5 = smov 112   ;;  %s15625_s9 = smov 104   ;;  %vm1531_vm2 = vcmask 64512  }
  0x4a   :  { %v353_v47 = vld [vmem:[%s15673_s25] sm:$0xff]  ;;  %v354_v48 = vld [vmem:[%s15673_s25 + $0x8] sm:$0xff]  ;;  %v355_v52 = vld [vmem:[%s15673_s25 + $0x10] sm:$0xff]  ;;  %vm1880_vm4 = vcmask 130048   ;;  %s15628_s13 = smov 8   ;;  %s15629_s22 = smov 16  }
  0x4b   :  { %v557_v49 = vld [vmem:[%s15693_s14] sm:$0xff]  ;;  %v14861_v50 = vpack.c.bf16 %v354_v48, %v353_v47  ;;  %v558_v51 = vld [vmem:[%s15693_s14 + $0x8] sm:$0xff]  ;;  %v356_v53 = vld [vmem:[%s15673_s25 + $0x18] sm:$0xff]  ;;  %s15630_s23 = smov 24   ;;  %vm2593_vm5 = vcmask 195584   ;;  %s18517_s26 = sld [smem:[#allocation5_spill]] }
  0x4c   :  { %14856 = vmatpush3.bf16.msra.mxu0 %v14853_v5  ;;  %v14877_v54 = vpack.c.bf16 %v558_v51, %v557_v49  ;;  %v14865_v55 = vpack.c.bf16 %v356_v53, %v355_v52  ;;  %v559_v56 = vld [vmem:[%s15693_s14 + $0x10] sm:$0xff]  ;;  %v560_v57 = vld [vmem:[%s15693_s14 + $0x18] sm:$0xff]  ;;  %v461_v59 = vld [vmem:[%s15683_s3] sm:$0xff]  ;;  %s18518_s28 = sld [smem:[#allocation6_spill]]  ;;  %s18519_s1 = sld [smem:[#allocation8_spill]]  ;;  %vm4881_vm6 = vcmask 523264  }
  0x4d   :  { %14858 = vmatprep.subr.bf16.mxu0 %v14857_v9  ;;  %14862 = vmatprep.subr.bf16.mxu1 %v14861_v50  ;;  %v14881_v58 = vpack.c.bf16 %v560_v57, %v559_v56  ;;  %v462_v60 = vld [vmem:[%s15683_s3 + $0x8] sm:$0xff]  ;;  %v13503_v49 = vld [vmem:[%s15688_s8] ss:$0 sm:$0xff]  ;;  %vm16141_vm3 = vmpackc.low %vm1531_vm2, %vm1531_vm2  ;;  %s18520_s2 = sld [smem:[#allocation7_spill]]  ;;  %s18521_s7 = sld [smem:[#allocation9_spill]]  ;;  %vm15632_vm7 = vmmov 0  }
  0x4e   :  { %14864 = vmatpush3.bf16.msra.mxu1 %v14861_v50  ;;  %v14869_v61 = vpack.c.bf16 %v462_v60, %v461_v59  ;;  %s18533_s10 = sld [smem:[#allocation18_spill]]  ;;  %s18534_s11 = sld [smem:[#allocation22_spill]]  ;;  %vm18043_vm8 = vmpackc.low %vm1880_vm4, %vm1880_vm4 }
  0x4f   :  { %14866 = vmatprep.subr.bf16.mxu1 %v14865_v55  ;;  %s18535_s15 = sld [smem:[#allocation20_spill]]  ;;  %s15634_s16 = smov 96  }
  0x50   :  { %14860 = vmatpush3.bf16.msra.mxu0 %v14857_v9  ;;  %s15635_s18 = smov 80  }
  0x51   :  { %14878 = vmatprep.subr.bf16.mxu0 %v14877_v54 }
  0x52   :  { %14868 = vmatpush3.bf16.msra.mxu1 %v14865_v55 }
  0x53   :  { %14209 = vmatmul.mubr.msk.f32.vlgmr.msra.gmra.mrb[0].mxu0 %vm173_vm0, %v164_v10  ;;  %14870 = vmatprep.subr.bf16.mxu1 %v14869_v61 }
  0x54   :  { %14211 = vmatprep.mubr.msk.f32.mxu0 %vm173_vm0, %v165_v11  ;;  %14880 = vmatpush3.bf16.msra.mxu0 %v14877_v54  ;;  %v13496_v11 = vld [vmem:[%s15663_s17] ss:$0 sm:$0xff] }
  0x55   :  { %14882 = vmatprep.subr.bf16.mxu0 %v14881_v58 }
  0x57   :  { %14212 = vmatmul.mubr.msk.f32.gmra.mrb[2].mxu0 %vm173_vm0, %v166_v12 }
  0x58   :  { %14884 = vmatpush3.bf16.msra.mxu0 %v14881_v58 }
 0x126   :  { %v14210_v14 = vpop.f32.mrb[0].mxu0 }
 0x127   :  { %v252_v16 = vpop.f32.mrb[1].mxu0  ;;  %v15863_v18 = vadd.f32 %v14210_v14, %v272_v15 }
 0x128   :  { %v15861_v17 = vadd.f32 %v271_v13, %v252_v16 }
 0x129   :  { %v283_v24 = vsel %vm279_vm1, %v15863_v18, 0.0 }
 0x12a   :  { %v14213_v19 = vpop.f32.mrb[2].mxu0  ;;  %v280_v20 = vsel %vm279_vm1, %v15861_v17, 0.0 }
 0x12b   :  { %281 = vadd.xlane.f32.xlu0 %v280_v20  ;;  %v262_v21 = vpop.f32.mrb[3].mxu0  ;;  %v15869_v23 = vadd.f32 %v14213_v19, %v272_v15 }
 0x12c   :  { %v15867_v22 = vadd.f32 %v271_v13, %v262_v21  ;;  %v13497_v13 = vld [vmem:[%s15668_s21] ss:$0 sm:$0xff] }
 0x12d   :  { %v289_v26 = vsel %vm279_vm1, %v15869_v23, 0.0 }
 0x12e   :  { %v286_v25 = vsel %vm279_vm1, %v15867_v22, 0.0 }
 0x12f   :  { %284 = vadd.xlane.f32.xlu0 %v283_v24  ;;  %287 = vadd.xlane.f32.xlu1 %v286_v25  ;;  %v463_v25 = vld [vmem:[%s15683_s3 + $0x10] sm:$0xff] }
 0x133   :  { %290 = vadd.xlane.f32.xlu1 %v289_v26  ;;  %v464_v26 = vld [vmem:[%s15683_s3 + $0x18] sm:$0xff] }
 0x1b8   :  { %v282_v27 = vpop.xlane.xlu0 %281 }
 0x1b9   :  { %v293_v28 = vmul.f32 0.03125, %v282_v27 }
 0x1bb   :  { %v15878_v29 = vsub.f32 %v15861_v17, %v293_v28 }
 0x1bc   :  { %v285_v30 = vpop.xlane.xlu0 %284  ;;  %v288_v31 = vpop.xlane.xlu1 %287 }
 0x1bd   :  { %v294_v32 = vmul.f32 0.03125, %v285_v30  ;;  %v295_v33 = vmul.f32 0.03125, %v288_v31  ;;  %v301_v34 = vmul.f32 %v15878_v29, %v15878_v29 }
 0x1bf   :  { %v15883_v35 = vsub.f32 %v15863_v18, %v294_v32  ;;  %v15886_v36 = vsub.f32 %v15867_v22, %v295_v33  ;;  %v305_v37 = vsel %vm279_vm1, %v301_v34, 0.0  ;;  %v14873_v32 = vpack.c.bf16 %v464_v26, %v463_v25 }
 0x1c0   :  { %306 = vadd.xlane.f32.xlu0 %v305_v37  ;;  %v291_v38 = vpop.xlane.xlu1 %290 }
 0x1c1   :  { %v296_v39 = vmul.f32 0.03125, %v291_v38  ;;  %v302_v40 = vmul.f32 %v15883_v35, %v15883_v35  ;;  %v303_v41 = vmul.f32 %v15886_v36, %v15886_v36 }
 0x1c3   :  { %v15894_v42 = vsub.f32 %v15869_v23, %v296_v39  ;;  %v308_v43 = vsel %vm279_vm1, %v302_v40, 0.0  ;;  %v311_v44 = vsel %vm279_vm1, %v303_v41, 0.0  ;;  %v13498_v39 = vld [vmem:[%s15678_s29] ss:$0 sm:$0xff] }
 0x1c4   :  { %309 = vadd.xlane.f32.xlu1 %v308_v43  ;;  %312 = vadd.xlane.f32.xlu0 %v311_v44  ;;  %v13508_v40 = vld [vmem:[%s15698_s19] ss:$0 sm:$0xff] }
 0x1c5   :  { %v304_v45 = vmul.f32 %v15894_v42, %v15894_v42 }
 0x1c7   :  { %v314_v46 = vsel %vm279_vm1, %v304_v45, 0.0 }
 0x1c8   :  { %315 = vadd.xlane.f32.xlu1 %v314_v46 }
 0x24d   :  { %v307_v62 = vpop.xlane.xlu0 %306 }
 0x24e   :  { %v317_v63 = vmul.f32 0.03125, %v307_v62 }
 0x250   :  { %v321_v0 = vadd.f32 1e-06, %v317_v63 }
 0x251   :  { %v313_v1 = vpop.xlane.xlu0 %312  ;;  %v310_v2 = vpop.xlane.xlu1 %309 }
 0x252   :  { %15329 = vrsqrt.f32 %v321_v0  ;;  %v319_v3 = vmul.f32 0.03125, %v313_v1  ;;  %v318_v4 = vmul.f32 0.03125, %v310_v2  ;;  %v15626_v0 = vmov 1983009808  }
 0x253   :  { %v678_v1 = vunpack.c.l.s4 %v15626_v0  ;;  %v680_v2 = vlaneseq }
 0x254   :  { %v323_v5 = vadd.f32 1e-06, %v319_v3  ;;  %v322_v6 = vadd.f32 1e-06, %v318_v4 }
 0x255   :  { %v316_v7 = vpop.xlane.xlu1 %315 }
 0x256   :  { %15331 = vrsqrt.f32 %v323_v5  ;;  %v320_v8 = vmul.f32 0.03125, %v316_v7  ;;  %v15627_v5 = vmov 1934713408   ;;  %v679_v7 = vunpack.c.0.s8 %v678_v1 }
 0x257   :  { %15333 = vrsqrt.f32 %v322_v6  ;;  %v710_v6 = vunpack.c.l.s4 %v15627_v5 }
 0x258   :  { %v324_v9 = vadd.f32 1e-06, %v320_v8  ;;  %v681_v8 = vshrl.u32 %v680_v2, 7 }
 0x25a   :  { %15335 = vrsqrt.f32 %v324_v9 }
 0x25c   :  { %v15330_v10 = vpop.eup %15329 }
 0x25d   :  { %v329_v12 = vmul.f32 %v15330_v10, %v15878_v29 }
 0x25f   :  { %v339_v14 = vmul.f32 %v13496_v11, %v329_v12  ;;  %v15995_v12 = vsub.s32 %v679_v7, %v681_v8 }
 0x260   :  { %v15332_v15 = vpop.eup %15331 }
 0x261   :  { %v15334_v16 = vpop.eup %15333  ;;  %v349_v19 = vadd.f32 %v13497_v13, %v339_v14  ;;  %v331_v20 = vmul.f32 %v15332_v15, %v15886_v36 }
 0x262   :  { %v330_v21 = vmul.f32 %v15334_v16, %v15883_v35 }
 0x263   :  { %14222 = vmatprep.mubr.msk.f32.mxu1 %vm279_vm1, %v349_v19  ;;  %14250 = vmatprep.mubr.msk.f32.mxu0 %vm279_vm1, %v349_v19  ;;  %v341_v24 = vmul.f32 %v13496_v11, %v331_v20 }
 0x264   :  { %v15336_v27 = vpop.eup %15335  ;;  %v340_v28 = vmul.f32 %v13496_v11, %v330_v21 }
 0x265   :  { %v351_v30 = vadd.f32 %v13497_v13, %v341_v24  ;;  %v332_v29 = vmul.f32 %v15336_v27, %v15894_v42 }
 0x266   :  { %v350_v31 = vadd.f32 %v13497_v13, %v340_v28 }
 0x267   :  { %v342_v33 = vmul.f32 %v13496_v11, %v332_v29  ;;  %v711_v11 = vunpack.c.0.s8 %v710_v6 }
 0x268   :  { %14223 = vmatmul.mubr.msk.f32.vlgmr.msra.gmra.mrb[0].mxu1 %vm279_vm1, %v350_v31  ;;  %14251 = vmatmul.mubr.msk.f32.vlgmr.msra.gmra.mrb[4].mxu0 %vm279_vm1, %v350_v31 }
 0x269   :  { %14872 = vmatpush3.bf16.msra.mxu1 %v14869_v61  ;;  %14225 = vmatprep.mubr.msk.f32.mxu1 %vm279_vm1, %v351_v30  ;;  %v352_v34 = vadd.f32 %v13497_v13, %v342_v33  ;;  %v15997_v21 = vsub.s32 %v711_v11, %v681_v8 }
 0x26a   :  { %14253 = vmatprep.mubr.msk.f32.mxu0 %vm279_vm1, %v351_v30  ;;  %14874 = vmatprep.subr.bf16.mxu1 %v14873_v32 }
 0x26c   :  { %14226 = vmatmul.mubr.msk.f32.gmra.mrb[2].mxu1 %vm279_vm1, %v352_v34  ;;  %14254 = vmatmul.mubr.msk.f32.gmra.mrb[6].mxu0 %vm279_vm1, %v352_v34 }
 0x26d   :  { %14876 = vmatpush3.bf16.msra.mxu1 %v14873_v32  ;;  %14236 = vmatprep.mubr.msk.f32.mxu1 %vm279_vm1, %v349_v19 }
 0x270   :  { %14237 = vmatmul.mubr.msk.f32.vlgmr.msra.gmra.mrb[4].mxu1 %vm279_vm1, %v350_v31 }
 0x271   :  { %14239 = vmatprep.mubr.msk.f32.mxu1 %vm279_vm1, %v351_v30 }
 0x274   :  { %14240 = vmatmul.mubr.msk.f32.gmra.mrb[6].mxu1 %vm279_vm1, %v352_v34 }
 0x33b   :  { %v14224_v35 = vpop.f32.mrb[0].mxu1  ;;  %v14252_v36 = vpop.f32.mrb[4].mxu0 }
 0x33c   :  { %v442_v37 = vpop.f32.mrb[1].mxu1  ;;  %v634_v38 = vpop.f32.mrb[5].mxu0  ;;  %v448_v58 = vadd.f32 %v14224_v35, %v13498_v39  ;;  %v15975_v61 = vadd.f32 %v14252_v36, %v13508_v40 }
 0x33d   :  { %v443_v56 = vadd.f32 %v13498_v39, %v442_v37  ;;  %v15965_v60 = vadd.f32 %v13508_v40, %v634_v38 }
 0x33e   :  { %v15959_v59 = vmul.f32 0.35355338, %v448_v58 }
 0x33f   :  { %v14227_v41 = vpop.f32.mrb[2].mxu1  ;;  %v14255_v42 = vpop.f32.mrb[6].mxu0  ;;  %v15950_v57 = vmul.f32 0.35355338, %v443_v56 }
 0x340   :  { %v15933_v43 = vadd.f32 %v14227_v41, %v13498_v39  ;;  %v15935_v44 = vadd.f32 %v14255_v42, %v13508_v40  ;;  %v452_v45 = vpop.f32.mrb[3].mxu1  ;;  %v644_v46 = vpop.f32.mrb[7].mxu0 }
 0x341   :  { %v15937_v47 = vadd.f32 %v13498_v39, %v452_v45  ;;  %v15939_v48 = vadd.f32 %v13508_v40, %v644_v46 }
 0x343   :  { %v14238_v50 = vpop.f32.mrb[4].mxu1 }
 0x344   :  { %v544_v51 = vadd.f32 %v14238_v50, %v13503_v49  ;;  %v538_v52 = vpop.f32.mrb[5].mxu1 }
 0x345   :  { %v15942_v53 = vadd.f32 %v13503_v49, %v538_v52 }
 0x346   :  { %951 = vrot.lane.b32.xlu1 %v544_v51, %s15623_s0 }
 0x347   :  { %v14241_v54 = vpop.f32.mrb[6].mxu1  ;;  %949 = vrot.lane.b32.xlu0 %v15942_v53, %s15623_s0 }
 0x348   :  { %v548_v55 = vpop.f32.mrb[7].mxu1  ;;  %v15989_v63 = vadd.f32 %v14241_v54, %v13503_v49 }
 0x349   :  { %v15977_v62 = vadd.f32 %v13503_v49, %v548_v55 }
 0x34a   :  { %957 = vrot.lane.b32.xlu1 %v544_v51, %s15624_s5 }
 0x34b   :  { %961 = vrot.lane.b32.xlu0 %v15942_v53, %s15625_s9 }
 0x34e   :  { %963 = vrot.lane.b32.xlu1 %v544_v51, %s15625_s9 }
 0x34f   :  { %657 = vrot.lane.b32.xlu0 %v15950_v57, %s15623_s0 }
 0x352   :  { %955 = vrot.lane.b32.xlu1 %v15942_v53, %s15624_s5 }
 0x353   :  { %669 = vrot.lane.b32.xlu0 %v15950_v57, %s15625_s9 }
 0x356   :  { %663 = vrot.lane.b32.xlu1 %v15950_v57, %s15624_s5 }
 0x357   :  { %665 = vrot.lane.b32.xlu0 %v15959_v59, %s15624_s5 }
 0x35a   :  { %659 = vrot.lane.b32.xlu1 %v15959_v59, %s15623_s0 }
 0x35b   :  { %1241 = vrot.lane.b32.xlu0 %v15965_v60, %s15623_s0 }
 0x35e   :  { %671 = vrot.lane.b32.xlu1 %v15959_v59, %s15625_s9 }
 0x35f   :  { %1253 = vrot.lane.b32.xlu0 %v15965_v60, %s15625_s9 }
 0x362   :  { %1243 = vrot.lane.b32.xlu1 %v15975_v61, %s15623_s0 }
 0x363   :  { %2892 = vrot.lane.b32.xlu0 %v15977_v62, %s15623_s0 }
 0x366   :  { %1247 = vrot.lane.b32.xlu1 %v15965_v60, %s15624_s5 }
 0x36a   :  { %1249 = vrot.lane.b32.xlu1 %v15975_v61, %s15624_s5 }
 0x36e   :  { %1255 = vrot.lane.b32.xlu1 %v15975_v61, %s15625_s9 }
 0x372   :  { %2894 = vrot.lane.b32.xlu1 %v15989_v63, %s15623_s0 }
 0x376   :  { %2898 = vrot.lane.b32.xlu1 %v15977_v62, %s15624_s5 }
 0x3b8   :  { %v952_v3 = vpop.permute.xlu1 %951 }
 0x3b9   :  { %v950_v4 = vpop.permute.xlu0 %949 }
 0x3bc   :  { %v958_v9 = vpop.permute.xlu1 %957 }
 0x3bd   :  { %v962_v10 = vpop.permute.xlu0 %961  ;;  %v1035_v13 = vcombine.low %v544_v51, %v958_v9  ;;  %v1036_v14 = vcombine.high %v544_v51, %v958_v9 }
 0x3be   :  { %v983_v28 = vcombine.low %v950_v4, %v962_v10  ;;  %v984_v30 = vcombine.high %v950_v4, %v962_v10 }
 0x3bf   :  { %v1043_v24 = vrot.slane %v1035_v13, %v15995_v12  ;;  %v1050_v25 = vrot.slane %v1036_v14, %v15995_v12 }
 0x3c0   :  { %v964_v15 = vpop.permute.xlu1 %963  ;;  %v991_v46 = vrot.slane %v983_v28, %v15995_v12  ;;  %v998_v49 = vrot.slane %v984_v30, %v15995_v12 }
 0x3c1   :  { %v1051_v16 = vcombine.low %v952_v3, %v964_v15  ;;  %v1052_v19 = vcombine.high %v952_v3, %v964_v15  ;;  %v658_v20 = vpop.permute.xlu0 %657 }
 0x3c3   :  { %v1059_v26 = vrot.slane %v1051_v16, %v15995_v12  ;;  %v1066_v27 = vrot.slane %v1052_v19, %v15995_v12 }
 0x3c4   :  { %v956_v29 = vpop.permute.xlu1 %955 }
 0x3c5   :  { %v1067_v31 = vcombine.low %v1043_v24, %v1059_v26  ;;  %v1068_v32 = vcombine.high %v1043_v24, %v1059_v26  ;;  %v1083_v33 = vcombine.low %v1050_v25, %v1066_v27  ;;  %v1084_v34 = vcombine.high %v1050_v25, %v1066_v27  ;;  %v670_v35 = vpop.permute.xlu0 %669 }
 0x3c6   :  { %v967_v36 = vcombine.low %v15942_v53, %v956_v29  ;;  %v968_v37 = vcombine.high %v15942_v53, %v956_v29  ;;  %v691_v38 = vcombine.low %v658_v20, %v670_v35  ;;  %v692_v39 = vcombine.high %v658_v20, %v670_v35 }
 0x3c7   :  { %v1075_v40 = vrot.slane %v1067_v31, %v15997_v21  ;;  %v1082_v41 = vrot.slane %v1068_v32, %v15997_v21  ;;  %v1091_v42 = vrot.slane %v1083_v33, %v15997_v21  ;;  %v1098_v45 = vrot.slane %v1084_v34, %v15997_v21 }
 0x3c8   :  { %v975_v50 = vrot.slane %v967_v36, %v15995_v12  ;;  %v982_v51 = vrot.slane %v968_v37, %v15995_v12  ;;  %v664_v52 = vpop.permute.xlu1 %663  ;;  %v699_v5 = vrot.slane %v691_v38, %v15995_v12  ;;  %v706_v6 = vrot.slane %v692_v39, %v15995_v12 }
 0x3c9   :  { %v1171_v53 = vcombine.low %v1075_v40, %v1082_v41  ;;  %v13519_v54 = vcombine.high %v1075_v40, %v1082_v41  ;;  %v1187_v55 = vcombine.low %v1091_v42, %v1098_v45  ;;  %v666_v56 = vpop.permute.xlu0 %665  ;;  %v13520_v4 = vcombine.high %v1091_v42, %v1098_v45 }
 0x3ca   :  { %v999_v58 = vcombine.low %v975_v50, %v991_v46  ;;  %v1000_v0 = vcombine.high %v975_v50, %v991_v46  ;;  %v1015_v1 = vcombine.low %v982_v51, %v998_v49  ;;  %v1016_v2 = vcombine.high %v982_v51, %v998_v49 }
 0x3cb   :  { %v16014_v3 = vrot.slane %v1171_v53, %v15995_v12  ;;  %v16023_v13 = vrot.slane %v13519_v54, %v15995_v12  ;;  %v16026_v14 = vrot.slane %v1187_v55, %v15995_v12  ;;  %v675_v15 = vcombine.low %v15950_v57, %v664_v52 }
 0x3cc   :  { %v1007_v7 = vrot.slane %v999_v58, %v15997_v21  ;;  %v1014_v8 = vrot.slane %v1000_v0, %v15997_v21  ;;  %v1023_v9 = vrot.slane %v1015_v1, %v15997_v21  ;;  %v1030_v10 = vrot.slane %v1016_v2, %v15997_v21  ;;  %v660_v11 = vpop.permute.xlu1 %659 }
 0x3cd   :  { %v676_v16 = vcombine.high %v15950_v57, %v664_v52  ;;  %v1242_v19 = vpop.permute.xlu0 %1241  ;;  %v683_v27 = vrot.slane %v675_v15, %v15995_v12  ;;  %v743_v30 = vcombine.low %v15959_v59, %v666_v56  ;;  %v744_v29 = vcombine.high %v15959_v59, %v666_v56 }
 0x3ce   :  { %v1103_v20 = vcombine.low %v1007_v7, %v1014_v8  ;;  %v13517_v24 = vcombine.high %v1007_v7, %v1014_v8  ;;  %v1119_v25 = vcombine.low %v1023_v9, %v1030_v10  ;;  %v13518_v26 = vcombine.high %v1023_v9, %v1030_v10 }
 0x3cf   :  { %v690_v28 = vrot.slane %v676_v16, %v15995_v12  ;;  %v707_v35 = vcombine.low %v683_v27, %v699_v5  ;;  %v708_v36 = vcombine.high %v683_v27, %v699_v5  ;;  %v751_v51 = vrot.slane %v743_v30, %v15995_v12 }
 0x3d0   :  { %v16035_v31 = vrot.slane %v1103_v20, %v15995_v12  ;;  %v16038_v32 = vrot.slane %v13517_v24, %v15995_v12  ;;  %v16041_v57 = vrot.slane %v1119_v25, %v15995_v12  ;;  %v16044_v33 = vrot.slane %v13518_v26, %v15995_v12  ;;  %v672_v34 = vpop.permute.xlu1 %671 }
 0x3d1   :  { %v723_v37 = vcombine.low %v690_v28, %v706_v6  ;;  %v724_v38 = vcombine.high %v690_v28, %v706_v6  ;;  %v1254_v39 = vpop.permute.xlu0 %1253  ;;  %v759_v40 = vcombine.low %v660_v11, %v672_v34  ;;  %v760_v59 = vcombine.high %v660_v11, %v672_v34 }
 0x3d2   :  { %v1275_v41 = vcombine.low %v1242_v19, %v1254_v39  ;;  %v1276_v42 = vcombine.high %v1242_v19, %v1254_v39  ;;  %v16047_v45 = vrot.slane %v707_v35, %v15997_v21  ;;  %v16050_v46 = vrot.slane %v708_v36, %v15997_v21 }
 0x3d3   :  { %v16053_v49 = vrot.slane %v723_v37, %v15997_v21  ;;  %v16056_v50 = vrot.slane %v724_v38, %v15997_v21  ;;  %v758_v52 = vrot.slane %v744_v29, %v15995_v12  ;;  %v767_v53 = vrot.slane %v759_v40, %v15995_v12 }
 0x3d4   :  { %v774_v54 = vrot.slane %v760_v59, %v15995_v12  ;;  %v16062_v55 = vpop.permute.xlu1 %1243  ;;  %v16065_v56 = vrot.slane %v13520_v4, %v15995_v12  ;;  %v811_v58 = vcombine.low %v16047_v45, %v16050_v46  ;;  %v1283_v0 = vrot.slane %v1275_v41, %v15995_v12 }
 0x3d5   :  { %v1290_v1 = vrot.slane %v1276_v42, %v15995_v12  ;;  %v775_v2 = vcombine.low %v751_v51, %v767_v53  ;;  %v776_v5 = vcombine.high %v751_v51, %v767_v53  ;;  %v13513_v8 = vcombine.high %v16047_v45, %v16050_v46 }
 0x3d6   :  { %v791_v6 = vcombine.low %v758_v52, %v774_v54  ;;  %v792_v7 = vcombine.high %v758_v52, %v774_v54  ;;  %v827_v9 = vcombine.low %v16053_v49, %v16056_v50  ;;  %v1135_v4 = vcombine.low %v16035_v31, %v16038_v32 }
 0x3d7   :  { %v1151_v10 = vcombine.low %v16041_v57, %v16044_v33  ;;  %v783_v11 = vrot.slane %v775_v2, %v15997_v21  ;;  %v790_v15 = vrot.slane %v776_v5, %v15997_v21  ;;  %v1203_v26 = vcombine.low %v16014_v3, %v16023_v13 }
 0x3d8   :  { %v799_v16 = vrot.slane %v791_v6, %v15997_v21  ;;  %v806_v19 = vrot.slane %v792_v7, %v15997_v21  ;;  %v1248_v20 = vpop.permute.xlu1 %1247  ;;  %v1219_v27 = vcombine.low %v16026_v14, %v16065_v56  ;;  %v1143_v37 = vrot.slane %v1135_v4, %v15997_v21 }
 0x3d9   :  { %v1259_v24 = vcombine.low %v15965_v60, %v1248_v20  ;;  %v1260_v25 = vcombine.high %v15965_v60, %v1248_v20  ;;  %v879_v28 = vcombine.low %v783_v11, %v790_v15  ;;  %v13515_v30 = vcombine.high %v783_v11, %v790_v15 }
 0x3da   :  { %v895_v29 = vcombine.low %v799_v16, %v806_v19  ;;  %v13516_v34 = vcombine.high %v799_v16, %v806_v19  ;;  %v1159_v38 = vrot.slane %v1151_v10, %v15997_v21  ;;  %v13514_v51 = vcombine.high %v16053_v49, %v16056_v50 }
 0x3db   :  { %v1267_v35 = vrot.slane %v1259_v24, %v15995_v12  ;;  %v1274_v36 = vrot.slane %v1260_v25, %v15995_v12  ;;  %v16094_v60 = vrot.slane %v879_v28, %v15995_v12  ;;  %v16097_v39 = vrot.slane %v13515_v30, %v15995_v12 }
 0x3dc   :  { %v16100_v40 = vrot.slane %v895_v29, %v15995_v12  ;;  %v16103_v59 = vrot.slane %v13516_v34, %v15995_v12  ;;  %v1211_v54 = vrot.slane %v1203_v26, %v15997_v21  ;;  %v1250_v6 = vpop.permute.xlu1 %1249  ;;  %v1227_v7 = vrot.slane %v1219_v27, %v15997_v21 }
 0x3dd   :  { %v1291_v41 = vcombine.low %v1267_v35, %v1283_v0  ;;  %v1292_v42 = vcombine.high %v1267_v35, %v1283_v0  ;;  %v1307_v45 = vcombine.low %v1274_v36, %v1290_v1  ;;  %v1308_v46 = vcombine.high %v1274_v36, %v1290_v1 }
 0x3de   :  { %v911_v52 = vcombine.low %v16094_v60, %v16097_v39  ;;  %v927_v53 = vcombine.low %v16100_v40, %v16103_v59  ;;  %v912_v2 = vcombine.high %v16094_v60, %v16097_v39  ;;  %v1167_v1 = vcombine.low %v1143_v37, %v1159_v38 }
 0x3df   :  { %v16115_v5 = vrot.slane %v1291_v41, %v15997_v21  ;;  %v16118_v0 = vrot.slane %v1292_v42, %v15997_v21  ;;  %v928_v49 = vcombine.high %v16100_v40, %v16103_v59  ;;  %v16123_v50 = vrot.slane %v1307_v45, %v15997_v21 }
 0x3e0   :  { %v1168_v4 = vcombine.high %v1143_v37, %v1159_v38  ;;  %v16127_v10 = vrot.slane %v911_v52, %v15997_v21  ;;  %v16130_v11 = vrot.slane %v927_v53, %v15997_v21  ;;  %v16133_v15 = vrot.slane %v1308_v46, %v15997_v21  ;;  %v1256_v41 = vpop.permute.xlu1 %1255 }
 0x3e1   :  { %v1395_v16 = vcombine.low %v16115_v5, %v16118_v0  ;;  %v1235_v19 = vcombine.low %v1211_v54, %v1227_v7  ;;  %v1236_v20 = vcombine.high %v1211_v54, %v1227_v7  ;;  %v818_v24 = vrot.slane %v811_v58, %v15995_v12 }
 0x3e2   :  { %v826_v25 = vrot.slane %v13513_v8, %v15995_v12  ;;  %v834_v27 = vrot.slane %v827_v9, %v15995_v12  ;;  %v842_v28 = vrot.slane %v13514_v51, %v15995_v12  ;;  %v1136_v30 = vcombine.high %v16035_v31, %v16038_v32 }
 0x3e3   :  { %v1152_v29 = vcombine.high %v16041_v57, %v16044_v33  ;;  %v14885_v34 = vpack.c.bf16 %v1235_v19, %v1167_v1  ;;  %v14891_v58 = vpack.c.bf16 %v1236_v20, %v1168_v4  ;;  %v1204_v8 = vcombine.high %v16014_v3, %v16023_v13 }
 0x3e4   :  { %v843_v35 = vcombine.low %v818_v24, %v826_v25  ;;  %v859_v36 = vcombine.low %v834_v27, %v842_v28  ;;  %v1150_v37 = vrot.slane %v1136_v30, %v15997_v21  ;;  %v1220_v9 = vcombine.high %v16026_v14, %v16065_v56 }
 0x3e5   :  { %v1166_v38 = vrot.slane %v1152_v29, %v15997_v21  ;;  %14887 = vmatprep.subr.msk.bf16.mxu1 %vm16141_vm3, %v14885_v34  ;;  %14893 = vmatprep.subr.msk.bf16.mxu0 %vm16141_vm3, %v14891_v58  ;;  %v1218_v32 = vrot.slane %v1204_v8, %v15997_v21  ;;  %v1327_v3 = vcombine.low %v15975_v61, %v1250_v6 }
 0x3e6   :  { %v851_v31 = vrot.slane %v843_v35, %v15997_v21  ;;  %14890 = vmatpush3.bf16.xpose.msk.msra.mxu1 %vm16141_vm3, %v14885_v34  ;;  %14896 = vmatpush3.bf16.xpose.msk.msra.mxu0 %vm16141_vm3, %v14891_v58  ;;  %v867_v13 = vrot.slane %v859_v36, %v15997_v21  ;;  %v1234_v57 = vrot.slane %v1220_v9, %v15997_v21 }
 0x3e7   :  { %v1169_v14 = vcombine.low %v1150_v37, %v1166_v38  ;;  %v1170_v33 = vcombine.high %v1150_v37, %v1166_v38  ;;  %v1328_v56 = vcombine.high %v15975_v61, %v1250_v6  ;;  %v1335_v42 = vrot.slane %v1327_v3, %v15995_v12 }
 0x3e8   :  { %v1343_v45 = vcombine.low %v16062_v55, %v1256_v41  ;;  %v875_v46 = vcombine.low %v851_v31, %v867_v13  ;;  %v876_v51 = vcombine.high %v851_v31, %v867_v13  ;;  %v1237_v52 = vcombine.low %v1218_v32, %v1234_v57 }
 0x3e9   :  { %v1238_v53 = vcombine.high %v1218_v32, %v1234_v57  ;;  %v1342_v54 = vrot.slane %v1328_v56, %v15995_v12  ;;  %v1344_v1 = vcombine.high %v16062_v55, %v1256_v41  ;;  %v943_v4 = vcombine.low %v16127_v10, %v16130_v11 }
 0x3ea   :  { %v1351_v7 = vrot.slane %v1343_v45, %v15995_v12  ;;  %14260 = vmatprep.mubr.msk.f32.mxu1 %vm1531_vm2, %v875_v46  ;;  %14267 = vmatprep.mubr.msk.f32.mxu0 %vm1531_vm2, %v876_v51  ;;  %v14897_v61 = vpack.c.bf16 %v1237_v52, %v1169_v14  ;;  %v944_v19 = vcombine.high %v16127_v10, %v16130_v11 }
 0x3eb   :  { %v14903_v6 = vpack.c.bf16 %v1238_v53, %v1170_v33  ;;  %v1358_v20 = vrot.slane %v1344_v1, %v15995_v12  ;;  %v844_v34 = vcombine.high %v818_v24, %v826_v25  ;;  %v13521_v55 = vcombine.high %v16115_v5, %v16118_v0 }
 0x3ec   :  { %v1359_v30 = vcombine.low %v1335_v42, %v1351_v7  ;;  %v1360_v29 = vcombine.high %v1335_v42, %v1351_v7  ;;  %v1411_v58 = vcombine.low %v16123_v50, %v16133_v15  ;;  %14899 = vmatprep.subr.msk.bf16.mxu1 %vm16141_vm3, %v14897_v61  ;;  %v860_v35 = vcombine.high %v834_v27, %v842_v28 }
 0x3ed   :  { %14905 = vmatprep.subr.msk.bf16.mxu0 %vm16141_vm3, %v14903_v6  ;;  %v1375_v8 = vcombine.low %v1342_v54, %v1358_v20  ;;  %v1376_v36 = vcombine.high %v1342_v54, %v1358_v20  ;;  %14261 = vmatmul.mubr.msk.f32.vlgmr.msra.gmra.mrb[8].mxu1 %vm1531_vm2, %v943_v4  ;;  %v13522_v24 = vcombine.high %v16123_v50, %v16133_v15 }
 0x3ee   :  { %v1367_v10 = vrot.slane %v1359_v30, %v15997_v21  ;;  %v1374_v11 = vrot.slane %v1360_v29, %v15997_v21  ;;  %14268 = vmatmul.mubr.msk.f32.vlgmr.msra.gmra.mrb[8].mxu0 %vm1531_vm2, %v944_v19  ;;  %14902 = vmatpush3.bf16.xpose.msk.msra.mxu1 %vm16141_vm3, %v14897_v61  ;;  %v858_v25 = vrot.slane %v844_v34, %v15997_v21 }
 0x3ef   :  { %v874_v27 = vrot.slane %v860_v35, %v15997_v21  ;;  %v1383_v28 = vrot.slane %v1375_v8, %v15997_v21  ;;  %v1390_v37 = vrot.slane %v1376_v36, %v15997_v21  ;;  %14908 = vmatpush3.bf16.xpose.msk.msra.mxu0 %vm16141_vm3, %v14903_v6  ;;  %v926_v15 = vrot.slane %v912_v2, %v15997_v21 }
 0x3f0   :  { %v1463_v38 = vcombine.low %v1367_v10, %v1374_v11  ;;  %v13523_v9 = vcombine.high %v1367_v10, %v1374_v11  ;;  %v942_v3 = vrot.slane %v928_v49, %v15997_v21  ;;  %v1402_v13 = vrot.slane %v1395_v16, %v15995_v12 }
 0x3f1   :  { %v877_v41 = vcombine.low %v858_v25, %v874_v27  ;;  %v878_v50 = vcombine.high %v858_v25, %v874_v27  ;;  %v1479_v31 = vcombine.low %v1383_v28, %v1390_v37  ;;  %v13524_v32 = vcombine.high %v1383_v28, %v1390_v37 }
 0x3f2   :  { %v1410_v14 = vrot.slane %v13521_v55, %v15995_v12  ;;  %v1418_v60 = vrot.slane %v1411_v58, %v15995_v12  ;;  %v1426_v39 = vrot.slane %v13522_v24, %v15995_v12  ;;  %v945_v2 = vcombine.low %v926_v15, %v942_v3 }
 0x3f3   :  { %14274 = vmatprep.mubr.msk.f32.mxu1 %vm1531_vm2, %v877_v41  ;;  %14281 = vmatprep.mubr.msk.f32.mxu0 %vm1531_vm2, %v878_v50  ;;  %v946_v57 = vcombine.high %v926_v15, %v942_v3  ;;  %v1470_v40 = vrot.slane %v1463_v38, %v15995_v12  ;;  %v1478_v59 = vrot.slane %v13523_v9, %v15995_v12 }
 0x3f4   :  { %v1427_v49 = vcombine.low %v1402_v13, %v1410_v14  ;;  %v1443_v33 = vcombine.low %v1418_v60, %v1426_v39  ;;  %v1486_v5 = vrot.slane %v1479_v31, %v15995_v12  ;;  %v1494_v0 = vrot.slane %v13524_v32, %v15995_v12 }
 0x3f5   :  { %14275 = vmatmul.mubr.msk.f32.vlgmr.msra.gmra.mrb[10].mxu1 %vm1531_vm2, %v945_v2  ;;  %v1495_v16 = vcombine.low %v1470_v40, %v1478_v59  ;;  %v1428_v56 = vcombine.high %v1402_v13, %v1410_v14  ;;  %v1444_v42 = vcombine.high %v1418_v60, %v1426_v39  ;;  %v1496_v45 = vcombine.high %v1470_v40, %v1478_v59 }
 0x3f6   :  { %14282 = vmatmul.mubr.msk.f32.vlgmr.msra.gmra.mrb[10].mxu0 %vm1531_vm2, %v946_v57  ;;  %v1435_v46 = vrot.slane %v1427_v49, %v15997_v21  ;;  %v1451_v51 = vrot.slane %v1443_v33, %v15997_v21  ;;  %v1511_v52 = vcombine.low %v1486_v5, %v1494_v0  ;;  %v1512_v53 = vcombine.high %v1486_v5, %v1494_v0  ;;  %v16275_v57 = vpop.permute.xlu0 %2892 }
 0x3f7   :  { %v1503_v54 = vrot.slane %v1495_v16, %v15997_v21  ;;  %v1510_v1 = vrot.slane %v1496_v45, %v15997_v21  ;;  %v1442_v4 = vrot.slane %v1428_v56, %v15997_v21  ;;  %v1458_v61 = vrot.slane %v1444_v42, %v15997_v21 }
 0x3f8   :  { %v1519_v7 = vrot.slane %v1511_v52, %v15997_v21  ;;  %v1526_v6 = vrot.slane %v1512_v53, %v15997_v21  ;;  %v1459_v19 = vcombine.low %v1435_v46, %v1451_v51  ;;  %v1460_v20 = vcombine.high %v1435_v46, %v1451_v51 }
 0x3f9   :  { %v1461_v10 = vcombine.low %v1442_v4, %v1458_v61  ;;  %v1462_v11 = vcombine.high %v1442_v4, %v1458_v61  ;;  %v16258_v39 = vmul.f32 0.35355338, %v15937_v47  ;;  %v16265_v2 = vmul.f32 0.35355338, %v15933_v43  ;;  %v16273_v47 = vpop.permute.xlu1 %2894 }
 0x3fa   :  { %v1527_v30 = vcombine.low %v1503_v54, %v1519_v7  ;;  %v1528_v29 = vcombine.high %v1503_v54, %v1519_v7  ;;  %v1529_v34 = vcombine.low %v1510_v1, %v1526_v6  ;;  %v1530_v55 = vcombine.high %v1510_v1, %v1526_v6 }
 0x3fc   :  { %v14909_v58 = vpack.c.bf16 %v1527_v30, %v1459_v19  ;;  %v14913_v35 = vpack.c.bf16 %v1528_v29, %v1460_v20  ;;  %v16236_v8 = vpack.c.bf16 %v1529_v34, %v1461_v10  ;;  %v16238_v36 = vpack.c.bf16 %v1530_v55, %v1462_v11 }
 0x3fd   :  { %v16277_v40 = vpop.permute.xlu1 %2898 }
 0x3fe   :  { %14910 = vmatprep.subr.bf16.mxu1 %v14909_v58  ;;  %14914 = vmatprep.subr.bf16.mxu0 %v14913_v35 }
 0x3ff   :  { %14912 = vmatpush3.bf16.msra.mxu1 %v14909_v58  ;;  %14916 = vmatpush3.bf16.msra.mxu0 %v14913_v35 }
 0x400   :  { %14918 = vmatprep.subr.bf16.mxu1 %v16236_v8  ;;  %14922 = vmatprep.subr.bf16.mxu0 %v16238_v36 }
 0x4c0   :  { %v14262_v24 = vpop.f32.mrb[8].mxu1 }
 0x4c1   :  { %v14269_v25 = vpop.f32.mrb[8].mxu0  ;;  %v1610_v27 = vpop.f32.mrb[9].mxu1  ;;  %v1884_v28 = vsel %vm1880_vm4, %v14262_v24, -inf }
 0x4c2   :  { %v1697_v37 = vpop.f32.mrb[9].mxu0  ;;  %1885 = vmax.xlane.f32.xlu0 %v1884_v28  ;;  %v1890_v9 = vsel %vm1880_vm4, %v14269_v25, -inf  ;;  %v1881_v31 = vsel %vm1880_vm4, %v1610_v27, -inf }
 0x4c3   :  { %v1887_v38 = vsel %vm1880_vm4, %v1697_v37, -inf }
 0x4c4   :  { %1888 = vmax.xlane.f32.xlu1 %v1887_v38 }
 0x4c6   :  { %1891 = vmax.xlane.f32.xlu0 %v1890_v9 }
 0x4c8   :  { %v14276_v41 = vpop.f32.mrb[10].mxu1 }
 0x4c9   :  { %v14283_v50 = vpop.f32.mrb[10].mxu0  ;;  %v16245_v15 = vpop.f32.mrb[11].mxu1  ;;  %v1896_v13 = vsel %vm1880_vm4, %v14276_v41, -inf }
 0x4ca   :  { %v1871_v32 = vpop.f32.mrb[11].mxu0  ;;  %v1902_v3 = vsel %vm1880_vm4, %v14283_v50, -inf  ;;  %1882 = vmax.xlane.f32.xlu0 %v1881_v31  ;;  %v1893_v60 = vsel %vm1880_vm4, %v16245_v15, -inf }
 0x4cb   :  { %1903 = vmax.xlane.f32.xlu1 %v1902_v3  ;;  %v1899_v14 = vsel %vm1880_vm4, %v1871_v32, -inf }
 0x4ce   :  { %1897 = vmax.xlane.f32.xlu0 %v1896_v13 }
 0x4cf   :  { %1900 = vmax.xlane.f32.xlu1 %v1899_v14 }
 0x4d2   :  { %1894 = vmax.xlane.f32.xlu0 %v1893_v60 }
 0x4e0   :  { %2900 = vrot.lane.b32.xlu1 %v15989_v63, %s15624_s5 }
 0x4e4   :  { %2906 = vrot.lane.b32.xlu1 %v15989_v63, %s15625_s9 }
 0x4e8   :  { %2606 = vrot.lane.b32.xlu1 %v16258_v39, %s15624_s5  ;;  %2904 = vrot.lane.b32.xlu0 %v15977_v62, %s15625_s9 }
 0x4ec   :  { %2602 = vrot.lane.b32.xlu1 %v16265_v2, %s15623_s0  ;;  %2600 = vrot.lane.b32.xlu0 %v16258_v39, %s15623_s0 }
 0x4f0   :  { %2612 = vrot.lane.b32.xlu0 %v16258_v39, %s15625_s9 }
 0x54f   :  { %v1886_v59 = vpop.xlane.xlu0 %1885 }
 0x550   :  { %v1906_v49 = vsub.f32 %v14262_v24, %v1886_v59  ;;  %v2910_v59 = vcombine.low %v15977_v62, %v16277_v40 }
 0x551   :  { %v1889_v33 = vpop.xlane.xlu1 %1888 }
 0x552   :  { %v1915_v43 = vmul.f32 1.442695, %v1906_v49  ;;  %v1907_v5 = vsub.f32 %v1697_v37, %v1889_v33  ;;  %v2911_v33 = vcombine.high %v15977_v62, %v16277_v40 }
 0x553   :  { %v1892_v0 = vpop.xlane.xlu0 %1891 }
 0x554   :  { %15337 = vpow2.f32 %v1915_v43  ;;  %v1908_v16 = vsub.f32 %v14269_v25, %v1892_v0  ;;  %v1917_v56 = vmul.f32 1.442695, %v1907_v5 }
 0x556   :  { %v1919_v42 = vmul.f32 1.442695, %v1908_v16 }
 0x557   :  { %v1883_v45 = vpop.xlane.xlu0 %1882 }
 0x558   :  { %15339 = vpow2.f32 %v1919_v42  ;;  %v1904_v46 = vpop.xlane.xlu1 %1903  ;;  %v1905_v51 = vsub.f32 %v1610_v27, %v1883_v45  ;;  %v2925_v45 = vrot.slane %v2911_v33, %v15995_v12 }
 0x559   :  { %15341 = vpow2.f32 %v1917_v56  ;;  %v1912_v20 = vsub.f32 %v14283_v50, %v1904_v46 }
 0x55a   :  { %v1913_v52 = vmul.f32 1.442695, %v1905_v51 }
 0x55b   :  { %v1898_v53 = vpop.xlane.xlu0 %1897  ;;  %v1927_v58 = vmul.f32 1.442695, %v1912_v20 }
 0x55c   :  { %15343 = vpow2.f32 %v1913_v52  ;;  %v1901_v54 = vpop.xlane.xlu1 %1900  ;;  %v1910_v1 = vsub.f32 %v14276_v41, %v1898_v53 }
 0x55d   :  { %v1911_v7 = vsub.f32 %v1871_v32, %v1901_v54 }
 0x55e   :  { %v16279_v4 = vpop.eup %15337  ;;  %v1923_v61 = vmul.f32 1.442695, %v1910_v1 }
 0x55f   :  { %v1932_v6 = vsel %vm1880_vm4, %v16279_v4, 0.0  ;;  %v1925_v19 = vmul.f32 1.442695, %v1911_v7  ;;  %v1895_v29 = vpop.xlane.xlu0 %1894 }
 0x560   :  { %1933 = vadd.xlane.f32.xlu0 %v1932_v6  ;;  %15345 = vpow2.f32 %v1923_v61  ;;  %v1909_v35 = vsub.f32 %v16245_v15, %v1895_v29  ;;  %v2901_v31 = vpop.permute.xlu1 %2900 }
 0x561   :  { %15347 = vpow2.f32 %v1925_v19  ;;  %v2978_v43 = vcombine.low %v15989_v63, %v2901_v31  ;;  %v2979_v5 = vcombine.high %v15989_v63, %v2901_v31 }
 0x562   :  { %v16283_v30 = vpop.eup %15339  ;;  %15349 = vpow2.f32 %v1927_v58  ;;  %v1921_v25 = vmul.f32 1.442695, %v1909_v35 }
 0x563   :  { %v1938_v34 = vsel %vm1880_vm4, %v16283_v30, 0.0  ;;  %v16287_v55 = vpop.eup %15341  ;;  %v2905_v32 = vpop.permute.xlu0 %2904  ;;  %v2993_v62 = vrot.slane %v2979_v5, %v15995_v12 }
 0x564   :  { %1939 = vadd.xlane.f32.xlu1 %v1938_v34  ;;  %v1935_v11 = vsel %vm1880_vm4, %v16287_v55, 0.0  ;;  %15351 = vpow2.f32 %v1921_v25  ;;  %v2907_v3 = vpop.permute.xlu1 %2906  ;;  %v2926_v13 = vcombine.low %v16275_v57, %v2905_v32  ;;  %v2927_v60 = vcombine.high %v16275_v57, %v2905_v32 }
 0x565   :  { %v2994_v14 = vcombine.low %v16273_v47, %v2907_v3  ;;  %v2995_v49 = vcombine.high %v16273_v47, %v2907_v3  ;;  %v2918_v57 = vrot.slane %v2910_v59, %v15995_v12  ;;  %v2986_v47 = vrot.slane %v2978_v43, %v15995_v12 }
 0x566   :  { %v16290_v10 = vpop.eup %15343  ;;  %v2934_v0 = vrot.slane %v2926_v13, %v15995_v12  ;;  %v2941_v56 = vrot.slane %v2927_v60, %v15995_v12 }
 0x567   :  { %v1929_v24 = vsel %vm1880_vm4, %v16290_v10, 0.0  ;;  %v3002_v16 = vrot.slane %v2994_v14, %v15995_v12  ;;  %v3009_v42 = vrot.slane %v2995_v49, %v15995_v12  ;;  %v2601_v54 = vpop.permute.xlu0 %2600 }
 0x568   :  { %1936 = vadd.xlane.f32.xlu1 %v1935_v11  ;;  %1930 = vadd.xlane.f32.xlu0 %v1929_v24  ;;  %v2942_v40 = vcombine.low %v2918_v57, %v2934_v0  ;;  %v2943_v46 = vcombine.high %v2918_v57, %v2934_v0  ;;  %v2958_v52 = vcombine.low %v2925_v45, %v2941_v56  ;;  %v2607_v61 = vpop.permute.xlu1 %2606 }
 0x569   :  { %v3010_v51 = vcombine.low %v2986_v47, %v3002_v16  ;;  %v3011_v63 = vcombine.high %v2986_v47, %v3002_v16  ;;  %v2959_v53 = vcombine.high %v2925_v45, %v2941_v56  ;;  %v3026_v1 = vcombine.low %v2993_v62, %v3009_v42 }
 0x56a   :  { %v16296_v27 = vpop.eup %15345  ;;  %v3027_v7 = vcombine.high %v2993_v62, %v3009_v42  ;;  %v2950_v6 = vrot.slane %v2942_v40, %v15997_v21  ;;  %v2957_v19 = vrot.slane %v2943_v46, %v15997_v21  ;;  %v2966_v34 = vrot.slane %v2958_v52, %v15997_v21 }
 0x56b   :  { %v16298_v28 = vpop.eup %15347  ;;  %v1944_v38 = vsel %vm1880_vm4, %v16296_v27, 0.0  ;;  %v3018_v20 = vrot.slane %v3010_v51, %v15997_v21  ;;  %v3025_v29 = vrot.slane %v3011_v63, %v15997_v21  ;;  %v2973_v58 = vrot.slane %v2959_v53, %v15997_v21  ;;  %v2613_v24 = vpop.permute.xlu0 %2612 }
 0x56c   :  { %v1947_v37 = vsel %vm1880_vm4, %v16298_v28, 0.0  ;;  %v16304_v9 = vpop.eup %15349  ;;  %1945 = vadd.xlane.f32.xlu0 %v1944_v38  ;;  %v3034_v35 = vrot.slane %v3026_v1, %v15997_v21  ;;  %v3041_v11 = vrot.slane %v3027_v7, %v15997_v21  ;;  %v3046_v25 = vcombine.low %v2950_v6, %v2957_v19  ;;  %v16342_v38 = vpop.permute.xlu1 %2602 }
 0x56d   :  { %1948 = vadd.xlane.f32.xlu1 %v1947_v37  ;;  %v1950_v41 = vsel %vm1880_vm4, %v16304_v9, 0.0  ;;  %v13557_v37 = vcombine.high %v2950_v6, %v2957_v19  ;;  %v3062_v31 = vcombine.low %v2966_v34, %v2973_v58  ;;  %v13558_v32 = vcombine.high %v2966_v34, %v2973_v58 }
 0x56e   :  { %v16308_v50 = vpop.eup %15351  ;;  %v3130_v3 = vcombine.low %v3034_v35, %v3041_v11  ;;  %v13560_v13 = vcombine.high %v3034_v35, %v3041_v11  ;;  %v2634_v14 = vcombine.low %v2601_v54, %v2613_v24  ;;  %v2635_v60 = vcombine.high %v2601_v54, %v2613_v24 }
 0x56f   :  { %v1941_v15 = vsel %vm1880_vm4, %v16308_v50, 0.0  ;;  %v16345_v59 = vrot.slane %v3046_v25, %v15995_v12  ;;  %v16348_v49 = vrot.slane %v13557_v37, %v15995_v12  ;;  %v2618_v33 = vcombine.low %v16258_v39, %v2607_v61 }
 0x570   :  { %1951 = vadd.xlane.f32.xlu0 %v1950_v41  ;;  %v3114_v41 = vcombine.low %v3018_v20, %v3025_v29  ;;  %v2619_v43 = vcombine.high %v16258_v39, %v2607_v61  ;;  %v16359_v57 = vrot.slane %v3062_v31, %v15995_v12  ;;  %v16362_v42 = vrot.slane %v13558_v32, %v15995_v12 }
 0x571   :  { %v16365_v45 = vrot.slane %v3130_v3, %v15995_v12  ;;  %v16368_v47 = vrot.slane %v13560_v13, %v15995_v12  ;;  %v2642_v39 = vrot.slane %v2634_v14, %v15995_v12  ;;  %v2649_v62 = vrot.slane %v2635_v60, %v15995_v12 }
 0x572   :  { %v16353_v16 = vrot.slane %v3114_v41, %v15995_v12  ;;  %v2626_v40 = vrot.slane %v2618_v33, %v15995_v12  ;;  %v2633_v46 = vrot.slane %v2619_v43, %v15995_v12  ;;  %v3078_v52 = vcombine.low %v16345_v59, %v16348_v49 }
 0x573   :  { %v3094_v53 = vcombine.low %v16359_v57, %v16362_v42  ;;  %v3162_v61 = vcombine.low %v16365_v45, %v16368_v47 }
 0x574   :  { %1942 = vadd.xlane.f32.xlu0 %v1941_v15  ;;  %v13559_v15 = vcombine.high %v3018_v20, %v3025_v29  ;;  %v2650_v1 = vcombine.low %v2626_v40, %v2642_v39  ;;  %v2651_v7 = vcombine.high %v2626_v40, %v2642_v39  ;;  %v2666_v6 = vcombine.low %v2633_v46, %v2649_v62 }
 0x575   :  { %v2667_v19 = vcombine.high %v2633_v46, %v2649_v62  ;;  %v3086_v20 = vrot.slane %v3078_v52, %v15997_v21  ;;  %v3102_v29 = vrot.slane %v3094_v53, %v15997_v21  ;;  %v3170_v11 = vrot.slane %v3162_v61, %v15997_v21 }
 0x576   :  { %v16356_v56 = vrot.slane %v13559_v15, %v15995_v12  ;;  %v2658_v34 = vrot.slane %v2650_v1, %v15997_v21  ;;  %v2665_v58 = vrot.slane %v2651_v7, %v15997_v21  ;;  %v2674_v24 = vrot.slane %v2666_v6, %v15997_v21 }
 0x577   :  { %v2681_v25 = vrot.slane %v2667_v19, %v15997_v21  ;;  %v3111_v32 = vcombine.high %v3086_v20, %v3102_v29  ;;  %v3110_v39 = vcombine.low %v3086_v20, %v3102_v29  ;;  %v3095_v1 = vcombine.high %v16359_v57, %v16362_v42 }
 0x578   :  { %v3146_v54 = vcombine.low %v16353_v16, %v16356_v56  ;;  %v2754_v15 = vcombine.low %v2658_v34, %v2665_v58  ;;  %v13553_v14 = vcombine.high %v2658_v34, %v2665_v58  ;;  %v3147_v7 = vcombine.high %v16353_v16, %v16356_v56 }
 0x579   :  { %v2770_v60 = vcombine.low %v2674_v24, %v2681_v25  ;;  %v13554_v33 = vcombine.high %v2674_v24, %v2681_v25  ;;  %v3109_v56 = vrot.slane %v3095_v1, %v15997_v21 }
 0x57a   :  { %v3154_v35 = vrot.slane %v3146_v54, %v15997_v21  ;;  %v16398_v52 = vrot.slane %v2754_v15, %v15995_v12  ;;  %v3079_v54 = vcombine.high %v16345_v59, %v16348_v49  ;;  %v3161_v42 = vrot.slane %v3147_v7, %v15997_v21 }
 0x57c   :  { %v3179_v3 = vcombine.high %v3154_v35, %v3170_v11  ;;  %v3178_v62 = vcombine.low %v3154_v35, %v3170_v11  ;;  %v3093_v16 = vrot.slane %v3079_v54, %v15997_v21 }
 0x57e   :  { %2614 = vrot.lane.b32.xlu1 %v16265_v2, %s15625_s9  ;;  %v3113_v11 = vcombine.high %v3093_v16, %v3109_v56 }
 0x58a   :  { %2608 = vrot.lane.b32.xlu0 %v16265_v2, %s15624_s5 }
 0x5ed   :  { %v1934_v5 = vpop.xlane.xlu0 %1933 }
 0x5ee   :  { %15353 = vrcp.f32 %v1934_v5 }
 0x5f1   :  { %v1940_v0 = vpop.xlane.xlu1 %1939 }
 0x5f2   :  { %15355 = vrcp.f32 %v1940_v0 }
 0x5f5   :  { %v1937_v51 = vpop.xlane.xlu1 %1936  ;;  %v1931_v63 = vpop.xlane.xlu0 %1930 }
 0x5f6   :  { %15357 = vrcp.f32 %v1937_v51 }
 0x5f7   :  { %15359 = vrcp.f32 %v1931_v63  ;;  %v16395_v63 = vpack.c.bf16 %v3179_v3, %v3111_v32 }
 0x5f8   :  { %v15354_v37 = vpop.eup %15353 }
 0x5f9   :  { %v1946_v43 = vpop.xlane.xlu0 %1945  ;;  %v1962_v51 = vmul.f32 %v15354_v37, %v16279_v4  ;;  %v16413_v4 = vpack.c.bf16 %v3178_v62, %v3110_v39 }
 0x5fa   :  { %v1949_v31 = vpop.xlane.xlu1 %1948 }
 0x5fb   :  { %15361 = vrcp.f32 %v1949_v31 }
 0x5fc   :  { %v15356_v41 = vpop.eup %15355 }
 0x5fd   :  { %v1964_v46 = vmul.f32 %v15356_v41, %v16283_v30  ;;  %v1952_v53 = vpop.xlane.xlu0 %1951  ;;  %v16409_v30 = vrot.slane %v13554_v33, %v15995_v12  ;;  %v3112_v33 = vcombine.low %v3093_v16, %v3109_v56 }
 0x5fe   :  { %15363 = vrcp.f32 %v1952_v53  ;;  %v2615_v59 = vpop.permute.xlu1 %2614 }
 0x5ff   :  { %15365 = vrcp.f32 %v1946_v43  ;;  %v2703_v6 = vcombine.high %v16342_v38, %v2615_v59 }
 0x600   :  { %v15358_v13 = vpop.eup %15357 }
 0x601   :  { %v15360_v5 = vpop.eup %15359  ;;  %v1963_v0 = vmul.f32 %v15358_v13, %v16287_v55  ;;  %v16403_v55 = vrot.slane %v13553_v14, %v15995_v12 }
 0x602   :  { %v1961_v40 = vmul.f32 %v15360_v5, %v16290_v10  ;;  %v16406_v10 = vrot.slane %v2770_v60, %v15995_v12 }
 0x603   :  { %14295 = vmatprep.mubr.msk.f32.mxu0 %vm1880_vm4, %v1963_v0  ;;  %v2786_v49 = vcombine.low %v16398_v52, %v16403_v55 }
 0x604   :  { %14288 = vmatprep.mubr.msk.f32.mxu1 %vm1880_vm4, %v1961_v40  ;;  %14296 = vmatmul.mubr.msk.f32.vlgmr.msra.gmra.mrb[12].mxu0 %vm1880_vm4, %v1964_v46  ;;  %v2802_v61 = vcombine.low %v16406_v10, %v16409_v30 }
 0x605   :  { %14289 = vmatmul.mubr.msk.f32.vlgmr.msra.gmra.mrb[12].mxu1 %vm1880_vm4, %v1962_v51  ;;  %14924 = vmatpush3.bf16.msra.mxu0 %v16238_v36  ;;  %v3163_v36 = vcombine.high %v16365_v45, %v16368_v47  ;;  %v15362_v57 = vpop.eup %15361  ;;  %v2702_v47 = vcombine.low %v16342_v38, %v2615_v59  ;;  %v2794_v29 = vrot.slane %v2786_v49, %v15997_v21 }
 0x606   :  { %14920 = vmatpush3.bf16.msra.mxu1 %v16236_v8  ;;  %14933 = vmatprep.subr.msk.bf16.mxu0 %vm16141_vm3, %v16395_v63  ;;  %v1943_v8 = vpop.xlane.xlu0 %1942  ;;  %v1967_v19 = vmul.f32 %v15362_v57, %v16298_v28  ;;  %v2810_v34 = vrot.slane %v2802_v61, %v15997_v21  ;;  %v2717_v38 = vrot.slane %v2703_v6, %v15995_v12 }
 0x607   :  { %14927 = vmatprep.subr.msk.bf16.mxu1 %vm16141_vm3, %v16413_v4  ;;  %15367 = vrcp.f32 %v1943_v8  ;;  %v3177_v45 = vrot.slane %v3163_v36, %v15997_v21  ;;  %v2710_v37 = vrot.slane %v2702_v47, %v15995_v12  ;;  %v2787_v59 = vcombine.high %v16398_v52, %v16403_v55 }
 0x608   :  { %14309 = vmatprep.mubr.msk.f32.mxu0 %vm1880_vm4, %v1967_v19  ;;  %v15364_v25 = vpop.eup %15363  ;;  %v2819_v31 = vcombine.high %v2794_v29, %v2810_v34  ;;  %v2818_v7 = vcombine.low %v2794_v29, %v2810_v34 }
 0x609   :  { %v3181_v24 = vcombine.high %v3161_v42, %v3177_v45  ;;  %v1968_v15 = vmul.f32 %v15364_v25, %v16304_v9  ;;  %v15366_v32 = vpop.eup %15365  ;;  %v3180_v43 = vcombine.low %v3161_v42, %v3177_v45  ;;  %v2801_v61 = vrot.slane %v2787_v59, %v15997_v21 }
 0x60a   :  { %v2609_v20 = vpop.permute.xlu0 %2608  ;;  %v1966_v46 = vmul.f32 %v15366_v32, %v16296_v27 }
 0x60b   :  { %v2686_v58 = vcombine.low %v16265_v2, %v2609_v20  ;;  %v2687_v35 = vcombine.high %v16265_v2, %v2609_v20  ;;  %14310 = vmatmul.mubr.msk.f32.vlgmr.msra.gmra.mrb[14].mxu0 %vm1880_vm4, %v1968_v15  ;;  %v14943_v60 = vpack.c.bf16 %v3181_v24, %v3113_v11  ;;  %v14937_v36 = vpack.c.bf16 %v3180_v43, %v3112_v33 }
 0x60c   :  { %14323 = vmatprep.mubr.msk.f32.mxu0 %vm1531_vm2, %v2819_v31 }
 0x60d   :  { %v2694_v28 = vrot.slane %v2686_v58, %v15995_v12  ;;  %v2701_v41 = vrot.slane %v2687_v35, %v15995_v12 }
 0x60e   :  { %14936 = vmatpush3.bf16.xpose.msk.msra.mxu0 %vm16141_vm3, %v16395_v63  ;;  %v2803_v63 = vcombine.high %v16406_v10, %v16409_v30 }
 0x60f   :  { %v2718_v3 = vcombine.low %v2694_v28, %v2710_v37  ;;  %v2719_v13 = vcombine.high %v2694_v28, %v2710_v37  ;;  %v2734_v2 = vcombine.low %v2701_v41, %v2717_v38  ;;  %v2735_v14 = vcombine.high %v2701_v41, %v2717_v38  ;;  %14945 = vmatprep.subr.msk.bf16.mxu0 %vm16141_vm3, %v14943_v60 }
 0x610   :  { %v2817_v57 = vrot.slane %v2803_v63, %v15997_v21 }
 0x611   :  { %v15368_v5 = vpop.eup %15367  ;;  %v2726_v0 = vrot.slane %v2718_v3, %v15997_v21  ;;  %v2733_v39 = vrot.slane %v2719_v13, %v15997_v21  ;;  %v2742_v62 = vrot.slane %v2734_v2, %v15997_v21  ;;  %v2749_v9 = vrot.slane %v2735_v14, %v15997_v21 }
 0x612   :  { %v1965_v40 = vmul.f32 %v15368_v5, %v16308_v50  ;;  %v2821_v47 = vcombine.high %v2801_v61, %v2817_v57 }
 0x613   :  { %v2822_v51 = vcombine.low %v2726_v0, %v2733_v39  ;;  %v13555_v53 = vcombine.high %v2726_v0, %v2733_v39  ;;  %v2838_v54 = vcombine.low %v2742_v62, %v2749_v9  ;;  %v13556_v1 = vcombine.high %v2742_v62, %v2749_v9 }
 0x614   :  { %14302 = vmatprep.mubr.msk.f32.mxu1 %vm1880_vm4, %v1965_v40 }
 0x615   :  { %v2829_v50 = vrot.slane %v2822_v51, %v15995_v12  ;;  %v2837_v27 = vrot.slane %v13555_v53, %v15995_v12  ;;  %v2845_v8 = vrot.slane %v2838_v54, %v15995_v12  ;;  %v2853_v49 = vrot.slane %v13556_v1, %v15995_v12  ;;  %14303 = vmatmul.mubr.msk.f32.vlgmr.msra.gmra.mrb[14].mxu1 %vm1880_vm4, %v1966_v46 }
 0x616   :  { %14930 = vmatpush3.bf16.xpose.msk.msra.mxu1 %vm16141_vm3, %v16413_v4  ;;  %14316 = vmatprep.mubr.msk.f32.mxu1 %vm1531_vm2, %v2818_v7  ;;  %v2820_v4 = vcombine.low %v2801_v61, %v2817_v57 }
 0x617   :  { %v2854_v52 = vcombine.low %v2829_v50, %v2837_v27  ;;  %v2870_v55 = vcombine.low %v2845_v8, %v2853_v49  ;;  %14939 = vmatprep.subr.msk.bf16.mxu1 %vm16141_vm3, %v14937_v36  ;;  %v2855_v16 = vcombine.high %v2829_v50, %v2837_v27  ;;  %v2871_v56 = vcombine.high %v2845_v8, %v2853_v49 }
 0x619   :  { %v2862_v10 = vrot.slane %v2854_v52, %v15997_v21  ;;  %v2878_v30 = vrot.slane %v2870_v55, %v15997_v21  ;;  %v2869_v6 = vrot.slane %v2855_v16, %v15997_v21  ;;  %v2885_v19 = vrot.slane %v2871_v56, %v15997_v21 }
 0x61b   :  { %v2886_v42 = vcombine.low %v2862_v10, %v2878_v30  ;;  %v2887_v45 = vcombine.high %v2862_v10, %v2878_v30  ;;  %v2888_v20 = vcombine.low %v2869_v6, %v2885_v19  ;;  %v2889_v29 = vcombine.high %v2869_v6, %v2885_v19 }
 0x61d   :  { %14317 = vmatmul.mubr.msk.f32.vlgmr.msra.gmra.mrb[16].mxu1 %vm1531_vm2, %v2886_v42  ;;  %14324 = vmatmul.mubr.msk.f32.vlgmr.msra.gmra.mrb[16].mxu0 %vm1531_vm2, %v2887_v45 }
 0x61e   :  { %14942 = vmatpush3.bf16.xpose.msk.msra.mxu1 %vm16141_vm3, %v14937_v36  ;;  %14948 = vmatpush3.bf16.xpose.msk.msra.mxu0 %vm16141_vm3, %v14943_v60 }
 0x61f   :  { %14330 = vmatprep.mubr.msk.f32.mxu1 %vm1531_vm2, %v2820_v4  ;;  %14337 = vmatprep.mubr.msk.f32.mxu0 %vm1531_vm2, %v2821_v47 }
 0x625   :  { %14331 = vmatmul.mubr.msk.f32.vlgmr.msra.gmra.mrb[18].mxu1 %vm1531_vm2, %v2888_v20  ;;  %14338 = vmatmul.mubr.msk.f32.vlgmr.msra.gmra.mrb[18].mxu0 %vm1531_vm2, %v2889_v29 }
 0x6d7   :  { %v14297_v34 = vpop.f32.mrb[12].mxu0 }
 0x6d8   :  { %v14290_v58 = vpop.f32.mrb[12].mxu1  ;;  %v2122_v35 = vpop.f32.mrb[13].mxu0 }
 0x6d9   :  { %v2041_v11 = vpop.f32.mrb[13].mxu1 }
 0x6de   :  { %v14311_v24 = vpop.f32.mrb[14].mxu0 }
 0x6df   :  { %v2377_v25 = vcombine.low %v14297_v34, %v14311_v24  ;;  %v2378_v37 = vcombine.high %v14297_v34, %v14311_v24  ;;  %v2284_v38 = vpop.f32.mrb[15].mxu0 }
 0x6e0   :  { %v2309_v28 = vcombine.low %v2122_v35, %v2284_v38  ;;  %v2310_v41 = vcombine.high %v2122_v35, %v2284_v38 }
 0x6e1   :  { %v2385_v14 = vrot.slane %v2377_v25, %v15995_v12  ;;  %v2392_v60 = vrot.slane %v2378_v37, %v15995_v12 }
 0x6e2   :  { %v2317_v5 = vrot.slane %v2309_v28, %v15995_v12  ;;  %v2324_v0 = vrot.slane %v2310_v41, %v15995_v12 }
 0x6e8   :  { %v14304_v15 = vpop.f32.mrb[14].mxu1 }
 0x6e9   :  { %v2361_v31 = vcombine.low %v14290_v58, %v14304_v15  ;;  %v2362_v32 = vcombine.high %v14290_v58, %v14304_v15  ;;  %v2203_v3 = vpop.f32.mrb[15].mxu1 }
 0x6ea   :  { %v2293_v13 = vcombine.low %v2041_v11, %v2203_v3  ;;  %v2294_v2 = vcombine.high %v2041_v11, %v2203_v3 }
 0x6eb   :  { %v2369_v33 = vrot.slane %v2361_v31, %v15995_v12  ;;  %v2376_v43 = vrot.slane %v2362_v32, %v15995_v12 }
 0x6ec   :  { %v2301_v39 = vrot.slane %v2293_v13, %v15995_v12  ;;  %v2308_v62 = vrot.slane %v2294_v2, %v15995_v12 }
 0x6ed   :  { %v2393_v9 = vcombine.low %v2369_v33, %v2385_v14  ;;  %v2394_v40 = vcombine.high %v2369_v33, %v2385_v14  ;;  %v2409_v46 = vcombine.low %v2376_v43, %v2392_v60  ;;  %v2410_v51 = vcombine.high %v2376_v43, %v2392_v60 }
 0x6ee   :  { %v2325_v53 = vcombine.low %v2301_v39, %v2317_v5  ;;  %v2326_v54 = vcombine.high %v2301_v39, %v2317_v5  ;;  %v2341_v1 = vcombine.low %v2308_v62, %v2324_v0  ;;  %v2342_v7 = vcombine.high %v2308_v62, %v2324_v0 }
 0x6ef   :  { %v2401_v36 = vrot.slane %v2393_v9, %v15997_v21  ;;  %v2408_v59 = vrot.slane %v2394_v40, %v15997_v21  ;;  %v2417_v63 = vrot.slane %v2409_v46, %v15997_v21  ;;  %v2424_v50 = vrot.slane %v2410_v51, %v15997_v21 }
 0x6f0   :  { %v2333_v27 = vrot.slane %v2325_v53, %v15997_v21  ;;  %v2340_v8 = vrot.slane %v2326_v54, %v15997_v21  ;;  %v2349_v49 = vrot.slane %v2341_v1, %v15997_v21  ;;  %v2356_v52 = vrot.slane %v2342_v7, %v15997_v21  ;;  %v16512_v55 = vpop.f32.mrb[16].mxu1  ;;  %v16514_v10 = vpop.f32.mrb[16].mxu0 }
 0x6f1   :  { %v2497_v30 = vcombine.low %v2401_v36, %v2408_v59  ;;  %v13551_v61 = vcombine.high %v2401_v36, %v2408_v59  ;;  %v2513_v57 = vcombine.low %v2417_v63, %v2424_v50  ;;  %v13552_v16 = vcombine.high %v2417_v63, %v2424_v50  ;;  %v16516_v56 = vpop.f32.mrb[17].mxu1  ;;  %v16518_v42 = vpop.f32.mrb[17].mxu0 }
 0x6f2   :  { %v2429_v45 = vcombine.low %v2333_v27, %v2340_v8  ;;  %v13549_v4 = vcombine.high %v2333_v27, %v2340_v8  ;;  %v2445_v47 = vcombine.low %v2349_v49, %v2356_v52  ;;  %v13550_v6 = vcombine.high %v2349_v49, %v2356_v52 }
 0x6f3   :  { %v3825_v19 = vsel %vm1880_vm4, %v16512_v55, -inf  ;;  %v3828_v20 = vsel %vm1880_vm4, %v16518_v42, -inf  ;;  %v2504_v29 = vrot.slane %v2497_v30, %v15995_v12  ;;  %v2512_v34 = vrot.slane %v13551_v61, %v15995_v12 }
 0x6f4   :  { %3826 = vmax.xlane.f32.xlu0 %v3825_v19  ;;  %3829 = vmax.xlane.f32.xlu1 %v3828_v20  ;;  %v2520_v58 = vrot.slane %v2513_v57, %v15995_v12  ;;  %v2528_v35 = vrot.slane %v13552_v16, %v15995_v12  ;;  %v2436_v11 = vrot.slane %v2429_v45, %v15995_v12  ;;  %v3831_v37 = vsel %vm1880_vm4, %v16514_v10, -inf }
 0x6f5   :  { %v2444_v24 = vrot.slane %v13549_v4, %v15995_v12  ;;  %v2452_v25 = vrot.slane %v2445_v47, %v15995_v12  ;;  %v2529_v38 = vcombine.low %v2504_v29, %v2512_v34  ;;  %v2460_v28 = vrot.slane %v13550_v6, %v15995_v12 }
 0x6f6   :  { %v2530_v41 = vcombine.high %v2504_v29, %v2512_v34  ;;  %v2545_v15 = vcombine.low %v2520_v58, %v2528_v35  ;;  %v2546_v32 = vcombine.high %v2520_v58, %v2528_v35  ;;  %v3822_v40 = vsel %vm1880_vm4, %v16516_v56, -inf }
 0x6f7   :  { %v2462_v31 = vcombine.high %v2436_v11, %v2444_v24  ;;  %v2461_v3 = vcombine.low %v2436_v11, %v2444_v24  ;;  %v16539_v14 = vrot.slane %v2529_v38, %v15997_v21  ;;  %v2478_v60 = vcombine.high %v2452_v25, %v2460_v28 }
 0x6f8   :  { %3832 = vmax.xlane.f32.xlu0 %v3831_v37  ;;  %v16534_v13 = vpop.f32.mrb[18].mxu1  ;;  %v16536_v2 = vpop.f32.mrb[18].mxu0  ;;  %v16542_v33 = vrot.slane %v2530_v41, %v15997_v21  ;;  %v2477_v43 = vcombine.low %v2452_v25, %v2460_v28  ;;  %v16545_v39 = vrot.slane %v2545_v15, %v15997_v21  ;;  %v16557_v51 = vrot.slane %v2546_v32, %v15997_v21 }
 0x6f9   :  { %v3726_v5 = vpop.f32.mrb[19].mxu1  ;;  %v3813_v0 = vpop.f32.mrb[19].mxu0  ;;  %v16548_v62 = vrot.slane %v2462_v31, %v15997_v21  ;;  %v16554_v46 = vrot.slane %v2478_v60, %v15997_v21  ;;  %v16562_v54 = vrot.slane %v2461_v3, %v15997_v21  ;;  %v3843_v49 = vsel %vm1880_vm4, %v16536_v2, -inf }
 0x6fa   :  { %v3840_v9 = vsel %vm1880_vm4, %v3813_v0, -inf  ;;  %v2562_v53 = vcombine.high %v16539_v14, %v16545_v39  ;;  %v16565_v1 = vrot.slane %v2477_v43, %v15997_v21  ;;  %v2561_v7 = vcombine.low %v16539_v14, %v16545_v39 }
 0x6fb   :  { %3841 = vmax.xlane.f32.xlu1 %v3840_v9  ;;  %v2495_v36 = vcombine.low %v16548_v62, %v16554_v46  ;;  %v2563_v59 = vcombine.low %v16542_v33, %v16557_v51  ;;  %v2564_v63 = vcombine.high %v16542_v33, %v16557_v51  ;;  %v2496_v50 = vcombine.high %v16548_v62, %v16554_v46  ;;  %v4536_v46 = vld [vmem:[%s15703_s24] sm:$0xff] }
 0x6fc   :  { %3823 = vmax.xlane.f32.xlu0 %v3822_v40  ;;  %v2494_v27 = vcombine.high %v16562_v54, %v16565_v1  ;;  %v2493_v8 = vcombine.low %v16562_v54, %v16565_v1  ;;  %v3834_v52 = vsel %vm1880_vm4, %v3726_v5, -inf  ;;  %v3837_v30 = vsel %vm1880_vm4, %v16534_v13, -inf }
 0x6ff   :  { %3844 = vmax.xlane.f32.xlu1 %v3843_v49 }
 0x700   :  { %3835 = vmax.xlane.f32.xlu0 %v3834_v52 }
 0x704   :  { %3838 = vmax.xlane.f32.xlu0 %v3837_v30 }
 0x710   :  { %3186 = vrot.lane.b32.xlu1 %v15935_v44, %s15623_s0 }
 0x714   :  { %3190 = vrot.lane.b32.xlu1 %v15939_v48, %s15624_s5 }
 0x718   :  { %3192 = vrot.lane.b32.xlu1 %v15935_v44, %s15624_s5 }
 0x71a   :  { %3184 = vrot.lane.b32.xlu0 %v15939_v48, %s15623_s0 }
 0x71c   :  { %3198 = vrot.lane.b32.xlu1 %v15935_v44, %s15625_s9 }
 0x71e   :  { %3196 = vrot.lane.b32.xlu0 %v15939_v48, %s15625_s9 }
 0x781   :  { %v3827_v61 = vpop.xlane.xlu0 %3826  ;;  %v3830_v57 = vpop.xlane.xlu1 %3829 }
 0x782   :  { %v3847_v16 = vsub.f32 %v16512_v55, %v3827_v61  ;;  %v3848_v4 = vsub.f32 %v16518_v42, %v3830_v57 }
 0x784   :  { %v3856_v45 = vmul.f32 1.442695, %v3847_v16  ;;  %v3858_v19 = vmul.f32 1.442695, %v3848_v4 }
 0x785   :  { %v3833_v47 = vpop.xlane.xlu0 %3832 }
 0x786   :  { %15369 = vpow2.f32 %v3856_v45  ;;  %v3849_v6 = vsub.f32 %v16514_v10, %v3833_v47 }
 0x788   :  { %v3860_v20 = vmul.f32 1.442695, %v3849_v6  ;;  %v3842_v29 = vpop.xlane.xlu1 %3841 }
 0x789   :  { %v3852_v34 = vsub.f32 %v3813_v0, %v3842_v29  ;;  %v3824_v58 = vpop.xlane.xlu0 %3823 }
 0x78a   :  { %15371 = vpow2.f32 %v3860_v20  ;;  %v3846_v35 = vsub.f32 %v16516_v56, %v3824_v58 }
 0x78b   :  { %15373 = vpow2.f32 %v3858_v19  ;;  %v3866_v11 = vmul.f32 1.442695, %v3852_v34 }
 0x78c   :  { %v3854_v24 = vmul.f32 1.442695, %v3846_v35  ;;  %v3845_v25 = vpop.xlane.xlu1 %3844 }
 0x78d   :  { %v3836_v55 = vpop.xlane.xlu0 %3835  ;;  %v3853_v56 = vsub.f32 %v16536_v2, %v3845_v25 }
 0x78e   :  { %15375 = vpow2.f32 %v3854_v24  ;;  %v3850_v37 = vsub.f32 %v3726_v5, %v3836_v55 }
 0x78f   :  { %15377 = vpow2.f32 %v3866_v11  ;;  %v3868_v0 = vmul.f32 1.442695, %v3853_v56 }
 0x790   :  { %v16602_v42 = vpop.eup %15369  ;;  %v3862_v38 = vmul.f32 1.442695, %v3850_v37  ;;  %v3187_v10 = vpop.permute.xlu1 %3186 }
 0x791   :  { %v3839_v28 = vpop.xlane.xlu0 %3838  ;;  %v3873_v41 = vsel %vm1880_vm4, %v16602_v42, 0.0 }
 0x792   :  { %15379 = vpow2.f32 %v3862_v38  ;;  %v3851_v15 = vsub.f32 %v16534_v13, %v3839_v28  ;;  %3874 = vadd.xlane.f32.xlu0 %v3873_v41 }
 0x794   :  { %v16608_v31 = vpop.eup %15371  ;;  %v3864_v32 = vmul.f32 1.442695, %v3851_v15  ;;  %v3191_v3 = vpop.permute.xlu1 %3190 }
 0x795   :  { %v3185_v60 = vpop.permute.xlu0 %3184  ;;  %v3879_v43 = vsel %vm1880_vm4, %v16608_v31, 0.0  ;;  %v16612_v5 = vpop.eup %15373  ;;  %v3202_v13 = vcombine.low %v15939_v48, %v3191_v3  ;;  %v3203_v40 = vcombine.high %v15939_v48, %v3191_v3 }
 0x796   :  { %3880 = vadd.xlane.f32.xlu1 %v3879_v43  ;;  %15381 = vpow2.f32 %v3864_v32  ;;  %v3876_v52 = vsel %vm1880_vm4, %v16612_v5, 0.0 }
 0x797   :  { %15383 = vpow2.f32 %v3868_v0  ;;  %v3210_v47 = vrot.slane %v3202_v13, %v15995_v12  ;;  %v3217_v6 = vrot.slane %v3203_v40, %v15995_v12 }
 0x798   :  { %v16614_v9 = vpop.eup %15375  ;;  %v3193_v2 = vpop.permute.xlu1 %3192 }
 0x799   :  { %v3197_v49 = vpop.permute.xlu0 %3196  ;;  %v3870_v30 = vsel %vm1880_vm4, %v16614_v9, 0.0  ;;  %v16622_v61 = vpop.eup %15377  ;;  %v3270_v45 = vcombine.low %v15935_v44, %v3193_v2  ;;  %v3271_v4 = vcombine.high %v15935_v44, %v3193_v2 }
 0x79a   :  { %v3218_v57 = vcombine.low %v3185_v60, %v3197_v49  ;;  %v3219_v16 = vcombine.high %v3185_v60, %v3197_v49  ;;  %3877 = vadd.xlane.f32.xlu1 %v3876_v52  ;;  %3871 = vadd.xlane.f32.xlu0 %v3870_v30  ;;  %v3888_v35 = vsel %vm1880_vm4, %v16622_v61, 0.0 }
 0x79b   :  { %v3278_v37 = vrot.slane %v3270_v45, %v15995_v12  ;;  %v3285_v38 = vrot.slane %v3271_v4, %v15995_v12 }
 0x79c   :  { %v16626_v48 = vpop.eup %15379  ;;  %v3226_v19 = vrot.slane %v3218_v57, %v15995_v12  ;;  %v3233_v20 = vrot.slane %v3219_v16, %v15995_v12  ;;  %v3199_v29 = vpop.permute.xlu1 %3198 }
 0x79d   :  { %v3286_v34 = vcombine.low %v3187_v10, %v3199_v29  ;;  %v3287_v58 = vcombine.high %v3187_v10, %v3199_v29  ;;  %v3882_v11 = vsel %vm1880_vm4, %v16626_v48, 0.0 }
 0x79e   :  { %v3234_v44 = vcombine.low %v3210_v47, %v3226_v19  ;;  %v3235_v24 = vcombine.high %v3210_v47, %v3226_v19  ;;  %v3250_v25 = vcombine.low %v3217_v6, %v3233_v20  ;;  %v3251_v55 = vcombine.high %v3217_v6, %v3233_v20  ;;  %3889 = vadd.xlane.f32.xlu1 %v3888_v35 }
 0x79f   :  { %v3294_v28 = vrot.slane %v3286_v34, %v15995_v12  ;;  %v3301_v41 = vrot.slane %v3287_v58, %v15995_v12  ;;  %3883 = vadd.xlane.f32.xlu0 %v3882_v11 }
 0x7a0   :  { %v3242_v10 = vrot.slane %v3234_v44, %v15997_v21  ;;  %v3249_v15 = vrot.slane %v3235_v24, %v15997_v21  ;;  %v3258_v56 = vrot.slane %v3250_v25, %v15997_v21  ;;  %v3265_v32 = vrot.slane %v3251_v55, %v15997_v21  ;;  %v16644_v3 = vpop.eup %15381 }
 0x7a1   :  { %v3302_v60 = vcombine.low %v3278_v37, %v3294_v28  ;;  %v3303_v43 = vcombine.high %v3278_v37, %v3294_v28  ;;  %v3318_v0 = vcombine.low %v3285_v38, %v3301_v41  ;;  %v3319_v13 = vcombine.high %v3285_v38, %v3301_v41  ;;  %v16655_v20 = vpop.eup %15383 }
 0x7a2   :  { %v3338_v40 = vcombine.low %v3242_v10, %v3249_v15  ;;  %v13561_v2 = vcombine.high %v3242_v10, %v3249_v15  ;;  %v3354_v49 = vcombine.low %v3258_v56, %v3265_v32  ;;  %v13562_v52 = vcombine.high %v3258_v56, %v3265_v32 }
 0x7a3   :  { %v3310_v30 = vrot.slane %v3302_v60, %v15997_v21  ;;  %v3317_v57 = vrot.slane %v3303_v43, %v15997_v21  ;;  %v3326_v16 = vrot.slane %v3318_v0, %v15997_v21  ;;  %v3333_v45 = vrot.slane %v3319_v13, %v15997_v21 }
 0x7a4   :  { %v3885_v4 = vsel %vm1880_vm4, %v16644_v3, 0.0  ;;  %v3345_v47 = vrot.slane %v3338_v40, %v15995_v12  ;;  %v3353_v6 = vrot.slane %v13561_v2, %v15995_v12  ;;  %v3361_v19 = vrot.slane %v3354_v49, %v15995_v12 }
 0x7a5   :  { %v3406_v29 = vcombine.low %v3310_v30, %v3317_v57  ;;  %v13563_v34 = vcombine.high %v3310_v30, %v3317_v57  ;;  %v3422_v58 = vcombine.low %v3326_v16, %v3333_v45  ;;  %v13564_v35 = vcombine.high %v3326_v16, %v3333_v45  ;;  %3886 = vadd.xlane.f32.xlu0 %v3885_v4 }
 0x7a6   :  { %v3369_v11 = vrot.slane %v13562_v52, %v15995_v12  ;;  %v3370_v44 = vcombine.low %v3345_v47, %v3353_v6  ;;  %v3371_v24 = vcombine.high %v3345_v47, %v3353_v6  ;;  %v3891_v28 = vsel %vm1880_vm4, %v16655_v20, 0.0 }
 0x7a7   :  { %v3413_v25 = vrot.slane %v3406_v29, %v15995_v12  ;;  %v3421_v55 = vrot.slane %v13563_v34, %v15995_v12  ;;  %v3429_v37 = vrot.slane %v3422_v58, %v15995_v12  ;;  %v3437_v38 = vrot.slane %v13564_v35, %v15995_v12 }
 0x7a8   :  { %v3378_v41 = vrot.slane %v3370_v44, %v15997_v21  ;;  %v3386_v10 = vcombine.low %v3361_v19, %v3369_v11  ;;  %v3387_v15 = vcombine.high %v3361_v19, %v3369_v11  ;;  %v3385_v13 = vrot.slane %v3371_v24, %v15997_v21 }
 0x7a9   :  { %3892 = vadd.xlane.f32.xlu0 %v3891_v28  ;;  %v3438_v56 = vcombine.low %v3413_v25, %v3421_v55  ;;  %v3454_v32 = vcombine.low %v3429_v37, %v3437_v38  ;;  %v3439_v60 = vcombine.high %v3413_v25, %v3421_v55  ;;  %v3455_v43 = vcombine.high %v3429_v37, %v3437_v38 }
 0x7aa   :  { %v3394_v0 = vrot.slane %v3386_v10, %v15997_v21  ;;  %v3401_v40 = vrot.slane %v3387_v15, %v15997_v21 }
 0x7ab   :  { %v3446_v2 = vrot.slane %v3438_v56, %v15997_v21  ;;  %v3462_v49 = vrot.slane %v3454_v32, %v15997_v21  ;;  %v3453_v52 = vrot.slane %v3439_v60, %v15997_v21  ;;  %v3469_v30 = vrot.slane %v3455_v43, %v15997_v21  ;;  %v4538_v43 = vld [vmem:[%s15703_s24 + $0x10] sm:$0xff] }
 0x7ac   :  { %v3402_v57 = vcombine.low %v3378_v41, %v3394_v0  ;;  %v3403_v45 = vcombine.high %v3378_v41, %v3394_v0  ;;  %v3404_v34 = vcombine.low %v3385_v13, %v3401_v40  ;;  %v3405_v58 = vcombine.high %v3385_v13, %v3401_v40  ;;  %v4539_v0 = vld [vmem:[%s15703_s24 + $0x18] sm:$0xff] }
 0x7ad   :  { %v3470_v16 = vcombine.low %v3446_v2, %v3462_v49  ;;  %v3471_v4 = vcombine.high %v3446_v2, %v3462_v49  ;;  %v3472_v47 = vcombine.low %v3453_v52, %v3469_v30  ;;  %v3473_v6 = vcombine.high %v3453_v52, %v3469_v30 }
 0x7ae   :  { %v14969_v49 = vpack.c.bf16 %v4539_v0, %v4538_v43 }
 0x7af   :  { %2569 = vrot.lane.b32.xlu1 %v2562_v53, %s15628_s13  ;;  %v14949_v19 = vpack.c.bf16 %v3470_v16, %v3402_v57  ;;  %v14953_v29 = vpack.c.bf16 %v3471_v4, %v3403_v45  ;;  %v14957_v35 = vpack.c.bf16 %v3472_v47, %v3404_v34  ;;  %v14961_v11 = vpack.c.bf16 %v3473_v6, %v3405_v58 }
 0x7b1   :  { %14950 = vmatprep.subr.bf16.mxu1 %v14949_v19  ;;  %14954 = vmatprep.subr.bf16.mxu0 %v14953_v29 }
 0x7b2   :  { %14952 = vmatpush3.bf16.msra.mxu1 %v14949_v19  ;;  %14956 = vmatpush3.bf16.msra.mxu0 %v14953_v29 }
 0x7b3   :  { %2575 = vrot.lane.b32.xlu1 %v2495_v36, %s15629_s22  ;;  %14958 = vmatprep.subr.bf16.mxu1 %v14957_v35 }
 0x7b4   :  { %14962 = vmatprep.subr.bf16.mxu0 %v14961_v11 }
 0x7b7   :  { %2577 = vrot.lane.b32.xlu1 %v2563_v59, %s15629_s22 }
 0x7bb   :  { %2585 = vrot.lane.b32.xlu1 %v2564_v63, %s15630_s23 }
 0x7bf   :  { %2567 = vrot.lane.b32.xlu0 %v2494_v27, %s15628_s13 }
 0x7c3   :  { %2583 = vrot.lane.b32.xlu0 %v2496_v50, %s15630_s23  ;;  %v4537_v50 = vld [vmem:[%s15703_s24 + $0x8] sm:$0xff] }
 0x7c4   :  { %v14965_v10 = vpack.c.bf16 %v4537_v50, %v4536_v46 }
 0x81f   :  { %v3875_v53 = vpop.xlane.xlu0 %3874 }
 0x820   :  { %15385 = vrcp.f32 %v3875_v53 }
 0x823   :  { %v3881_v36 = vpop.xlane.xlu1 %3880 }
 0x824   :  { %15387 = vrcp.f32 %v3881_v36 }
 0x827   :  { %v3878_v59 = vpop.xlane.xlu1 %3877  ;;  %v3872_v44 = vpop.xlane.xlu0 %3871 }
 0x828   :  { %15389 = vrcp.f32 %v3878_v59 }
 0x829   :  { %15391 = vrcp.f32 %v3872_v44 }
 0x82a   :  { %v15386_v63 = vpop.eup %15385 }
 0x82b   :  { %v3890_v33 = vpop.xlane.xlu1 %3889  ;;  %v3903_v41 = vmul.f32 %v15386_v63, %v16602_v42 }
 0x82c   :  { %15393 = vrcp.f32 %v3890_v33  ;;  %v3884_v51 = vpop.xlane.xlu0 %3883 }
 0x82d   :  { %15395 = vrcp.f32 %v3884_v51 }
 0x82e   :  { %v15388_v27 = vpop.eup %15387 }
 0x82f   :  { %v2570_v25 = vpop.permute.xlu1 %2569  ;;  %v3905_v28 = vmul.f32 %v15388_v27, %v16608_v31 }
 0x832   :  { %v15390_v24 = vpop.eup %15389  ;;  %v3887_v62 = vpop.xlane.xlu0 %3886 }
 0x833   :  { %v15392_v55 = vpop.eup %15391  ;;  %15397 = vrcp.f32 %v3887_v62  ;;  %v3904_v37 = vmul.f32 %v15390_v24, %v16612_v5  ;;  %v2576_v5 = vpop.permute.xlu1 %2575 }
 0x834   :  { %v3902_v38 = vmul.f32 %v15392_v55, %v16614_v9 }
 0x835   :  { %14351 = vmatprep.mubr.msk.f32.mxu0 %vm1880_vm4, %v3904_v37 }
 0x836   :  { %v15394_v15 = vpop.eup %15393  ;;  %v3893_v56 = vpop.xlane.xlu0 %3892  ;;  %14344 = vmatprep.mubr.msk.f32.mxu1 %vm1880_vm4, %v3902_v38  ;;  %14352 = vmatmul.mubr.msk.f32.vlgmr.msra.gmra.mrb[20].mxu0 %vm1880_vm4, %v3905_v28 }
 0x837   :  { %v15396_v32 = vpop.eup %15395  ;;  %15399 = vrcp.f32 %v3893_v56  ;;  %14345 = vmatmul.mubr.msk.f32.vlgmr.msra.gmra.mrb[20].mxu1 %vm1880_vm4, %v3903_v41  ;;  %14964 = vmatpush3.bf16.msra.mxu0 %v14961_v11  ;;  %v3908_v31 = vmul.f32 %v15394_v15, %v16622_v61  ;;  %v2578_v61 = vpop.permute.xlu1 %2577 }
 0x838   :  { %14960 = vmatpush3.bf16.msra.mxu1 %v14957_v35  ;;  %v3906_v42 = vmul.f32 %v15396_v32, %v16626_v48 }
 0x839   :  { %14365 = vmatprep.mubr.msk.f32.mxu0 %vm1880_vm4, %v3908_v31  ;;  %14966 = vmatprep.subr.bf16.mxu1 %v14965_v10 }
 0x83a   :  { %v2568_v9 = vpop.permute.xlu0 %2567  ;;  %14358 = vmatprep.mubr.msk.f32.mxu1 %vm1880_vm4, %v3906_v42 }
 0x83b   :  { %v2589_v60 = vsel %vm1531_vm2, %v2493_v8, %v2568_v9  ;;  %v2586_v1 = vpop.permute.xlu1 %2585  ;;  %v2590_v8 = vsel %vm1531_vm2, %v2561_v7, %v2570_v25 }
 0x83c   :  { %v2591_v40 = vsel %vm1880_vm4, %v2589_v60, %v2576_v5 }
 0x83d   :  { %v15398_v13 = vpop.eup %15397 }
 0x83e   :  { %v2584_v2 = vpop.permute.xlu0 %2583  ;;  %v3907_v48 = vmul.f32 %v15398_v13, %v16644_v3  ;;  %v2592_v3 = vsel %vm1880_vm4, %v2590_v8, %v2578_v61 }
 0x83f   :  { %v2594_v52 = vsel %vm2593_vm5, %v2591_v40, %v2584_v2  ;;  %v2595_v57 = vsel %vm2593_vm5, %v2592_v3, %v2586_v1 }
 0x840   :  { %14359 = vmatmul.mubr.msk.f32.vlgmr.msra.gmra.mrb[22].mxu1 %vm1880_vm4, %v3907_v48 }
 0x841   :  { %v15400_v30 = vpop.eup %15399  ;;  %14968 = vmatpush3.bf16.msra.mxu1 %v14965_v10  ;;  %14376 = vmatprep.mubr.msk.f32.mxu1 %vm279_vm1, %v2594_v52 }
 0x842   :  { %14970 = vmatprep.subr.bf16.mxu1 %v14969_v49  ;;  %v3909_v54 = vmul.f32 %v15400_v30, %v16655_v20 }
 0x844   :  { %14366 = vmatmul.mubr.msk.f32.vlgmr.msra.gmra.mrb[22].mxu0 %vm1880_vm4, %v3909_v54 }
 0x845   :  { %14972 = vmatpush3.bf16.msra.mxu1 %v14969_v49 }
 0x848   :  { %14377 = vmatmul.mubr.msk.f32.vlgmr.msra.gmra.mrb[24].mxu1 %vm279_vm1, %v2595_v57 }
 0x909   :  { %v14353_v16 = vpop.f32.mrb[20].mxu0 }
 0x90a   :  { %v14346_v45 = vpop.f32.mrb[20].mxu1  ;;  %v4063_v4 = vpop.f32.mrb[21].mxu0 }
 0x90b   :  { %v3982_v47 = vpop.f32.mrb[21].mxu1 }
 0x913   :  { %v14360_v20 = vpop.f32.mrb[22].mxu1 }
 0x914   :  { %v4302_v6 = vcombine.low %v14346_v45, %v14360_v20  ;;  %v4303_v19 = vcombine.high %v14346_v45, %v14360_v20  ;;  %v4144_v29 = vpop.f32.mrb[23].mxu1 }
 0x915   :  { %v4234_v34 = vcombine.low %v3982_v47, %v4144_v29  ;;  %v4235_v58 = vcombine.high %v3982_v47, %v4144_v29 }
 0x916   :  { %v4310_v36 = vrot.slane %v4302_v6, %v15995_v12  ;;  %v4317_v59 = vrot.slane %v4303_v19, %v15995_v12 }
 0x917   :  { %v14367_v14 = vpop.f32.mrb[22].mxu0  ;;  %v4242_v51 = vrot.slane %v4234_v34, %v15995_v12  ;;  %v4249_v63 = vrot.slane %v4235_v58, %v15995_v12 }
 0x918   :  { %v4318_v39 = vcombine.low %v14353_v16, %v14367_v14  ;;  %v4319_v7 = vcombine.high %v14353_v16, %v14367_v14  ;;  %v4225_v35 = vpop.f32.mrb[23].mxu0 }
 0x919   :  { %v4250_v11 = vcombine.low %v4063_v4, %v4225_v35  ;;  %v4251_v53 = vcombine.high %v4063_v4, %v4225_v35 }
 0x91a   :  { %v4326_v44 = vrot.slane %v4318_v39, %v15995_v12  ;;  %v4333_v33 = vrot.slane %v4319_v7, %v15995_v12 }
 0x91b   :  { %v4258_v27 = vrot.slane %v4250_v11, %v15995_v12  ;;  %v4265_v24 = vrot.slane %v4251_v53, %v15995_v12  ;;  %v16738_v25 = vpop.f32.mrb[24].mxu1 }
 0x91c   :  { %v4334_v62 = vcombine.low %v4310_v36, %v4326_v44  ;;  %v4335_v46 = vcombine.high %v4310_v36, %v4326_v44  ;;  %v4350_v50 = vcombine.low %v4317_v59, %v4333_v33  ;;  %v4351_v55 = vcombine.high %v4317_v59, %v4333_v33  ;;  %v4625_v37 = vpop.f32.mrb[25].mxu1 }
 0x91d   :  { %v4266_v38 = vcombine.low %v4242_v51, %v4258_v27  ;;  %v4267_v28 = vcombine.high %v4242_v51, %v4258_v27  ;;  %v4282_v41 = vcombine.low %v4249_v63, %v4265_v24  ;;  %v4283_v10 = vcombine.high %v4249_v63, %v4265_v24 }
 0x91e   :  { %v4342_v15 = vrot.slane %v4334_v62, %v15997_v21  ;;  %v4349_v56 = vrot.slane %v4335_v46, %v15997_v21  ;;  %v4358_v32 = vrot.slane %v4350_v50, %v15997_v21  ;;  %v4365_v31 = vrot.slane %v4351_v55, %v15997_v21  ;;  %v13593_v46 = vld [vmem:[%s15708_s30] ss:$0 sm:$0xff] }
 0x91f   :  { %v4274_v5 = vrot.slane %v4266_v38, %v15997_v21  ;;  %v4281_v42 = vrot.slane %v4267_v28, %v15997_v21  ;;  %v4290_v9 = vrot.slane %v4282_v41, %v15997_v21  ;;  %v4297_v60 = vrot.slane %v4283_v10, %v15997_v21 }
 0x920   :  { %v4438_v43 = vcombine.low %v4342_v15, %v4349_v56  ;;  %v13591_v0 = vcombine.high %v4342_v15, %v4349_v56  ;;  %v4454_v13 = vcombine.low %v4358_v32, %v4365_v31  ;;  %v13592_v61 = vcombine.high %v4358_v32, %v4365_v31 }
 0x921   :  { %v4370_v40 = vcombine.low %v4274_v5, %v4281_v42  ;;  %v13589_v2 = vcombine.high %v4274_v5, %v4281_v42  ;;  %v4386_v48 = vcombine.low %v4290_v9, %v4297_v60  ;;  %v13590_v49 = vcombine.high %v4290_v9, %v4297_v60 }
 0x922   :  { %v4445_v52 = vrot.slane %v4438_v43, %v15995_v12  ;;  %v4453_v30 = vrot.slane %v13591_v0, %v15995_v12  ;;  %v4461_v54 = vrot.slane %v4454_v13, %v15995_v12  ;;  %v4469_v1 = vrot.slane %v13592_v61, %v15995_v12 }
 0x923   :  { %v4377_v8 = vrot.slane %v4370_v40, %v15995_v12  ;;  %v4385_v3 = vrot.slane %v13589_v2, %v15995_v12  ;;  %v4393_v16 = vrot.slane %v4386_v48, %v15995_v12  ;;  %v4401_v4 = vrot.slane %v13590_v49, %v15995_v12 }
 0x924   :  { %v4470_v57 = vcombine.low %v4445_v52, %v4453_v30  ;;  %v4486_v45 = vcombine.low %v4461_v54, %v4469_v1  ;;  %v4471_v20 = vcombine.high %v4445_v52, %v4453_v30  ;;  %v4487_v19 = vcombine.high %v4461_v54, %v4469_v1 }
 0x925   :  { %v4402_v47 = vcombine.low %v4377_v8, %v4385_v3  ;;  %v4403_v29 = vcombine.high %v4377_v8, %v4385_v3  ;;  %v4418_v14 = vcombine.low %v4393_v16, %v4401_v4  ;;  %v4419_v11 = vcombine.high %v4393_v16, %v4401_v4 }
 0x926   :  { %v4478_v6 = vrot.slane %v4470_v57, %v15997_v21  ;;  %v4494_v34 = vrot.slane %v4486_v45, %v15997_v21  ;;  %v4485_v39 = vrot.slane %v4471_v20, %v15997_v21  ;;  %v4501_v7 = vrot.slane %v4487_v19, %v15997_v21  ;;  %v4724_v20 = vld [vmem:[%s15723_s20 + $0x10] sm:$0xff]  ;;  %v4725_v19 = vld [vmem:[%s15723_s20 + $0x18] sm:$0xff] }
 0x927   :  { %v4410_v58 = vrot.slane %v4402_v47, %v15997_v21  ;;  %v4417_v35 = vrot.slane %v4403_v29, %v15997_v21  ;;  %v4426_v36 = vrot.slane %v4418_v14, %v15997_v21  ;;  %v4433_v33 = vrot.slane %v4419_v11, %v15997_v21  ;;  %v4722_v47 = vld [vmem:[%s15723_s20] sm:$0xff] }
 0x928   :  { %v4503_v53 = vcombine.high %v4478_v6, %v4494_v34  ;;  %v4502_v59 = vcombine.low %v4478_v6, %v4494_v34  ;;  %v4504_v44 = vcombine.low %v4485_v39, %v4501_v7  ;;  %v4505_v51 = vcombine.high %v4485_v39, %v4501_v7 }
 0x929   :  { %v4435_v63 = vcombine.high %v4410_v58, %v4426_v36  ;;  %v4434_v27 = vcombine.low %v4410_v58, %v4426_v36  ;;  %v4436_v24 = vcombine.low %v4417_v35, %v4433_v33  ;;  %v4437_v62 = vcombine.high %v4417_v35, %v4433_v33 }
 0x92a   :  { %4510 = vrot.lane.b32.xlu1 %v4503_v53, %s15628_s13  ;;  %v4626_v50 = vadd.f32 %v13593_v46, %v4625_v37  ;;  %v4631_v55 = vadd.f32 %v16738_v25, %v13593_v46  ;;  %v14977_v29 = vpack.c.bf16 %v4725_v19, %v4724_v20 }
 0x92b   :  { %4508 = vrot.lane.b32.xlu0 %v4435_v63, %s15628_s13 }
 0x92c   :  { %v16773_v38 = vadd.f32 %v4626_v50, %v15861_v17  ;;  %v16776_v28 = vadd.f32 %v4631_v55, %v15863_v18 }
 0x92e   :  { %4518 = vrot.lane.b32.xlu1 %v4504_v44, %s15629_s22  ;;  %v4650_v41 = vsel %vm279_vm1, %v16773_v38, 0.0  ;;  %v4653_v10 = vsel %vm279_vm1, %v16776_v28, 0.0 }
 0x92f   :  { %4516 = vrot.lane.b32.xlu0 %v4436_v24, %s15629_s22 }
 0x932   :  { %4526 = vrot.lane.b32.xlu1 %v4505_v51, %s15630_s23 }
 0x933   :  { %4524 = vrot.lane.b32.xlu0 %v4437_v62, %s15630_s23 }
 0x952   :  { %4651 = vadd.xlane.f32.xlu0 %v4650_v41 }
 0x956   :  { %4654 = vadd.xlane.f32.xlu1 %v4653_v10  ;;  %v13599_v10 = vld [vmem:[%s18518_s28] ss:$0 sm:$0xff] }
 0x99c   :  { %v4511_v15 = vpop.permute.xlu1 %4510 }
 0x99d   :  { %v4509_v56 = vpop.permute.xlu0 %4508  ;;  %v4531_v17 = vsel %vm1531_vm2, %v4502_v59, %v4511_v15 }
 0x99e   :  { %v4530_v25 = vsel %vm1531_vm2, %v4434_v27, %v4509_v56 }
 0x9a0   :  { %v4519_v32 = vpop.permute.xlu1 %4518 }
 0x9a1   :  { %v4517_v37 = vpop.permute.xlu0 %4516  ;;  %v4533_v42 = vsel %vm1880_vm4, %v4531_v17, %v4519_v32  ;;  %v4868_v17 = vld [vmem:[%s18519_s1 + $0x10] sm:$0xff] }
 0x9a2   :  { %v4532_v18 = vsel %vm1880_vm4, %v4530_v25, %v4517_v37  ;;  %v4866_v37 = vld [vmem:[%s18519_s1] sm:$0xff]  ;;  %v4867_v25 = vld [vmem:[%s18519_s1 + $0x8] sm:$0xff] }
 0x9a4   :  { %v4527_v31 = vpop.permute.xlu1 %4526 }
 0x9a5   :  { %v4525_v5 = vpop.permute.xlu0 %4524  ;;  %v4535_v60 = vsel %vm2593_vm5, %v4533_v42, %v4527_v31  ;;  %v14981_v31 = vpack.c.bf16 %v4867_v25, %v4866_v37  ;;  %v4870_v42 = vld [vmem:[%s18519_s1 + $0x20] sm:$0xff] }
 0x9a6   :  { %v4534_v9 = vsel %vm2593_vm5, %v4532_v18, %v4525_v5  ;;  %v4869_v18 = vld [vmem:[%s18519_s1 + $0x18] sm:$0xff] }
 0x9a7   :  { %14379 = vmatprep.mubr.msk.f32.mxu1 %vm279_vm1, %v4534_v9  ;;  %14982 = vmatprep.subr.bf16.mxu1 %v14981_v31  ;;  %v14985_v5 = vpack.c.bf16 %v4869_v18, %v4868_v17  ;;  %v4871_v9 = vld [vmem:[%s18519_s1 + $0x28] sm:$0xff] }
 0x9a8   :  { %14380 = vmatmul.mubr.msk.f32.gmra.mrb[26].mxu1 %vm279_vm1, %v4535_v60  ;;  %v4872_v60 = vld [vmem:[%s18519_s1 + $0x30] sm:$0xff] }
 0x9a9   :  { %14984 = vmatpush3.bf16.msra.mxu1 %v14981_v31 }
 0x9aa   :  { %14986 = vmatprep.subr.bf16.mxu1 %v14985_v5 }
 0x9ad   :  { %14988 = vmatpush3.bf16.msra.mxu1 %v14985_v5 }
 0x9df   :  { %v4652_v2 = vpop.xlane.xlu0 %4651 }
 0x9e0   :  { %v4662_v52 = vmul.f32 0.03125, %v4652_v2 }
 0x9e2   :  { %v4666_v8 = vsub.f32 %v16773_v38, %v4662_v52 }
 0x9e3   :  { %v4655_v43 = vpop.xlane.xlu1 %4654 }
 0x9e4   :  { %v4663_v0 = vmul.f32 0.03125, %v4655_v43  ;;  %v4670_v45 = vmul.f32 %v4666_v8, %v4666_v8  ;;  %v14989_v43 = vpack.c.bf16 %v4871_v9, %v4870_v42 }
 0x9e6   :  { %v4667_v13 = vsub.f32 %v16776_v28, %v4663_v0  ;;  %v4674_v4 = vsel %vm279_vm1, %v4670_v45, 0.0  ;;  %v4873_v0 = vld [vmem:[%s18519_s1 + $0x38] sm:$0xff]  ;;  %14990 = vmatprep.subr.bf16.mxu1 %v14989_v43 }
 0x9e7   :  { %14992 = vmatpush3.bf16.msra.mxu1 %v14989_v43 }
 0x9e8   :  { %v4671_v61 = vmul.f32 %v4667_v13, %v4667_v13 }
 0x9ea   :  { %v4677_v40 = vsel %vm279_vm1, %v4671_v61, 0.0 }
 0x9eb   :  { %4678 = vadd.xlane.f32.xlu1 %v4677_v40 }
 0xa7b   :  { %v14381_v48 = vpop.f32.mrb[26].mxu1 }
 0xa7c   :  { %v4635_v49 = vpop.f32.mrb[27].mxu1  ;;  %v4641_v30 = vadd.f32 %v14381_v48, %v13593_v46 }
 0xa7d   :  { %v4636_v54 = vadd.f32 %v13593_v46, %v4635_v49  ;;  %v13598_v46 = vld [vmem:[%s18517_s26] ss:$0 sm:$0xff] }
 0xa7e   :  { %v16797_v3 = vadd.f32 %v4641_v30, %v15869_v23  ;;  %v4679_v23 = vpop.xlane.xlu1 %4678 }
 0xa7f   :  { %v16793_v1 = vadd.f32 %v4636_v54, %v15867_v22  ;;  %v4723_v22 = vld [vmem:[%s15723_s20 + $0x8] sm:$0xff]  ;;  %v4687_v34 = vmul.f32 0.03125, %v4679_v23 }
 0xa80   :  { %v4659_v16 = vsel %vm279_vm1, %v16797_v3, 0.0  ;;  %v14973_v6 = vpack.c.bf16 %v4723_v22, %v4722_v47  ;;  %v13600_v22 = vld [vmem:[%s18520_s2] ss:$0 sm:$0xff] }
 0xa81   :  { %v4656_v57 = vsel %vm279_vm1, %v16793_v1, 0.0  ;;  %v4691_v7 = vadd.f32 1e-06, %v4687_v34 }
 0xa82   :  { %4657 = vadd.xlane.f32.xlu0 %v4656_v57  ;;  %14974 = vmatprep.subr.bf16.mxu0 %v14973_v6 }
 0xa83   :  { %14976 = vmatpush3.bf16.msra.mxu0 %v14973_v6  ;;  %15401 = vrsqrt.f32 %v4691_v7 }
 0xa84   :  { %14978 = vmatprep.subr.bf16.mxu0 %v14977_v29 }
 0xa86   :  { %4660 = vadd.xlane.f32.xlu0 %v4659_v16 }
 0xa87   :  { %14980 = vmatpush3.bf16.msra.mxu0 %v14977_v29 }
 0xa8a   :  { %4675 = vadd.xlane.f32.xlu0 %v4674_v4 }
 0xa8d   :  { %v15402_v24 = vpop.eup %15401 }
 0xa8e   :  { %v4699_v62 = vmul.f32 %v15402_v24, %v4667_v13  ;;  %v14993_v13 = vpack.c.bf16 %v4873_v0, %v4872_v60 }
 0xa90   :  { %v4709_v41 = vmul.f32 %v13598_v46, %v4699_v62  ;;  %14994 = vmatprep.subr.bf16.mxu1 %v14993_v13 }
 0xa91   :  { %14996 = vmatpush3.bf16.msra.mxu1 %v14993_v13 }
 0xa92   :  { %v4719_v32 = vadd.f32 %v13599_v10, %v4709_v41 }
 0xb0f   :  { %v4658_v58 = vpop.xlane.xlu0 %4657 }
 0xb10   :  { %v4664_v14 = vmul.f32 0.03125, %v4658_v58 }
 0xb12   :  { %v4668_v39 = vsub.f32 %v16793_v1, %v4664_v14 }
 0xb13   :  { %v4661_v35 = vpop.xlane.xlu0 %4660 }
 0xb14   :  { %v4665_v11 = vmul.f32 0.03125, %v4661_v35  ;;  %v4672_v53 = vmul.f32 %v4668_v39, %v4668_v39 }
 0xb16   :  { %v4669_v36 = vsub.f32 %v16797_v3, %v4665_v11  ;;  %v4680_v59 = vsel %vm279_vm1, %v4672_v53, 0.0 }
 0xb17   :  { %4681 = vadd.xlane.f32.xlu0 %v4680_v59  ;;  %v4676_v44 = vpop.xlane.xlu0 %4675 }
 0xb18   :  { %v4686_v33 = vmul.f32 0.03125, %v4676_v44  ;;  %v4673_v51 = vmul.f32 %v4669_v36, %v4669_v36 }
 0xb1a   :  { %v4690_v63 = vadd.f32 1e-06, %v4686_v33  ;;  %v4683_v27 = vsel %vm279_vm1, %v4673_v51, 0.0 }
 0xb1b   :  { %4684 = vadd.xlane.f32.xlu1 %v4683_v27 }
 0xb1c   :  { %15403 = vrsqrt.f32 %v4690_v63 }
 0xb26   :  { %v15404_v50 = vpop.eup %15403 }
 0xb27   :  { %v4698_v55 = vmul.f32 %v15404_v50, %v4666_v8 }
 0xb29   :  { %v4708_v15 = vmul.f32 %v13598_v46, %v4698_v55 }
 0xb2b   :  { %v4718_v56 = vadd.f32 %v13599_v10, %v4708_v15 }
 0xb2d   :  { %14390 = vmatprep.mubr.msk.f32.mxu0 %vm279_vm1, %v4718_v56 }
 0xb2e   :  { %14391 = vmatmul.mubr.msk.f32.vlgmr.msra.gmra.mrb[24].mxu0 %vm279_vm1, %v4719_v32 }
 0xba4   :  { %v4682_v61 = vpop.xlane.xlu0 %4681 }
 0xba5   :  { %v4688_v40 = vmul.f32 0.03125, %v4682_v61 }
 0xba7   :  { %v4692_v2 = vadd.f32 1e-06, %v4688_v40 }
 0xba8   :  { %v4685_v48 = vpop.xlane.xlu1 %4684 }
 0xba9   :  { %15405 = vrsqrt.f32 %v4692_v2  ;;  %v4689_v49 = vmul.f32 0.03125, %v4685_v48  ;;  %v13605_v2 = vld [vmem:[%s18521_s7] ss:$0 sm:$0xff] }
 0xbab   :  { %v4693_v52 = vadd.f32 1e-06, %v4689_v49 }
 0xbad   :  { %15407 = vrsqrt.f32 %v4693_v52 }
 0xbb3   :  { %v15406_v30 = vpop.eup %15405 }
 0xbb4   :  { %v4700_v54 = vmul.f32 %v15406_v30, %v4668_v39 }
 0xbb6   :  { %v4710_v8 = vmul.f32 %v13598_v46, %v4700_v54 }
 0xbb7   :  { %v15408_v57 = vpop.eup %15407 }
 0xbb8   :  { %v4720_v16 = vadd.f32 %v13599_v10, %v4710_v8  ;;  %v4701_v45 = vmul.f32 %v15408_v57, %v4669_v36 }
 0xbba   :  { %14393 = vmatprep.mubr.msk.f32.mxu0 %vm279_vm1, %v4720_v16  ;;  %v4711_v4 = vmul.f32 %v13598_v46, %v4701_v45 }
 0xbbc   :  { %v4721_v47 = vadd.f32 %v13599_v10, %v4711_v4 }
 0xbbe   :  { %14394 = vmatmul.mubr.msk.f32.gmra.mrb[26].mxu0 %vm279_vm1, %v4721_v47 }
 0xc01   :  { %v14392_v20 = vpop.f32.mrb[24].mxu0 }
 0xc02   :  { %v4817_v6 = vadd.f32 %v14392_v20, %v13600_v22  ;;  %v4811_v19 = vpop.f32.mrb[25].mxu0 }
 0xc03   :  { %v4812_v29 = vadd.f32 %v13600_v22, %v4811_v19 }
 0xc04   :  { %v4831_v23 = vmul.f32 %v4817_v6, %v4817_v6 }
 0xc05   :  { %v4830_v34 = vmul.f32 %v4812_v29, %v4812_v29 }
 0xc06   :  { %v4835_v58 = vmul.f32 %v4831_v23, %v4817_v6 }
 0xc07   :  { %v4834_v14 = vmul.f32 %v4830_v34, %v4812_v29 }
 0xc08   :  { %v4839_v39 = vmul.f32 0.044715, %v4835_v58 }
 0xc09   :  { %v4838_v7 = vmul.f32 0.044715, %v4834_v14 }
 0xc0a   :  { %v4843_v35 = vadd.f32 %v4839_v39, %v4817_v6 }
 0xc0b   :  { %v4842_v11 = vadd.f32 %v4838_v7, %v4812_v29 }
 0xc0c   :  { %v4847_v53 = vmul.f32 0.7978846, %v4843_v35  ;;  %v13614_v35 = vld [vmem:[%s15673_s25 + $0x20] sm:$0xff] }
 0xc0d   :  { %v4846_v36 = vmul.f32 0.7978846, %v4842_v11  ;;  %v13615_v11 = vld [vmem:[%s15673_s25 + $0x28] sm:$0xff] }
 0xc0e   :  { %15409 = vtanh.f32 %v4847_v53  ;;  %v13634_v53 = vld [vmem:[%s15693_s14 + $0x20] sm:$0xff] }
 0xc0f   :  { %15411 = vtanh.f32 %v4846_v36  ;;  %v14997_v36 = vpack.c.bf16 %v13615_v11, %v13614_v35 }
 0xc11   :  { %14998 = vmatprep.subr.bf16.mxu0 %v14997_v36 }
 0xc12   :  { %15000 = vmatpush3.bf16.msra.mxu0 %v14997_v36 }
 0xc18   :  { %v15410_v59 = vpop.eup %15409 }
 0xc19   :  { %v15412_v44 = vpop.eup %15411  ;;  %v4855_v33 = vadd.f32 1.0, %v15410_v59  ;;  %v13635_v59 = vld [vmem:[%s15693_s14 + $0x28] sm:$0xff] }
 0xc1a   :  { %v4854_v51 = vadd.f32 1.0, %v15412_v44  ;;  %v13616_v44 = vld [vmem:[%s15673_s25 + $0x30] sm:$0xff] }
 0xc1b   :  { %v4859_v63 = vmul.f32 0.5, %v4855_v33  ;;  %v13617_v33 = vld [vmem:[%s15673_s25 + $0x38] sm:$0xff]  ;;  %s18524_s25 = sld [smem:[#allocation11_spill]] }
 0xc1c   :  { %v4858_v27 = vmul.f32 0.5, %v4854_v51  ;;  %v15013_v51 = vpack.c.bf16 %v13635_v59, %v13634_v53 }
 0xc1d   :  { %v4863_v62 = vmul.f32 %v4859_v63, %v4817_v6  ;;  %v15001_v63 = vpack.c.bf16 %v13617_v33, %v13616_v44 }
 0xc1e   :  { %v4862_v24 = vmul.f32 %v4858_v27, %v4812_v29  ;;  %v13636_v27 = vld [vmem:[%s15693_s14 + $0x30] sm:$0xff]  ;;  %15014 = vmatprep.subr.bf16.mxu1 %v15013_v51 }
 0xc1f   :  { %15002 = vmatprep.subr.bf16.mxu0 %v15001_v63 }
 0xc20   :  { %14412 = vmatprep.mubr.msk.f32.mxu1 %vm4881_vm6, %v4862_v24  ;;  %v13637_v24 = vld [vmem:[%s15693_s14 + $0x38] sm:$0xff]  ;;  %15004 = vmatpush3.bf16.msra.mxu0 %v15001_v63  ;;  %s18528_s14 = sld [smem:[#allocation23_spill]] }
 0xc21   :  { %14413 = vmatmul.mubr.msk.f32.vlgmr.msra.gmra.mrb[28].mxu1 %vm4881_vm6, %v4863_v62  ;;  %v15017_v62 = vpack.c.bf16 %v13637_v24, %v13636_v27  ;;  %v13629_v27 = vld [vmem:[%s15688_s8 + $0x1] ss:$0 sm:$0xff]  ;;  %s18527_s8 = sld [smem:[#allocation19_spill]] }
 0xc22   :  { %15016 = vmatpush3.bf16.msra.mxu1 %v15013_v51 }
 0xc23   :  { %15018 = vmatprep.subr.bf16.mxu1 %v15017_v62 }
 0xc26   :  { %15020 = vmatpush3.bf16.msra.mxu1 %v15017_v62 }
 0xc91   :  { %v14395_v46 = vpop.f32.mrb[26].mxu0 }
 0xc92   :  { %v4827_v50 = vadd.f32 %v14395_v46, %v13600_v22  ;;  %v4821_v55 = vpop.f32.mrb[27].mxu0 }
 0xc93   :  { %v4822_v41 = vadd.f32 %v13600_v22, %v4821_v55 }
 0xc94   :  { %v4833_v10 = vmul.f32 %v4827_v50, %v4827_v50 }
 0xc95   :  { %v4832_v15 = vmul.f32 %v4822_v41, %v4822_v41 }
 0xc96   :  { %v4837_v56 = vmul.f32 %v4833_v10, %v4827_v50 }
 0xc97   :  { %v4836_v32 = vmul.f32 %v4832_v15, %v4822_v41 }
 0xc98   :  { %v4841_v37 = vmul.f32 0.044715, %v4837_v56 }
 0xc99   :  { %v4840_v25 = vmul.f32 0.044715, %v4836_v32 }
 0xc9a   :  { %v4845_v31 = vadd.f32 %v4841_v37, %v4827_v50 }
 0xc9b   :  { %v4844_v17 = vadd.f32 %v4840_v25, %v4822_v41 }
 0xc9c   :  { %v4849_v18 = vmul.f32 0.7978846, %v4845_v31 }
 0xc9d   :  { %v4848_v5 = vmul.f32 0.7978846, %v4844_v17 }
 0xc9e   :  { %15413 = vtanh.f32 %v4849_v18 }
 0xc9f   :  { %15415 = vtanh.f32 %v4848_v5 }
 0xca8   :  { %v15414_v42 = vpop.eup %15413 }
 0xca9   :  { %v15416_v9 = vpop.eup %15415  ;;  %v4857_v60 = vadd.f32 1.0, %v15414_v42 }
 0xcaa   :  { %v4856_v43 = vadd.f32 1.0, %v15416_v9 }
 0xcab   :  { %v4861_v0 = vmul.f32 0.5, %v4857_v60 }
 0xcac   :  { %v4860_v13 = vmul.f32 0.5, %v4856_v43  ;;  %v13612_v43 = vld [vmem:[%s15663_s17 + $0x1] ss:$0 sm:$0xff]  ;;  %s18522_s17 = sld [smem:[#allocation13_spill]] }
 0xcad   :  { %v4865_v40 = vmul.f32 %v4861_v0, %v4827_v50 }
 0xcae   :  { %v4864_v61 = vmul.f32 %v4860_v13, %v4822_v41 }
 0xcb0   :  { %14415 = vmatprep.mubr.msk.f32.mxu1 %vm4881_vm6, %v4864_v61 }
 0xcb1   :  { %14416 = vmatmul.mubr.msk.f32.gmra.mrb[30].mxu1 %vm4881_vm6, %v4865_v40  ;;  %v13613_v40 = vld [vmem:[%s15668_s21 + $0x1] ss:$0 sm:$0xff]  ;;  %s18523_s21 = sld [smem:[#allocation10_spill]] }
 0xcf4   :  { %v14414_v48 = vpop.f32.mrb[28].mxu1 }
 0xcf5   :  { %v4966_v49 = vadd.f32 %v14414_v48, %v13605_v2  ;;  %v4960_v52 = vpop.f32.mrb[29].mxu1 }
 0xcf6   :  { %v4961_v30 = vadd.f32 %v13605_v2, %v4960_v52 }
 0xcf7   :  { %v16833_v54 = vadd.f32 %v4966_v49, %v16776_v28 }
 0xcf8   :  { %v16836_v8 = vadd.f32 %v4961_v30, %v16773_v38  ;;  %v13624_v30 = vld [vmem:[%s15683_s3 + $0x20] sm:$0xff] }
 0xcf9   :  { %v4990_v57 = vsel %vm279_vm1, %v16833_v54, 0.0 }
 0xcfa   :  { %4991 = vadd.xlane.f32.xlu1 %v4990_v57  ;;  %v4987_v16 = vsel %vm279_vm1, %v16836_v8, 0.0  ;;  %v13625_v57 = vld [vmem:[%s15683_s3 + $0x28] sm:$0xff] }
 0xcfb   :  { %4988 = vadd.xlane.f32.xlu0 %v4987_v16  ;;  %v15005_v16 = vpack.c.bf16 %v13625_v57, %v13624_v30 }
 0xcfd   :  { %15006 = vmatprep.subr.bf16.mxu0 %v15005_v16 }
 0xd84   :  { %v14417_v45 = vpop.f32.mrb[30].mxu1 }
 0xd85   :  { %v4976_v4 = vadd.f32 %v14417_v45, %v13605_v2  ;;  %v4970_v47 = vpop.f32.mrb[31].mxu1  ;;  %v13626_v45 = vld [vmem:[%s15683_s3 + $0x30] sm:$0xff] }
 0xd86   :  { %v4971_v22 = vadd.f32 %v13605_v2, %v4970_v47 }
 0xd87   :  { %v16843_v20 = vadd.f32 %v4976_v4, %v16797_v3  ;;  %v4992_v28 = vpop.xlane.xlu1 %4991  ;;  %v13627_v4 = vld [vmem:[%s15683_s3 + $0x38] sm:$0xff]  ;;  %s18526_s3 = sld [smem:[#allocation21_spill]] }
 0xd88   :  { %v16846_v6 = vadd.f32 %v4971_v22, %v16793_v1  ;;  %v5000_v38 = vmul.f32 0.03125, %v4992_v28  ;;  %v4989_v19 = vpop.xlane.xlu0 %4988  ;;  %v15009_v47 = vpack.c.bf16 %v13627_v4, %v13626_v45 }
 0xd89   :  { %v4999_v29 = vmul.f32 0.03125, %v4989_v19  ;;  %v4996_v23 = vsel %vm279_vm1, %v16843_v20, 0.0 }
 0xd8a   :  { %v5004_v34 = vsub.f32 %v16833_v54, %v5000_v38  ;;  %4997 = vadd.xlane.f32.xlu1 %v4996_v23  ;;  %v4993_v3 = vsel %vm279_vm1, %v16846_v6, 0.0 }
 0xd8b   :  { %v5003_v1 = vsub.f32 %v16836_v8, %v4999_v29  ;;  %4994 = vadd.xlane.f32.xlu0 %v4993_v3 }
 0xd8c   :  { %v5008_v58 = vmul.f32 %v5004_v34, %v5004_v34 }
 0xd8d   :  { %v5007_v14 = vmul.f32 %v5003_v1, %v5003_v1 }
 0xd8e   :  { %v5014_v39 = vsel %vm279_vm1, %v5008_v58, 0.0 }
 0xd8f   :  { %5015 = vadd.xlane.f32.xlu1 %v5014_v39  ;;  %v5011_v7 = vsel %vm279_vm1, %v5007_v14, 0.0 }
 0xd90   :  { %5012 = vadd.xlane.f32.xlu0 %v5011_v7 }
 0xe17   :  { %v4998_v46 = vpop.xlane.xlu1 %4997 }
 0xe18   :  { %v5002_v50 = vmul.f32 0.03125, %v4998_v46  ;;  %v4995_v55 = vpop.xlane.xlu0 %4994 }
 0xe19   :  { %v5001_v41 = vmul.f32 0.03125, %v4995_v55  ;;  %v16898_v55 = vld [vmem:[%s15678_s29 + $0x1] ss:$0 sm:$0xff]  ;;  %s18525_s29 = sld [smem:[#allocation16_spill]] }
 0xe1a   :  { %v5006_v10 = vsub.f32 %v16843_v20, %v5002_v50 }
 0xe1b   :  { %v5005_v15 = vsub.f32 %v16846_v6, %v5001_v41 }
 0xe1c   :  { %v5016_v56 = vpop.xlane.xlu1 %5015  ;;  %v5010_v32 = vmul.f32 %v5006_v10, %v5006_v10 }
 0xe1d   :  { %v5024_v37 = vmul.f32 0.03125, %v5016_v56  ;;  %v5013_v25 = vpop.xlane.xlu0 %5012  ;;  %v5009_v31 = vmul.f32 %v5005_v15, %v5005_v15 }
 0xe1e   :  { %v5023_v17 = vmul.f32 0.03125, %v5013_v25  ;;  %v5020_v18 = vsel %vm279_vm1, %v5010_v32, 0.0  ;;  %v13639_v25 = vld [vmem:[%s15698_s19 + $0x1] ss:$0 sm:$0xff] }
 0xe1f   :  { %v5028_v5 = vadd.f32 1e-06, %v5024_v37  ;;  %5021 = vadd.xlane.f32.xlu1 %v5020_v18  ;;  %v5017_v42 = vsel %vm279_vm1, %v5009_v31, 0.0 }
 0xe20   :  { %v5027_v9 = vadd.f32 1e-06, %v5023_v17  ;;  %5018 = vadd.xlane.f32.xlu0 %v5017_v42 }
 0xe21   :  { %15417 = vrsqrt.f32 %v5028_v5 }
 0xe22   :  { %15419 = vrsqrt.f32 %v5027_v9 }
 0xe2b   :  { %v15418_v60 = vpop.eup %15417 }
 0xe2c   :  { %v15420_v0 = vpop.eup %15419  ;;  %v5036_v13 = vmul.f32 %v15418_v60, %v5004_v34 }
 0xe2d   :  { %v5035_v61 = vmul.f32 %v15420_v0, %v5003_v1 }
 0xe2e   :  { %v5046_v2 = vmul.f32 %v13612_v43, %v5036_v13 }
 0xe2f   :  { %v5045_v48 = vmul.f32 %v13612_v43, %v5035_v61 }
 0xe30   :  { %v5056_v52 = vadd.f32 %v13613_v40, %v5046_v2 }
 0xe31   :  { %v5055_v49 = vadd.f32 %v13613_v40, %v5045_v48 }
 0xe33   :  { %14426 = vmatprep.mubr.msk.f32.mxu0 %vm279_vm1, %v5055_v49  ;;  %14454 = vmatprep.mubr.msk.f32.mxu1 %vm279_vm1, %v5055_v49 }
 0xe34   :  { %14427 = vmatmul.mubr.msk.f32.vlgmr.msra.gmra.mrb[28].mxu0 %vm279_vm1, %v5056_v52  ;;  %14455 = vmatmul.mubr.msk.f32.vlgmr.msra.gmra.mrb[32].mxu1 %vm279_vm1, %v5056_v52 }
 0xe35   :  { %15008 = vmatpush3.bf16.msra.mxu0 %v15005_v16 }
 0xe36   :  { %15010 = vmatprep.subr.bf16.mxu0 %v15009_v47 }
 0xe39   :  { %15012 = vmatpush3.bf16.msra.mxu0 %v15009_v47 }
 0xeac   :  { %v5022_v22 = vpop.xlane.xlu1 %5021 }
 0xead   :  { %v5026_v28 = vmul.f32 0.03125, %v5022_v22  ;;  %v5019_v38 = vpop.xlane.xlu0 %5018 }
 0xeae   :  { %v5025_v19 = vmul.f32 0.03125, %v5019_v38 }
 0xeaf   :  { %v5030_v29 = vadd.f32 1e-06, %v5026_v28 }
 0xeb0   :  { %v5029_v23 = vadd.f32 1e-06, %v5025_v19 }
 0xeb1   :  { %15421 = vrsqrt.f32 %v5030_v29 }
 0xeb2   :  { %15423 = vrsqrt.f32 %v5029_v23 }
 0xebb   :  { %v15422_v34 = vpop.eup %15421 }
 0xebc   :  { %v15424_v3 = vpop.eup %15423  ;;  %v5038_v1 = vmul.f32 %v15422_v34, %v5006_v10 }
 0xebd   :  { %v5037_v58 = vmul.f32 %v15424_v3, %v5005_v15 }
 0xebe   :  { %v5048_v14 = vmul.f32 %v13612_v43, %v5038_v1 }
 0xebf   :  { %v5047_v39 = vmul.f32 %v13612_v43, %v5037_v58 }
 0xec0   :  { %v5058_v35 = vadd.f32 %v13613_v40, %v5048_v14 }
 0xec1   :  { %v5057_v7 = vadd.f32 %v13613_v40, %v5047_v39 }
 0xec3   :  { %14429 = vmatprep.mubr.msk.f32.mxu0 %vm279_vm1, %v5057_v7  ;;  %14457 = vmatprep.mubr.msk.f32.mxu1 %vm279_vm1, %v5057_v7 }
 0xec4   :  { %14430 = vmatmul.mubr.msk.f32.gmra.mrb[30].mxu0 %vm279_vm1, %v5058_v35  ;;  %14458 = vmatmul.mubr.msk.f32.gmra.mrb[34].mxu1 %vm279_vm1, %v5058_v35 }
 0xec5   :  { %14440 = vmatprep.mubr.msk.f32.mxu0 %vm279_vm1, %v5055_v49 }
 0xec8   :  { %14441 = vmatmul.mubr.msk.f32.vlgmr.msra.gmra.mrb[32].mxu0 %vm279_vm1, %v5056_v52 }
 0xec9   :  { %14443 = vmatprep.mubr.msk.f32.mxu0 %vm279_vm1, %v5057_v7 }
 0xecc   :  { %14444 = vmatmul.mubr.msk.f32.gmra.mrb[34].mxu0 %vm279_vm1, %v5058_v35 }
 0xf07   :  { %v14428_v11 = vpop.f32.mrb[28].mxu0  ;;  %v14456_v53 = vpop.f32.mrb[32].mxu1 }
 0xf08   :  { %v5150_v36 = vpop.f32.mrb[29].mxu0  ;;  %v5346_v59 = vpop.f32.mrb[33].mxu1  ;;  %v5156_v32 = vadd.f32 %v14428_v11, %v16898_v55  ;;  %v16934_v17 = vadd.f32 %v14456_v53, %v13639_v25 }
 0xf09   :  { %v5151_v15 = vadd.f32 %v16898_v55, %v5150_v36  ;;  %v16924_v31 = vadd.f32 %v13639_v25, %v5346_v59 }
 0xf0a   :  { %v16917_v37 = vmul.f32 0.35355338, %v5156_v32 }
 0xf0b   :  { %v16907_v56 = vmul.f32 0.35355338, %v5151_v15 }
 0xf97   :  { %v16886_v44 = vpop.f32.mrb[30].mxu0  ;;  %v16888_v33 = vpop.f32.mrb[34].mxu1 }
 0xf98   :  { %v16890_v51 = vpop.f32.mrb[31].mxu0  ;;  %v16892_v63 = vpop.f32.mrb[35].mxu1 }
 0xf9b   :  { %v14442_v24 = vpop.f32.mrb[32].mxu0 }
 0xf9c   :  { %v5254_v62 = vadd.f32 %v14442_v24, %v13629_v27  ;;  %v5248_v46 = vpop.f32.mrb[33].mxu0 }
 0xf9d   :  { %v16895_v50 = vadd.f32 %v13629_v27, %v5248_v46 }
 0xf9e   :  { %5663 = vrot.lane.b32.xlu1 %v5254_v62, %s15623_s0 }
 0xf9f   :  { %v14445_v41 = vpop.f32.mrb[34].mxu0  ;;  %5661 = vrot.lane.b32.xlu0 %v16895_v50, %s15623_s0 }
 0xfa0   :  { %v5258_v10 = vpop.f32.mrb[35].mxu0  ;;  %v16950_v5 = vadd.f32 %v14445_v41, %v13629_v27 }
 0xfa1   :  { %v16936_v18 = vadd.f32 %v13629_v27, %v5258_v10 }
 0xfa2   :  { %5669 = vrot.lane.b32.xlu1 %v5254_v62, %s15624_s5 }
 0xfa3   :  { %5673 = vrot.lane.b32.xlu0 %v16895_v50, %s15625_s9 }
 0xfa6   :  { %5675 = vrot.lane.b32.xlu1 %v5254_v62, %s15625_s9 }
 0xfa7   :  { %5369 = vrot.lane.b32.xlu0 %v16907_v56, %s15623_s0 }
 0xfaa   :  { %5667 = vrot.lane.b32.xlu1 %v16895_v50, %s15624_s5 }
 0xfab   :  { %5381 = vrot.lane.b32.xlu0 %v16907_v56, %s15625_s9 }
 0xfae   :  { %5375 = vrot.lane.b32.xlu1 %v16907_v56, %s15624_s5 }
 0xfaf   :  { %5377 = vrot.lane.b32.xlu0 %v16917_v37, %s15624_s5 }
 0xfb2   :  { %5371 = vrot.lane.b32.xlu1 %v16917_v37, %s15623_s0 }
 0xfb3   :  { %5953 = vrot.lane.b32.xlu0 %v16924_v31, %s15623_s0 }
 0xfb6   :  { %5383 = vrot.lane.b32.xlu1 %v16917_v37, %s15625_s9 }
 0xfb7   :  { %5965 = vrot.lane.b32.xlu0 %v16924_v31, %s15625_s9 }
 0xfba   :  { %5955 = vrot.lane.b32.xlu1 %v16934_v17, %s15623_s0 }
 0xfbb   :  { %7601 = vrot.lane.b32.xlu0 %v16936_v18, %s15623_s0 }
 0xfbe   :  { %5959 = vrot.lane.b32.xlu1 %v16924_v31, %s15624_s5 }
 0xfbf   :  { %7613 = vrot.lane.b32.xlu0 %v16936_v18, %s15625_s9 }
 0xfc2   :  { %5961 = vrot.lane.b32.xlu1 %v16934_v17, %s15624_s5 }
 0xfc6   :  { %5967 = vrot.lane.b32.xlu1 %v16934_v17, %s15625_s9 }
 0xfca   :  { %7603 = vrot.lane.b32.xlu1 %v16950_v5, %s15623_s0 }
 0xfce   :  { %7609 = vrot.lane.b32.xlu1 %v16950_v5, %s15624_s5 }
 0xfd2   :  { %7615 = vrot.lane.b32.xlu1 %v16950_v5, %s15625_s9 }
 0xfd6   :  { %7607 = vrot.lane.b32.xlu1 %v16936_v18, %s15624_s5 }
0x1010   :  { %v5664_v42 = vpop.permute.xlu1 %5663 }
0x1011   :  { %v5662_v9 = vpop.permute.xlu0 %5661 }
0x1014   :  { %v5670_v60 = vpop.permute.xlu1 %5669 }
0x1015   :  { %v5674_v43 = vpop.permute.xlu0 %5673  ;;  %v5747_v0 = vcombine.low %v5254_v62, %v5670_v60  ;;  %v5748_v13 = vcombine.high %v5254_v62, %v5670_v60 }
0x1016   :  { %v5695_v61 = vcombine.low %v5662_v9, %v5674_v43  ;;  %v5696_v40 = vcombine.high %v5662_v9, %v5674_v43 }
0x1017   :  { %v5755_v30 = vrot.slane %v5747_v0, %v15995_v12  ;;  %v5762_v57 = vrot.slane %v5748_v13, %v15995_v12 }
0x1018   :  { %v5676_v2 = vpop.permute.xlu1 %5675  ;;  %v5703_v4 = vrot.slane %v5695_v61, %v15995_v12  ;;  %v5710_v47 = vrot.slane %v5696_v40, %v15995_v12 }
0x1019   :  { %v5763_v48 = vcombine.low %v5664_v42, %v5676_v2  ;;  %v5764_v49 = vcombine.high %v5664_v42, %v5676_v2  ;;  %v5370_v52 = vpop.permute.xlu0 %5369 }
0x101b   :  { %v5771_v16 = vrot.slane %v5763_v48, %v15995_v12  ;;  %v5778_v45 = vrot.slane %v5764_v49, %v15995_v12 }
0x101c   :  { %v5668_v22 = vpop.permute.xlu1 %5667 }
0x101d   :  { %v5779_v28 = vcombine.low %v5755_v30, %v5771_v16  ;;  %v5780_v38 = vcombine.high %v5755_v30, %v5771_v16  ;;  %v5795_v19 = vcombine.low %v5762_v57, %v5778_v45  ;;  %v5796_v29 = vcombine.high %v5762_v57, %v5778_v45  ;;  %v5382_v23 = vpop.permute.xlu0 %5381 }
0x101e   :  { %v5679_v34 = vcombine.low %v16895_v50, %v5668_v22  ;;  %v5680_v3 = vcombine.high %v16895_v50, %v5668_v22  ;;  %v5403_v1 = vcombine.low %v5370_v52, %v5382_v23  ;;  %v5404_v58 = vcombine.high %v5370_v52, %v5382_v23 }
0x101f   :  { %v5787_v14 = vrot.slane %v5779_v28, %v15997_v21  ;;  %v5794_v39 = vrot.slane %v5780_v38, %v15997_v21  ;;  %v5803_v7 = vrot.slane %v5795_v19, %v15997_v21  ;;  %v5810_v35 = vrot.slane %v5796_v29, %v15997_v21 }
0x1020   :  { %v5687_v11 = vrot.slane %v5679_v34, %v15995_v12  ;;  %v5694_v53 = vrot.slane %v5680_v3, %v15995_v12  ;;  %v5411_v36 = vrot.slane %v5403_v1, %v15995_v12  ;;  %v5418_v59 = vrot.slane %v5404_v58, %v15995_v12  ;;  %v5376_v27 = vpop.permute.xlu1 %5375 }
0x1021   :  { %v5883_v24 = vcombine.low %v5787_v14, %v5794_v39  ;;  %v13650_v62 = vcombine.high %v5787_v14, %v5794_v39  ;;  %v5899_v46 = vcombine.low %v5803_v7, %v5810_v35  ;;  %v13651_v50 = vcombine.high %v5803_v7, %v5810_v35  ;;  %v5378_v41 = vpop.permute.xlu0 %5377 }
0x1022   :  { %v5711_v10 = vcombine.low %v5687_v11, %v5703_v4  ;;  %v5712_v15 = vcombine.high %v5687_v11, %v5703_v4  ;;  %v5727_v32 = vcombine.low %v5694_v53, %v5710_v47  ;;  %v5728_v25 = vcombine.high %v5694_v53, %v5710_v47 }
0x1023   :  { %v16977_v42 = vrot.slane %v5883_v24, %v15995_v12  ;;  %v16980_v9 = vrot.slane %v13650_v62, %v15995_v12  ;;  %v16983_v60 = vrot.slane %v5899_v46, %v15995_v12  ;;  %v16986_v43 = vrot.slane %v13651_v50, %v15995_v12 }
0x1024   :  { %v5719_v0 = vrot.slane %v5711_v10, %v15997_v21  ;;  %v5726_v13 = vrot.slane %v5712_v15, %v15997_v21  ;;  %v5735_v61 = vrot.slane %v5727_v32, %v15997_v21  ;;  %v5742_v40 = vrot.slane %v5728_v25, %v15997_v21  ;;  %v5372_v2 = vpop.permute.xlu1 %5371 }
0x1025   :  { %v5387_v48 = vcombine.low %v16907_v56, %v5376_v27  ;;  %v5388_v49 = vcombine.high %v16907_v56, %v5376_v27  ;;  %v5455_v52 = vcombine.low %v16917_v37, %v5378_v41  ;;  %v5456_v30 = vcombine.high %v16917_v37, %v5378_v41  ;;  %v5954_v57 = vpop.permute.xlu0 %5953 }
0x1026   :  { %v5815_v16 = vcombine.low %v5719_v0, %v5726_v13  ;;  %v13648_v45 = vcombine.high %v5719_v0, %v5726_v13  ;;  %v5831_v4 = vcombine.low %v5735_v61, %v5742_v40  ;;  %v13649_v47 = vcombine.high %v5735_v61, %v5742_v40 }
0x1027   :  { %v5395_v22 = vrot.slane %v5387_v48, %v15995_v12  ;;  %v5402_v28 = vrot.slane %v5388_v49, %v15995_v12  ;;  %v5463_v38 = vrot.slane %v5455_v52, %v15995_v12  ;;  %v5470_v19 = vrot.slane %v5456_v30, %v15995_v12 }
0x1028   :  { %v17001_v29 = vrot.slane %v5815_v16, %v15995_v12  ;;  %v17004_v56 = vrot.slane %v13648_v45, %v15995_v12  ;;  %v17007_v37 = vrot.slane %v5831_v4, %v15995_v12  ;;  %v17010_v23 = vrot.slane %v13649_v47, %v15995_v12  ;;  %v5384_v34 = vpop.permute.xlu1 %5383 }
0x1029   :  { %v5419_v3 = vcombine.low %v5395_v22, %v5411_v36  ;;  %v5420_v1 = vcombine.high %v5395_v22, %v5411_v36  ;;  %v5435_v58 = vcombine.low %v5402_v28, %v5418_v59  ;;  %v5436_v14 = vcombine.high %v5402_v28, %v5418_v59  ;;  %v5966_v39 = vpop.permute.xlu0 %5965 }
0x102a   :  { %v5471_v7 = vcombine.low %v5372_v2, %v5384_v34  ;;  %v5472_v35 = vcombine.high %v5372_v2, %v5384_v34  ;;  %v5987_v11 = vcombine.low %v5954_v57, %v5966_v39  ;;  %v5988_v53 = vcombine.high %v5954_v57, %v5966_v39 }
0x102b   :  { %v17013_v27 = vrot.slane %v5419_v3, %v15997_v21  ;;  %v17016_v24 = vrot.slane %v5420_v1, %v15997_v21  ;;  %v17019_v62 = vrot.slane %v5435_v58, %v15997_v21  ;;  %v17022_v46 = vrot.slane %v5436_v14, %v15997_v21 }
0x102c   :  { %v5479_v36 = vrot.slane %v5471_v7, %v15995_v12  ;;  %v5486_v59 = vrot.slane %v5472_v35, %v15995_v12  ;;  %v5995_v50 = vrot.slane %v5987_v11, %v15995_v12  ;;  %v6002_v41 = vrot.slane %v5988_v53, %v15995_v12  ;;  %v17028_v10 = vpop.permute.xlu1 %5955 }
0x102d   :  { %v5523_v15 = vcombine.low %v17013_v27, %v17016_v24  ;;  %v13644_v32 = vcombine.high %v17013_v27, %v17016_v24  ;;  %v5539_v25 = vcombine.low %v17019_v62, %v17022_v46  ;;  %v13645_v0 = vcombine.high %v17019_v62, %v17022_v46  ;;  %v7602_v22 = vpop.permute.xlu0 %7601 }
0x102e   :  { %v5487_v13 = vcombine.low %v5463_v38, %v5479_v36  ;;  %v5488_v61 = vcombine.high %v5463_v38, %v5479_v36  ;;  %v5503_v40 = vcombine.low %v5470_v19, %v5486_v59  ;;  %v5504_v2 = vcombine.high %v5470_v19, %v5486_v59 }
0x102f   :  { %v5847_v48 = vcombine.low %v17001_v29, %v17004_v56  ;;  %v5863_v49 = vcombine.low %v17007_v37, %v17010_v23  ;;  %v5915_v52 = vcombine.low %v16977_v42, %v16980_v9  ;;  %v5931_v30 = vcombine.low %v16983_v60, %v16986_v43 }
0x1030   :  { %v5495_v57 = vrot.slane %v5487_v13, %v15997_v21  ;;  %v5502_v16 = vrot.slane %v5488_v61, %v15997_v21  ;;  %v5511_v45 = vrot.slane %v5503_v40, %v15997_v21  ;;  %v5518_v4 = vrot.slane %v5504_v2, %v15997_v21  ;;  %v5960_v47 = vpop.permute.xlu1 %5959 }
0x1031   :  { %v5971_v28 = vcombine.low %v16924_v31, %v5960_v47  ;;  %v5972_v38 = vcombine.high %v16924_v31, %v5960_v47  ;;  %v5855_v19 = vrot.slane %v5847_v48, %v15997_v21  ;;  %v5871_v34 = vrot.slane %v5863_v49, %v15997_v21 }
0x1032   :  { %v5591_v3 = vcombine.low %v5495_v57, %v5502_v16  ;;  %v13646_v1 = vcombine.high %v5495_v57, %v5502_v16  ;;  %v5607_v58 = vcombine.low %v5511_v45, %v5518_v4  ;;  %v13647_v14 = vcombine.high %v5511_v45, %v5518_v4  ;;  %v7614_v57 = vpop.permute.xlu0 %7613 }
0x1033   :  { %v5979_v39 = vrot.slane %v5971_v28, %v15995_v12  ;;  %v5986_v7 = vrot.slane %v5972_v38, %v15995_v12  ;;  %v5879_v35 = vcombine.low %v5855_v19, %v5871_v34  ;;  %v5923_v11 = vrot.slane %v5915_v52, %v15997_v21 }
0x1034   :  { %v17058_v53 = vrot.slane %v5591_v3, %v15995_v12  ;;  %v17061_v31 = vrot.slane %v13646_v1, %v15995_v12  ;;  %v17064_v27 = vrot.slane %v5607_v58, %v15995_v12  ;;  %v17067_v24 = vrot.slane %v13647_v14, %v15995_v12  ;;  %v17069_v62 = vpop.permute.xlu1 %5961 }
0x1035   :  { %v6003_v46 = vcombine.low %v5979_v39, %v5995_v50  ;;  %v6004_v36 = vcombine.high %v5979_v39, %v5995_v50  ;;  %v6019_v59 = vcombine.low %v5986_v7, %v6002_v41  ;;  %v6020_v13 = vcombine.high %v5986_v7, %v6002_v41 }
0x1036   :  { %v5623_v61 = vcombine.low %v17058_v53, %v17061_v31  ;;  %v5624_v40 = vcombine.high %v17058_v53, %v17061_v31  ;;  %v5639_v2 = vcombine.low %v17064_v27, %v17067_v24  ;;  %v5640_v48 = vcombine.high %v17064_v27, %v17067_v24 }
0x1037   :  { %v17080_v49 = vrot.slane %v6003_v46, %v15997_v21  ;;  %v17083_v52 = vrot.slane %v6004_v36, %v15997_v21  ;;  %v17086_v50 = vrot.slane %v6019_v59, %v15997_v21  ;;  %v17089_v41 = vrot.slane %v6020_v13, %v15997_v21 }
0x1038   :  { %v17092_v16 = vrot.slane %v5623_v61, %v15997_v21  ;;  %v17095_v45 = vrot.slane %v5639_v2, %v15997_v21  ;;  %v5939_v4 = vrot.slane %v5931_v30, %v15997_v21  ;;  %v5880_v47 = vcombine.high %v5855_v19, %v5871_v34  ;;  %v5968_v28 = vpop.permute.xlu1 %5967 }
0x1039   :  { %v6107_v38 = vcombine.low %v17080_v49, %v17083_v52  ;;  %v13652_v3 = vcombine.high %v17080_v49, %v17083_v52  ;;  %v6123_v1 = vcombine.low %v17086_v50, %v17089_v41  ;;  %v13653_v58 = vcombine.high %v17086_v50, %v17089_v41 }
0x103a   :  { %v5947_v14 = vcombine.low %v5923_v11, %v5939_v4  ;;  %v5948_v39 = vcombine.high %v5923_v11, %v5939_v4  ;;  %v7635_v7 = vcombine.low %v7602_v22, %v7614_v57  ;;  %v7636_v46 = vcombine.high %v7602_v22, %v7614_v57 }
0x103b   :  { %v17107_v30 = vrot.slane %v5523_v15, %v15995_v12  ;;  %v5538_v19 = vrot.slane %v13644_v32, %v15995_v12  ;;  %v5546_v34 = vrot.slane %v5539_v25, %v15995_v12  ;;  %v5554_v36 = vrot.slane %v13645_v0, %v15995_v12 }
0x103c   :  { %v15021_v59 = vpack.c.bf16 %v5947_v14, %v5879_v35  ;;  %v15027_v13 = vpack.c.bf16 %v5948_v39, %v5880_v47  ;;  %v17113_v61 = vrot.slane %v7635_v7, %v15995_v12  ;;  %v17116_v2 = vrot.slane %v7636_v46, %v15995_v12  ;;  %v17118_v11 = vpop.permute.xlu1 %7603 }
0x103d   :  { %v5555_v22 = vcombine.low %v17107_v30, %v5538_v19  ;;  %v5571_v15 = vcombine.low %v5546_v34, %v5554_v36  ;;  %v5848_v32 = vcombine.high %v17001_v29, %v17004_v56  ;;  %v5864_v25 = vcombine.high %v17007_v37, %v17010_v23 }
0x103e   :  { %15023 = vmatprep.subr.msk.bf16.mxu0 %vm16141_vm3, %v15021_v59  ;;  %15029 = vmatprep.subr.msk.bf16.mxu1 %vm16141_vm3, %v15027_v13  ;;  %v5916_v0 = vcombine.high %v16977_v42, %v16980_v9  ;;  %v5932_v35 = vcombine.high %v16983_v60, %v16986_v43  ;;  %v6039_v57 = vcombine.low %v16934_v17, %v17069_v62 }
0x103f   :  { %15026 = vmatpush3.bf16.xpose.msk.msra.mxu0 %vm16141_vm3, %v15021_v59  ;;  %15032 = vmatpush3.bf16.xpose.msk.msra.mxu1 %vm16141_vm3, %v15027_v13  ;;  %v5563_v29 = vrot.slane %v5555_v22, %v15997_v21  ;;  %v5579_v56 = vrot.slane %v5571_v15, %v15997_v21  ;;  %v5862_v37 = vrot.slane %v5848_v32, %v15997_v21 }
0x1040   :  { %v5878_v42 = vrot.slane %v5864_v25, %v15997_v21  ;;  %v5930_v9 = vrot.slane %v5916_v0, %v15997_v21  ;;  %v5946_v60 = vrot.slane %v5932_v35, %v15997_v21  ;;  %v6040_v43 = vcombine.high %v16934_v17, %v17069_v62  ;;  %v7610_v23 = vpop.permute.xlu1 %7609 }
0x1041   :  { %v5587_v4 = vcombine.low %v5563_v29, %v5579_v56  ;;  %v5588_v47 = vcombine.high %v5563_v29, %v5579_v56  ;;  %v6047_v14 = vrot.slane %v6039_v57, %v15995_v12  ;;  %v6055_v39 = vcombine.low %v17028_v10, %v5968_v28 }
0x1042   :  { %v5881_v7 = vcombine.low %v5862_v37, %v5878_v42  ;;  %v5949_v46 = vcombine.low %v5930_v9, %v5946_v60  ;;  %v5882_v59 = vcombine.high %v5862_v37, %v5878_v42  ;;  %v5950_v13 = vcombine.high %v5930_v9, %v5946_v60 }
0x1043   :  { %14464 = vmatprep.mubr.msk.f32.mxu0 %vm1531_vm2, %v5587_v4  ;;  %14471 = vmatprep.mubr.msk.f32.mxu1 %vm1531_vm2, %v5588_v47  ;;  %v6054_v22 = vrot.slane %v6040_v43, %v15995_v12  ;;  %v6056_v15 = vcombine.high %v17028_v10, %v5968_v28  ;;  %v6063_v17 = vrot.slane %v6055_v39, %v15995_v12 }
0x1044   :  { %v15033_v62 = vpack.c.bf16 %v5949_v46, %v5881_v7  ;;  %v15039_v32 = vpack.c.bf16 %v5950_v13, %v5882_v59  ;;  %v5655_v25 = vcombine.low %v17092_v16, %v17095_v45  ;;  %v5656_v0 = vcombine.high %v17092_v16, %v17095_v45  ;;  %v7616_v35 = vpop.permute.xlu1 %7615 }
0x1045   :  { %v6070_v57 = vrot.slane %v6056_v15, %v15995_v12  ;;  %v6071_v29 = vcombine.low %v6047_v14, %v6063_v17  ;;  %v6072_v56 = vcombine.high %v6047_v14, %v6063_v17  ;;  %v5556_v37 = vcombine.high %v17107_v30, %v5538_v19 }
0x1046   :  { %15035 = vmatprep.subr.msk.bf16.mxu0 %vm16141_vm3, %v15033_v62  ;;  %15041 = vmatprep.subr.msk.bf16.mxu1 %vm16141_vm3, %v15039_v32  ;;  %v5572_v10 = vcombine.high %v5546_v34, %v5554_v36  ;;  %v7687_v28 = vcombine.low %v16950_v5, %v7610_v23  ;;  %v7688_v42 = vcombine.high %v16950_v5, %v7610_v23 }
0x1047   :  { %v17167_v16 = vrot.slane %v6071_v29, %v15997_v21  ;;  %v17170_v45 = vrot.slane %v6072_v56, %v15997_v21  ;;  %v6087_v9 = vcombine.low %v6054_v22, %v6070_v57  ;;  %v6088_v60 = vcombine.high %v6054_v22, %v6070_v57  ;;  %14465 = vmatmul.mubr.msk.f32.vlgmr.msra.gmra.mrb[36].mxu0 %vm1531_vm2, %v5655_v25 }
0x1048   :  { %14472 = vmatmul.mubr.msk.f32.vlgmr.msra.gmra.mrb[36].mxu1 %vm1531_vm2, %v5656_v0  ;;  %15038 = vmatpush3.bf16.xpose.msk.msra.mxu0 %vm16141_vm3, %v15033_v62  ;;  %v5570_v30 = vrot.slane %v5556_v37, %v15997_v21  ;;  %v5586_v19 = vrot.slane %v5572_v10, %v15997_v21  ;;  %v7695_v5 = vrot.slane %v7687_v28, %v15995_v12  ;;  %v7608_v4 = vpop.permute.xlu1 %7607 }
0x1049   :  { %v17180_v34 = vrot.slane %v6087_v9, %v15997_v21  ;;  %v17183_v36 = vrot.slane %v6088_v60, %v15997_v21  ;;  %v6175_v43 = vcombine.low %v17167_v16, %v17170_v45  ;;  %v13654_v23 = vcombine.high %v17167_v16, %v17170_v45  ;;  %15044 = vmatpush3.bf16.xpose.msk.msra.mxu1 %vm16141_vm3, %v15039_v32 }
0x104a   :  { %v5589_v47 = vcombine.low %v5570_v30, %v5586_v19  ;;  %v5590_v14 = vcombine.high %v5570_v30, %v5586_v19  ;;  %v7702_v39 = vrot.slane %v7688_v42, %v15995_v12  ;;  %v5638_v7 = vrot.slane %v5624_v40, %v15997_v21 }
0x104b   :  { %v6191_v46 = vcombine.low %v17180_v34, %v17183_v36  ;;  %v13655_v59 = vcombine.high %v17180_v34, %v17183_v36  ;;  %v5654_v13 = vrot.slane %v5640_v48, %v15997_v21  ;;  %v7703_v22 = vcombine.low %v17118_v11, %v7616_v35 }
0x104c   :  { %14478 = vmatprep.mubr.msk.f32.mxu0 %vm1531_vm2, %v5589_v47  ;;  %14485 = vmatprep.mubr.msk.f32.mxu1 %vm1531_vm2, %v5590_v14  ;;  %v7704_v53 = vcombine.high %v17118_v11, %v7616_v35  ;;  %v7619_v31 = vcombine.low %v16936_v18, %v7608_v4  ;;  %v7620_v40 = vcombine.high %v16936_v18, %v7608_v4 }
0x104d   :  { %v5657_v15 = vcombine.low %v5638_v7, %v5654_v13  ;;  %v5658_v17 = vcombine.high %v5638_v7, %v5654_v13  ;;  %v7711_v62 = vrot.slane %v7703_v22, %v15995_v12  ;;  %v6114_v27 = vrot.slane %v6107_v38, %v15995_v12 }
0x104e   :  { %v7718_v24 = vrot.slane %v7704_v53, %v15995_v12  ;;  %v7627_v48 = vrot.slane %v7619_v31, %v15995_v12  ;;  %v7634_v32 = vrot.slane %v7620_v40, %v15995_v12  ;;  %v6122_v18 = vrot.slane %v13652_v3, %v15995_v12 }
0x104f   :  { %14479 = vmatmul.mubr.msk.f32.vlgmr.msra.gmra.mrb[38].mxu0 %vm1531_vm2, %v5657_v15  ;;  %v7719_v11 = vcombine.low %v7695_v5, %v7711_v62  ;;  %v7720_v25 = vcombine.high %v7695_v5, %v7711_v62  ;;  %v6130_v38 = vrot.slane %v6123_v1, %v15995_v12  ;;  %v6138_v0 = vrot.slane %v13653_v58, %v15995_v12 }
0x1050   :  { %14486 = vmatmul.mubr.msk.f32.vlgmr.msra.gmra.mrb[38].mxu1 %vm1531_vm2, %v5658_v17  ;;  %v7735_v35 = vcombine.low %v7702_v39, %v7718_v24  ;;  %v7736_v57 = vcombine.high %v7702_v39, %v7718_v24  ;;  %v7651_v49 = vcombine.low %v7627_v48, %v17113_v61  ;;  %v7652_v52 = vcombine.high %v7627_v48, %v17113_v61 }
0x1051   :  { %v7727_v3 = vrot.slane %v7719_v11, %v15997_v21  ;;  %v7734_v29 = vrot.slane %v7720_v25, %v15997_v21  ;;  %v7667_v56 = vcombine.low %v7634_v32, %v17116_v2  ;;  %v7668_v1 = vcombine.high %v7634_v32, %v17116_v2 }
0x1052   :  { %v7743_v37 = vrot.slane %v7735_v35, %v15997_v21  ;;  %v7750_v50 = vrot.slane %v7736_v57, %v15997_v21  ;;  %v7659_v41 = vrot.slane %v7651_v49, %v15997_v21  ;;  %v7666_v58 = vrot.slane %v7652_v52, %v15997_v21 }
0x1053   :  { %v7823_v10 = vcombine.low %v7727_v3, %v7734_v29  ;;  %v13690_v28 = vcombine.high %v7727_v3, %v7734_v29  ;;  %v7675_v61 = vrot.slane %v7667_v56, %v15997_v21  ;;  %v7682_v42 = vrot.slane %v7668_v1, %v15997_v21 }
0x1054   :  { %v7839_v9 = vcombine.low %v7743_v37, %v7750_v50  ;;  %v13691_v60 = vcombine.high %v7743_v37, %v7750_v50  ;;  %v7755_v30 = vcombine.low %v7659_v41, %v7666_v58  ;;  %v13688_v19 = vcombine.high %v7659_v41, %v7666_v58 }
0x1055   :  { %v17245_v2 = vrot.slane %v7823_v10, %v15995_v12  ;;  %v17248_v5 = vrot.slane %v13690_v28, %v15995_v12  ;;  %v7771_v34 = vcombine.low %v7675_v61, %v7682_v42  ;;  %v13689_v36 = vcombine.high %v7675_v61, %v7682_v42 }
0x1056   :  { %v17251_v4 = vrot.slane %v7839_v9, %v15995_v12  ;;  %v17254_v47 = vrot.slane %v13691_v60, %v15995_v12  ;;  %v7762_v14 = vrot.slane %v7755_v30, %v15995_v12  ;;  %v7770_v39 = vrot.slane %v13688_v19, %v15995_v12 }
0x1057   :  { %v7778_v7 = vrot.slane %v7771_v34, %v15995_v12  ;;  %v7786_v13 = vrot.slane %v13689_v36, %v15995_v12  ;;  %v6139_v22 = vcombine.low %v6114_v27, %v6122_v18  ;;  %v6155_v53 = vcombine.low %v6130_v38, %v6138_v0 }
0x1058   :  { %v6182_v31 = vrot.slane %v6175_v43, %v15995_v12  ;;  %v6190_v40 = vrot.slane %v13654_v23, %v15995_v12  ;;  %v6198_v15 = vrot.slane %v6191_v46, %v15995_v12  ;;  %v6206_v17 = vrot.slane %v13655_v59, %v15995_v12 }
0x1059   :  { %v6147_v62 = vrot.slane %v6139_v22, %v15997_v21  ;;  %v6163_v24 = vrot.slane %v6155_v53, %v15997_v21  ;;  %v6140_v48 = vcombine.high %v6114_v27, %v6122_v18  ;;  %v6156_v32 = vcombine.high %v6130_v38, %v6138_v0 }
0x105a   :  { %v6207_v11 = vcombine.low %v6182_v31, %v6190_v40  ;;  %v6223_v25 = vcombine.low %v6198_v15, %v6206_v17  ;;  %v6208_v35 = vcombine.high %v6182_v31, %v6190_v40  ;;  %v6224_v57 = vcombine.high %v6198_v15, %v6206_v17 }
0x105b   :  { %v6171_v43 = vcombine.low %v6147_v62, %v6163_v24  ;;  %v6154_v49 = vrot.slane %v6140_v48, %v15997_v21  ;;  %v6170_v16 = vrot.slane %v6156_v32, %v15997_v21  ;;  %v6172_v45 = vcombine.high %v6147_v62, %v6163_v24 }
0x105c   :  { %v6215_v23 = vrot.slane %v6207_v11, %v15997_v21  ;;  %v6231_v46 = vrot.slane %v6223_v25, %v15997_v21  ;;  %v6222_v59 = vrot.slane %v6208_v35, %v15997_v21  ;;  %v6238_v52 = vrot.slane %v6224_v57, %v15997_v21 }
0x105d   :  { %v6173_v27 = vcombine.low %v6154_v49, %v6170_v16  ;;  %v7787_v18 = vcombine.low %v7762_v14, %v7770_v39  ;;  %v7803_v38 = vcombine.low %v7778_v7, %v7786_v13  ;;  %v7855_v0 = vcombine.low %v17245_v2, %v17248_v5 }
0x105e   :  { %v6239_v3 = vcombine.low %v6215_v23, %v6231_v46  ;;  %v6241_v29 = vcombine.low %v6222_v59, %v6238_v52  ;;  %v6240_v56 = vcombine.high %v6215_v23, %v6231_v46  ;;  %v7871_v1 = vcombine.low %v17251_v4, %v17254_v47 }
0x105f   :  { %v7795_v37 = vrot.slane %v7787_v18, %v15997_v21  ;;  %v7811_v50 = vrot.slane %v7803_v38, %v15997_v21  ;;  %v7863_v41 = vrot.slane %v7855_v0, %v15997_v21  ;;  %v6174_v58 = vcombine.high %v6154_v49, %v6170_v16 }
0x1060   :  { %v15045_v10 = vpack.c.bf16 %v6239_v3, %v6171_v43  ;;  %v15053_v28 = vpack.c.bf16 %v6241_v29, %v6173_v27  ;;  %v17285_v61 = vpack.c.bf16 %v6240_v56, %v6172_v45  ;;  %v7879_v42 = vrot.slane %v7871_v1, %v15997_v21 }
0x1061   :  { %v7819_v9 = vcombine.low %v7795_v37, %v7811_v50  ;;  %v6242_v60 = vcombine.high %v6222_v59, %v6238_v52  ;;  %v7820_v30 = vcombine.high %v7795_v37, %v7811_v50  ;;  %v7788_v19 = vcombine.high %v7762_v14, %v7770_v39 }
0x1062   :  { %15046 = vmatprep.subr.bf16.mxu0 %v15045_v10  ;;  %15054 = vmatprep.subr.bf16.mxu1 %v15053_v28  ;;  %v7887_v34 = vcombine.low %v7863_v41, %v7879_v42  ;;  %v7888_v36 = vcombine.high %v7863_v41, %v7879_v42  ;;  %v7804_v22 = vcombine.high %v7778_v7, %v7786_v13 }
0x1063   :  { %15048 = vmatpush3.bf16.msra.mxu0 %v15045_v10  ;;  %15056 = vmatpush3.bf16.msra.mxu1 %v15053_v28  ;;  %v17288_v53 = vpack.c.bf16 %v6242_v60, %v6174_v58  ;;  %v7802_v31 = vrot.slane %v7788_v19, %v15997_v21  ;;  %v7856_v40 = vcombine.high %v17245_v2, %v17248_v5 }
0x1064   :  { %15050 = vmatprep.subr.bf16.mxu0 %v17285_v61  ;;  %v17294_v15 = vpack.c.bf16 %v7887_v34, %v7819_v9  ;;  %v17296_v17 = vpack.c.bf16 %v7888_v36, %v7820_v30  ;;  %v7818_v14 = vrot.slane %v7804_v22, %v15997_v21  ;;  %v7872_v39 = vcombine.high %v17251_v4, %v17254_v47 }
0x1065   :  { %v7870_v7 = vrot.slane %v7856_v40, %v15997_v21  ;;  %v5161_v18 = vadd.f32 %v16898_v55, %v16890_v51  ;;  %v5166_v38 = vadd.f32 %v16886_v44, %v16898_v55 }
0x1066   :  { %15063 = vmatprep.subr.msk.bf16.mxu1 %vm16141_vm3, %v17294_v15  ;;  %v7821_v13 = vcombine.low %v7802_v31, %v7818_v14  ;;  %v7886_v2 = vrot.slane %v7872_v39, %v15997_v21  ;;  %v7822_v5 = vcombine.high %v7802_v31, %v7818_v14 }
0x1067   :  { %v17323_v0 = vmul.f32 0.35355338, %v5161_v18  ;;  %v17327_v3 = vmul.f32 0.35355338, %v5166_v38 }
0x1068   :  { %v7889_v62 = vcombine.low %v7870_v7, %v7886_v2  ;;  %v7890_v24 = vcombine.high %v7870_v7, %v7886_v2 }
0x106a   :  { %v17306_v48 = vpack.c.bf16 %v7889_v62, %v7821_v13  ;;  %v17308_v32 = vpack.c.bf16 %v7890_v24, %v7822_v5 }
0x111a   :  { %v14466_v11 = vpop.f32.mrb[36].mxu0 }
0x111b   :  { %v14473_v25 = vpop.f32.mrb[36].mxu1  ;;  %v6321_v35 = vpop.f32.mrb[37].mxu0  ;;  %v6594_v4 = vsel %vm1880_vm4, %v14466_v11, -inf }
0x111c   :  { %v6408_v47 = vpop.f32.mrb[37].mxu1  ;;  %6595 = vmax.xlane.f32.xlu1 %v6594_v4  ;;  %v6591_v57 = vsel %vm1880_vm4, %v6321_v35, -inf  ;;  %v6600_v43 = vsel %vm1880_vm4, %v14473_v25, -inf }
0x111d   :  { %6592 = vmax.xlane.f32.xlu0 %v6591_v57  ;;  %v6597_v49 = vsel %vm1880_vm4, %v6408_v47, -inf }
0x1120   :  { %6601 = vmax.xlane.f32.xlu1 %v6600_v43 }
0x1121   :  { %6598 = vmax.xlane.f32.xlu0 %v6597_v49 }
0x1122   :  { %v14480_v16 = vpop.f32.mrb[38].mxu0 }
0x1123   :  { %v14487_v45 = vpop.f32.mrb[38].mxu1  ;;  %v6495_v23 = vpop.f32.mrb[39].mxu0  ;;  %v6606_v52 = vsel %vm1880_vm4, %v14480_v16, -inf }
0x1124   :  { %v17314_v46 = vpop.f32.mrb[39].mxu1  ;;  %v6612_v59 = vsel %vm1880_vm4, %v14487_v45, -inf  ;;  %v6603_v27 = vsel %vm1880_vm4, %v6495_v23, -inf }
0x1125   :  { %6613 = vmax.xlane.f32.xlu1 %v6612_v59  ;;  %6607 = vmax.xlane.f32.xlu0 %v6606_v52  ;;  %v6609_v29 = vsel %vm1880_vm4, %v17314_v46, -inf }
0x1129   :  { %6604 = vmax.xlane.f32.xlu0 %v6603_v27 }
0x1136   :  { %7315 = vrot.lane.b32.xlu1 %v17323_v0, %s15624_s5 }
0x113a   :  { %7311 = vrot.lane.b32.xlu1 %v17327_v3, %s15623_s0 }
0x113f   :  { %7309 = vrot.lane.b32.xlu0 %v17323_v0, %s15623_s0 }
0x115e   :  { %6610 = vmax.xlane.f32.xlu0 %v6609_v29 }
0x1174   :  { %7321 = vrot.lane.b32.xlu0 %v17323_v0, %s15625_s9 }
0x11a9   :  { %v6596_v44 = vpop.xlane.xlu1 %6595 }
0x11aa   :  { %v6616_v51 = vsub.f32 %v14466_v11, %v6596_v44  ;;  %v6593_v55 = vpop.xlane.xlu0 %6592 }
0x11ab   :  { %v6615_v56 = vsub.f32 %v6321_v35, %v6593_v55 }
0x11ac   :  { %v6625_v1 = vmul.f32 1.442695, %v6616_v51 }
0x11ad   :  { %v6623_v37 = vmul.f32 1.442695, %v6615_v56  ;;  %v6602_v50 = vpop.xlane.xlu1 %6601 }
0x11ae   :  { %15425 = vpow2.f32 %v6625_v1  ;;  %v6618_v41 = vsub.f32 %v14473_v25, %v6602_v50  ;;  %v6599_v58 = vpop.xlane.xlu0 %6598 }
0x11af   :  { %15427 = vpow2.f32 %v6623_v37  ;;  %v6617_v10 = vsub.f32 %v6408_v47, %v6599_v58 }
0x11b0   :  { %v6629_v28 = vmul.f32 1.442695, %v6618_v41 }
0x11b1   :  { %v6627_v42 = vmul.f32 1.442695, %v6617_v10 }
0x11b2   :  { %15429 = vpow2.f32 %v6629_v28  ;;  %v6614_v9 = vpop.xlane.xlu1 %6613  ;;  %v6608_v60 = vpop.xlane.xlu0 %6607 }
0x11b3   :  { %15431 = vpow2.f32 %v6627_v42  ;;  %v6622_v30 = vsub.f32 %v14487_v45, %v6614_v9  ;;  %v6620_v19 = vsub.f32 %v14480_v16, %v6608_v60 }
0x11b5   :  { %v6637_v34 = vmul.f32 1.442695, %v6622_v30  ;;  %v6633_v36 = vmul.f32 1.442695, %v6620_v19 }
0x11b6   :  { %v6605_v22 = vpop.xlane.xlu0 %6604  ;;  %v7316_v52 = vpop.permute.xlu1 %7315 }
0x11b7   :  { %15433 = vpow2.f32 %v6637_v34  ;;  %v6619_v31 = vsub.f32 %v6495_v23, %v6605_v22  ;;  %v7327_v44 = vcombine.low %v17323_v0, %v7316_v52 }
0x11b8   :  { %v17337_v40 = vpop.eup %15425  ;;  %15435 = vpow2.f32 %v6633_v36 }
0x11b9   :  { %v17339_v14 = vpop.eup %15427  ;;  %v6631_v39 = vmul.f32 1.442695, %v6619_v31  ;;  %v6642_v7 = vsel %vm1880_vm4, %v17337_v40, 0.0  ;;  %v7335_v37 = vrot.slane %v7327_v44, %v15995_v12 }
0x11ba   :  { %6643 = vadd.xlane.f32.xlu1 %v6642_v7  ;;  %v6639_v13 = vsel %vm1880_vm4, %v17339_v14, 0.0  ;;  %v7310_v43 = vpop.permute.xlu0 %7309  ;;  %v17374_v18 = vpop.permute.xlu1 %7311 }
0x11bb   :  { %15437 = vpow2.f32 %v6631_v39  ;;  %6640 = vadd.xlane.f32.xlu0 %v6639_v13 }
0x11bc   :  { %v17345_v2 = vpop.eup %15429 }
0x11bd   :  { %v17347_v5 = vpop.eup %15431  ;;  %v6648_v62 = vsel %vm1880_vm4, %v17345_v2, 0.0 }
0x11be   :  { %6649 = vadd.xlane.f32.xlu1 %v6648_v62  ;;  %v6645_v24 = vsel %vm1880_vm4, %v17347_v5, 0.0 }
0x11bf   :  { %6646 = vadd.xlane.f32.xlu0 %v6645_v24 }
0x11c1   :  { %v17353_v11 = vpop.eup %15433 }
0x11c2   :  { %v17355_v25 = vpop.eup %15435  ;;  %v6660_v35 = vsel %vm1880_vm4, %v17353_v11, 0.0 }
0x11c3   :  { %6661 = vadd.xlane.f32.xlu1 %v6660_v35  ;;  %v6654_v4 = vsel %vm1880_vm4, %v17355_v25, 0.0 }
0x11c4   :  { %6655 = vadd.xlane.f32.xlu0 %v6654_v4 }
0x11c5   :  { %v17361_v47 = vpop.eup %15437 }
0x11c6   :  { %v6651_v57 = vsel %vm1880_vm4, %v17361_v47, 0.0 }
0x11c8   :  { %6652 = vadd.xlane.f32.xlu0 %v6651_v57 }
0x11d4   :  { %7323 = vrot.lane.b32.xlu1 %v17327_v3, %s15625_s9 }
0x11eb   :  { %v6611_v49 = vpop.xlane.xlu0 %6610 }
0x11ec   :  { %v6621_v16 = vsub.f32 %v17314_v46, %v6611_v49  ;;  %v7328_v46 = vcombine.high %v17323_v0, %v7316_v52 }
0x11ee   :  { %v6635_v45 = vmul.f32 1.442695, %v6621_v16  ;;  %v7342_v50 = vrot.slane %v7328_v46, %v15995_v12 }
0x11ef   :  { %v7322_v27 = vpop.permute.xlu0 %7321 }
0x11f0   :  { %15439 = vpow2.f32 %v6635_v45  ;;  %v7343_v38 = vcombine.low %v7310_v43, %v7322_v27  ;;  %v7344_v29 = vcombine.high %v7310_v43, %v7322_v27 }
0x11f2   :  { %v7351_v51 = vrot.slane %v7343_v38, %v15995_v12  ;;  %v7358_v55 = vrot.slane %v7344_v29, %v15995_v12 }
0x11f4   :  { %v7359_v41 = vcombine.low %v7335_v37, %v7351_v51  ;;  %v7360_v58 = vcombine.high %v7335_v37, %v7351_v51  ;;  %v7375_v10 = vcombine.low %v7342_v50, %v7358_v55  ;;  %v7376_v28 = vcombine.high %v7342_v50, %v7358_v55 }
0x11f6   :  { %v7367_v0 = vrot.slane %v7359_v41, %v15997_v21  ;;  %v7374_v60 = vrot.slane %v7360_v58, %v15997_v21  ;;  %v7383_v30 = vrot.slane %v7375_v10, %v15997_v21  ;;  %v7390_v19 = vrot.slane %v7376_v28, %v15997_v21 }
0x11f8   :  { %v7463_v31 = vcombine.low %v7367_v0, %v7374_v60  ;;  %v13684_v39 = vcombine.high %v7367_v0, %v7374_v60  ;;  %v7479_v7 = vcombine.low %v7383_v30, %v7390_v19  ;;  %v13685_v13 = vcombine.high %v7383_v30, %v7390_v19 }
0x11fa   :  { %v17368_v23 = vpop.eup %15439  ;;  %v17391_v43 = vrot.slane %v7463_v31, %v15995_v12  ;;  %v17394_v49 = vrot.slane %v13684_v39, %v15995_v12  ;;  %v17397_v16 = vrot.slane %v7479_v7, %v15995_v12 }
0x11fb   :  { %v6657_v59 = vsel %vm1880_vm4, %v17368_v23, 0.0 }
0x11fc   :  { %6658 = vadd.xlane.f32.xlu0 %v6657_v59  ;;  %v7495_v59 = vcombine.low %v17391_v43, %v17394_v49 }
0x1212   :  { %7317 = vrot.lane.b32.xlu0 %v17327_v3, %s15624_s5 }
0x1247   :  { %v6644_v56 = vpop.xlane.xlu1 %6643 }
0x1248   :  { %15441 = vrcp.f32 %v6644_v56  ;;  %v6641_v1 = vpop.xlane.xlu0 %6640 }
0x1249   :  { %15443 = vrcp.f32 %v6641_v1 }
0x124b   :  { %v6650_v42 = vpop.xlane.xlu1 %6649 }
0x124c   :  { %15445 = vrcp.f32 %v6650_v42  ;;  %v6647_v9 = vpop.xlane.xlu0 %6646 }
0x124d   :  { %15447 = vrcp.f32 %v6647_v9 }
0x1251   :  { %v6656_v34 = vpop.xlane.xlu0 %6655 }
0x1252   :  { %v15442_v36 = vpop.eup %15441  ;;  %15449 = vrcp.f32 %v6656_v34 }
0x1253   :  { %v15444_v22 = vpop.eup %15443  ;;  %v6672_v35 = vmul.f32 %v15442_v36, %v17337_v40 }
0x1254   :  { %v6671_v62 = vmul.f32 %v15444_v22, %v17339_v14  ;;  %v17400_v14 = vrot.slane %v13685_v13, %v15995_v12  ;;  %v7496_v13 = vcombine.high %v17391_v43, %v17394_v49 }
0x1255   :  { %v6653_v24 = vpop.xlane.xlu0 %6652 }
0x1256   :  { %v15446_v4 = vpop.eup %15445  ;;  %15451 = vrcp.f32 %v6653_v24  ;;  %14492 = vmatprep.mubr.msk.f32.mxu0 %vm1880_vm4, %v6671_v62  ;;  %v7511_v52 = vcombine.low %v17397_v16, %v17400_v14  ;;  %v7512_v62 = vcombine.high %v17397_v16, %v17400_v14  ;;  %v7510_v16 = vrot.slane %v7496_v13, %v15997_v21 }
0x1257   :  { %v15448_v57 = vpop.eup %15447  ;;  %14493 = vmatmul.mubr.msk.f32.vlgmr.msra.gmra.mrb[40].mxu0 %vm1880_vm4, %v6672_v35  ;;  %v6674_v45 = vmul.f32 %v15446_v4, %v17345_v2 }
0x1258   :  { %15052 = vmatpush3.bf16.msra.mxu0 %v17285_v61  ;;  %v6673_v40 = vmul.f32 %v15448_v57, %v17347_v5  ;;  %v7503_v5 = vrot.slane %v7495_v59, %v15997_v21  ;;  %v7519_v2 = vrot.slane %v7511_v52, %v15997_v21  ;;  %v7526_v14 = vrot.slane %v7512_v62, %v15997_v21 }
0x1259   :  { %15058 = vmatprep.subr.bf16.mxu0 %v17288_v53 }
0x125a   :  { %14499 = vmatprep.mubr.msk.f32.mxu0 %vm1880_vm4, %v6673_v40  ;;  %v7527_v44 = vcombine.low %v7503_v5, %v7519_v2  ;;  %v7528_v7 = vcombine.high %v7503_v5, %v7519_v2  ;;  %v7529_v52 = vcombine.low %v7510_v16, %v7526_v14 }
0x125b   :  { %14500 = vmatmul.mubr.msk.f32.vlgmr.msra.gmra.mrb[42].mxu0 %vm1880_vm4, %v6674_v45 }
0x125c   :  { %15060 = vmatpush3.bf16.msra.mxu0 %v17288_v53  ;;  %v15450_v61 = vpop.eup %15449  ;;  %v6662_v53 = vpop.xlane.xlu1 %6661 }
0x125d   :  { %15069 = vmatprep.subr.msk.bf16.mxu0 %vm16141_vm3, %v17296_v17  ;;  %v6676_v29 = vmul.f32 %v15450_v61, %v17355_v25  ;;  %15453 = vrcp.f32 %v6662_v53  ;;  %v7530_v61 = vcombine.high %v7510_v16, %v7526_v14 }
0x1260   :  { %v15452_v27 = vpop.eup %15451 }
0x1261   :  { %v6675_v38 = vmul.f32 %v15452_v27, %v17361_v47  ;;  %v7324_v47 = vpop.permute.xlu1 %7323 }
0x1262   :  { %v7411_v25 = vcombine.low %v17374_v18, %v7324_v47  ;;  %v7412_v51 = vcombine.high %v17374_v18, %v7324_v47 }
0x1263   :  { %14506 = vmatprep.mubr.msk.f32.mxu1 %vm1880_vm4, %v6675_v38 }
0x1264   :  { %14507 = vmatmul.mubr.msk.f32.vlgmr.msra.gmra.mrb[40].mxu1 %vm1880_vm4, %v6676_v29  ;;  %v7419_v1 = vrot.slane %v7411_v25, %v15995_v12  ;;  %v7426_v37 = vrot.slane %v7412_v51, %v15995_v12 }
0x1265   :  { %15066 = vmatpush3.bf16.xpose.msk.msra.mxu1 %vm16141_vm3, %v17294_v15  ;;  %14520 = vmatprep.mubr.msk.f32.mxu1 %vm1531_vm2, %v7527_v44 }
0x1266   :  { %15075 = vmatprep.subr.msk.bf16.mxu1 %vm16141_vm3, %v17306_v48 }
0x1267   :  { %v15454_v58 = vpop.eup %15453 }
0x1268   :  { %v6678_v34 = vmul.f32 %v15454_v58, %v17353_v11 }
0x1289   :  { %v6659_v46 = vpop.xlane.xlu0 %6658 }
0x128a   :  { %15455 = vrcp.f32 %v6659_v46 }
0x128d   :  { %v7318_v55 = vpop.permute.xlu0 %7317 }
0x128e   :  { %v7395_v56 = vcombine.low %v17327_v3, %v7318_v55  ;;  %v7396_v15 = vcombine.high %v17327_v3, %v7318_v55 }
0x1290   :  { %v7403_v50 = vrot.slane %v7395_v56, %v15995_v12  ;;  %v7410_v41 = vrot.slane %v7396_v15, %v15995_v12 }
0x1292   :  { %v7427_v10 = vcombine.low %v7403_v50, %v7419_v1  ;;  %v7428_v28 = vcombine.high %v7403_v50, %v7419_v1  ;;  %v7443_v42 = vcombine.low %v7410_v41, %v7426_v37  ;;  %v7444_v9 = vcombine.high %v7410_v41, %v7426_v37 }
0x1294   :  { %v15456_v0 = vpop.eup %15455  ;;  %v7435_v18 = vrot.slane %v7427_v10, %v15997_v21  ;;  %v7442_v60 = vrot.slane %v7428_v28, %v15997_v21  ;;  %v7451_v3 = vrot.slane %v7443_v42, %v15997_v21  ;;  %v7458_v30 = vrot.slane %v7444_v9, %v15997_v21 }
0x1295   :  { %v6677_v19 = vmul.f32 %v15456_v0, %v17368_v23 }
0x1296   :  { %v7531_v36 = vcombine.low %v7435_v18, %v7442_v60  ;;  %v13686_v22 = vcombine.high %v7435_v18, %v7442_v60  ;;  %v7547_v31 = vcombine.low %v7451_v3, %v7458_v30  ;;  %v13687_v39 = vcombine.high %v7451_v3, %v7458_v30 }
0x1297   :  { %14513 = vmatprep.mubr.msk.f32.mxu0 %vm1880_vm4, %v6677_v19 }
0x1298   :  { %v7538_v24 = vrot.slane %v7531_v36, %v15995_v12  ;;  %v7546_v35 = vrot.slane %v13686_v22, %v15995_v12  ;;  %v7554_v23 = vrot.slane %v7547_v31, %v15995_v12  ;;  %v7562_v11 = vrot.slane %v13687_v39, %v15995_v12  ;;  %14514 = vmatmul.mubr.msk.f32.vlgmr.msra.gmra.mrb[44].mxu0 %vm1880_vm4, %v6678_v34 }
0x1299   :  { %15072 = vmatpush3.bf16.xpose.msk.msra.mxu0 %vm16141_vm3, %v17296_v17  ;;  %14527 = vmatprep.mubr.msk.f32.mxu0 %vm1531_vm2, %v7528_v7 }
0x129a   :  { %v7563_v4 = vcombine.low %v7538_v24, %v7546_v35  ;;  %v7579_v57 = vcombine.low %v7554_v23, %v7562_v11  ;;  %15081 = vmatprep.subr.msk.bf16.mxu0 %vm16141_vm3, %v17308_v32  ;;  %v7564_v40 = vcombine.high %v7538_v24, %v7546_v35  ;;  %v7580_v45 = vcombine.high %v7554_v23, %v7562_v11 }
0x129c   :  { %v7571_v43 = vrot.slane %v7563_v4, %v15997_v21  ;;  %v7587_v49 = vrot.slane %v7579_v57, %v15997_v21  ;;  %v7578_v5 = vrot.slane %v7564_v40, %v15997_v21  ;;  %v7594_v2 = vrot.slane %v7580_v45, %v15997_v21 }
0x129e   :  { %v7595_v59 = vcombine.low %v7571_v43, %v7587_v49  ;;  %v7596_v17 = vcombine.high %v7571_v43, %v7587_v49  ;;  %v7597_v27 = vcombine.low %v7578_v5, %v7594_v2  ;;  %v7598_v38 = vcombine.high %v7578_v5, %v7594_v2 }
0x12a0   :  { %14521 = vmatmul.mubr.msk.f32.vlgmr.msra.gmra.mrb[42].mxu1 %vm1531_vm2, %v7595_v59  ;;  %14528 = vmatmul.mubr.msk.f32.vlgmr.msra.gmra.mrb[46].mxu0 %vm1531_vm2, %v7596_v17 }
0x12a1   :  { %15078 = vmatpush3.bf16.xpose.msk.msra.mxu1 %vm16141_vm3, %v17306_v48  ;;  %15084 = vmatpush3.bf16.xpose.msk.msra.mxu0 %vm16141_vm3, %v17308_v32 }
0x12a2   :  { %14534 = vmatprep.mubr.msk.f32.mxu1 %vm1531_vm2, %v7529_v52  ;;  %14541 = vmatprep.mubr.msk.f32.mxu0 %vm1531_vm2, %v7530_v61 }
0x12a8   :  { %14535 = vmatmul.mubr.msk.f32.vlgmr.msra.gmra.mrb[44].mxu1 %vm1531_vm2, %v7597_v27  ;;  %14542 = vmatmul.mubr.msk.f32.vlgmr.msra.gmra.mrb[48].mxu0 %vm1531_vm2, %v7598_v38 }
0x132a   :  { %v14494_v29 = vpop.f32.mrb[40].mxu0 }
0x132b   :  { %v6751_v48 = vpop.f32.mrb[41].mxu0 }
0x132e   :  { %v14501_v44 = vpop.f32.mrb[42].mxu0 }
0x132f   :  { %v6832_v53 = vpop.f32.mrb[43].mxu0 }
0x1337   :  { %v14508_v26 = vpop.f32.mrb[40].mxu1 }
0x1338   :  { %v7071_v32 = vcombine.low %v14494_v29, %v14508_v26  ;;  %v7072_v47 = vcombine.high %v14494_v29, %v14508_v26  ;;  %v6913_v46 = vpop.f32.mrb[41].mxu1 }
0x1339   :  { %v7003_v25 = vcombine.low %v6751_v48, %v6913_v46  ;;  %v7004_v51 = vcombine.high %v6751_v48, %v6913_v46 }
0x133a   :  { %v7079_v41 = vrot.slane %v7071_v32, %v15995_v12  ;;  %v7086_v58 = vrot.slane %v7072_v47, %v15995_v12 }
0x133b   :  { %v7011_v42 = vrot.slane %v7003_v25, %v15995_v12  ;;  %v7018_v9 = vrot.slane %v7004_v51, %v15995_v12 }
0x136b   :  { %v14515_v55 = vpop.f32.mrb[44].mxu0 }
0x136c   :  { %v7087_v56 = vcombine.low %v14501_v44, %v14515_v55  ;;  %v7088_v15 = vcombine.high %v14501_v44, %v14515_v55  ;;  %v6994_v1 = vpop.f32.mrb[45].mxu0 }
0x136d   :  { %v7019_v37 = vcombine.low %v6832_v53, %v6994_v1  ;;  %v7020_v50 = vcombine.high %v6832_v53, %v6994_v1 }
0x136e   :  { %v7095_v10 = vrot.slane %v7087_v56, %v15995_v12  ;;  %v7102_v28 = vrot.slane %v7088_v15, %v15995_v12 }
0x136f   :  { %v7027_v0 = vrot.slane %v7019_v37, %v15995_v12  ;;  %v7034_v18 = vrot.slane %v7020_v50, %v15995_v12 }
0x1370   :  { %v7103_v60 = vcombine.low %v7079_v41, %v7095_v10  ;;  %v7104_v3 = vcombine.high %v7079_v41, %v7095_v10  ;;  %v7119_v30 = vcombine.low %v7086_v58, %v7102_v28  ;;  %v7120_v19 = vcombine.high %v7086_v58, %v7102_v28 }
0x1371   :  { %v7035_v34 = vcombine.low %v7011_v42, %v7027_v0  ;;  %v7036_v36 = vcombine.high %v7011_v42, %v7027_v0  ;;  %v7051_v22 = vcombine.low %v7018_v9, %v7034_v18  ;;  %v7052_v31 = vcombine.high %v7018_v9, %v7034_v18 }
0x1372   :  { %v7111_v39 = vrot.slane %v7103_v60, %v15997_v21  ;;  %v7118_v7 = vrot.slane %v7104_v3, %v15997_v21  ;;  %v7127_v13 = vrot.slane %v7119_v30, %v15997_v21  ;;  %v7134_v62 = vrot.slane %v7120_v19, %v15997_v21 }
0x1373   :  { %v7043_v24 = vrot.slane %v7035_v34, %v15997_v21  ;;  %v7050_v35 = vrot.slane %v7036_v36, %v15997_v21  ;;  %v7059_v23 = vrot.slane %v7051_v22, %v15997_v21  ;;  %v7066_v11 = vrot.slane %v7052_v31, %v15997_v21  ;;  %v17494_v4 = vpop.f32.mrb[42].mxu1  ;;  %v17496_v57 = vpop.f32.mrb[46].mxu0 }
0x1374   :  { %v7207_v43 = vcombine.low %v7111_v39, %v7118_v7  ;;  %v13682_v49 = vcombine.high %v7111_v39, %v7118_v7  ;;  %v7223_v16 = vcombine.low %v7127_v13, %v7134_v62  ;;  %v13683_v14 = vcombine.high %v7127_v13, %v7134_v62  ;;  %v17498_v40 = vpop.f32.mrb[43].mxu1  ;;  %v17500_v45 = vpop.f32.mrb[47].mxu0 }
0x1375   :  { %v7139_v59 = vcombine.low %v7043_v24, %v7050_v35  ;;  %v13680_v17 = vcombine.high %v7043_v24, %v7050_v35  ;;  %v7155_v52 = vcombine.low %v7059_v23, %v7066_v11  ;;  %v13681_v61 = vcombine.high %v7059_v23, %v7066_v11 }
0x1376   :  { %v7214_v5 = vrot.slane %v7207_v43, %v15995_v12  ;;  %v7222_v2 = vrot.slane %v13682_v49, %v15995_v12  ;;  %v7230_v27 = vrot.slane %v7223_v16, %v15995_v12  ;;  %v7238_v38 = vrot.slane %v13683_v14, %v15995_v12  ;;  %v15559_v43 = vld [vmem:[%s15698_s19 + $0x1] ss:$0 sm:$0xff]  ;;  %s18529_s19 = sld [smem:[#allocation14_spill]] }
0x1377   :  { %v7146_v29 = vrot.slane %v7139_v59, %v15995_v12  ;;  %v7154_v48 = vrot.slane %v13680_v17, %v15995_v12  ;;  %v7162_v44 = vrot.slane %v7155_v52, %v15995_v12  ;;  %v7170_v53 = vrot.slane %v13681_v61, %v15995_v12 }
0x1378   :  { %v8534_v26 = vsel %vm1880_vm4, %v17494_v4, -inf  ;;  %v8531_v32 = vsel %vm1880_vm4, %v17498_v40, -inf  ;;  %v7239_v47 = vcombine.low %v7214_v5, %v7222_v2  ;;  %v7255_v46 = vcombine.low %v7230_v27, %v7238_v38 }
0x1379   :  { %8535 = vmax.xlane.f32.xlu1 %v8534_v26  ;;  %8532 = vmax.xlane.f32.xlu0 %v8531_v32  ;;  %v7172_v25 = vcombine.high %v7146_v29, %v7154_v48  ;;  %v7188_v51 = vcombine.high %v7162_v44, %v7170_v53  ;;  %v7240_v55 = vcombine.high %v7214_v5, %v7222_v2  ;;  %v8540_v28 = vsel %vm1880_vm4, %v17496_v57, -inf }
0x137a   :  { %v7256_v56 = vcombine.high %v7230_v27, %v7238_v38  ;;  %v7171_v15 = vcombine.low %v7146_v29, %v7154_v48  ;;  %v17517_v50 = vrot.slane %v7239_v47, %v15997_v21  ;;  %v17520_v41 = vrot.slane %v7255_v46, %v15997_v21 }
0x137b   :  { %v17514_v1 = vpop.f32.mrb[44].mxu1  ;;  %v14543_v37 = vpop.f32.mrb[48].mxu0  ;;  %v17523_v58 = vrot.slane %v7172_v25, %v15997_v21  ;;  %v7187_v10 = vcombine.low %v7162_v44, %v7170_v53  ;;  %v17532_v0 = vrot.slane %v7188_v51, %v15997_v21  ;;  %v17535_v18 = vrot.slane %v7240_v55, %v15997_v21 }
0x137c   :  { %v17527_v42 = vpop.f32.mrb[45].mxu1  ;;  %v17529_v9 = vpop.f32.mrb[49].mxu0  ;;  %v8552_v60 = vsel %vm1880_vm4, %v14543_v37, -inf  ;;  %v7272_v30 = vcombine.high %v17517_v50, %v17520_v41  ;;  %v17543_v19 = vrot.slane %v7256_v56, %v15997_v21  ;;  %v17548_v36 = vrot.slane %v7171_v15, %v15997_v21 }
0x137d   :  { %8541 = vmax.xlane.f32.xlu1 %v8540_v28  ;;  %v8543_v3 = vsel %vm1880_vm4, %v17527_v42, -inf  ;;  %v7205_v34 = vcombine.low %v17523_v58, %v17532_v0  ;;  %v17551_v22 = vrot.slane %v7187_v10, %v15997_v21  ;;  %v7271_v31 = vcombine.low %v17517_v50, %v17520_v41 }
0x137e   :  { %8544 = vmax.xlane.f32.xlu0 %v8543_v3  ;;  %v7273_v39 = vcombine.low %v17535_v18, %v17543_v19  ;;  %v7274_v7 = vcombine.high %v17535_v18, %v17543_v19  ;;  %v7206_v13 = vcombine.high %v17523_v58, %v17532_v0  ;;  %v8546_v35 = vsel %vm1880_vm4, %v17514_v1, -inf }
0x137f   :  { %v7204_v62 = vcombine.high %v17548_v36, %v17551_v22  ;;  %v7203_v24 = vcombine.low %v17548_v36, %v17551_v22  ;;  %v8537_v23 = vsel %vm1880_vm4, %v17500_v45, -inf  ;;  %v8549_v11 = vsel %vm1880_vm4, %v17529_v9, -inf }
0x1380   :  { %v17573_v49 = vadd.f32 %v15559_v43, %v16888_v33  ;;  %v17578_v16 = vadd.f32 %v15559_v43, %v16892_v63 }
0x1381   :  { %8553 = vmax.xlane.f32.xlu1 %v8552_v60 }
0x1382   :  { %8547 = vmax.xlane.f32.xlu0 %v8546_v35 }
0x1386   :  { %8538 = vmax.xlane.f32.xlu0 %v8537_v23 }
0x138a   :  { %8550 = vmax.xlane.f32.xlu0 %v8549_v11 }
0x1392   :  { %7895 = vrot.lane.b32.xlu1 %v17573_v49, %s15623_s0 }
0x1396   :  { %7899 = vrot.lane.b32.xlu1 %v17578_v16, %s15624_s5 }
0x139a   :  { %7901 = vrot.lane.b32.xlu1 %v17573_v49, %s15624_s5 }
0x139e   :  { %7907 = vrot.lane.b32.xlu1 %v17573_v49, %s15625_s9 }
0x13a0   :  { %7893 = vrot.lane.b32.xlu0 %v17578_v16, %s15623_s0  ;;  %s18538_s0 = sld [smem:[#allocation24_spill]] }
0x13a2   :  { %7279 = vrot.lane.b32.xlu1 %v7272_v30, %s15628_s13 }
0x13a4   :  { %7905 = vrot.lane.b32.xlu0 %v17578_v16, %s15625_s9  ;;  %s15637_s9 = smov 48  }
0x13a6   :  { %7285 = vrot.lane.b32.xlu1 %v7205_v34, %s15629_s22 }
0x13a8   :  { %7277 = vrot.lane.b32.xlu0 %v7204_v62, %s15628_s13 }
0x13aa   :  { %7287 = vrot.lane.b32.xlu1 %v7273_v39, %s15629_s22 }
0x1406   :  { %v8536_v33 = vpop.xlane.xlu1 %8535  ;;  %v8533_v63 = vpop.xlane.xlu0 %8532 }
0x1407   :  { %v8556_v14 = vsub.f32 %v17494_v4, %v8536_v33  ;;  %v8555_v59 = vsub.f32 %v17498_v40, %v8533_v63 }
0x1409   :  { %v8565_v17 = vmul.f32 1.442695, %v8556_v14  ;;  %v8563_v52 = vmul.f32 1.442695, %v8555_v59 }
0x140a   :  { %v8542_v61 = vpop.xlane.xlu1 %8541 }
0x140b   :  { %15457 = vpow2.f32 %v8565_v17  ;;  %v8558_v5 = vsub.f32 %v17496_v57, %v8542_v61  ;;  %v8545_v2 = vpop.xlane.xlu0 %8544 }
0x140c   :  { %15459 = vpow2.f32 %v8563_v52  ;;  %v8559_v51 = vsub.f32 %v17527_v42, %v8545_v2 }
0x140d   :  { %v8569_v27 = vmul.f32 1.442695, %v8558_v5 }
0x140e   :  { %v8554_v38 = vpop.xlane.xlu1 %8553  ;;  %v8571_v10 = vmul.f32 1.442695, %v8559_v51 }
0x140f   :  { %15461 = vpow2.f32 %v8569_v27  ;;  %v8562_v29 = vsub.f32 %v14543_v37, %v8554_v38  ;;  %v8548_v48 = vpop.xlane.xlu0 %8547 }
0x1410   :  { %v8560_v44 = vsub.f32 %v17514_v1, %v8548_v48 }
0x1411   :  { %v8577_v53 = vmul.f32 1.442695, %v8562_v29 }
0x1412   :  { %v7896_v26 = vpop.permute.xlu1 %7895  ;;  %v8573_v4 = vmul.f32 1.442695, %v8560_v44 }
0x1413   :  { %v8539_v32 = vpop.xlane.xlu0 %8538 }
0x1414   :  { %15463 = vpow2.f32 %v8573_v4  ;;  %v8557_v47 = vsub.f32 %v17500_v45, %v8539_v32 }
0x1415   :  { %v17598_v40 = vpop.eup %15457  ;;  %15465 = vpow2.f32 %v8577_v53 }
0x1416   :  { %v17601_v57 = vpop.eup %15459  ;;  %v7900_v46 = vpop.permute.xlu1 %7899  ;;  %v8582_v25 = vsel %vm1880_vm4, %v17598_v40, 0.0  ;;  %v8567_v1 = vmul.f32 1.442695, %v8557_v47 }
0x1417   :  { %8583 = vadd.xlane.f32.xlu1 %v8582_v25  ;;  %v8579_v55 = vsel %vm1880_vm4, %v17601_v57, 0.0  ;;  %v8551_v56 = vpop.xlane.xlu0 %8550  ;;  %v7911_v60 = vcombine.low %v17578_v16, %v7900_v46  ;;  %v7912_v39 = vcombine.high %v17578_v16, %v7900_v46 }
0x1418   :  { %8580 = vadd.xlane.f32.xlu0 %v8579_v55  ;;  %v8561_v3 = vsub.f32 %v17529_v9, %v8551_v56  ;;  %15467 = vpow2.f32 %v8567_v1 }
0x1419   :  { %v17608_v15 = vpop.eup %15461  ;;  %15469 = vpow2.f32 %v8571_v10  ;;  %v7919_v33 = vrot.slane %v7911_v60, %v15995_v12  ;;  %v7926_v61 = vrot.slane %v7912_v39, %v15995_v12 }
0x141a   :  { %v7902_v37 = vpop.permute.xlu1 %7901  ;;  %v8588_v45 = vsel %vm1880_vm4, %v17608_v15, 0.0  ;;  %v8575_v63 = vmul.f32 1.442695, %v8561_v3 }
0x141b   :  { %v7894_v28 = vpop.permute.xlu0 %7893  ;;  %v7979_v42 = vcombine.low %v17573_v49, %v7902_v37  ;;  %v7980_v30 = vcombine.high %v17573_v49, %v7902_v37 }
0x141c   :  { %8589 = vadd.xlane.f32.xlu0 %v8588_v45  ;;  %15471 = vpow2.f32 %v8575_v63 }
0x141d   :  { %v7987_v49 = vrot.slane %v7979_v42, %v15995_v12  ;;  %v7994_v16 = vrot.slane %v7980_v30, %v15995_v12 }
0x141e   :  { %v17616_v34 = vpop.eup %15463  ;;  %v7908_v62 = vpop.permute.xlu1 %7907 }
0x141f   :  { %v17619_v35 = vpop.eup %15465  ;;  %v7995_v23 = vcombine.low %v7896_v26, %v7908_v62  ;;  %v7996_v11 = vcombine.high %v7896_v26, %v7908_v62  ;;  %v7906_v43 = vpop.permute.xlu0 %7905  ;;  %v8594_v9 = vsel %vm1880_vm4, %v17616_v34, 0.0 }
0x1420   :  { %v7927_v14 = vcombine.low %v7894_v28, %v7906_v43  ;;  %v7928_v59 = vcombine.high %v7894_v28, %v7906_v43  ;;  %8595 = vadd.xlane.f32.xlu1 %v8594_v9  ;;  %v8600_v27 = vsel %vm1880_vm4, %v17619_v35, 0.0 }
0x1421   :  { %v8003_v17 = vrot.slane %v7995_v23, %v15995_v12  ;;  %v8010_v52 = vrot.slane %v7996_v11, %v15995_v12 }
0x1422   :  { %v7935_v5 = vrot.slane %v7927_v14, %v15995_v12  ;;  %v7942_v2 = vrot.slane %v7928_v59, %v15995_v12  ;;  %v17640_v37 = vpop.eup %15467 }
0x1423   :  { %v8011_v38 = vcombine.low %v7987_v49, %v8003_v17  ;;  %v8012_v29 = vcombine.high %v7987_v49, %v8003_v17  ;;  %v8027_v48 = vcombine.low %v7994_v16, %v8010_v52  ;;  %v8028_v44 = vcombine.high %v7994_v16, %v8010_v52  ;;  %v17643_v39 = vpop.eup %15469  ;;  %v7278_v18 = vpop.permute.xlu0 %7277 }
0x1424   :  { %v7943_v53 = vcombine.low %v7919_v33, %v7935_v5  ;;  %v7944_v26 = vcombine.high %v7919_v33, %v7935_v5  ;;  %v7959_v4 = vcombine.low %v7926_v61, %v7942_v2  ;;  %8601 = vadd.xlane.f32.xlu1 %v8600_v27  ;;  %v7960_v56 = vcombine.high %v7926_v61, %v7942_v2 }
0x1425   :  { %v8019_v32 = vrot.slane %v8011_v38, %v15997_v21  ;;  %v8026_v47 = vrot.slane %v8012_v29, %v15997_v21  ;;  %v8035_v46 = vrot.slane %v8027_v48, %v15997_v21  ;;  %v8042_v25 = vrot.slane %v8028_v44, %v15997_v21 }
0x1426   :  { %v7951_v51 = vrot.slane %v7943_v53, %v15997_v21  ;;  %v7958_v55 = vrot.slane %v7944_v26, %v15997_v21  ;;  %v7967_v1 = vrot.slane %v7959_v4, %v15997_v21  ;;  %v7974_v3 = vrot.slane %v7960_v56, %v15997_v21  ;;  %v17656_v29 = vpop.eup %15471 }
0x1427   :  { %v8115_v45 = vcombine.low %v8019_v32, %v8026_v47  ;;  %v13694_v10 = vcombine.high %v8019_v32, %v8026_v47  ;;  %v8131_v28 = vcombine.low %v8035_v46, %v8042_v25  ;;  %v13695_v60 = vcombine.high %v8035_v46, %v8042_v25 }
0x1428   :  { %v8047_v42 = vcombine.low %v7951_v51, %v7958_v55  ;;  %v13692_v30 = vcombine.high %v7951_v51, %v7958_v55  ;;  %v8063_v9 = vcombine.low %v7967_v1, %v7974_v3  ;;  %v13693_v33 = vcombine.high %v7967_v1, %v7974_v3 }
0x1429   :  { %v8122_v62 = vrot.slane %v8115_v45, %v15995_v12  ;;  %v8130_v23 = vrot.slane %v13694_v10, %v15995_v12  ;;  %v8138_v11 = vrot.slane %v8131_v28, %v15995_v12  ;;  %v8146_v43 = vrot.slane %v13695_v60, %v15995_v12 }
0x142a   :  { %v8585_v63 = vsel %vm1880_vm4, %v17640_v37, 0.0  ;;  %v8054_v14 = vrot.slane %v8047_v42, %v15995_v12  ;;  %v8062_v59 = vrot.slane %v13692_v30, %v15995_v12  ;;  %v8070_v16 = vrot.slane %v8063_v9, %v15995_v12 }
0x142b   :  { %8586 = vadd.xlane.f32.xlu0 %v8585_v63  ;;  %v8147_v49 = vcombine.low %v8122_v62, %v8130_v23  ;;  %v8078_v17 = vrot.slane %v13693_v33, %v15995_v12  ;;  %v8163_v52 = vcombine.low %v8138_v11, %v8146_v43  ;;  %v8148_v61 = vcombine.high %v8122_v62, %v8130_v23 }
0x142c   :  { %v8079_v5 = vcombine.low %v8054_v14, %v8062_v59  ;;  %v8080_v27 = vcombine.high %v8054_v14, %v8062_v59  ;;  %v8164_v38 = vcombine.high %v8138_v11, %v8146_v43  ;;  %v8591_v48 = vsel %vm1880_vm4, %v17643_v39, 0.0  ;;  %v7280_v43 = vpop.permute.xlu1 %7279  ;;  %v13724_v14 = vld [vmem:[%s15703_s24 + $0x20] sm:$0xff]  ;;  %v13725_v59 = vld [vmem:[%s15703_s24 + $0x28] sm:$0xff] }
0x142d   :  { %v8155_v2 = vrot.slane %v8147_v49, %v15997_v21  ;;  %v8095_v44 = vcombine.low %v8070_v16, %v8078_v17  ;;  %v8171_v53 = vrot.slane %v8163_v52, %v15997_v21  ;;  %v8096_v26 = vcombine.high %v8070_v16, %v8078_v17 }
0x142e   :  { %v8087_v4 = vrot.slane %v8079_v5, %v15997_v21  ;;  %v8094_v32 = vrot.slane %v8080_v27, %v15997_v21  ;;  %v8162_v25 = vrot.slane %v8148_v61, %v15997_v21  ;;  %v8178_v51 = vrot.slane %v8164_v38, %v15997_v21 }
0x142f   :  { %8592 = vadd.xlane.f32.xlu0 %v8591_v48  ;;  %v8103_v47 = vrot.slane %v8095_v44, %v15997_v21  ;;  %v8110_v46 = vrot.slane %v8096_v26, %v15997_v21  ;;  %v8597_v55 = vsel %vm1880_vm4, %v17656_v29, 0.0  ;;  %v8179_v56 = vcombine.low %v8155_v2, %v8171_v53  ;;  %v13726_v44 = vld [vmem:[%s15703_s24 + $0x30] sm:$0xff] }
0x1430   :  { %v8180_v1 = vcombine.high %v8155_v2, %v8171_v53  ;;  %v8181_v30 = vcombine.low %v8162_v25, %v8178_v51  ;;  %v8182_v62 = vcombine.high %v8162_v25, %v8178_v51  ;;  %v7286_v9 = vpop.permute.xlu1 %7285  ;;  %v15101_v52 = vpack.c.bf16 %v13725_v59, %v13724_v14  ;;  %v13727_v53 = vld [vmem:[%s15703_s24 + $0x38] sm:$0xff]  ;;  %s18530_s24 = sld [smem:[#allocation15_spill]] }
0x1431   :  { %v8111_v45 = vcombine.low %v8087_v4, %v8103_v47  ;;  %v8112_v10 = vcombine.high %v8087_v4, %v8103_v47  ;;  %v8113_v28 = vcombine.low %v8094_v32, %v8110_v46  ;;  %v8114_v60 = vcombine.high %v8094_v32, %v8110_v46 }
0x1432   :  { %v7299_v4 = vsel %vm1531_vm2, %v7203_v24, %v7278_v18 }
0x1433   :  { %8598 = vadd.xlane.f32.xlu0 %v8597_v55  ;;  %v15085_v3 = vpack.c.bf16 %v8179_v56, %v8111_v45  ;;  %v15089_v42 = vpack.c.bf16 %v8180_v1, %v8112_v10  ;;  %v15093_v23 = vpack.c.bf16 %v8181_v30, %v8113_v28  ;;  %v15097_v11 = vpack.c.bf16 %v8182_v62, %v8114_v60 }
0x1434   :  { %v7288_v33 = vpop.permute.xlu1 %7287  ;;  %v7301_v25 = vsel %vm1880_vm4, %v7299_v4, %v7286_v9 }
0x1435   :  { %7295 = vrot.lane.b32.xlu1 %v7274_v7, %s15630_s23  ;;  %15086 = vmatprep.subr.bf16.mxu1 %v15085_v3 }
0x1436   :  { %15090 = vmatprep.subr.bf16.mxu0 %v15089_v42  ;;  %15088 = vmatpush3.bf16.msra.mxu1 %v15085_v3 }
0x1437   :  { %15092 = vmatpush3.bf16.msra.mxu0 %v15089_v42  ;;  %15094 = vmatprep.subr.bf16.mxu1 %v15093_v23 }
0x1438   :  { %15098 = vmatprep.subr.bf16.mxu0 %v15097_v11 }
0x1449   :  { %7293 = vrot.lane.b32.xlu0 %v7206_v13, %s15630_s23 }
0x14a4   :  { %v8584_v19 = vpop.xlane.xlu1 %8583 }
0x14a5   :  { %15473 = vrcp.f32 %v8584_v19  ;;  %v8581_v7 = vpop.xlane.xlu0 %8580 }
0x14a6   :  { %15475 = vrcp.f32 %v8581_v7 }
0x14a9   :  { %v8590_v58 = vpop.xlane.xlu0 %8589 }
0x14aa   :  { %15477 = vrcp.f32 %v8590_v58 }
0x14ad   :  { %v8596_v0 = vpop.xlane.xlu1 %8595 }
0x14af   :  { %v15474_v63 = vpop.eup %15473 }
0x14b0   :  { %v15476_v49 = vpop.eup %15475  ;;  %v8612_v17 = vmul.f32 %v15474_v63, %v17598_v40 }
0x14b1   :  { %v8611_v16 = vmul.f32 %v15476_v49, %v17601_v57  ;;  %v8602_v5 = vpop.xlane.xlu1 %8601 }
0x14b3   :  { %14548 = vmatprep.mubr.msk.f32.mxu1 %vm1880_vm4, %v8611_v16 }
0x14b4   :  { %14549 = vmatmul.mubr.msk.f32.vlgmr.msra.gmra.mrb[46].mxu1 %vm1880_vm4, %v8612_v17  ;;  %v15478_v57 = vpop.eup %15477 }
0x14b5   :  { %15096 = vmatpush3.bf16.msra.mxu1 %v15093_v23  ;;  %v8614_v38 = vmul.f32 %v15478_v57, %v17608_v15  ;;  %v15105_v15 = vpack.c.bf16 %v13727_v53, %v13726_v44  ;;  %v7296_v24 = vpop.permute.xlu1 %7295 }
0x14b6   :  { %15102 = vmatprep.subr.bf16.mxu1 %v15101_v52 }
0x14b8   :  { %v8587_v13 = vpop.xlane.xlu0 %8586 }
0x14b9   :  { %15479 = vrcp.f32 %v8587_v13 }
0x14ba   :  { %15481 = vrcp.f32 %v8596_v0 }
0x14bc   :  { %v8593_v61 = vpop.xlane.xlu0 %8592 }
0x14bd   :  { %15483 = vrcp.f32 %v8593_v61 }
0x14be   :  { %15485 = vrcp.f32 %v8602_v5 }
0x14c0   :  { %v8599_v40 = vpop.xlane.xlu0 %8598 }
0x14c1   :  { %15487 = vrcp.f32 %v8599_v40 }
0x14c3   :  { %v15480_v2 = vpop.eup %15479 }
0x14c4   :  { %v8613_v27 = vmul.f32 %v15480_v2, %v17640_v37  ;;  %v15482_v48 = vpop.eup %15481  ;;  %v7294_v32 = vpop.permute.xlu0 %7293 }
0x14c5   :  { %v8616_v37 = vmul.f32 %v15482_v48, %v17616_v34  ;;  %v7303_v55 = vsel %vm2593_vm5, %v7301_v25, %v7294_v32  ;;  %v7300_v34 = vsel %vm1531_vm2, %v7271_v31, %v7280_v43 }
0x14c6   :  { %14555 = vmatprep.mubr.msk.f32.mxu0 %vm1880_vm4, %v8613_v27 }
0x14c7   :  { %v15484_v26 = vpop.eup %15483  ;;  %14556 = vmatmul.mubr.msk.f32.vlgmr.msra.gmra.mrb[50].mxu0 %vm1880_vm4, %v8614_v38 }
0x14c8   :  { %15100 = vmatpush3.bf16.msra.mxu0 %v15097_v11  ;;  %v8615_v47 = vmul.f32 %v15484_v26, %v17643_v39  ;;  %v15486_v46 = vpop.eup %15485  ;;  %v7302_v39 = vsel %vm1880_vm4, %v7300_v34, %v7288_v33 }
0x14c9   :  { %v8618_v22 = vmul.f32 %v15486_v46, %v17619_v35  ;;  %v7304_v56 = vsel %vm2593_vm5, %v7302_v39, %v7296_v24 }
0x14ca   :  { %14562 = vmatprep.mubr.msk.f32.mxu1 %vm1880_vm4, %v8615_v47 }
0x14cb   :  { %v15488_v51 = vpop.eup %15487  ;;  %14563 = vmatmul.mubr.msk.f32.vlgmr.msra.gmra.mrb[48].mxu1 %vm1880_vm4, %v8616_v37 }
0x14cc   :  { %15104 = vmatpush3.bf16.msra.mxu1 %v15101_v52  ;;  %14580 = vmatprep.mubr.msk.f32.mxu1 %vm279_vm1, %v7303_v55  ;;  %v8617_v36 = vmul.f32 %v15488_v51, %v17656_v29  ;;  %v17728_v51 = vld [vmem:[%s15708_s30 + $0x1] ss:$0 sm:$0xff]  ;;  %s18531_s30 = sld [smem:[#allocation17_spill]] }
0x14cd   :  { %15106 = vmatprep.subr.bf16.mxu1 %v15105_v15 }
0x14ce   :  { %14569 = vmatprep.mubr.msk.f32.mxu0 %vm1880_vm4, %v8617_v36 }
0x14cf   :  { %14570 = vmatmul.mubr.msk.f32.vlgmr.msra.gmra.mrb[52].mxu0 %vm1880_vm4, %v8618_v22 }
0x14d0   :  { %15108 = vmatpush3.bf16.msra.mxu1 %v15105_v15 }
0x14d3   :  { %14581 = vmatmul.mubr.msk.f32.vlgmr.msra.gmra.mrb[50].mxu1 %vm279_vm1, %v7304_v56 }
0x1587   :  { %v14550_v29 = vpop.f32.mrb[46].mxu1 }
0x1588   :  { %v8691_v35 = vpop.f32.mrb[47].mxu1 }
0x159a   :  { %v14557_v1 = vpop.f32.mrb[50].mxu0 }
0x159b   :  { %v8772_v45 = vpop.f32.mrb[51].mxu0 }
0x159e   :  { %v14564_v10 = vpop.f32.mrb[48].mxu1 }
0x159f   :  { %v9011_v28 = vcombine.low %v14550_v29, %v14564_v10  ;;  %v9012_v60 = vcombine.high %v14550_v29, %v14564_v10  ;;  %v8853_v3 = vpop.f32.mrb[49].mxu1 }
0x15a0   :  { %v8943_v42 = vcombine.low %v8691_v35, %v8853_v3  ;;  %v8944_v30 = vcombine.high %v8691_v35, %v8853_v3 }
0x15a1   :  { %v9019_v43 = vrot.slane %v9011_v28, %v15995_v12  ;;  %v9026_v9 = vrot.slane %v9012_v60, %v15995_v12 }
0x15a2   :  { %v14571_v50 = vpop.f32.mrb[52].mxu0  ;;  %v8951_v19 = vrot.slane %v8943_v42, %v15995_v12  ;;  %v8958_v7 = vrot.slane %v8944_v30, %v15995_v12 }
0x15a3   :  { %v9027_v41 = vcombine.low %v14557_v1, %v14571_v50  ;;  %v9028_v31 = vcombine.high %v14557_v1, %v14571_v50  ;;  %v8934_v62 = vpop.f32.mrb[53].mxu0 }
0x15a4   :  { %v8959_v23 = vcombine.low %v8772_v45, %v8934_v62  ;;  %v8960_v11 = vcombine.high %v8772_v45, %v8934_v62 }
0x15a5   :  { %v9035_v33 = vrot.slane %v9027_v41, %v15995_v12  ;;  %v9042_v18 = vrot.slane %v9028_v31, %v15995_v12 }
0x15a6   :  { %v8967_v63 = vrot.slane %v8959_v23, %v15995_v12  ;;  %v8974_v14 = vrot.slane %v8960_v11, %v15995_v12  ;;  %v14582_v59 = vpop.f32.mrb[50].mxu1 }
0x15a7   :  { %v9043_v49 = vcombine.low %v9019_v43, %v9035_v33  ;;  %v9044_v16 = vcombine.high %v9019_v43, %v9035_v33  ;;  %v9059_v17 = vcombine.low %v9026_v9, %v9042_v18  ;;  %v9060_v52 = vcombine.high %v9026_v9, %v9042_v18  ;;  %v9336_v58 = vpop.f32.mrb[51].mxu1 }
0x15a8   :  { %v8975_v0 = vcombine.low %v8951_v19, %v8967_v63  ;;  %v8976_v13 = vcombine.high %v8951_v19, %v8967_v63  ;;  %v8991_v61 = vcombine.low %v8958_v7, %v8974_v14  ;;  %v8992_v5 = vcombine.high %v8958_v7, %v8974_v14 }
0x15a9   :  { %v9051_v40 = vrot.slane %v9043_v49, %v15997_v21  ;;  %v9058_v57 = vrot.slane %v9044_v16, %v15997_v21  ;;  %v9067_v2 = vrot.slane %v9059_v17, %v15997_v21  ;;  %v9074_v27 = vrot.slane %v9060_v52, %v15997_v21 }
0x15aa   :  { %v8983_v38 = vrot.slane %v8975_v0, %v15997_v21  ;;  %v8990_v48 = vrot.slane %v8976_v13, %v15997_v21  ;;  %v8999_v44 = vrot.slane %v8991_v61, %v15997_v21  ;;  %v9006_v53 = vrot.slane %v8992_v5, %v15997_v21 }
0x15ab   :  { %v9147_v26 = vcombine.low %v9051_v40, %v9058_v57  ;;  %v13722_v4 = vcombine.high %v9051_v40, %v9058_v57  ;;  %v9163_v32 = vcombine.low %v9067_v2, %v9074_v27  ;;  %v13723_v47 = vcombine.high %v9067_v2, %v9074_v27 }
0x15ac   :  { %v9079_v37 = vcombine.low %v8983_v38, %v8990_v48  ;;  %v13720_v15 = vcombine.high %v8983_v38, %v8990_v48  ;;  %v9095_v46 = vcombine.low %v8999_v44, %v9006_v53  ;;  %v13721_v25 = vcombine.high %v8999_v44, %v9006_v53 }
0x15ad   :  { %v9154_v55 = vrot.slane %v9147_v26, %v15995_v12  ;;  %v9162_v36 = vrot.slane %v13722_v4, %v15995_v12  ;;  %v9170_v22 = vrot.slane %v9163_v32, %v15995_v12  ;;  %v9178_v24 = vrot.slane %v13723_v47, %v15995_v12 }
0x15ae   :  { %v9086_v34 = vrot.slane %v9079_v37, %v15995_v12  ;;  %v9094_v39 = vrot.slane %v13720_v15, %v15995_v12  ;;  %v9102_v56 = vrot.slane %v9095_v46, %v15995_v12  ;;  %v9110_v29 = vrot.slane %v13721_v25, %v15995_v12 }
0x15af   :  { %v9342_v35 = vadd.f32 %v14582_v59, %v17728_v51  ;;  %v9337_v1 = vadd.f32 %v17728_v51, %v9336_v58  ;;  %v9179_v45 = vcombine.low %v9154_v55, %v9162_v36  ;;  %v9195_v10 = vcombine.low %v9170_v22, %v9178_v24 }
0x15b0   :  { %v9180_v28 = vcombine.high %v9154_v55, %v9162_v36  ;;  %v9196_v60 = vcombine.high %v9170_v22, %v9178_v24  ;;  %v9111_v3 = vcombine.low %v9086_v34, %v9094_v39  ;;  %v9127_v42 = vcombine.low %v9102_v56, %v9110_v29  ;;  %v13738_v36 = vld [vmem:[%s15723_s20 + $0x20] sm:$0xff]  ;;  %v13739_v22 = vld [vmem:[%s15723_s20 + $0x28] sm:$0xff] }
0x15b1   :  { %v17741_v30 = vadd.f32 %v9342_v35, %v16833_v54  ;;  %v17744_v50 = vadd.f32 %v9337_v1, %v16836_v8  ;;  %v9187_v41 = vrot.slane %v9179_v45, %v15997_v21  ;;  %v9203_v31 = vrot.slane %v9195_v10, %v15997_v21 }
0x15b2   :  { %v9194_v62 = vrot.slane %v9180_v28, %v15997_v21  ;;  %v9210_v23 = vrot.slane %v9196_v60, %v15997_v21  ;;  %v9119_v11 = vrot.slane %v9111_v3, %v15997_v21  ;;  %v9135_v43 = vrot.slane %v9127_v42, %v15997_v21  ;;  %v17781_v3 = vld [vmem:[%s18517_s26 + $0x1] ss:$0 sm:$0xff]  ;;  %s18540_s26 = sld [smem:[#allocation26_spill]] }
0x15b3   :  { %v9366_v9 = vsel %vm279_vm1, %v17741_v30, 0.0  ;;  %v9363_v54 = vsel %vm279_vm1, %v17744_v50, 0.0  ;;  %v9212_v8 = vcombine.high %v9187_v41, %v9203_v31  ;;  %v9112_v33 = vcombine.high %v9086_v34, %v9094_v39  ;;  %v13740_v34 = vld [vmem:[%s15723_s20 + $0x30] sm:$0xff]  ;;  %v13741_v39 = vld [vmem:[%s15723_s20 + $0x38] sm:$0xff]  ;;  %s18532_s20 = sld [smem:[#allocation12_spill]] }
0x15b4   :  { %9367 = vadd.xlane.f32.xlu1 %v9366_v9  ;;  %9364 = vadd.xlane.f32.xlu0 %v9363_v54  ;;  %v9213_v18 = vcombine.low %v9194_v62, %v9210_v23  ;;  %v9144_v19 = vcombine.high %v9119_v11, %v9135_v43  ;;  %v9214_v7 = vcombine.high %v9194_v62, %v9210_v23  ;;  %v17784_v62 = vld [vmem:[%s18518_s28 + $0x1] ss:$0 sm:$0xff] }
0x15b5   :  { %v9126_v63 = vrot.slane %v9112_v33, %v15997_v21  ;;  %v9128_v14 = vcombine.high %v9102_v56, %v9110_v29  ;;  %v9211_v59 = vcombine.low %v9187_v41, %v9203_v31  ;;  %v9143_v49 = vcombine.low %v9119_v11, %v9135_v43 }
0x15b6   :  { %v15109_v24 = vpack.c.bf16 %v13739_v22, %v13738_v36  ;;  %v15113_v56 = vpack.c.bf16 %v13741_v39, %v13740_v34 }
0x15b7   :  { %v9142_v16 = vrot.slane %v9128_v14, %v15997_v21 }
0x15b8   :  { %15110 = vmatprep.subr.bf16.mxu0 %v15109_v24 }
0x15b9   :  { %v9145_v17 = vcombine.low %v9126_v63, %v9142_v16  ;;  %v9146_v52 = vcombine.high %v9126_v63, %v9142_v16  ;;  %15112 = vmatpush3.bf16.msra.mxu0 %v15109_v24  ;;  %v13751_v16 = vld [vmem:[%s18519_s1 + $0x58] sm:$0xff] }
0x15ba   :  { %15114 = vmatprep.subr.bf16.mxu0 %v15113_v56 }
0x15bd   :  { %15116 = vmatpush3.bf16.msra.mxu0 %v15113_v56 }
0x15c5   :  { %9219 = vrot.lane.b32.xlu1 %v9212_v8, %s15628_s13 }
0x15c9   :  { %9227 = vrot.lane.b32.xlu1 %v9213_v18, %s15629_s22 }
0x15ca   :  { %9217 = vrot.lane.b32.xlu0 %v9144_v19, %s15628_s13 }
0x15cd   :  { %9235 = vrot.lane.b32.xlu1 %v9214_v7, %s15630_s23 }
0x15ce   :  { %9225 = vrot.lane.b32.xlu0 %v9145_v17, %s15629_s22  ;;  %v13752_v17 = vld [vmem:[%s18519_s1 + $0x60] sm:$0xff] }
0x15d2   :  { %9233 = vrot.lane.b32.xlu0 %v9146_v52, %s15630_s23  ;;  %v13753_v52 = vld [vmem:[%s18519_s1 + $0x68] sm:$0xff]  ;;  %s18539_s23 = sld [smem:[#allocation25_spill]] }
0x1641   :  { %v9368_v58 = vpop.xlane.xlu1 %9367  ;;  %v9365_v0 = vpop.xlane.xlu0 %9364 }
0x1642   :  { %v9376_v13 = vmul.f32 0.03125, %v9368_v58  ;;  %v9375_v61 = vmul.f32 0.03125, %v9365_v0  ;;  %v15125_v58 = vpack.c.bf16 %v13753_v52, %v13752_v17  ;;  %v13754_v0 = vld [vmem:[%s18519_s1 + $0x70] sm:$0xff] }
0x1644   :  { %v9380_v5 = vsub.f32 %v17741_v30, %v9376_v13  ;;  %v9379_v40 = vsub.f32 %v17744_v50, %v9375_v61  ;;  %v13755_v13 = vld [vmem:[%s18519_s1 + $0x78] sm:$0xff] }
0x1645   :  { %v9220_v57 = vpop.permute.xlu1 %9219  ;;  %v9218_v2 = vpop.permute.xlu0 %9217  ;;  %v15129_v61 = vpack.c.bf16 %v13755_v13, %v13754_v0 }
0x1646   :  { %v9384_v27 = vmul.f32 %v9380_v5, %v9380_v5  ;;  %v9383_v38 = vmul.f32 %v9379_v40, %v9379_v40  ;;  %v9239_v4 = vsel %vm1531_vm2, %v9143_v49, %v9218_v2  ;;  %v9240_v32 = vsel %vm1531_vm2, %v9211_v59, %v9220_v57  ;;  %v13748_v59 = vld [vmem:[%s18519_s1 + $0x40] sm:$0xff] }
0x1648   :  { %v9390_v48 = vsel %vm279_vm1, %v9384_v27, 0.0  ;;  %v9387_v44 = vsel %vm279_vm1, %v9383_v38, 0.0 }
0x1649   :  { %9391 = vadd.xlane.f32.xlu1 %v9390_v48  ;;  %v9228_v53 = vpop.permute.xlu1 %9227  ;;  %9388 = vadd.xlane.f32.xlu0 %v9387_v44  ;;  %v9226_v26 = vpop.permute.xlu0 %9225 }
0x164a   :  { %v9241_v47 = vsel %vm1880_vm4, %v9239_v4, %v9226_v26  ;;  %v9242_v46 = vsel %vm1880_vm4, %v9240_v32, %v9228_v53  ;;  %v13743_v53 = vld [vmem:[%s18520_s2 + $0x1] ss:$0 sm:$0xff] }
0x164d   :  { %v9236_v37 = vpop.permute.xlu1 %9235  ;;  %v9234_v15 = vpop.permute.xlu0 %9233 }
0x164e   :  { %v9243_v25 = vsel %vm2593_vm5, %v9241_v47, %v9234_v15  ;;  %v9244_v55 = vsel %vm2593_vm5, %v9242_v46, %v9236_v37 }
0x164f   :  { %14583 = vmatprep.mubr.msk.f32.mxu1 %vm279_vm1, %v9243_v25 }
0x1650   :  { %14584 = vmatmul.mubr.msk.f32.gmra.mrb[52].mxu1 %vm279_vm1, %v9244_v55 }
0x16d6   :  { %v9392_v29 = vpop.xlane.xlu1 %9391  ;;  %v9389_v35 = vpop.xlane.xlu0 %9388 }
0x16d7   :  { %v9400_v1 = vmul.f32 0.03125, %v9392_v29  ;;  %v9399_v45 = vmul.f32 0.03125, %v9389_v35 }
0x16d9   :  { %v9404_v10 = vadd.f32 1e-06, %v9400_v1  ;;  %v9403_v28 = vadd.f32 1e-06, %v9399_v45 }
0x16db   :  { %15489 = vrsqrt.f32 %v9404_v10 }
0x16dc   :  { %15491 = vrsqrt.f32 %v9403_v28 }
0x16e5   :  { %v15490_v60 = vpop.eup %15489 }
0x16e6   :  { %v15492_v42 = vpop.eup %15491  ;;  %v9412_v41 = vmul.f32 %v15490_v60, %v9380_v5 }
0x16e7   :  { %v9411_v31 = vmul.f32 %v15492_v42, %v9379_v40 }
0x16e8   :  { %v9422_v23 = vmul.f32 %v17781_v3, %v9412_v41 }
0x16e9   :  { %v9421_v11 = vmul.f32 %v17781_v3, %v9411_v31 }
0x16ea   :  { %v9432_v9 = vadd.f32 %v17784_v62, %v9422_v23 }
0x16eb   :  { %v9431_v43 = vadd.f32 %v17784_v62, %v9421_v11 }
0x16ed   :  { %14594 = vmatprep.mubr.msk.f32.mxu0 %vm279_vm1, %v9431_v43 }
0x16ee   :  { %14595 = vmatmul.mubr.msk.f32.vlgmr.msra.gmra.mrb[54].mxu0 %vm279_vm1, %v9432_v9 }
0x1723   :  { %v14585_v54 = vpop.f32.mrb[52].mxu1 }
0x1724   :  { %v9346_v8 = vpop.f32.mrb[53].mxu1  ;;  %v9352_v33 = vadd.f32 %v14585_v54, %v17728_v51 }
0x1725   :  { %v9347_v18 = vadd.f32 %v17728_v51, %v9346_v8  ;;  %v13749_v51 = vld [vmem:[%s18519_s1 + $0x48] sm:$0xff] }
0x1726   :  { %v17798_v7 = vadd.f32 %v9352_v33, %v16843_v20  ;;  %v15117_v49 = vpack.c.bf16 %v13749_v51, %v13748_v59 }
0x1727   :  { %v17795_v19 = vadd.f32 %v9347_v18, %v16846_v6  ;;  %v13750_v6 = vld [vmem:[%s18519_s1 + $0x50] sm:$0xff] }
0x1728   :  { %v9372_v14 = vsel %vm279_vm1, %v17798_v7, 0.0  ;;  %15118 = vmatprep.subr.bf16.mxu1 %v15117_v49  ;;  %v15121_v20 = vpack.c.bf16 %v13751_v16, %v13750_v6  ;;  %v17826_v6 = vld [vmem:[%s18521_s7 + $0x1] ss:$0 sm:$0xff] }
0x1729   :  { %v9369_v63 = vsel %vm279_vm1, %v17795_v19, 0.0  ;;  %15120 = vmatpush3.bf16.msra.mxu1 %v15117_v49 }
0x172a   :  { %9370 = vadd.xlane.f32.xlu0 %v9369_v63  ;;  %15122 = vmatprep.subr.bf16.mxu1 %v15121_v20 }
0x172d   :  { %15124 = vmatpush3.bf16.msra.mxu1 %v15121_v20 }
0x172e   :  { %9373 = vadd.xlane.f32.xlu0 %v9372_v14  ;;  %15126 = vmatprep.subr.bf16.mxu1 %v15125_v58 }
0x1731   :  { %15128 = vmatpush3.bf16.msra.mxu1 %v15125_v58 }
0x1732   :  { %15130 = vmatprep.subr.bf16.mxu1 %v15129_v61 }
0x1735   :  { %15132 = vmatpush3.bf16.msra.mxu1 %v15129_v61 }
0x17b7   :  { %v9371_v5 = vpop.xlane.xlu0 %9370 }
0x17b8   :  { %v9377_v40 = vmul.f32 0.03125, %v9371_v5 }
0x17ba   :  { %v9381_v57 = vsub.f32 %v17795_v19, %v9377_v40 }
0x17bb   :  { %v9374_v2 = vpop.xlane.xlu0 %9373 }
0x17bc   :  { %v9378_v27 = vmul.f32 0.03125, %v9374_v2  ;;  %v9385_v38 = vmul.f32 %v9381_v57, %v9381_v57 }
0x17be   :  { %v9382_v48 = vsub.f32 %v17798_v7, %v9378_v27  ;;  %v9393_v44 = vsel %vm279_vm1, %v9385_v38, 0.0 }
0x17bf   :  { %9394 = vadd.xlane.f32.xlu0 %v9393_v44 }
0x17c0   :  { %v9386_v26 = vmul.f32 %v9382_v48, %v9382_v48 }
0x17c1   :  { %v14596_v4 = vpop.f32.mrb[54].mxu0 }
0x17c2   :  { %v9532_v32 = vadd.f32 %v14596_v4, %v13743_v53  ;;  %v9526_v47 = vpop.f32.mrb[55].mxu0  ;;  %v9396_v37 = vsel %vm279_vm1, %v9386_v26, 0.0 }
0x17c3   :  { %v9527_v15 = vadd.f32 %v13743_v53, %v9526_v47  ;;  %9397 = vadd.xlane.f32.xlu1 %v9396_v37 }
0x17c4   :  { %v9546_v46 = vmul.f32 %v9532_v32, %v9532_v32 }
0x17c5   :  { %v9545_v25 = vmul.f32 %v9527_v15, %v9527_v15 }
0x17c6   :  { %v9550_v55 = vmul.f32 %v9546_v46, %v9532_v32 }
0x17c7   :  { %v9549_v36 = vmul.f32 %v9545_v25, %v9527_v15 }
0x17c8   :  { %v9554_v22 = vmul.f32 0.044715, %v9550_v55 }
0x17c9   :  { %v9553_v24 = vmul.f32 0.044715, %v9549_v36 }
0x17ca   :  { %v9558_v34 = vadd.f32 %v9554_v22, %v9532_v32 }
0x17cb   :  { %v9557_v39 = vadd.f32 %v9553_v24, %v9527_v15 }
0x17cc   :  { %v9562_v56 = vmul.f32 0.7978846, %v9558_v34 }
0x17cd   :  { %v9561_v29 = vmul.f32 0.7978846, %v9557_v39 }
0x17ce   :  { %15493 = vtanh.f32 %v9562_v56 }
0x17cf   :  { %15495 = vtanh.f32 %v9561_v29 }
0x17d8   :  { %v15494_v35 = vpop.eup %15493 }
0x17d9   :  { %v15496_v1 = vpop.eup %15495  ;;  %v9570_v45 = vadd.f32 1.0, %v15494_v35 }
0x17da   :  { %v9569_v10 = vadd.f32 1.0, %v15496_v1 }
0x17db   :  { %v9574_v28 = vmul.f32 0.5, %v9570_v45 }
0x17dc   :  { %v9573_v60 = vmul.f32 0.5, %v9569_v10  ;;  %v9773_v10 = vld [vmem:[%s18522_s17] sm:$0xff] }
0x17dd   :  { %v9578_v41 = vmul.f32 %v9574_v28, %v9532_v32  ;;  %v9774_v28 = vld [vmem:[%s18522_s17 + $0x8] sm:$0xff] }
0x17de   :  { %v9577_v42 = vmul.f32 %v9573_v60, %v9527_v15  ;;  %v15133_v60 = vpack.c.bf16 %v9774_v28, %v9773_v10 }
0x17e0   :  { %14616 = vmatprep.mubr.msk.f32.mxu1 %vm4881_vm6, %v9577_v42  ;;  %v9775_v42 = vld [vmem:[%s18522_s17 + $0x10] sm:$0xff]  ;;  %15134 = vmatprep.subr.bf16.mxu0 %v15133_v60 }
0x17e1   :  { %14617 = vmatmul.mubr.msk.f32.vlgmr.msra.gmra.mrb[54].mxu1 %vm4881_vm6, %v9578_v41  ;;  %v9776_v41 = vld [vmem:[%s18522_s17 + $0x18] sm:$0xff]  ;;  %15136 = vmatpush3.bf16.msra.mxu0 %v15133_v60 }
0x184c   :  { %v9395_v31 = vpop.xlane.xlu0 %9394 }
0x184d   :  { %v9401_v23 = vmul.f32 0.03125, %v9395_v31  ;;  %v15137_v31 = vpack.c.bf16 %v9776_v41, %v9775_v42 }
0x184f   :  { %v9405_v11 = vadd.f32 1e-06, %v9401_v23  ;;  %15138 = vmatprep.subr.bf16.mxu0 %v15137_v31 }
0x1850   :  { %v9398_v43 = vpop.xlane.xlu1 %9397  ;;  %15140 = vmatpush3.bf16.msra.mxu0 %v15137_v31 }
0x1851   :  { %15497 = vrsqrt.f32 %v9405_v11  ;;  %v9402_v9 = vmul.f32 0.03125, %v9398_v43 }
0x1853   :  { %v9406_v54 = vadd.f32 1e-06, %v9402_v9 }
0x1855   :  { %15499 = vrsqrt.f32 %v9406_v54 }
0x185b   :  { %v15498_v8 = vpop.eup %15497 }
0x185c   :  { %v9413_v33 = vmul.f32 %v15498_v8, %v9381_v57 }
0x185e   :  { %v9423_v18 = vmul.f32 %v17781_v3, %v9413_v33 }
0x185f   :  { %v15500_v63 = vpop.eup %15499 }
0x1860   :  { %v9433_v14 = vadd.f32 %v17784_v62, %v9423_v18  ;;  %v9414_v59 = vmul.f32 %v15500_v63, %v9382_v48  ;;  %v17843_v18 = vld [vmem:[%s18523_s21] ss:$0 sm:$0xff] }
0x1862   :  { %14597 = vmatprep.mubr.msk.f32.mxu0 %vm279_vm1, %v9433_v14  ;;  %v9424_v51 = vmul.f32 %v17781_v3, %v9414_v59 }
0x1864   :  { %v9434_v49 = vadd.f32 %v17784_v62, %v9424_v51  ;;  %v17846_v51 = vld [vmem:[%s18524_s25] ss:$0 sm:$0xff] }
0x1866   :  { %14598 = vmatmul.mubr.msk.f32.gmra.mrb[56].mxu0 %vm279_vm1, %v9434_v49 }
0x18b4   :  { %v14618_v16 = vpop.f32.mrb[54].mxu1 }
0x18b5   :  { %v9682_v20 = vadd.f32 %v14618_v16, %v17826_v6  ;;  %v9676_v17 = vpop.f32.mrb[55].mxu1 }
0x18b6   :  { %v9677_v52 = vadd.f32 %v17826_v6, %v9676_v17 }
0x18b7   :  { %v9696_v58 = vadd.f32 %v9682_v20, %v17741_v30 }
0x18b8   :  { %v9695_v0 = vadd.f32 %v9677_v52, %v17744_v50 }
0x18b9   :  { %v9704_v13 = vsel %vm279_vm1, %v9696_v58, 0.0 }
0x18ba   :  { %9705 = vadd.xlane.f32.xlu1 %v9704_v13  ;;  %v9701_v3 = vsel %vm279_vm1, %v9695_v0, 0.0 }
0x18bb   :  { %9702 = vadd.xlane.f32.xlu0 %v9701_v3 }
0x1939   :  { %v14599_v62 = vpop.f32.mrb[56].mxu0 }
0x193a   :  { %v9542_v61 = vadd.f32 %v14599_v62, %v13743_v53  ;;  %v9536_v5 = vpop.f32.mrb[57].mxu0 }
0x193b   :  { %v9537_v40 = vadd.f32 %v13743_v53, %v9536_v5 }
0x193c   :  { %v9548_v57 = vmul.f32 %v9542_v61, %v9542_v61 }
0x193d   :  { %v9547_v2 = vmul.f32 %v9537_v40, %v9537_v40 }
0x193e   :  { %v9552_v27 = vmul.f32 %v9548_v57, %v9542_v61 }
0x193f   :  { %v9551_v38 = vmul.f32 %v9547_v2, %v9537_v40 }
0x1940   :  { %v9556_v48 = vmul.f32 0.044715, %v9552_v27 }
0x1941   :  { %v9555_v44 = vmul.f32 0.044715, %v9551_v38 }
0x1942   :  { %v9560_v26 = vadd.f32 %v9556_v48, %v9542_v61 }
0x1943   :  { %v9559_v30 = vadd.f32 %v9555_v44, %v9537_v40 }
0x1944   :  { %v9564_v4 = vmul.f32 0.7978846, %v9560_v26 }
0x1945   :  { %v9563_v50 = vmul.f32 0.7978846, %v9559_v30 }
0x1946   :  { %15501 = vtanh.f32 %v9564_v4 }
0x1947   :  { %15503 = vtanh.f32 %v9563_v50  ;;  %v9706_v32 = vpop.xlane.xlu1 %9705  ;;  %v9955_v50 = vld [vmem:[%s18525_s29] sm:$0xff] }
0x1948   :  { %v9714_v47 = vmul.f32 0.03125, %v9706_v32  ;;  %v9703_v37 = vpop.xlane.xlu0 %9702 }
0x1949   :  { %v9713_v15 = vmul.f32 0.03125, %v9703_v37 }
0x194a   :  { %v9718_v46 = vsub.f32 %v9696_v58, %v9714_v47  ;;  %v9958_v47 = vsel %vm4881_vm6, %v9955_v50, 0.0 }
0x194b   :  { %v9717_v25 = vsub.f32 %v9695_v0, %v9713_v15 }
0x194c   :  { %v9722_v55 = vmul.f32 %v9718_v46, %v9718_v46 }
0x194d   :  { %v9721_v53 = vmul.f32 %v9717_v25, %v9717_v25 }
0x194e   :  { %v9728_v36 = vsel %vm279_vm1, %v9722_v55, 0.0 }
0x194f   :  { %9729 = vadd.xlane.f32.xlu1 %v9728_v36  ;;  %v9725_v22 = vsel %vm279_vm1, %v9721_v53, 0.0 }
0x1950   :  { %v15502_v24 = vpop.eup %15501  ;;  %9726 = vadd.xlane.f32.xlu0 %v9725_v22 }
0x1951   :  { %v15504_v34 = vpop.eup %15503  ;;  %v9572_v39 = vadd.f32 1.0, %v15502_v24 }
0x1952   :  { %v9571_v56 = vadd.f32 1.0, %v15504_v34 }
0x1953   :  { %v9576_v29 = vmul.f32 0.5, %v9572_v39 }
0x1954   :  { %v9575_v35 = vmul.f32 0.5, %v9571_v56 }
0x1955   :  { %v9580_v45 = vmul.f32 %v9576_v29, %v9542_v61 }
0x1956   :  { %v9579_v1 = vmul.f32 %v9575_v35, %v9537_v40 }
0x1958   :  { %14619 = vmatprep.mubr.msk.f32.mxu1 %vm4881_vm6, %v9579_v1 }
0x1959   :  { %14620 = vmatmul.mubr.msk.f32.gmra.mrb[56].mxu1 %vm4881_vm6, %v9580_v45 }
0x19dc   :  { %v9730_v23 = vpop.xlane.xlu1 %9729 }
0x19dd   :  { %v9738_v11 = vmul.f32 0.03125, %v9730_v23  ;;  %v9727_v43 = vpop.xlane.xlu0 %9726 }
0x19de   :  { %v9737_v9 = vmul.f32 0.03125, %v9727_v43 }
0x19df   :  { %v9742_v54 = vadd.f32 1e-06, %v9738_v11 }
0x19e0   :  { %v9741_v8 = vadd.f32 1e-06, %v9737_v9 }
0x19e1   :  { %15505 = vrsqrt.f32 %v9742_v54 }
0x19e2   :  { %15507 = vrsqrt.f32 %v9741_v8 }
0x19eb   :  { %v15506_v33 = vpop.eup %15505 }
0x19ec   :  { %v15508_v63 = vpop.eup %15507  ;;  %v9750_v14 = vmul.f32 %v15506_v33, %v9718_v46 }
0x19ed   :  { %v9749_v59 = vmul.f32 %v15508_v63, %v9717_v25  ;;  %v10073_v63 = vld [vmem:[%s18526_s3] sm:$0xff] }
0x19ee   :  { %v9760_v49 = vmul.f32 %v17843_v18, %v9750_v14  ;;  %v10074_v14 = vld [vmem:[%s18526_s3 + $0x8] sm:$0xff] }
0x19ef   :  { %v9759_v16 = vmul.f32 %v17843_v18, %v9749_v59  ;;  %v15153_v59 = vpack.c.bf16 %v10074_v14, %v10073_v63  ;;  %v10190_v63 = vld [vmem:[%s18528_s14 + $0x28] sm:$0xff] }
0x19f0   :  { %v9770_v17 = vadd.f32 %v17846_v51, %v9760_v49  ;;  %v9985_v49 = vld [vmem:[%s18527_s8] sm:$0xff] }
0x19f1   :  { %v9769_v20 = vadd.f32 %v17846_v51, %v9759_v16  ;;  %v9986_v16 = vld [vmem:[%s18527_s8 + $0x8] sm:$0xff]  ;;  %15154 = vmatprep.subr.bf16.mxu1 %v15153_v59 }
0x19f2   :  { %15156 = vmatpush3.bf16.msra.mxu1 %v15153_v59  ;;  %v10191_v59 = vld [vmem:[%s18528_s14 + $0x30] sm:$0xff] }
0x19f3   :  { %14630 = vmatprep.mubr.msk.f32.mxu0 %vm279_vm1, %v9769_v20  ;;  %v15142_v20 = vpack.c.bf16 %v9986_v16, %v9985_v49  ;;  %v10192_v49 = vld [vmem:[%s18528_s14 + $0x38] sm:$0xff] }
0x19f4   :  { %14631 = vmatmul.mubr.msk.f32.vlgmr.msra.gmra.mrb[58].mxu0 %vm279_vm1, %v9770_v17  ;;  %v10076_v17 = vld [vmem:[%s18526_s3 + $0x18] sm:$0xff]  ;;  %v15181_v16 = vpack.c.bf16 %v10192_v49, %v10191_v59 }
0x1a2c   :  { %v14621_v52 = vpop.f32.mrb[56].mxu1 }
0x1a2d   :  { %v9692_v58 = vadd.f32 %v14621_v52, %v17826_v6  ;;  %v9686_v0 = vpop.f32.mrb[57].mxu1 }
0x1a2e   :  { %v9687_v13 = vadd.f32 %v17826_v6, %v9686_v0  ;;  %v9988_v0 = vld [vmem:[%s18527_s8 + $0x18] sm:$0xff] }
0x1a2f   :  { %v9698_v3 = vadd.f32 %v9692_v58, %v17798_v7  ;;  %v9987_v58 = vld [vmem:[%s18527_s8 + $0x10] sm:$0xff] }
0x1a30   :  { %v9697_v62 = vadd.f32 %v9687_v13, %v17795_v19  ;;  %v15145_v13 = vpack.c.bf16 %v9988_v0, %v9987_v58 }
0x1a31   :  { %v9710_v61 = vsel %vm279_vm1, %v9698_v3, 0.0 }
0x1a32   :  { %9711 = vadd.xlane.f32.xlu1 %v9710_v61  ;;  %v9707_v5 = vsel %vm279_vm1, %v9697_v62, 0.0 }
0x1a33   :  { %9708 = vadd.xlane.f32.xlu0 %v9707_v5  ;;  %v9989_v5 = vld [vmem:[%s18527_s8 + $0x20] sm:$0xff] }
0x1abf   :  { %v9712_v40 = vpop.xlane.xlu1 %9711 }
0x1ac0   :  { %v9716_v57 = vmul.f32 0.03125, %v9712_v40  ;;  %v9709_v2 = vpop.xlane.xlu0 %9708  ;;  %v9990_v40 = vld [vmem:[%s18527_s8 + $0x28] sm:$0xff] }
0x1ac1   :  { %v9715_v27 = vmul.f32 0.03125, %v9709_v2  ;;  %v10079_v2 = vld [vmem:[%s18526_s3 + $0x30] sm:$0xff] }
0x1ac2   :  { %v9720_v38 = vsub.f32 %v9698_v3, %v9716_v57  ;;  %v10077_v3 = vld [vmem:[%s18526_s3 + $0x20] sm:$0xff]  ;;  %v15148_v57 = vpack.c.bf16 %v9990_v40, %v9989_v5 }
0x1ac3   :  { %v9719_v48 = vsub.f32 %v9697_v62, %v9715_v27  ;;  %v10078_v62 = vld [vmem:[%s18526_s3 + $0x28] sm:$0xff]  ;;  %v10080_v27 = vld [vmem:[%s18526_s3 + $0x38] sm:$0xff] }
0x1ac4   :  { %v9724_v44 = vmul.f32 %v9720_v38, %v9720_v38  ;;  %v15161_v61 = vpack.c.bf16 %v10078_v62, %v10077_v3 }
0x1ac5   :  { %v9723_v26 = vmul.f32 %v9719_v48, %v9719_v48 }
0x1ac6   :  { %v9734_v6 = vsel %vm279_vm1, %v9724_v44, 0.0  ;;  %v9992_v44 = vld [vmem:[%s18527_s8 + $0x38] sm:$0xff] }
0x1ac7   :  { %v14632_v7 = vpop.f32.mrb[58].mxu0  ;;  %9735 = vadd.xlane.f32.xlu1 %v9734_v6  ;;  %v9731_v19 = vsel %vm279_vm1, %v9723_v26, 0.0  ;;  %v10185_v6 = vld [vmem:[%s18528_s14] sm:$0xff] }
0x1ac8   :  { %v9855_v30 = vpop.f32.mrb[59].mxu0  ;;  %9732 = vadd.xlane.f32.xlu0 %v9731_v19  ;;  %v9879_v4 = vsel %vm4881_vm6, %v14632_v7, 0.0  ;;  %v15633_v19 = vmov 0.0  }
0x1ac9   :  { %v9876_v32 = vsel %vm4881_vm6, %v9855_v30, 0.0 }
0x1acb   :  { %9880 = vadd.xlane.f32.xlu1 %v9879_v4 }
0x1acc   :  { %9877 = vadd.xlane.f32.xlu0 %v9876_v32 }
0x1ad0   :  { %9959 = vadd.xlane.f32.xlu0 %v9958_v47 }
0x1b54   :  { %v9736_v37 = vpop.xlane.xlu1 %9735 }
0x1b55   :  { %v9740_v15 = vmul.f32 0.03125, %v9736_v37  ;;  %v9733_v46 = vpop.xlane.xlu0 %9732 }
0x1b56   :  { %v9739_v25 = vmul.f32 0.03125, %v9733_v46 }
0x1b57   :  { %v9744_v55 = vadd.f32 1e-06, %v9740_v15 }
0x1b58   :  { %v9743_v53 = vadd.f32 1e-06, %v9739_v25  ;;  %v9881_v36 = vpop.xlane.xlu1 %9880 }
0x1b59   :  { %15509 = vrsqrt.f32 %v9744_v55  ;;  %v9890_v22 = vmul.f32 0.015625, %v9881_v36  ;;  %v9878_v24 = vpop.xlane.xlu0 %9877  ;;  %v17913_v36 = vld [vmem:[%s18529_s19] ss:$0 sm:$0xff] }
0x1b5a   :  { %15511 = vrsqrt.f32 %v9743_v53  ;;  %v9889_v34 = vmul.f32 0.015625, %v9878_v24 }
0x1b5b   :  { %v17866_v39 = vsub.f32 %v14632_v7, %v9890_v22  ;;  %v10186_v7 = vld [vmem:[%s18528_s14 + $0x8] sm:$0xff] }
0x1b5c   :  { %v17868_v56 = vsub.f32 %v9855_v30, %v9889_v34  ;;  %v15169_v30 = vpack.c.bf16 %v10186_v7, %v10185_v6 }
0x1b5d   :  { %v9960_v29 = vpop.xlane.xlu0 %9959  ;;  %v9898_v35 = vmul.f32 %v17866_v39, %v17866_v39 }
0x1b5e   :  { %v9961_v1 = vmul.f32 0.015625, %v9960_v29  ;;  %v9897_v45 = vmul.f32 %v17868_v56, %v17868_v56  ;;  %v17918_v29 = vld [vmem:[%s18530_s24] ss:$0 sm:$0xff] }
0x1b5f   :  { %v9904_v10 = vsel %vm4881_vm6, %v9898_v35, 0.0 }
0x1b60   :  { %v17875_v28 = vsub.f32 %v9955_v50, %v9961_v1  ;;  %9905 = vadd.xlane.f32.xlu0 %v9904_v10  ;;  %v9901_v60 = vsel %vm4881_vm6, %v9897_v45, 0.0  ;;  %v13770_v10 = vld [vmem:[%s18531_s30] ss:$0 sm:$0xff] }
0x1b61   :  { %9902 = vadd.xlane.f32.xlu1 %v9901_v60 }
0x1b62   :  { %v9963_v42 = vmul.f32 %v17875_v28, %v17875_v28 }
0x1b63   :  { %v15510_v41 = vpop.eup %15509 }
0x1b64   :  { %v15512_v31 = vpop.eup %15511  ;;  %v9964_v23 = vsel %vm4881_vm6, %v9963_v42, 0.0  ;;  %v9752_v11 = vmul.f32 %v15510_v41, %v9720_v38  ;;  %v15165_v38 = vpack.c.bf16 %v10080_v27, %v10079_v2  ;;  %v17925_v42 = vld [vmem:[%s18532_s20] sm:$0xff] }
0x1b65   :  { %9965 = vadd.xlane.f32.xlu1 %v9964_v23  ;;  %v9751_v43 = vmul.f32 %v15512_v31, %v9719_v48  ;;  %v9991_v48 = vld [vmem:[%s18527_s8 + $0x30] sm:$0xff]  ;;  %v17930_v31 = vld [vmem:[%s18532_s20 + $0x8] sm:$0xff] }
0x1b66   :  { %v9762_v9 = vmul.f32 %v17843_v18, %v9752_v11  ;;  %v15151_v26 = vpack.c.bf16 %v9992_v44, %v9991_v48  ;;  %v10187_v23 = vld [vmem:[%s18528_s14 + $0x10] sm:$0xff]  ;;  %v10188_v11 = vld [vmem:[%s18528_s14 + $0x18] sm:$0xff] }
0x1b67   :  { %v9761_v54 = vmul.f32 %v17843_v18, %v9751_v43  ;;  %v15631_v18 = vmov 0.0|0.0  }
0x1b68   :  { %v9772_v33 = vadd.f32 %v17846_v51, %v9762_v9  ;;  %15141 = vmatprep.subr.bf16.mxu0 %v15631_v18 }
0x1b69   :  { %v9771_v8 = vadd.f32 %v17846_v51, %v9761_v54  ;;  %15143 = vmatpush3.bf16.msra.mxu0 %v15142_v20  ;;  %v10075_v51 = vld [vmem:[%s18526_s3 + $0x10] sm:$0xff] }
0x1b6a   :  { %15144 = vmatprep.subr.bf16.mxu0 %v15631_v18  ;;  %v15157_v52 = vpack.c.bf16 %v10076_v17, %v10075_v51 }
0x1b6b   :  { %14633 = vmatprep.mubr.msk.f32.mxu0 %vm279_vm1, %v9771_v8 }
0x1b6c   :  { %14634 = vmatmul.mubr.msk.f32.gmra.mrb[60].mxu0 %vm279_vm1, %v9772_v33  ;;  %15158 = vmatprep.subr.bf16.mxu1 %v15157_v52  ;;  %v15173_v33 = vpack.c.bf16 %v10188_v11, %v10187_v23 }
0x1b6d   :  { %15146 = vmatpush3.bf16.msra.mxu0 %v15145_v13  ;;  %15160 = vmatpush3.bf16.msra.mxu1 %v15157_v52 }
0x1b6e   :  { %15147 = vmatprep.subr.bf16.mxu0 %v15631_v18  ;;  %15162 = vmatprep.subr.bf16.mxu1 %v15161_v61 }
0x1b6f   :  { %14652 = vmatprep.mubr.msk.f32.mxu0 %vm15632_vm7, %v15633_v19 }
0x1b71   :  { %15164 = vmatpush3.bf16.msra.mxu1 %v15161_v61  ;;  %15149 = vmatpush3.bf16.msra.mxu0 %v15148_v57 }
0x1b72   :  { %15150 = vmatprep.subr.bf16.mxu0 %v15631_v18  ;;  %15166 = vmatprep.subr.bf16.mxu1 %v15165_v38 }
0x1b75   :  { %15168 = vmatpush3.bf16.msra.mxu1 %v15165_v38  ;;  %15152 = vmatpush3.bf16.msra.mxu0 %v15151_v26  ;;  %v17956_v26 = vld [vmem:[%s18534_s11] ss:$0 sm:$0xff] }
0x1b76   :  { %15185 = vmatprep.subr.bf16.mxu1 %v15631_v18  ;;  %15170 = vmatprep.subr.bf16.mxu0 %v15169_v30 }
0x1bed   :  { %v9906_v4 = vpop.xlane.xlu0 %9905 }
0x1bee   :  { %v9914_v50 = vmul.f32 0.015625, %v9906_v4  ;;  %v9903_v32 = vpop.xlane.xlu1 %9902  ;;  %v13772_v4 = vld [vmem:[%s18535_s15] ss:$0 sm:$0xff] }
0x1bef   :  { %v9913_v47 = vmul.f32 0.015625, %v9903_v32 }
0x1bf0   :  { %v9918_v37 = vadd.f32 1e-05, %v9914_v50 }
0x1bf1   :  { %v9917_v15 = vadd.f32 1e-05, %v9913_v47 }
0x1bf2   :  { %15513 = vrsqrt.f32 %v9918_v37  ;;  %v9966_v46 = vpop.xlane.xlu1 %9965 }
0x1bf3   :  { %15515 = vrsqrt.f32 %v9917_v15  ;;  %v9967_v25 = vmul.f32 0.015625, %v9966_v46 }
0x1bf5   :  { %v9968_v55 = vadd.f32 1e-05, %v9967_v25 }
0x1bf7   :  { %15517 = vrsqrt.f32 %v9968_v55 }
0x1bfc   :  { %v15514_v53 = vpop.eup %15513 }
0x1bfd   :  { %v15516_v22 = vpop.eup %15515  ;;  %v9926_v24 = vmul.f32 %v15514_v53, %v17866_v39 }
0x1bfe   :  { %v9925_v34 = vmul.f32 %v15516_v22, %v17868_v56  ;;  %v13771_v56 = vld [vmem:[%s18533_s10] ss:$0 sm:$0xff] }
0x1bff   :  { %v9936_v35 = vmul.f32 %v17913_v36, %v9926_v24 }
0x1c00   :  { %v9935_v1 = vmul.f32 %v17913_v36, %v9925_v34 }
0x1c01   :  { %v15518_v45 = vpop.eup %15517  ;;  %v9946_v60 = vadd.f32 %v17918_v29, %v9936_v35 }
0x1c02   :  { %v9970_v41 = vmul.f32 %v15518_v45, %v17875_v28  ;;  %v9945_v39 = vadd.f32 %v17918_v29, %v9935_v1  ;;  %v10189_v28 = vld [vmem:[%s18528_s14 + $0x20] sm:$0xff] }
0x1c03   :  { %v9952_v54 = vadd.f32 %v17930_v31, %v9946_v60  ;;  %v15177_v14 = vpack.c.bf16 %v10190_v63, %v10189_v28 }
0x1c04   :  { %v9977_v43 = vmul.f32 %v13770_v10, %v9970_v41  ;;  %v9951_v9 = vadd.f32 %v17925_v42, %v9945_v39 }
0x1c06   :  { %v9984_v8 = vadd.f32 %v13771_v56, %v9977_v43  ;;  %14671 = vmatprep.mubr.msk.f32.mxu1 %vm4881_vm6, %v9951_v9 }
0x1c07   :  { %14672 = vmatmul.mubr.msk.f32.vlgmr.msra.gmra.mrb[58].mxu1 %vm4881_vm6, %v9952_v54 }
0x1c08   :  { %14653 = vmatmul.mubr.msk.f32.vlgmr.msra.gmra.mrb[62].mxu0 %vm4881_vm6, %v9984_v8 }
0x1c09   :  { %15172 = vmatpush3.bf16.msra.mxu0 %v15169_v30  ;;  %14693 = vmatprep.mubr.msk.f32.mxu0 %vm4881_vm6, %v9945_v39 }
0x1c0a   :  { %15174 = vmatprep.subr.bf16.mxu0 %v15173_v33 }
0x1c0d   :  { %15176 = vmatpush3.bf16.msra.mxu0 %v15173_v33 }
0x1c0e   :  { %15178 = vmatprep.subr.bf16.mxu0 %v15177_v14 }
0x1c11   :  { %15180 = vmatpush3.bf16.msra.mxu0 %v15177_v14 }
0x1c12   :  { %15182 = vmatprep.subr.bf16.mxu0 %v15181_v16 }
0x1c15   :  { %15184 = vmatpush3.bf16.msra.mxu0 %v15181_v16 }
0x1c16   :  { %15193 = vmatprep.subr.bf16.mxu0 %v15631_v18 }
0x1c18   :  { %14694 = vmatmul.mubr.msk.f32.vlgmr.msra.gmra.mrb[64].mxu0 %vm4881_vm6, %v9946_v60 }
0x1c3f   :  { %v14635_v20 = vpop.f32.mrb[60].mxu0 }
0x1c40   :  { %v9865_v51 = vpop.f32.mrb[61].mxu0  ;;  %v9885_v17 = vsel %vm4881_vm6, %v14635_v20, 0.0 }
0x1c41   :  { %9886 = vadd.xlane.f32.xlu1 %v9885_v17  ;;  %v9882_v52 = vsel %vm4881_vm6, %v9865_v51, 0.0 }
0x1c42   :  { %9883 = vadd.xlane.f32.xlu0 %v9882_v52 }
0x1cce   :  { %v9887_v58 = vpop.xlane.xlu1 %9886 }
0x1ccf   :  { %v9892_v0 = vmul.f32 0.015625, %v9887_v58  ;;  %v9884_v13 = vpop.xlane.xlu0 %9883 }
0x1cd0   :  { %v9891_v3 = vmul.f32 0.015625, %v9884_v13 }
0x1cd1   :  { %v9896_v62 = vsub.f32 %v14635_v20, %v9892_v0 }
0x1cd2   :  { %v17949_v61 = vsub.f32 %v9865_v51, %v9891_v3 }
0x1cd3   :  { %v9900_v5 = vmul.f32 %v9896_v62, %v9896_v62 }
0x1cd4   :  { %v9899_v40 = vmul.f32 %v17949_v61, %v17949_v61 }
0x1cd5   :  { %v9910_v57 = vsel %vm4881_vm6, %v9900_v5, 0.0 }
0x1cd6   :  { %9911 = vadd.xlane.f32.xlu1 %v9910_v57  ;;  %v9907_v2 = vsel %vm4881_vm6, %v9899_v40, 0.0 }
0x1cd7   :  { %9908 = vadd.xlane.f32.xlu0 %v9907_v2 }
0x1cda   :  { %v14673_v27 = vpop.f32.mrb[58].mxu1 }
0x1cdb   :  { %v10069_v38 = vpop.f32.mrb[62].mxu0  ;;  %v10166_v48 = vpop.f32.mrb[59].mxu1  ;;  %v10172_v6 = vadd.f32 %v14673_v27, %v17956_v26 }
0x1cdc   :  { %v14654_v44 = vpop.f32.mrb[63].mxu0  ;;  %v10167_v7 = vadd.f32 %v17956_v26, %v10166_v48  ;;  %v10070_v32 = vadd.f32 %v13772_v4, %v10069_v38 }
0x1cde   :  { %v17970_v47 = vmul.f32 0.25, %v10070_v32 }
0x1ce7   :  { %10448 = vrot.lane.b32.xlu1 %v10172_v6, %s15624_s5 }
0x1ceb   :  { %v17961_v30 = vpop.f32.mrb[64].mxu0  ;;  %10454 = vrot.lane.b32.xlu1 %v10172_v6, %s15634_s16 }
0x1cec   :  { %v17965_v50 = vpop.f32.mrb[65].mxu0 }
0x1ced   :  { %10446 = vrot.lane.b32.xlu0 %v10167_v7, %s15624_s5 }
0x1cef   :  { %10452 = vrot.lane.b32.xlu1 %v10167_v7, %s15634_s16 }
0x1cf1   :  { %10458 = vrot.lane.b32.xlu0 %v10167_v7, %s15635_s18 }
0x1cf3   :  { %10460 = vrot.lane.b32.xlu1 %v10172_v6, %s15635_s18 }
0x1cf5   :  { %10299 = vrot.lane.b32.xlu0 %v17970_v47, %s15624_s5 }
0x1cf7   :  { %10302 = vrot.lane.b32.xlu1 %v17970_v47, %s15634_s16 }
0x1cf9   :  { %10305 = vrot.lane.b32.xlu0 %v17970_v47, %s15635_s18 }
0x1d63   :  { %v9912_v37 = vpop.xlane.xlu1 %9911 }
0x1d64   :  { %v9916_v15 = vmul.f32 0.015625, %v9912_v37  ;;  %v9909_v46 = vpop.xlane.xlu0 %9908 }
0x1d65   :  { %v9915_v22 = vmul.f32 0.015625, %v9909_v46 }
0x1d66   :  { %v9920_v25 = vadd.f32 1e-05, %v9916_v15 }
0x1d67   :  { %v10449_v55 = vpop.permute.xlu1 %10448  ;;  %v9919_v45 = vadd.f32 1e-05, %v9915_v22 }
0x1d68   :  { %15519 = vrsqrt.f32 %v9920_v25  ;;  %v10447_v53 = vpop.permute.xlu0 %10446 }
0x1d69   :  { %15521 = vrsqrt.f32 %v9919_v45 }
0x1d6b   :  { %v10455_v24 = vpop.permute.xlu1 %10454 }
0x1d6c   :  { %v10459_v34 = vpop.permute.xlu0 %10458  ;;  %v10532_v10 = vcombine.low %v10172_v6, %v10455_v24  ;;  %v10533_v60 = vcombine.high %v10172_v6, %v10455_v24 }
0x1d6d   :  { %v10480_v35 = vcombine.low %v10447_v53, %v10459_v34  ;;  %v10481_v1 = vcombine.high %v10447_v53, %v10459_v34 }
0x1d6e   :  { %v10540_v33 = vrot.slane %v10532_v10, %v15995_v12  ;;  %v10547_v28 = vrot.slane %v10533_v60, %v15995_v12 }
0x1d6f   :  { %v10453_v41 = vpop.permute.xlu1 %10452  ;;  %v10488_v43 = vrot.slane %v10480_v35, %v15995_v12  ;;  %v10495_v9 = vrot.slane %v10481_v1, %v15995_v12 }
0x1d70   :  { %v10464_v39 = vcombine.low %v10167_v7, %v10453_v41  ;;  %v10465_v56 = vcombine.high %v10167_v7, %v10453_v41  ;;  %v10300_v23 = vpop.permute.xlu0 %10299 }
0x1d72   :  { %v15520_v11 = vpop.eup %15519  ;;  %v10472_v54 = vrot.slane %v10464_v39, %v15995_v12  ;;  %v10479_v8 = vrot.slane %v10465_v56, %v15995_v12 }
0x1d73   :  { %v10461_v63 = vpop.permute.xlu1 %10460  ;;  %v9928_v14 = vmul.f32 %v15520_v11, %v9896_v62  ;;  %v15522_v60 = vpop.eup %15521 }
0x1d74   :  { %v10496_v59 = vcombine.low %v10472_v54, %v10488_v43  ;;  %v10497_v49 = vcombine.high %v10472_v54, %v10488_v43  ;;  %v10512_v16 = vcombine.low %v10479_v8, %v10495_v9  ;;  %v10513_v20 = vcombine.high %v10479_v8, %v10495_v9  ;;  %v10306_v51 = vpop.permute.xlu0 %10305 }
0x1d75   :  { %v10548_v17 = vcombine.low %v10449_v55, %v10461_v63  ;;  %v10549_v52 = vcombine.high %v10449_v55, %v10461_v63  ;;  %v10324_v58 = vcombine.low %v10300_v23, %v10306_v51  ;;  %v10325_v0 = vcombine.high %v10300_v23, %v10306_v51 }
0x1d76   :  { %v10504_v13 = vrot.slane %v10496_v59, %v15997_v21  ;;  %v10511_v3 = vrot.slane %v10497_v49, %v15997_v21  ;;  %v10520_v5 = vrot.slane %v10512_v16, %v15997_v21  ;;  %v10527_v40 = vrot.slane %v10513_v20, %v15997_v21 }
0x1d77   :  { %v10556_v57 = vrot.slane %v10548_v17, %v15995_v12  ;;  %v10563_v62 = vrot.slane %v10549_v52, %v15995_v12  ;;  %v10332_v2 = vrot.slane %v10324_v58, %v15995_v12  ;;  %v17993_v27 = vrot.slane %v10325_v0, %v15995_v12  ;;  %v10303_v11 = vpop.permute.xlu1 %10302 }
0x1d78   :  { %v10600_v38 = vcombine.low %v10504_v13, %v10511_v3  ;;  %v13786_v48 = vcombine.high %v10504_v13, %v10511_v3  ;;  %v10616_v44 = vcombine.low %v10520_v5, %v10527_v40  ;;  %v13787_v6 = vcombine.high %v10520_v5, %v10527_v40 }
0x1d79   :  { %v10564_v7 = vcombine.low %v10540_v33, %v10556_v57  ;;  %v10565_v4 = vcombine.high %v10540_v33, %v10556_v57  ;;  %v10580_v32 = vcombine.low %v10547_v28, %v10563_v62  ;;  %v10581_v37 = vcombine.high %v10547_v28, %v10563_v62 }
0x1d7a   :  { %v10607_v15 = vrot.slane %v10600_v38, %v15995_v12  ;;  %v10615_v46 = vrot.slane %v13786_v48, %v15995_v12  ;;  %v10623_v25 = vrot.slane %v10616_v44, %v15995_v12  ;;  %v10631_v55 = vrot.slane %v13787_v6, %v15995_v12 }
0x1d7b   :  { %v10572_v53 = vrot.slane %v10564_v7, %v15997_v21  ;;  %v10579_v22 = vrot.slane %v10565_v4, %v15997_v21  ;;  %v10588_v24 = vrot.slane %v10580_v32, %v15997_v21  ;;  %v10595_v34 = vrot.slane %v10581_v37, %v15997_v21 }
0x1d7c   :  { %v10632_v35 = vcombine.low %v10607_v15, %v10615_v46  ;;  %v10633_v1 = vcombine.high %v10607_v15, %v10615_v46  ;;  %v10648_v45 = vcombine.low %v10623_v25, %v10631_v55  ;;  %v10649_v10 = vcombine.high %v10623_v25, %v10631_v55 }
0x1d7d   :  { %v10668_v41 = vcombine.low %v10572_v53, %v10579_v22  ;;  %v13788_v39 = vcombine.high %v10572_v53, %v10579_v22  ;;  %v10684_v56 = vcombine.low %v10588_v24, %v10595_v34  ;;  %v13789_v23 = vcombine.high %v10588_v24, %v10595_v34 }
0x1d7e   :  { %v18004_v43 = vrot.slane %v10632_v35, %v15997_v21  ;;  %v18007_v9 = vrot.slane %v10633_v1, %v15997_v21  ;;  %v18010_v54 = vrot.slane %v10648_v45, %v15997_v21  ;;  %v18013_v8 = vrot.slane %v10649_v10, %v15997_v21 }
0x1d7f   :  { %v10675_v33 = vrot.slane %v10668_v41, %v15995_v12  ;;  %v10683_v28 = vrot.slane %v13788_v39, %v15995_v12  ;;  %v10691_v63 = vrot.slane %v10684_v56, %v15995_v12  ;;  %v10699_v59 = vrot.slane %v13789_v23, %v15995_v12 }
0x1d80   :  { %v10308_v49 = vcombine.low %v17970_v47, %v10303_v11  ;;  %v10309_v16 = vcombine.high %v17970_v47, %v10303_v11  ;;  %v9927_v20 = vmul.f32 %v15522_v60, %v17949_v61  ;;  %v9938_v51 = vmul.f32 %v17913_v36, %v9928_v14 }
0x1d81   :  { %v10700_v17 = vcombine.low %v10675_v33, %v10683_v28  ;;  %v10701_v52 = vcombine.high %v10675_v33, %v10683_v28  ;;  %v10716_v58 = vcombine.low %v10691_v63, %v10699_v59  ;;  %v10717_v0 = vcombine.high %v10691_v63, %v10699_v59 }
0x1d82   :  { %v10316_v13 = vrot.slane %v10308_v49, %v15995_v12  ;;  %v10323_v3 = vrot.slane %v10309_v16, %v15995_v12  ;;  %v9937_v5 = vmul.f32 %v17913_v36, %v9927_v20  ;;  %v9948_v40 = vadd.f32 %v17918_v29, %v9938_v51 }
0x1d83   :  { %v10708_v57 = vrot.slane %v10700_v17, %v15997_v21  ;;  %v10715_v47 = vrot.slane %v10701_v52, %v15997_v21  ;;  %v10724_v61 = vrot.slane %v10716_v58, %v15997_v21  ;;  %v10731_v14 = vrot.slane %v10717_v0, %v15997_v21 }
0x1d84   :  { %v10340_v62 = vcombine.low %v10316_v13, %v10332_v2  ;;  %v10341_v38 = vcombine.high %v10316_v13, %v10332_v2  ;;  %v10356_v48 = vcombine.low %v10323_v3, %v17993_v27  ;;  %v10357_v44 = vcombine.high %v10323_v3, %v17993_v27 }
0x1d85   :  { %v9947_v6 = vadd.f32 %v17918_v29, %v9937_v5  ;;  %v9954_v36 = vadd.f32 %v17930_v31, %v9948_v40  ;;  %v10664_v7 = vcombine.low %v18004_v43, %v18010_v54  ;;  %v10732_v4 = vcombine.low %v10708_v57, %v10724_v61 }
0x1d86   :  { %v10348_v32 = vrot.slane %v10340_v62, %v15997_v21  ;;  %v10355_v37 = vrot.slane %v10341_v38, %v15997_v21  ;;  %v10364_v15 = vrot.slane %v10356_v48, %v15997_v21  ;;  %v10371_v2 = vrot.slane %v10357_v44, %v15997_v21  ;;  %v18114_v62 = vld [vmem:[%s18538_s0] ss:$0 sm:$0xff] }
0x1d87   :  { %14696 = vmatprep.mubr.msk.f32.mxu0 %vm4881_vm6, %v9947_v6  ;;  %v9953_v29 = vadd.f32 %v17925_v42, %v9947_v6  ;;  %v15186_v31 = vpack.c.bf16 %v10732_v4, %v10664_v7  ;;  %v10666_v46 = vcombine.low %v18007_v9, %v18013_v8  ;;  %v10734_v25 = vcombine.low %v10715_v47, %v10731_v14 }
0x1d88   :  { %v10376_v55 = vcombine.low %v10348_v32, %v10355_v37  ;;  %v13784_v53 = vcombine.high %v10348_v32, %v10355_v37  ;;  %v10392_v22 = vcombine.low %v10364_v15, %v10371_v2  ;;  %v13785_v24 = vcombine.high %v10364_v15, %v10371_v2  ;;  %14697 = vmatmul.mubr.msk.f32.gmra.mrb[66].mxu0 %vm4881_vm6, %v9948_v40 }
0x1d89   :  { %14674 = vmatprep.mubr.msk.f32.mxu1 %vm4881_vm6, %v9953_v29  ;;  %15188 = vmatpush3.bf16.xpose.msk.msra.mxu1 %vm18043_vm8, %v15186_v31  ;;  %v15194_v34 = vpack.c.bf16 %v10734_v25, %v10666_v46  ;;  %v10733_v56 = vcombine.high %v10708_v57, %v10724_v61  ;;  %v10665_v63 = vcombine.high %v18004_v43, %v18010_v54 }
0x1d8a   :  { %v10383_v35 = vrot.slane %v10376_v55, %v15995_v12  ;;  %v10391_v42 = vrot.slane %v13784_v53, %v15995_v12  ;;  %v10399_v1 = vrot.slane %v10392_v22, %v15995_v12  ;;  %v10407_v45 = vrot.slane %v13785_v24, %v15995_v12  ;;  %14675 = vmatmul.mubr.msk.f32.gmra.mrb[60].mxu1 %vm4881_vm6, %v9954_v36 }
0x1d8b   :  { %15196 = vmatpush3.bf16.xpose.msk.msra.mxu0 %vm18043_vm8, %v15194_v34  ;;  %14703 = vmatprep.mubr.msk.f32.mxu1 %vm15632_vm7, %v15633_v19  ;;  %v15190_v16 = vpack.c.bf16 %v10733_v56, %v10665_v63  ;;  %v10735_v43 = vcombine.high %v10715_v47, %v10731_v14  ;;  %v10667_v54 = vcombine.high %v18007_v9, %v18013_v8 }
0x1d8c   :  { %v10408_v10 = vcombine.low %v10383_v35, %v10391_v42  ;;  %v10409_v60 = vcombine.high %v10383_v35, %v10391_v42  ;;  %v10424_v41 = vcombine.low %v10399_v1, %v10407_v45  ;;  %v10425_v39 = vcombine.high %v10399_v1, %v10407_v45  ;;  %14717 = vmatprep.mubr.msk.f32.mxu0 %vm15632_vm7, %v15633_v19 }
0x1d8d   :  { %15189 = vmatprep.subr.bf16.mxu1 %v15631_v18  ;;  %15201 = vmatprep.subr.bf16.mxu0 %v15631_v18  ;;  %v15198_v51 = vpack.c.bf16 %v10735_v43, %v10667_v54  ;;  %v10284_v48 = vadd.f32 %v17961_v30, %v18114_v62  ;;  %v18123_v6 = vadd.f32 %v18114_v62, %v17965_v50 }
0x1d8e   :  { %v10416_v23 = vrot.slane %v10408_v10, %v15997_v21  ;;  %v10423_v11 = vrot.slane %v10409_v60, %v15997_v21  ;;  %v10432_v33 = vrot.slane %v10424_v41, %v15997_v21  ;;  %v10439_v28 = vrot.slane %v10425_v39, %v15997_v21 }
0x1d90   :  { %v18074_v59 = vcombine.low %v10416_v23, %v10432_v33  ;;  %v18076_v49 = vcombine.low %v10423_v11, %v10439_v28  ;;  %v18091_v20 = vcombine.high %v10416_v23, %v10432_v33  ;;  %v18100_v17 = vcombine.high %v10423_v11, %v10439_v28 }
0x1d92   :  { %14704 = vmatmul.mubr.msk.f32.vlgmr.msra.gmra.mrb[62].mxu1 %vm1880_vm4, %v18074_v59  ;;  %14718 = vmatmul.mubr.msk.f32.vlgmr.msra.gmra.mrb[68].mxu0 %vm1880_vm4, %v18076_v49 }
0x1d93   :  { %15192 = vmatpush3.bf16.xpose.msk.msra.mxu1 %vm18043_vm8, %v15190_v16  ;;  %14710 = vmatprep.mubr.msk.f32.mxu1 %vm15632_vm7, %v15633_v19 }
0x1d94   :  { %15197 = vmatprep.subr.bf16.mxu1 %v15631_v18  ;;  %14731 = vmatprep.mubr.msk.f32.mxu0 %vm15632_vm7, %v15633_v19 }
0x1d9a   :  { %14711 = vmatmul.mubr.msk.f32.vlgmr.msra.gmra.mrb[64].mxu1 %vm1880_vm4, %v18091_v20 }
0x1d9b   :  { %15200 = vmatpush3.bf16.xpose.msk.msra.mxu1 %vm18043_vm8, %v15198_v51  ;;  %14724 = vmatprep.mubr.msk.f32.mxu1 %vm15632_vm7, %v15633_v19 }
0x1d9c   :  { %15207 = vmatprep.subr.bf16.mxu1 %v15631_v18 }
0x1da2   :  { %14725 = vmatmul.mubr.msk.f32.vlgmr.msra.gmra.mrb[66].mxu1 %vm1880_vm4, %v18100_v17 }
0x1da3   :  { %14745 = vmatprep.mubr.msk.f32.mxu1 %vm15632_vm7, %v15633_v19 }
0x1e5b   :  { %v18106_v9 = vpop.f32.mrb[66].mxu0 }
0x1e5c   :  { %v18108_v8 = vpop.f32.mrb[67].mxu0 }
0x1e5d   :  { %v14676_v52 = vpop.f32.mrb[60].mxu1 }
0x1e5e   :  { %v10176_v58 = vpop.f32.mrb[61].mxu1  ;;  %v18132_v36 = vadd.f32 %v14676_v52, %v17956_v26 }
0x1e5f   :  { %v18137_v30 = vadd.f32 %v17956_v26, %v10176_v58 }
0x1e65   :  { %v11103_v0 = vpop.f32.mrb[62].mxu1  ;;  %v11261_v13 = vpop.f32.mrb[68].mxu0 }
0x1e66   :  { %v14705_v3 = vpop.f32.mrb[63].mxu1  ;;  %v14719_v5 = vpop.f32.mrb[69].mxu0  ;;  %v11350_v40 = vsel %vm1880_vm4, %v11261_v13, -inf  ;;  %v11344_v57 = vsel %vm1880_vm4, %v11103_v0, -inf }
0x1e67   :  { %11351 = vmax.xlane.f32.xlu0 %v11350_v40  ;;  %11345 = vmax.xlane.f32.xlu1 %v11344_v57 }
0x1e6d   :  { %v11182_v47 = vpop.f32.mrb[64].mxu1 }
0x1e6e   :  { %v14712_v61 = vpop.f32.mrb[65].mxu1  ;;  %v11347_v14 = vsel %vm1880_vm4, %v11182_v47, -inf }
0x1e6f   :  { %11348 = vmax.xlane.f32.xlu0 %v11347_v14 }
0x1e75   :  { %v18116_v38 = vpop.f32.mrb[66].mxu1 }
0x1e76   :  { %v14726_v44 = vpop.f32.mrb[67].mxu1  ;;  %v11353_v50 = vsel %vm1880_vm4, %v18116_v38, -inf }
0x1e78   :  { %10740 = vrot.lane.b32.xlu1 %v10284_v48, %s15624_s5 }
0x1e7c   :  { %10744 = vrot.lane.b32.xlu1 %v18123_v6, %s15634_s16 }
0x1e80   :  { %10746 = vrot.lane.b32.xlu1 %v10284_v48, %s15634_s16 }
0x1e84   :  { %10752 = vrot.lane.b32.xlu1 %v10284_v48, %s15635_s18 }
0x1e85   :  { %10738 = vrot.lane.b32.xlu0 %v18123_v6, %s15624_s5 }
0x1e88   :  { %11835 = vrot.lane.b32.xlu1 %v18132_v36, %s15624_s5 }
0x1e8c   :  { %11839 = vrot.lane.b32.xlu1 %v18137_v30, %s15634_s16 }
0x1ea4   :  { %11354 = vmax.xlane.f32.xlu0 %v11353_v50 }
0x1eba   :  { %10750 = vrot.lane.b32.xlu0 %v18123_v6, %s15635_s18 }
0x1ebe   :  { %11833 = vrot.lane.b32.xlu0 %v18137_v30, %s15624_s5 }
0x1ec2   :  { %11841 = vrot.lane.b32.xlu0 %v18132_v36, %s15634_s16 }
0x1ef4   :  { %v11352_v7 = vpop.xlane.xlu0 %11351  ;;  %v11346_v4 = vpop.xlane.xlu1 %11345 }
0x1ef5   :  { %v11358_v26 = vsub.f32 %v11261_v13, %v11352_v7  ;;  %v11356_v32 = vsub.f32 %v11103_v0, %v11346_v4 }
0x1ef7   :  { %v11364_v37 = vmul.f32 1.442695, %v11358_v26  ;;  %v11360_v15 = vmul.f32 1.442695, %v11356_v32 }
0x1ef8   :  { %v10741_v2 = vpop.permute.xlu1 %10740 }
0x1ef9   :  { %15523 = vpow2.f32 %v11360_v15 }
0x1efa   :  { %15525 = vpow2.f32 %v11364_v37 }
0x1efc   :  { %v18149_v29 = vpop.permute.xlu1 %10744  ;;  %v11349_v31 = vpop.xlane.xlu0 %11348 }
0x1efd   :  { %v11357_v46 = vsub.f32 %v11182_v47, %v11349_v31 }
0x1eff   :  { %v11362_v25 = vmul.f32 1.442695, %v11357_v46  ;;  %v10756_v46 = vcombine.low %v18123_v6, %v18149_v29 }
0x1f00   :  { %v10747_v55 = vpop.permute.xlu1 %10746  ;;  %v10739_v15 = vpop.permute.xlu0 %10738 }
0x1f01   :  { %15527 = vpow2.f32 %v11362_v25  ;;  %v10824_v53 = vcombine.low %v10284_v48, %v10747_v55  ;;  %v10825_v22 = vcombine.high %v10284_v48, %v10747_v55  ;;  %v10757_v25 = vcombine.high %v18123_v6, %v18149_v29 }
0x1f03   :  { %v18151_v24 = vpop.eup %15523  ;;  %v10832_v10 = vrot.slane %v10824_v53, %v15995_v12  ;;  %v10839_v60 = vrot.slane %v10825_v22, %v15995_v12 }
0x1f04   :  { %v10753_v34 = vpop.permute.xlu1 %10752  ;;  %v18153_v35 = vpop.eup %15525  ;;  %v11368_v45 = vsel %vm1880_vm4, %v18151_v24, 0.0 }
0x1f05   :  { %v10840_v42 = vcombine.low %v10741_v2, %v10753_v34  ;;  %v10841_v1 = vcombine.high %v10741_v2, %v10753_v34  ;;  %11369 = vadd.xlane.f32.xlu1 %v11368_v45  ;;  %v11374_v56 = vsel %vm1880_vm4, %v18153_v35, 0.0 }
0x1f07   :  { %v10848_v41 = vrot.slane %v10840_v42, %v15995_v12  ;;  %v10855_v39 = vrot.slane %v10841_v1, %v15995_v12  ;;  %v10764_v42 = vrot.slane %v10756_v46, %v15995_v12  ;;  %v10771_v1 = vrot.slane %v10757_v25, %v15995_v12 }
0x1f09   :  { %v10856_v23 = vcombine.low %v10832_v10, %v10848_v41  ;;  %v10857_v11 = vcombine.high %v10832_v10, %v10848_v41  ;;  %v10872_v33 = vcombine.low %v10839_v60, %v10855_v39  ;;  %v10873_v28 = vcombine.high %v10839_v60, %v10855_v39  ;;  %11375 = vadd.xlane.f32.xlu1 %v11374_v56 }
0x1f0b   :  { %v18163_v63 = vpop.eup %15527  ;;  %v10864_v16 = vrot.slane %v10856_v23, %v15997_v21  ;;  %v10871_v43 = vrot.slane %v10857_v11, %v15997_v21  ;;  %v10880_v54 = vrot.slane %v10872_v33, %v15997_v21  ;;  %v10887_v51 = vrot.slane %v10873_v28, %v15997_v21 }
0x1f0c   :  { %v11371_v52 = vsel %vm1880_vm4, %v18163_v63, 0.0 }
0x1f0d   :  { %v10960_v58 = vcombine.low %v10864_v16, %v10871_v43  ;;  %v13792_v0 = vcombine.high %v10864_v16, %v10871_v43  ;;  %v10976_v13 = vcombine.low %v10880_v54, %v10887_v51  ;;  %v13793_v3 = vcombine.high %v10880_v54, %v10887_v51  ;;  %11372 = vadd.xlane.f32.xlu0 %v11371_v52 }
0x1f0f   :  { %v10967_v5 = vrot.slane %v10960_v58, %v15995_v12  ;;  %v10975_v40 = vrot.slane %v13792_v0, %v15995_v12  ;;  %v10983_v57 = vrot.slane %v10976_v13, %v15995_v12  ;;  %v10991_v47 = vrot.slane %v13793_v3, %v15995_v12 }
0x1f11   :  { %v10992_v61 = vcombine.low %v10967_v5, %v10975_v40  ;;  %v11008_v14 = vcombine.low %v10983_v57, %v10991_v47  ;;  %v10993_v48 = vcombine.high %v10967_v5, %v10975_v40  ;;  %v11009_v44 = vcombine.high %v10983_v57, %v10991_v47 }
0x1f13   :  { %v11000_v50 = vrot.slane %v10992_v61, %v15997_v21  ;;  %v11016_v7 = vrot.slane %v11008_v14, %v15997_v21  ;;  %v11007_v4 = vrot.slane %v10993_v48, %v15997_v21  ;;  %v11023_v26 = vrot.slane %v11009_v44, %v15997_v21 }
0x1f15   :  { %v11025_v32 = vcombine.high %v11000_v50, %v11016_v7  ;;  %v11027_v37 = vcombine.high %v11007_v4, %v11023_v26  ;;  %v11024_v48 = vcombine.low %v11000_v50, %v11016_v7  ;;  %v11026_v44 = vcombine.low %v11007_v4, %v11023_v26 }
0x1f1a   :  { %11845 = vrot.lane.b32.xlu1 %v18137_v30, %s15635_s18 }
0x1f31   :  { %v11355_v2 = vpop.xlane.xlu0 %11354 }
0x1f32   :  { %v11359_v31 = vsub.f32 %v18116_v38, %v11355_v2 }
0x1f34   :  { %v11366_v55 = vmul.f32 1.442695, %v11359_v31 }
0x1f35   :  { %v10751_v53 = vpop.permute.xlu0 %10750 }
0x1f36   :  { %15529 = vpow2.f32 %v11366_v55  ;;  %v10772_v22 = vcombine.low %v10739_v15, %v10751_v53  ;;  %v10773_v34 = vcombine.high %v10739_v15, %v10751_v53 }
0x1f38   :  { %v10780_v45 = vrot.slane %v10772_v22, %v15995_v12  ;;  %v10787_v10 = vrot.slane %v10773_v34, %v15995_v12  ;;  %v11836_v34 = vpop.permute.xlu1 %11835 }
0x1f39   :  { %v11834_v7 = vpop.permute.xlu0 %11833 }
0x1f3a   :  { %v10788_v38 = vcombine.low %v10764_v42, %v10780_v45  ;;  %v10789_v60 = vcombine.high %v10764_v42, %v10780_v45  ;;  %v10804_v41 = vcombine.low %v10771_v1, %v10787_v10  ;;  %v10805_v39 = vcombine.high %v10771_v1, %v10787_v10 }
0x1f3c   :  { %v10796_v56 = vrot.slane %v10788_v38, %v15997_v21  ;;  %v10803_v6 = vrot.slane %v10789_v60, %v15997_v21  ;;  %v10812_v29 = vrot.slane %v10804_v41, %v15997_v21  ;;  %v10819_v23 = vrot.slane %v10805_v39, %v15997_v21  ;;  %v11840_v50 = vpop.permute.xlu1 %11839 }
0x1f3d   :  { %v11842_v26 = vpop.permute.xlu0 %11841  ;;  %v11851_v39 = vcombine.low %v18137_v30, %v11840_v50 }
0x1f3e   :  { %v10892_v11 = vcombine.low %v10796_v56, %v10803_v6  ;;  %v13790_v33 = vcombine.high %v10796_v56, %v10803_v6  ;;  %v10908_v28 = vcombine.low %v10812_v29, %v10819_v23  ;;  %v13791_v16 = vcombine.high %v10812_v29, %v10819_v23 }
0x1f3f   :  { %v11852_v56 = vcombine.high %v18137_v30, %v11840_v50 }
0x1f40   :  { %v18194_v43 = vpop.eup %15529  ;;  %v10899_v54 = vrot.slane %v10892_v11, %v15995_v12  ;;  %v10907_v51 = vrot.slane %v13790_v33, %v15995_v12  ;;  %v10915_v52 = vrot.slane %v10908_v28, %v15995_v12  ;;  %v10923_v58 = vrot.slane %v13791_v16, %v15995_v12 }
0x1f41   :  { %v11377_v0 = vsel %vm1880_vm4, %v18194_v43, 0.0  ;;  %v11866_v23 = vrot.slane %v11852_v56, %v15995_v12 }
0x1f42   :  { %11378 = vadd.xlane.f32.xlu0 %v11377_v0  ;;  %v10924_v13 = vcombine.low %v10899_v54, %v10907_v51  ;;  %v10940_v3 = vcombine.low %v10915_v52, %v10923_v58  ;;  %v10925_v5 = vcombine.high %v10899_v54, %v10907_v51  ;;  %v10941_v40 = vcombine.high %v10915_v52, %v10923_v58 }
0x1f43   :  { %v11919_v0 = vcombine.low %v18132_v36, %v11842_v26 }
0x1f44   :  { %v10932_v57 = vrot.slane %v10924_v13, %v15997_v21  ;;  %v10948_v47 = vrot.slane %v10940_v3, %v15997_v21  ;;  %v10939_v61 = vrot.slane %v10925_v5, %v15997_v21  ;;  %v10955_v14 = vrot.slane %v10941_v40, %v15997_v21 }
0x1f45   :  { %v11920_v13 = vcombine.high %v18132_v36, %v11842_v26 }
0x1f46   :  { %v10956_v15 = vcombine.low %v10932_v57, %v10948_v47  ;;  %v10958_v2 = vcombine.low %v10939_v61, %v10955_v14  ;;  %v10957_v31 = vcombine.high %v10932_v57, %v10948_v47  ;;  %v10959_v46 = vcombine.high %v10939_v61, %v10955_v14 }
0x1f48   :  { %v15202_v25 = vpack.c.bf16 %v11024_v48, %v10956_v15  ;;  %v15208_v55 = vpack.c.bf16 %v11026_v44, %v10958_v2  ;;  %v15205_v53 = vpack.c.bf16 %v11025_v32, %v10957_v31  ;;  %v15211_v22 = vpack.c.bf16 %v11027_v37, %v10959_v46 }
0x1f49   :  { %v11927_v48 = vrot.slane %v11919_v0, %v15995_v12  ;;  %v11934_v44 = vrot.slane %v11920_v13, %v15995_v12 }
0x1f4a   :  { %15203 = vmatpush3.bf16.msra.mxu0 %v15202_v25  ;;  %15209 = vmatpush3.bf16.msra.mxu1 %v15208_v55 }
0x1f4b   :  { %15204 = vmatprep.subr.bf16.mxu0 %v15631_v18  ;;  %15213 = vmatprep.subr.bf16.mxu1 %v15631_v18 }
0x1f58   :  { %11847 = vrot.lane.b32.xlu0 %v18132_v36, %s15635_s18 }
0x1f92   :  { %v11370_v4 = vpop.xlane.xlu1 %11369 }
0x1f93   :  { %15531 = vrcp.f32 %v11370_v4 }
0x1f96   :  { %v11376_v42 = vpop.xlane.xlu1 %11375 }
0x1f97   :  { %15533 = vrcp.f32 %v11376_v42 }
0x1f9a   :  { %v11373_v1 = vpop.xlane.xlu0 %11372 }
0x1f9b   :  { %15535 = vrcp.f32 %v11373_v1 }
0x1f9d   :  { %v15532_v32 = vpop.eup %15531 }
0x1f9e   :  { %v11384_v37 = vmul.f32 %v15532_v32, %v18151_v24  ;;  %v11846_v24 = vpop.permute.xlu1 %11845 }
0x1f9f   :  { %v11868_v41 = vcombine.high %v11834_v7, %v11846_v24 }
0x1fa0   :  { %14732 = vmatmul.mubr.msk.f32.vlgmr.msra.gmra.mrb[70].mxu0 %vm1880_vm4, %v11384_v37 }
0x1fa1   :  { %v15534_v45 = vpop.eup %15533  ;;  %15206 = vmatpush3.bf16.msra.mxu0 %v15205_v53  ;;  %14738 = vmatprep.mubr.msk.f32.mxu0 %vm15632_vm7, %v15633_v19  ;;  %v11882_v29 = vrot.slane %v11868_v41, %v15995_v12 }
0x1fa2   :  { %v11386_v10 = vmul.f32 %v15534_v45, %v18153_v35  ;;  %15210 = vmatprep.subr.bf16.mxu0 %v15631_v18  ;;  %v11867_v35 = vcombine.low %v11834_v7, %v11846_v24 }
0x1fa3   :  { %v11899_v28 = vcombine.low %v11866_v23, %v11882_v29  ;;  %v11900_v16 = vcombine.high %v11866_v23, %v11882_v29 }
0x1fa4   :  { %14746 = vmatmul.mubr.msk.f32.vlgmr.msra.gmra.mrb[68].mxu1 %vm1880_vm4, %v11386_v10  ;;  %v11875_v6 = vrot.slane %v11867_v35, %v15995_v12 }
0x1fa5   :  { %v15536_v38 = vpop.eup %15535  ;;  %14759 = vmatprep.mubr.msk.f32.mxu1 %vm15632_vm7, %v15633_v19  ;;  %v11907_v52 = vrot.slane %v11899_v28, %v15997_v21  ;;  %v11914_v30 = vrot.slane %v11900_v16, %v15997_v21 }
0x1fa6   :  { %v11385_v60 = vmul.f32 %v15536_v38, %v18163_v63  ;;  %v11859_v63 = vrot.slane %v11851_v39, %v15995_v12 }
0x1fa7   :  { %v12003_v40 = vcombine.low %v11907_v52, %v11914_v30  ;;  %v13813_v57 = vcombine.high %v11907_v52, %v11914_v30 }
0x1fa8   :  { %14739 = vmatmul.mubr.msk.f32.vlgmr.msra.gmra.mrb[72].mxu0 %vm1880_vm4, %v11385_v60  ;;  %v11883_v11 = vcombine.low %v11859_v63, %v11875_v6  ;;  %v11884_v33 = vcombine.high %v11859_v63, %v11875_v6 }
0x1fa9   :  { %15212 = vmatpush3.bf16.msra.mxu0 %v15211_v22  ;;  %14752 = vmatprep.mubr.msk.f32.mxu0 %vm15632_vm7, %v15633_v19  ;;  %v12010_v36 = vrot.slane %v12003_v40, %v15995_v12  ;;  %v12018_v25 = vrot.slane %v13813_v57, %v15995_v12 }
0x1faa   :  { %15217 = vmatprep.subr.bf16.mxu0 %v15631_v18  ;;  %v11891_v54 = vrot.slane %v11883_v11, %v15997_v21  ;;  %v11898_v51 = vrot.slane %v11884_v33, %v15997_v21 }
0x1fab   :  { %v12035_v32 = vcombine.low %v12010_v36, %v12018_v25  ;;  %v12036_v16 = vcombine.high %v12010_v36, %v12018_v25 }
0x1fac   :  { %v11987_v3 = vcombine.low %v11891_v54, %v11898_v51  ;;  %v13812_v5 = vcombine.high %v11891_v54, %v11898_v51 }
0x1fad   :  { %v12050_v40 = vrot.slane %v12036_v16, %v15997_v21 }
0x1fae   :  { %v11994_v31 = vrot.slane %v11987_v3, %v15995_v12  ;;  %v12002_v46 = vrot.slane %v13812_v5, %v15995_v12 }
0x1fb0   :  { %v12019_v1 = vcombine.low %v11994_v31, %v12002_v46  ;;  %v12020_v28 = vcombine.high %v11994_v31, %v12002_v46 }
0x1fb2   :  { %v12027_v56 = vrot.slane %v12019_v1, %v15997_v21  ;;  %v12034_v5 = vrot.slane %v12020_v28, %v15997_v21 }
0x1fcf   :  { %v11379_v58 = vpop.xlane.xlu0 %11378 }
0x1fd0   :  { %15537 = vrcp.f32 %v11379_v58 }
0x1fd3   :  { %v11848_v47 = vpop.permute.xlu0 %11847 }
0x1fd4   :  { %v11935_v61 = vcombine.low %v11836_v34, %v11848_v47  ;;  %v11936_v14 = vcombine.high %v11836_v34, %v11848_v47 }
0x1fd6   :  { %v11943_v15 = vrot.slane %v11935_v61, %v15995_v12  ;;  %v11950_v2 = vrot.slane %v11936_v14, %v15995_v12  ;;  %v12053_v61 = vcombine.low %v12034_v5, %v12050_v40  ;;  %v12054_v14 = vcombine.high %v12034_v5, %v12050_v40 }
0x1fd8   :  { %v11951_v55 = vcombine.low %v11927_v48, %v11943_v15  ;;  %v11952_v53 = vcombine.high %v11927_v48, %v11943_v15  ;;  %v11967_v22 = vcombine.low %v11934_v44, %v11950_v2  ;;  %v11968_v34 = vcombine.high %v11934_v44, %v11950_v2 }
0x1fda   :  { %v15538_v50 = vpop.eup %15537  ;;  %v11959_v7 = vrot.slane %v11951_v55, %v15997_v21  ;;  %v11966_v4 = vrot.slane %v11952_v53, %v15997_v21  ;;  %v11975_v26 = vrot.slane %v11967_v22, %v15997_v21  ;;  %v11982_v42 = vrot.slane %v11968_v34, %v15997_v21 }
0x1fdb   :  { %v11387_v37 = vmul.f32 %v15538_v50, %v18194_v43  ;;  %v12043_v43 = vrot.slane %v12035_v32, %v15997_v21 }
0x1fdc   :  { %v12055_v45 = vcombine.low %v11959_v7, %v11966_v4  ;;  %v13814_v10 = vcombine.high %v11959_v7, %v11966_v4  ;;  %v12071_v38 = vcombine.low %v11975_v26, %v11982_v42  ;;  %v13815_v60 = vcombine.high %v11975_v26, %v11982_v42 }
0x1fdd   :  { %14753 = vmatmul.mubr.msk.f32.vlgmr.msra.gmra.mrb[74].mxu0 %vm1880_vm4, %v11387_v37  ;;  %v12051_v54 = vcombine.low %v12027_v56, %v12043_v43  ;;  %v12052_v52 = vcombine.high %v12027_v56, %v12043_v43 }
0x1fde   :  { %v12062_v24 = vrot.slane %v12055_v45, %v15995_v12  ;;  %v12070_v35 = vrot.slane %v13814_v10, %v15995_v12  ;;  %v12078_v41 = vrot.slane %v12071_v38, %v15995_v12  ;;  %v12086_v39 = vrot.slane %v13815_v60, %v15995_v12  ;;  %14766 = vmatprep.mubr.msk.f32.mxu0 %vm15632_vm7, %v15633_v19 }
0x1fe0   :  { %v12087_v6 = vcombine.low %v12062_v24, %v12070_v35  ;;  %v12103_v29 = vcombine.low %v12078_v41, %v12086_v39  ;;  %v12088_v63 = vcombine.high %v12062_v24, %v12070_v35  ;;  %v12104_v11 = vcombine.high %v12078_v41, %v12086_v39 }
0x1fe2   :  { %v12095_v23 = vrot.slane %v12087_v6, %v15997_v21  ;;  %v12111_v33 = vrot.slane %v12103_v29, %v15997_v21  ;;  %v12102_v58 = vrot.slane %v12088_v63, %v15997_v21  ;;  %v12118_v0 = vrot.slane %v12104_v11, %v15997_v21 }
0x1fe4   :  { %v12119_v51 = vcombine.low %v12095_v23, %v12111_v33  ;;  %v12120_v30 = vcombine.high %v12095_v23, %v12111_v33  ;;  %v12121_v57 = vcombine.low %v12102_v58, %v12118_v0  ;;  %v12122_v47 = vcombine.high %v12102_v58, %v12118_v0 }
0x1fe6   :  { %v15214_v13 = vpack.c.bf16 %v12119_v51, %v12051_v54  ;;  %v15218_v3 = vpack.c.bf16 %v12120_v30, %v12052_v52  ;;  %v15222_v48 = vpack.c.bf16 %v12121_v57, %v12053_v61  ;;  %v15226_v44 = vpack.c.bf16 %v12122_v47, %v12054_v14 }
0x1fe8   :  { %15216 = vmatpush3.bf16.xpose.msk.msra.mxu1 %vm18043_vm8, %v15214_v13  ;;  %15220 = vmatpush3.bf16.xpose.msk.msra.mxu0 %vm18043_vm8, %v15218_v3 }
0x1fe9   :  { %15221 = vmatprep.subr.bf16.mxu1 %v15631_v18  ;;  %15225 = vmatprep.subr.bf16.mxu0 %v15631_v18 }
0x1fef   :  { %14760 = vmatmul.mubr.msk.f32.vlgmr.msra.gmra.mrb[70].mxu1 %vm1880_vm4, %v18074_v59  ;;  %14767 = vmatmul.mubr.msk.f32.vlgmr.msra.gmra.mrb[76].mxu0 %vm1880_vm4, %v18091_v20 }
0x1ff0   :  { %15224 = vmatpush3.bf16.xpose.msk.msra.mxu1 %vm18043_vm8, %v15222_v48  ;;  %15228 = vmatpush3.bf16.xpose.msk.msra.mxu0 %vm18043_vm8, %v15226_v44  ;;  %v10289_v48 = vadd.f32 %v18114_v62, %v18108_v8 }
0x1ff1   :  { %14773 = vmatprep.mubr.msk.f32.mxu1 %vm15632_vm7, %v15633_v19  ;;  %14780 = vmatprep.mubr.msk.f32.mxu0 %vm15632_vm7, %v15633_v19 }
0x1ff2   :  { %15229 = vmatprep.subr.bf16.mxu1 %v15631_v18  ;;  %15232 = vmatprep.subr.bf16.mxu0 %v15631_v18 }
0x1ff7   :  { %14774 = vmatmul.mubr.msk.f32.vlgmr.msra.gmra.mrb[72].mxu1 %vm1880_vm4, %v18076_v49  ;;  %14781 = vmatmul.mubr.msk.f32.vlgmr.msra.gmra.mrb[78].mxu0 %vm1880_vm4, %v18100_v17 }
0x1ff8   :  { %14787 = vmatprep.mubr.msk.f32.mxu1 %vm15632_vm7, %v15633_v19  ;;  %14794 = vmatprep.mubr.msk.f32.mxu0 %vm15632_vm7, %v15633_v19 }
0x2073   :  { %v11457_v27 = vpop.f32.mrb[70].mxu0 }
0x2074   :  { %v14733_v59 = vpop.f32.mrb[71].mxu0 }
0x2077   :  { %v11603_v20 = vpop.f32.mrb[68].mxu1 }
0x2078   :  { %v11680_v15 = vcombine.low %v11457_v27, %v11603_v20  ;;  %v11681_v2 = vcombine.high %v11457_v27, %v11603_v20  ;;  %v14747_v31 = vpop.f32.mrb[69].mxu1  ;;  %v18334_v27 = vadd.f32 %v18106_v9, %v18114_v62 }
0x207a   :  { %v11688_v17 = vrot.slane %v11680_v15, %v15995_v12  ;;  %v11695_v22 = vrot.slane %v11681_v2, %v15995_v12 }
0x207b   :  { %v11530_v46 = vpop.f32.mrb[72].mxu0 }
0x207c   :  { %v14740_v36 = vpop.f32.mrb[73].mxu0 }
0x20b0   :  { %v11676_v25 = vpop.f32.mrb[74].mxu0 }
0x20b1   :  { %v11696_v55 = vcombine.low %v11530_v46, %v11676_v25  ;;  %v11697_v49 = vcombine.high %v11530_v46, %v11676_v25  ;;  %v14754_v53 = vpop.f32.mrb[75].mxu0 }
0x20b3   :  { %v11704_v34 = vrot.slane %v11696_v55, %v15995_v12  ;;  %v11711_v50 = vrot.slane %v11697_v49, %v15995_v12 }
0x20b5   :  { %v11712_v7 = vcombine.low %v11688_v17, %v11704_v34  ;;  %v11713_v4 = vcombine.high %v11688_v17, %v11704_v34  ;;  %v11728_v26 = vcombine.low %v11695_v22, %v11711_v50  ;;  %v11729_v42 = vcombine.high %v11695_v22, %v11711_v50 }
0x20b7   :  { %v11720_v1 = vrot.slane %v11712_v7, %v15997_v21  ;;  %v11727_v32 = vrot.slane %v11713_v4, %v15997_v21  ;;  %v11736_v37 = vrot.slane %v11728_v26, %v15997_v21  ;;  %v11743_v45 = vrot.slane %v11729_v42, %v15997_v21 }
0x20b9   :  { %v11748_v10 = vcombine.low %v11720_v1, %v11727_v32  ;;  %v13810_v38 = vcombine.high %v11720_v1, %v11727_v32  ;;  %v11764_v60 = vcombine.low %v11736_v37, %v11743_v45  ;;  %v13811_v24 = vcombine.high %v11736_v37, %v11743_v45 }
0x20bb   :  { %v11755_v35 = vrot.slane %v11748_v10, %v15995_v12  ;;  %v11763_v41 = vrot.slane %v13810_v38, %v15995_v12  ;;  %v11771_v39 = vrot.slane %v11764_v60, %v15995_v12  ;;  %v11779_v56 = vrot.slane %v13811_v24, %v15995_v12 }
0x20bd   :  { %v11781_v43 = vcombine.high %v11755_v35, %v11763_v41  ;;  %v11797_v6 = vcombine.high %v11771_v39, %v11779_v56  ;;  %v11780_v29 = vcombine.low %v11755_v35, %v11763_v41  ;;  %v11796_v63 = vcombine.low %v11771_v39, %v11779_v56 }
0x20bf   :  { %v18305_v23 = vrot.slane %v11781_v43, %v15997_v21  ;;  %v18308_v11 = vrot.slane %v11797_v6, %v15997_v21  ;;  %v18311_v33 = vrot.slane %v11780_v29, %v15997_v21  ;;  %v18314_v28 = vrot.slane %v11796_v63, %v15997_v21 }
0x20c1   :  { %v11814_v16 = vcombine.low %v18305_v23, %v18308_v11  ;;  %v11813_v54 = vcombine.high %v18311_v33, %v18314_v28  ;;  %v11815_v51 = vcombine.high %v18305_v23, %v18308_v11  ;;  %v11812_v52 = vcombine.low %v18311_v33, %v18314_v28 }
0x20c2   :  { %v12487_v30 = vpop.f32.mrb[70].mxu1  ;;  %v12563_v58 = vpop.f32.mrb[76].mxu0 }
0x20c3   :  { %v14761_v0 = vpop.f32.mrb[71].mxu1  ;;  %v14768_v13 = vpop.f32.mrb[77].mxu0  ;;  %v12719_v3 = vsel %vm1880_vm4, %v12487_v30, -inf  ;;  %v12722_v14 = vsel %vm1880_vm4, %v12563_v58, -inf }
0x20c4   :  { %12720 = vmax.xlane.f32.xlu1 %v12719_v3 }
0x20ca   :  { %v12639_v5 = vpop.f32.mrb[72].mxu1  ;;  %v12715_v40 = vpop.f32.mrb[78].mxu0 }
0x20cb   :  { %v14775_v57 = vpop.f32.mrb[73].mxu1  ;;  %v14782_v47 = vpop.f32.mrb[79].mxu0  ;;  %v12725_v61 = vsel %vm1880_vm4, %v12639_v5, -inf  ;;  %v12728_v44 = vsel %vm1880_vm4, %v12715_v40, -inf }
0x20cc   :  { %12726 = vmax.xlane.f32.xlu0 %v12725_v61 }
0x20d0   :  { %12723 = vmax.xlane.f32.xlu0 %v12722_v14 }
0x20d4   :  { %12729 = vmax.xlane.f32.xlu0 %v12728_v44 }
0x20d5   :  { %12125 = vrot.lane.b32.xlu1 %v10289_v48, %s15624_s5 }
0x20d9   :  { %12131 = vrot.lane.b32.xlu1 %v10289_v48, %s15634_s16 }
0x20dd   :  { %12133 = vrot.lane.b32.xlu1 %v18334_v27, %s15634_s16 }
0x20e1   :  { %12137 = vrot.lane.b32.xlu1 %v10289_v48, %s15635_s18 }
0x20ea   :  { %12127 = vrot.lane.b32.xlu0 %v18334_v27, %s15624_s5  ;;  %s15636_s5 = smov 32  }
0x20ee   :  { %12139 = vrot.lane.b32.xlu0 %v18334_v27, %s15635_s18 }
0x2151   :  { %v12721_v8 = vpop.xlane.xlu1 %12720 }
0x2152   :  { %v12731_v59 = vsub.f32 %v12487_v30, %v12721_v8 }
0x2154   :  { %v12735_v20 = vmul.f32 1.442695, %v12731_v59 }
0x2155   :  { %v12126_v15 = vpop.permute.xlu1 %12125 }
0x2156   :  { %15539 = vpow2.f32 %v12735_v20 }
0x2159   :  { %v12132_v2 = vpop.permute.xlu1 %12131  ;;  %v12727_v31 = vpop.xlane.xlu0 %12726 }
0x215a   :  { %v12733_v9 = vsub.f32 %v12639_v5, %v12727_v31  ;;  %v12143_v55 = vcombine.low %v10289_v48, %v12132_v2  ;;  %v12144_v53 = vcombine.high %v10289_v48, %v12132_v2 }
0x215c   :  { %v12739_v62 = vmul.f32 1.442695, %v12733_v9  ;;  %v12151_v42 = vrot.slane %v12143_v55, %v15995_v12  ;;  %v12158_v1 = vrot.slane %v12144_v53, %v15995_v12 }
0x215d   :  { %v12134_v46 = vpop.permute.xlu1 %12133  ;;  %v12724_v36 = vpop.xlane.xlu0 %12723 }
0x215e   :  { %15541 = vpow2.f32 %v12739_v62  ;;  %v12732_v25 = vsub.f32 %v12563_v58, %v12724_v36  ;;  %v12211_v41 = vcombine.low %v18334_v27, %v12134_v46  ;;  %v12212_v63 = vcombine.high %v18334_v27, %v12134_v46 }
0x2160   :  { %v18343_v49 = vpop.eup %15539  ;;  %v12737_v17 = vmul.f32 1.442695, %v12732_v25  ;;  %v12226_v8 = vrot.slane %v12212_v63, %v15995_v12 }
0x2161   :  { %v12138_v22 = vpop.permute.xlu1 %12137  ;;  %v12730_v34 = vpop.xlane.xlu0 %12729  ;;  %v12743_v50 = vsel %vm1880_vm4, %v18343_v49, 0.0 }
0x2162   :  { %15543 = vpow2.f32 %v12737_v17  ;;  %v12159_v7 = vcombine.low %v12126_v15, %v12138_v22  ;;  %v12160_v4 = vcombine.high %v12126_v15, %v12138_v22  ;;  %v12734_v26 = vsub.f32 %v12715_v40, %v12730_v34  ;;  %12744 = vadd.xlane.f32.xlu1 %v12743_v50 }
0x2163   :  { %v12219_v40 = vrot.slane %v12211_v41, %v15995_v12 }
0x2164   :  { %v12167_v32 = vrot.slane %v12159_v7, %v15995_v12  ;;  %v12174_v37 = vrot.slane %v12160_v4, %v15995_v12  ;;  %v12741_v45 = vmul.f32 1.442695, %v12734_v26 }
0x2165   :  { %v12128_v10 = vpop.permute.xlu0 %12127 }
0x2166   :  { %v12175_v38 = vcombine.low %v12151_v42, %v12167_v32  ;;  %v12176_v60 = vcombine.high %v12151_v42, %v12167_v32  ;;  %v12191_v24 = vcombine.low %v12158_v1, %v12174_v37  ;;  %v12192_v35 = vcombine.high %v12158_v1, %v12174_v37 }
0x2167   :  { %15545 = vpow2.f32 %v12741_v45 }
0x2168   :  { %v18352_v39 = vpop.eup %15541  ;;  %v12183_v56 = vrot.slane %v12175_v38, %v15997_v21  ;;  %v12190_v43 = vrot.slane %v12176_v60, %v15997_v21  ;;  %v12199_v6 = vrot.slane %v12191_v24, %v15997_v21  ;;  %v12206_v29 = vrot.slane %v12192_v35, %v15997_v21 }
0x2169   :  { %v12140_v30 = vpop.permute.xlu0 %12139  ;;  %v12749_v58 = vsel %vm1880_vm4, %v18352_v39, 0.0 }
0x216a   :  { %v12279_v0 = vcombine.low %v12183_v56, %v12190_v43  ;;  %v13816_v13 = vcombine.high %v12183_v56, %v12190_v43  ;;  %v12295_v3 = vcombine.low %v12199_v6, %v12206_v29  ;;  %v13817_v5 = vcombine.high %v12199_v6, %v12206_v29  ;;  %12750 = vadd.xlane.f32.xlu1 %v12749_v58 }
0x216b   :  { %v12227_v57 = vcombine.low %v12128_v10, %v12140_v30  ;;  %v12228_v47 = vcombine.high %v12128_v10, %v12140_v30 }
0x216c   :  { %v18362_v61 = vpop.eup %15543  ;;  %v12286_v14 = vrot.slane %v12279_v0, %v15995_v12  ;;  %v12294_v48 = vrot.slane %v13816_v13, %v15995_v12  ;;  %v12302_v44 = vrot.slane %v12295_v3, %v15995_v12  ;;  %v12310_v27 = vrot.slane %v13817_v5, %v15995_v12 }
0x216d   :  { %v12235_v59 = vrot.slane %v12227_v57, %v15995_v12  ;;  %v12242_v20 = vrot.slane %v12228_v47, %v15995_v12  ;;  %v12746_v15 = vsel %vm1880_vm4, %v18362_v61, 0.0 }
0x216e   :  { %12747 = vadd.xlane.f32.xlu0 %v12746_v15  ;;  %v12312_v2 = vcombine.high %v12286_v14, %v12294_v48  ;;  %v12328_v31 = vcombine.high %v12302_v44, %v12310_v27  ;;  %v12311_v4 = vcombine.low %v12286_v14, %v12294_v48  ;;  %v12327_v26 = vcombine.low %v12302_v44, %v12310_v27 }
0x216f   :  { %v12243_v9 = vcombine.low %v12219_v40, %v12235_v59  ;;  %v12244_v62 = vcombine.high %v12219_v40, %v12235_v59  ;;  %v12259_v46 = vcombine.low %v12226_v8, %v12242_v20  ;;  %v12260_v36 = vcombine.high %v12226_v8, %v12242_v20 }
0x2170   :  { %v12326_v25 = vrot.slane %v12312_v2, %v15997_v21  ;;  %v12342_v55 = vrot.slane %v12328_v31, %v15997_v21  ;;  %v12319_v41 = vrot.slane %v12311_v4, %v15997_v21  ;;  %v12335_v56 = vrot.slane %v12327_v26, %v15997_v21 }
0x2171   :  { %v18375_v53 = vpop.eup %15545  ;;  %v12251_v17 = vrot.slane %v12243_v9, %v15997_v21  ;;  %v12258_v22 = vrot.slane %v12244_v62, %v15997_v21  ;;  %v12267_v34 = vrot.slane %v12259_v46, %v15997_v21  ;;  %v12274_v50 = vrot.slane %v12260_v36, %v15997_v21  ;;  %v13208_v36 = vld [vmem:[%s18539_s23 + $0x10] sm:$0xff] }
0x2172   :  { %v12752_v7 = vsel %vm1880_vm4, %v18375_v53, 0.0  ;;  %v12345_v42 = vcombine.low %v12326_v25, %v12342_v55  ;;  %v12346_v10 = vcombine.high %v12326_v25, %v12342_v55  ;;  %v12343_v3 = vcombine.low %v12319_v41, %v12335_v56  ;;  %v13209_v55 = vld [vmem:[%s18539_s23 + $0x18] sm:$0xff] }
0x2173   :  { %v12347_v1 = vcombine.low %v12251_v17, %v12258_v22  ;;  %v13818_v32 = vcombine.high %v12251_v17, %v12258_v22  ;;  %v12363_v37 = vcombine.low %v12267_v34, %v12274_v50  ;;  %v13819_v45 = vcombine.high %v12267_v34, %v12274_v50  ;;  %12753 = vadd.xlane.f32.xlu0 %v12752_v7  ;;  %v13210_v22 = vld [vmem:[%s18539_s23 + $0x20] sm:$0xff]  ;;  %v13211_v34 = vld [vmem:[%s18539_s23 + $0x28] sm:$0xff] }
0x2174   :  { %v12344_v5 = vcombine.high %v12319_v41, %v12335_v56  ;;  %v15245_v17 = vpack.c.bf16 %v13209_v55, %v13208_v36  ;;  %v15249_v50 = vpack.c.bf16 %v13211_v34, %v13210_v22 }
0x2175   :  { %v12354_v38 = vrot.slane %v12347_v1, %v15995_v12  ;;  %v12362_v60 = vrot.slane %v13818_v32, %v15995_v12  ;;  %v12370_v24 = vrot.slane %v12363_v37, %v15995_v12  ;;  %v12378_v35 = vrot.slane %v13819_v45, %v15995_v12 }
0x2177   :  { %v12379_v43 = vcombine.low %v12354_v38, %v12362_v60  ;;  %v12395_v6 = vcombine.low %v12370_v24, %v12378_v35  ;;  %v12380_v29 = vcombine.high %v12354_v38, %v12362_v60  ;;  %v12396_v63 = vcombine.high %v12370_v24, %v12378_v35 }
0x2179   :  { %v12387_v30 = vrot.slane %v12379_v43, %v15997_v21  ;;  %v12403_v58 = vrot.slane %v12395_v6, %v15997_v21  ;;  %v12394_v0 = vrot.slane %v12380_v29, %v15997_v21  ;;  %v12410_v13 = vrot.slane %v12396_v63, %v15997_v21  ;;  %v13212_v63 = vld [vmem:[%s18539_s23 + $0x30] sm:$0xff] }
0x217b   :  { %11821 = vrot.lane.b32.xlu1 %v11814_v16, %s15636_s5  ;;  %v12411_v40 = vcombine.low %v12387_v30, %v12403_v58  ;;  %v12412_v57 = vcombine.high %v12387_v30, %v12403_v58  ;;  %v12413_v47 = vcombine.low %v12394_v0, %v12410_v13  ;;  %v12414_v14 = vcombine.high %v12394_v0, %v12410_v13  ;;  %v13213_v30 = vld [vmem:[%s18539_s23 + $0x38] sm:$0xff] }
0x217d   :  { %v15230_v48 = vpack.c.bf16 %v12411_v40, %v12343_v3  ;;  %v15233_v44 = vpack.c.bf16 %v12412_v57, %v12344_v5  ;;  %v15236_v27 = vpack.c.bf16 %v12413_v47, %v12345_v42  ;;  %v15239_v8 = vpack.c.bf16 %v12414_v14, %v12346_v10 }
0x217e   :  { %v15253_v5 = vpack.c.bf16 %v13213_v30, %v13212_v63 }
0x217f   :  { %15231 = vmatpush3.bf16.msra.mxu1 %v15230_v48  ;;  %15234 = vmatpush3.bf16.msra.mxu0 %v15233_v44 }
0x2180   :  { %15235 = vmatprep.subr.bf16.mxu1 %v15631_v18  ;;  %15238 = vmatprep.subr.bf16.mxu0 %v15631_v18 }
0x2189   :  { %11817 = vrot.lane.b32.xlu0 %v11813_v54, %s15629_s22 }
0x218d   :  { %11825 = vrot.lane.b32.xlu0 %v11815_v51, %s15637_s9 }
0x21ef   :  { %v12745_v16 = vpop.xlane.xlu1 %12744 }
0x21f0   :  { %15547 = vrcp.f32 %v12745_v16 }
0x21f7   :  { %v12751_v59 = vpop.xlane.xlu1 %12750 }
0x21f8   :  { %15549 = vrcp.f32 %v12751_v59 }
0x21fa   :  { %v15548_v20 = vpop.eup %15547 }
0x21fb   :  { %v12759_v15 = vmul.f32 %v15548_v20, %v18343_v49  ;;  %v12748_v2 = vpop.xlane.xlu0 %12747  ;;  %v11822_v31 = vpop.permute.xlu1 %11821 }
0x21fc   :  { %15551 = vrcp.f32 %v12748_v2 }
0x21fd   :  { %14788 = vmatmul.mubr.msk.f32.vlgmr.msra.gmra.mrb[74].mxu1 %vm1880_vm4, %v12759_v15 }
0x21fe   :  { %15237 = vmatpush3.bf16.msra.mxu1 %v15236_v27  ;;  %14801 = vmatprep.mubr.msk.f32.mxu1 %vm15632_vm7, %v15633_v19 }
0x2200   :  { %v12754_v18 = vpop.xlane.xlu0 %12753 }
0x2201   :  { %15553 = vrcp.f32 %v12754_v18 }
0x2202   :  { %v15550_v54 = vpop.eup %15549 }
0x2203   :  { %v12761_v23 = vmul.f32 %v15550_v54, %v18352_v39 }
0x2204   :  { %v11818_v11 = vpop.permute.xlu0 %11817 }
0x2205   :  { %v11828_v51 = vsel %vm1880_vm4, %v11812_v52, %v11818_v11  ;;  %14802 = vmatmul.mubr.msk.f32.vlgmr.msra.gmra.mrb[76].mxu1 %vm1880_vm4, %v12761_v23  ;;  %v13206_v52 = vld [vmem:[%s18539_s23] sm:$0xff] }
0x2206   :  { %v15552_v49 = vpop.eup %15551  ;;  %v11829_v62 = vsel %vm279_vm1, %v11828_v51, %v11822_v31 }
0x2207   :  { %v12760_v9 = vmul.f32 %v15552_v49, %v18362_v61  ;;  %v13207_v61 = vld [vmem:[%s18539_s23 + $0x8] sm:$0xff] }
0x2208   :  { %v11826_v39 = vpop.permute.xlu0 %11825  ;;  %v15241_v25 = vpack.c.bf16 %v13207_v61, %v13206_v52 }
0x2209   :  { %v11830_v46 = vsel %vm173_vm0, %v11829_v62, %v11826_v39  ;;  %14795 = vmatmul.mubr.msk.f32.vlgmr.msra.gmra.mrb[80].mxu0 %vm1880_vm4, %v12760_v9 }
0x220a   :  { %15240 = vmatpush3.bf16.msra.mxu0 %v15239_v8  ;;  %14827 = vmatprep.mubr.msk.f32.mxu1 %vm4881_vm6, %v11830_v46 }
0x220b   :  { %v15554_v33 = vpop.eup %15553  ;;  %14808 = vmatprep.mubr.msk.f32.mxu0 %vm15632_vm7, %v15633_v19  ;;  %15242 = vmatprep.subr.bf16.mxu1 %v15241_v25 }
0x220c   :  { %v12762_v28 = vmul.f32 %v15554_v33, %v18375_v53  ;;  %15244 = vmatpush3.bf16.msra.mxu1 %v15241_v25 }
0x220d   :  { %15246 = vmatprep.subr.bf16.mxu1 %v15245_v17 }
0x220e   :  { %14809 = vmatmul.mubr.msk.f32.vlgmr.msra.gmra.mrb[82].mxu0 %vm1880_vm4, %v12762_v28 }
0x2210   :  { %15248 = vmatpush3.bf16.msra.mxu1 %v15245_v17 }
0x2211   :  { %15250 = vmatprep.subr.bf16.mxu1 %v15249_v50 }
0x2214   :  { %15252 = vmatpush3.bf16.msra.mxu1 %v15249_v50 }
0x2215   :  { %15254 = vmatprep.subr.bf16.mxu1 %v15253_v5 }
0x2218   :  { %15256 = vmatpush3.bf16.msra.mxu1 %v15253_v5 }
0x22d0   :  { %v12832_v19 = vpop.f32.mrb[74].mxu1 }
0x22d1   :  { %v14789_v7 = vpop.f32.mrb[75].mxu1 }
0x22d8   :  { %v12978_v53 = vpop.f32.mrb[76].mxu1 }
0x22d9   :  { %v13055_v4 = vcombine.low %v12832_v19, %v12978_v53  ;;  %v13056_v26 = vcombine.high %v12832_v19, %v12978_v53  ;;  %v14803_v42 = vpop.f32.mrb[77].mxu1 }
0x22db   :  { %v13063_v60 = vrot.slane %v13055_v4, %v15995_v12  ;;  %v13070_v24 = vrot.slane %v13056_v26, %v15995_v12 }
0x22dc   :  { %v12905_v1 = vpop.f32.mrb[80].mxu0 }
0x22dd   :  { %v14796_v32 = vpop.f32.mrb[81].mxu0 }
0x22de   :  { %v13347_v32 = vld [vmem:[%s15838_s12 + $0x8] sm:$0xff] }
0x22e1   :  { %v13051_v37 = vpop.f32.mrb[82].mxu0 }
0x22e2   :  { %v13071_v45 = vcombine.low %v12905_v1, %v13051_v37  ;;  %v13072_v10 = vcombine.high %v12905_v1, %v13051_v37  ;;  %v14810_v38 = vpop.f32.mrb[83].mxu0  ;;  %v13346_v1 = vld [vmem:[%s15838_s12] sm:$0xff] }
0x22e3   :  { %v15257_v37 = vpack.c.bf16 %v13347_v32, %v13346_v1  ;;  %v13350_v38 = vld [vmem:[%s15838_s12 + $0x20] sm:$0xff] }
0x22e4   :  { %v13079_v35 = vrot.slane %v13071_v45, %v15995_v12  ;;  %v13086_v41 = vrot.slane %v13072_v10, %v15995_v12  ;;  %v13348_v45 = vld [vmem:[%s15838_s12 + $0x10] sm:$0xff]  ;;  %v13349_v10 = vld [vmem:[%s15838_s12 + $0x18] sm:$0xff] }
0x22e5   :  { %15258 = vmatprep.subr.bf16.mxu0 %v15257_v37 }
0x22e6   :  { %v13087_v56 = vcombine.low %v13063_v60, %v13079_v35  ;;  %v13088_v43 = vcombine.high %v13063_v60, %v13079_v35  ;;  %v13103_v6 = vcombine.low %v13070_v24, %v13086_v41  ;;  %v13104_v29 = vcombine.high %v13070_v24, %v13086_v41  ;;  %15260 = vmatpush3.bf16.msra.mxu0 %v15257_v37  ;;  %v13351_v24 = vld [vmem:[%s15838_s12 + $0x28] sm:$0xff]  ;;  %v13352_v41 = vld [vmem:[%s15838_s12 + $0x30] sm:$0xff] }
0x22e7   :  { %v15261_v60 = vpack.c.bf16 %v13349_v10, %v13348_v45  ;;  %v15265_v35 = vpack.c.bf16 %v13351_v24, %v13350_v38 }
0x22e8   :  { %v13095_v58 = vrot.slane %v13087_v56, %v15997_v21  ;;  %v13102_v0 = vrot.slane %v13088_v43, %v15997_v21  ;;  %v13111_v13 = vrot.slane %v13103_v6, %v15997_v21  ;;  %v13118_v3 = vrot.slane %v13104_v29, %v15997_v21  ;;  %v13353_v56 = vld [vmem:[%s15838_s12 + $0x38] sm:$0xff]  ;;  %s15638_s12 = smov [#allocation2]  }
0x22e9   :  { %15262 = vmatprep.subr.bf16.mxu0 %v15261_v60  ;;  %v15269_v43 = vpack.c.bf16 %v13353_v56, %v13352_v41 }
0x22ea   :  { %v13123_v40 = vcombine.low %v13095_v58, %v13102_v0  ;;  %v13836_v57 = vcombine.high %v13095_v58, %v13102_v0  ;;  %v13139_v47 = vcombine.low %v13111_v13, %v13118_v3  ;;  %v13837_v14 = vcombine.high %v13111_v13, %v13118_v3  ;;  %15264 = vmatpush3.bf16.msra.mxu0 %v15261_v60  ;;  %v13841_v3 = vld [vmem:[%s15828_s27] ss:$0 sm:$0xff] }
0x22eb   :  { %15266 = vmatprep.subr.bf16.mxu0 %v15265_v35 }
0x22ec   :  { %v13130_v48 = vrot.slane %v13123_v40, %v15995_v12  ;;  %v13138_v44 = vrot.slane %v13836_v57, %v15995_v12  ;;  %v13146_v27 = vrot.slane %v13139_v47, %v15995_v12  ;;  %v13154_v8 = vrot.slane %v13837_v14, %v15995_v12  ;;  %v13842_v40 = vld [vmem:[%s15833_s4] ss:$0 sm:$0xff] }
0x22ee   :  { %v13156_v16 = vcombine.high %v13130_v48, %v13138_v44  ;;  %v13172_v59 = vcombine.high %v13146_v27, %v13154_v8  ;;  %v13155_v20 = vcombine.low %v13130_v48, %v13138_v44  ;;  %v13171_v15 = vcombine.low %v13146_v27, %v13154_v8  ;;  %15268 = vmatpush3.bf16.msra.mxu0 %v15265_v35 }
0x22ef   :  { %15270 = vmatprep.subr.bf16.mxu0 %v15269_v43 }
0x22f0   :  { %v13170_v2 = vrot.slane %v13156_v16, %v15997_v21  ;;  %v13186_v18 = vrot.slane %v13172_v59, %v15997_v21  ;;  %v13163_v54 = vrot.slane %v13155_v20, %v15997_v21  ;;  %v13179_v23 = vrot.slane %v13171_v15, %v15997_v21  ;;  %v13838_v21 = vld [vmem:[%s18540_s26] ss:$0 sm:$0xff] }
0x22f2   :  { %v13190_v11 = vcombine.high %v13170_v2, %v13186_v18  ;;  %v13188_v51 = vcombine.high %v13163_v54, %v13179_v23  ;;  %v13189_v49 = vcombine.low %v13170_v2, %v13186_v18  ;;  %v13187_v31 = vcombine.low %v13163_v54, %v13179_v23  ;;  %15272 = vmatpush3.bf16.msra.mxu0 %v15269_v43 }
0x22f4   :  { %13200 = vrot.lane.b32.xlu0 %v13190_v11, %s15637_s9  ;;  %13192 = vrot.lane.b32.xlu1 %v13188_v51, %s15629_s22  ;;  %s13442_s22 = sshll.u32 %s15638_s12, 4  ;;  %s13443_s22 = int_to_ptr.vmem [resolvable:$true] %s13442_s22 }
0x22f5   :  { %s15560_s27 = scalar_lea.vmem %s13443_s22, 256  ;;  %p15565_p1 = scmp.lt.s32.totalorder %s13443_s22, %s13443_s22 }
0x22f6   :  { %p15561_p0 = scmp.ne.s32.totalorder %s13443_s22, %s15560_s27  ;;  %p15566_p2 = scmp.lt.s32.totalorder %s15560_s27, %s15560_s27 }
0x22f8   :  { %13196 = vrot.lane.b32.xlu1 %v13189_v49, %s15636_s5  ;;  %p15567_p3 = por %p15566_p2, %p15565_p1 }
0x22fa   :  { %p15568_p4 = pnand %p15567_p3, %p15561_p0 }
0x2366   :  { %v13193_v12 = vpop.permute.xlu1 %13192  ;;  %v13201_v39 = vpop.permute.xlu0 %13200 }
0x2367   :  { %v13203_v9 = vsel %vm1880_vm4, %v13187_v31, %v13193_v12 }
0x236a   :  { %v13197_v62 = vpop.permute.xlu1 %13196 }
0x236b   :  { %v13204_v46 = vsel %vm279_vm1, %v13203_v9, %v13197_v62 }
0x236c   :  { %v13205_v33 = vsel %vm173_vm0, %v13204_v46, %v13201_v39 }
0x236d   :  { %14828 = vmatmul.mubr.msk.f32.vlgmr.msra.gmra.mrb[78].mxu1 %vm4881_vm6, %v13205_v33 }
0x2440   :  { %v14829_v28 = vpop.f32.mrb[78].mxu1 }
0x2441   :  { %v13299_v52 = vadd.f32 %v14829_v28, %v13838_v21  ;;  %v13293_v61 = vpop.f32.mrb[79].mxu1 }
0x2442   :  { %v13294_v36 = vadd.f32 %v13838_v21, %v13293_v61 }
0x2443   :  { %v13307_v25 = vsel %vm4881_vm6, %v13299_v52, 0.0 }
0x2444   :  { %13308 = vadd.xlane.f32.xlu0 %v13307_v25  ;;  %v13304_v55 = vsel %vm4881_vm6, %v13294_v36, 0.0 }
0x2445   :  { %13305 = vadd.xlane.f32.xlu1 %v13304_v55 }
0x24d1   :  { %v13309_v17 = vpop.xlane.xlu0 %13308 }
0x24d2   :  { %v13311_v22 = vmul.f32 0.015625, %v13309_v17  ;;  %v13306_v34 = vpop.xlane.xlu1 %13305 }
0x24d3   :  { %v13310_v50 = vmul.f32 0.015625, %v13306_v34 }
0x24d4   :  { %v13313_v19 = vsub.f32 %v13299_v52, %v13311_v22 }
0x24d5   :  { %v13312_v7 = vsub.f32 %v13294_v36, %v13310_v50 }
0x24d6   :  { %v13315_v26 = vmul.f32 %v13313_v19, %v13313_v19 }
0x24d7   :  { %v13314_v53 = vmul.f32 %v13312_v7, %v13312_v7 }
0x24d8   :  { %v13319_v42 = vsel %vm4881_vm6, %v13315_v26, 0.0 }
0x24d9   :  { %v13316_v4 = vsel %vm4881_vm6, %v13314_v53, 0.0 }
0x24da   :  { %13317 = vadd.xlane.f32.xlu0 %v13316_v4 }
0x24de   :  { %13320 = vadd.xlane.f32.xlu0 %v13319_v42 }
0x2567   :  { %v13318_v6 = vpop.xlane.xlu0 %13317 }
0x2568   :  { %v13322_v29 = vmul.f32 0.015625, %v13318_v6 }
0x256a   :  { %v13324_v63 = vadd.f32 1e-05, %v13322_v29 }
0x256b   :  { %v13321_v30 = vpop.xlane.xlu0 %13320 }
0x256c   :  { %15555 = vrsqrt.f32 %v13324_v63  ;;  %v13323_v58 = vmul.f32 0.015625, %v13321_v30 }
0x256e   :  { %v13325_v0 = vadd.f32 1e-05, %v13323_v58 }
0x2570   :  { %15557 = vrsqrt.f32 %v13325_v0 }
0x2576   :  { %v15556_v13 = vpop.eup %15555 }
0x2577   :  { %v13328_v5 = vmul.f32 %v15556_v13, %v13312_v7 }
0x2579   :  { %v13336_v57 = vmul.f32 %v13841_v3, %v13328_v5 }
0x257a   :  { %v15558_v47 = vpop.eup %15557 }
0x257b   :  { %v13329_v14 = vmul.f32 %v15558_v47, %v13313_v19  ;;  %v13344_v48 = vadd.f32 %v13842_v40, %v13336_v57 }
0x257d   :  { %v13337_v44 = vmul.f32 %v13841_v3, %v13329_v14  ;;  %14846 = vmatprep.mubr.msk.f32.mxu0 %vm4881_vm6, %v13344_v48 }
0x257f   :  { %v13345_v27 = vadd.f32 %v13842_v40, %v13337_v44 }
0x2581   :  { %14847 = vmatmul.mubr.msk.f32.vlgmr.msra.gmra.mrb[84].mxu0 %vm4881_vm6, %v13345_v27 }
0x2654   :  { %v14848_v8 = vpop.f32.mrb[84].mxu0 }
0x2655   :  { %13436 = vst.msk [vmem:[#allocation2 + $0x8] sm:$0xff] %vm4881_vm6, %v14848_v8  ;;  %v13426_v16 = vpop.f32.mrb[85].mxu0 }
0x2656   :  { %13435 = vst.msk [vmem:[#allocation2] sm:$0xff] %vm4881_vm6, %v13426_v16 }
0x2657   :  { %15571 = shalt.err (!%p15568_p4)
}
0x2658   :  { %s15572_s4 = scalar_lea.hbm %s15843_s6, 256 }
0x2659   :  { %p15573_p5 = scmp.ne.s32.totalorder %s15843_s6, %s15572_s4  ;;  %p15576_p6 = scmp.lt.u32.totalorder %s15572_s4, %s15843_s6 }
0x265b   :  { %p15578_p7 = pnand %p15576_p6, %p15573_p5 }
0x265d   :  { %15581 = shalt.err (!%p15578_p7)
}
0x265e   :  { %s15639_s28 = smov 128  }
0x265f   :  { %13448 = dma.vmem_to_hbm [thread:$0]  %s13443_s22, 256, %s15843_s6, [#allocation3], %s15639_s28, %s15639_s28, %s15628_s13  }
0x2660   :  { %15582 = dma.done.wait [#allocation3], 256  }
0x2661   :  { %15583 = vsyncadd [#allocation3], 4294967040 }
0x2662   :  { %13452 = vsyncpa [#allocation3], 1 }

</bundles_post_ra>
